<compile_context>
chip_gen: v7x
topology: tpu7x:2x2x1
jax: 0.10.0
libtpu: 0.0.40
codegen_flags: <defaults>
</compile_context>

<pallas_src>
import functools

import jax
import jax.numpy as jnp
from jax.experimental import pallas as pl
from jax.experimental.pallas import tpu as pltpu

BN_EPS = 1e-5


def _round_up(x, m):
    return x + (-x) % m


# ----------------------------------------------------------------------------
# Fused matmul kernel:  out = act(A @ B + shift)
# Full-K blocks => one MXU pass per (i, j) tile, no accumulator scratch, no
# pl.when phases.  A/B tiles are bf16; accumulation & epilogue are f32.
# ----------------------------------------------------------------------------
def _fused_matmul_kernel(a_ref, b_ref, t_ref, o_ref, *, activation):
    y = jnp.dot(a_ref[...], b_ref[...], preferred_element_type=jnp.float32)
    y = y + t_ref[...]
    if activation == "relu":
        y = jnp.maximum(y, 0.0)
    o_ref[...] = y.astype(o_ref.dtype)


def fused_matmul(a, b, shift, activation="none", out_dtype=jnp.bfloat16):
    """act(a @ b + shift); shift is per-output-column (N,). K is never tiled."""
    M, K = a.shape
    K2, N = b.shape
    assert K == K2

    # M tiling: single block when small (pad only to 16 sublanes), else 256/512-row tiles.
    if M <= 1024:
        Mp = _round_up(M, 16)
        tm = Mp
    elif M <= 4096:
        Mp = _round_up(M, 256)
        tm = 256
    else:
        Mp = _round_up(M, 512)
        tm = 512
    # K: full extent (pad tiny contractions up to 128 lanes for robustness).
    Kp = K if K >= 128 else 128
    # N tiling: lane-dense multiples of 128.
    Np = _round_up(N, 128)
    if Np <= 512:
        tn = Np
    elif Np % 512 == 0:
        tn = 512
    elif Np % 256 == 0:
        tn = 256
    else:
        tn = 128

    a_p = a.astype(jnp.bfloat16)
    if (Mp, Kp) != (M, K):
        a_p = jnp.pad(a_p, ((0, Mp - M), (0, Kp - K)))
    b_p = b.astype(jnp.bfloat16)
    if (Kp, Np) != (K, N):
        b_p = jnp.pad(b_p, ((0, Kp - K), (0, Np - N)))
    t_p = shift.astype(jnp.float32).reshape(1, N)
    if Np != N:
        t_p = jnp.pad(t_p, ((0, 0), (0, Np - N)))

    kernel = functools.partial(_fused_matmul_kernel, activation=activation)
    out = pl.pallas_call(
        kernel,
        out_shape=jax.ShapeDtypeStruct((Mp, Np), out_dtype),
        grid_spec=pltpu.PrefetchScalarGridSpec(
            num_scalar_prefetch=0,
            grid=(Mp // tm, Np // tn),
            in_specs=[
                pl.BlockSpec((tm, Kp), lambda i, j: (i, 0)),
                pl.BlockSpec((Kp, tn), lambda i, j: (0, j)),
                pl.BlockSpec((1, tn), lambda i, j: (0, j)),
            ],
            out_specs=pl.BlockSpec((tm, tn), lambda i, j: (i, j)),
        ),
        compiler_params=pltpu.CompilerParams(
            dimension_semantics=("parallel", "parallel")),
    )(a_p, b_p, t_p)
    if (Mp, Np) != (M, N):
        out = out[:M, :N]
    return out


# ----------------------------------------------------------------------------
# Conv / ConvTranspose via NHWC im2col + fused Pallas matmul
# ----------------------------------------------------------------------------
def _im2col_nhwc(x, k, stride, padding):
    N, H, W, C = x.shape
    if padding:
        x = jnp.pad(x, ((0, 0), (padding, padding), (padding, padding), (0, 0)))
    OH = (H + 2 * padding - k) // stride + 1
    OW = (W + 2 * padding - k) // stride + 1
    cols = []
    for i in range(k):
        for j in range(k):
            cols.append(x[:, i:i + stride * OH:stride, j:j + stride * OW:stride, :])
    # (N, OH, OW, k*k, C): channels stay on the minor axis -> direct reshape, no big transpose.
    cols = jnp.stack(cols, axis=3)
    return cols.reshape(N * OH * OW, k * k * C), OH, OW


def conv2d(x, w, shift, stride, padding, activation, scale=None, out_dtype=jnp.bfloat16):
    # x: NHWC; w: (Cout, Cin, k, k) (PyTorch Conv2d layout). Returns NHWC.
    N = x.shape[0]
    Cout, Cin, k, _ = w.shape
    patches, OH, OW = _im2col_nhwc(x, k, stride, padding)
    # (kh, kw, Cin) ordering of K matches the patch layout above.
    wmat = w.transpose(2, 3, 1, 0).reshape(k * k * Cin, Cout)
    if scale is not None:
        wmat = wmat * scale[None, :]   # fold BN scale into the weights (host-side, tiny)
    out = fused_matmul(patches, wmat, shift, activation, out_dtype)
    return out.reshape(N, OH, OW, Cout)


def conv_transpose2d(x, w, bias, stride, padding, output_padding, activation,
                     out_dtype=jnp.bfloat16):
    # x: NHWC; w: (Cin, Cout, k, k) (PyTorch ConvTranspose2d layout). Returns NHWC.
    N, H, W, C = x.shape
    Cin, Cout, k, _ = w.shape
    Hd, Wd = (H - 1) * stride + 1, (W - 1) * stride + 1
    xd = jnp.zeros((N, Hd, Wd, C), x.dtype).at[:, ::stride, ::stride, :].set(x)
    pad = k - 1 - padding
    xp = jnp.pad(xd, ((0, 0), (pad, pad + output_padding),
                      (pad, pad + output_padding), (0, 0)))
    wf = jnp.flip(w, axis=(2, 3)).transpose(1, 0, 2, 3)  # (Cout, Cin, k, k)
    # TODO(synk): a sub-pixel (phase) decomposition would shrink the k=7 zero-dilated
    # patch matrix ~4x; the bf16 im2col is acceptable at these sizes.
    return conv2d(xp, wf, bias, stride=1, padding=0, activation=activation,
                  out_dtype=out_dtype)


def _bn_fold(bias, gamma, beta, mean, var):
    """Fold (Linear/Conv bias) + BatchNorm(running stats) into per-channel scale/shift."""
    s = gamma / jnp.sqrt(var + BN_EPS)
    t = (bias - mean) * s + beta
    return s, t


# ----------------------------------------------------------------------------
# Parameters (deterministic synthetic init)
# ----------------------------------------------------------------------------
def init_params(key):
    keys = iter(jax.random.split(key, 64))
    p = {}

    def nrm(shape, scale=0.05):
        return scale * jax.random.normal(next(keys), shape, jnp.float32)

    def conv(name, cout, cin, k):
        p[name + "_w"] = nrm((cout, cin, k, k))
        p[name + "_b"] = nrm((cout,), 0.01)

    def bn(name, c):
        p[name + "_g"] = 1.0 + nrm((c,), 0.1)
        p[name + "_b"] = nrm((c,), 0.05)
        p[name + "_m"] = nrm((c,), 0.01)
        p[name + "_v"] = 1.0 + 0.1 * jnp.abs(jax.random.normal(next(keys), (c,), jnp.float32))

    def lin(name, cout, cin):
        p[name + "_w"] = nrm((cout, cin))
        p[name + "_b"] = nrm((cout,), 0.01)

    # Encoder (alt_model): Conv(4->48,k7,s2,p1)+BN, Conv(48->64,k3,s2,p1)+BN, Conv(64->72,k3,s2,p1)+BN
    conv("ec1", 48, 4, 7); bn("bn1", 48)
    conv("ec2", 64, 48, 3); bn("bn2", 64)
    conv("ec3", 72, 64, 3); bn("bn3", 72)
    # fc_mu / fc_logvar: Linear(4608 -> 2) + BatchNorm1d(2)
    lin("fcmu", 2, 4608); bn("bnmu", 2)
    lin("fclv", 2, 4608); bn("bnlv", 2)
    # Decoder (alt_model): Linear(2->256), Linear(256->72*8*8), then 3 ConvTranspose2d
    lin("dfc1", 256, 2)
    lin("dfc2", 72 * 8 * 8, 256)
    p["dct1_w"] = nrm((72, 48, 3, 3)); p["dct1_b"] = nrm((48,), 0.01)
    p["dct2_w"] = nrm((48, 32, 3, 3)); p["dct2_b"] = nrm((32,), 0.01)
    p["dct3_w"] = nrm((32, 4, 7, 7)); p["dct3_b"] = nrm((4,), 0.01)
    return p


# ----------------------------------------------------------------------------
# VAE forward
# ----------------------------------------------------------------------------
def vae_forward(params, x):
    p = params
    N = x.shape[0]

    # NCHW -> NHWC once; run the whole network channels-last in bf16.
    h = x.transpose(0, 2, 3, 1).astype(jnp.bfloat16)

    # ---- Encoder (eval mode: Dropout = identity, BN uses running stats) ----
    s, t = _bn_fold(p["ec1_b"], p["bn1_g"], p["bn1_b"], p["bn1_m"], p["bn1_v"])
    h = conv2d(h, p["ec1_w"], t, 2, 1, "relu", scale=s)                    # (N,30,30,48)
    s, t = _bn_fold(p["ec2_b"], p["bn2_g"], p["bn2_b"], p["bn2_m"], p["bn2_v"])
    h = conv2d(h, p["ec2_w"], t, 2, 1, "relu", scale=s)                    # (N,15,15,64)
    s, t = _bn_fold(p["ec3_b"], p["bn3_g"], p["bn3_b"], p["bn3_m"], p["bn3_v"])
    h = conv2d(h, p["ec3_w"], t, 2, 1, "relu", scale=s)                    # (N,8,8,72)

    # flatten in PyTorch (C, H, W) order (tiny transpose)
    flat = h.transpose(0, 3, 1, 2).reshape(N, -1)                          # (N,4608)

    # fc_mu and fc_logvar fused into one matmul (flat streamed through VMEM once)
    s_mu, t_mu = _bn_fold(p["fcmu_b"], p["bnmu_g"], p["bnmu_b"], p["bnmu_m"], p["bnmu_v"])
    s_lv, t_lv = _bn_fold(p["fclv_b"], p["bnlv_g"], p["bnlv_b"], p["bnlv_m"], p["bnlv_v"])
    w_ml = jnp.concatenate([p["fcmu_w"], p["fclv_w"]], axis=0).T           # (4608, 4)
    w_ml = w_ml * jnp.concatenate([s_mu, s_lv])[None, :]
    t_ml = jnp.concatenate([t_mu, t_lv])
    ml = fused_matmul(flat, w_ml, t_ml, "none", out_dtype=jnp.float32)     # (N,4)
    mu, logvar = ml[:, :2], ml[:, 2:]

    # latent_sample: eval mode returns mu.
    latent = mu

    # ---- Decoder ----
    h = fused_matmul(latent, p["dfc1_w"].T, p["dfc1_b"], "relu")           # (N,256)
    # nn.ReLU() at the head of the alt decoder commutes with Reshape -> fused here.
    h = fused_matmul(h, p["dfc2_w"].T, p["dfc2_b"], "relu")                # (N,4608)
    h = h.reshape(N, 72, 8, 8).transpose(0, 2, 3, 1)                       # Reshape -> NHWC (N,8,8,72)
    h = conv_transpose2d(h, p["dct1_w"], p["dct1_b"], 2, 1, 0, "relu")     # (N,15,15,48)
    h = conv_transpose2d(h, p["dct2_w"], p["dct2_b"], 2, 1, 0, "relu")     # (N,29,29,32)
    xr = conv_transpose2d(h, p["dct3_w"], p["dct3_b"], 2, 0, 1, "none",
                          out_dtype=jnp.float32)                           # (N,64,64,4)
    x_recon = xr.transpose(0, 3, 1, 2)                                     # back to NCHW
    return x_recon, mu, logvar


if __name__ == "__main__":
    key = jax.random.PRNGKey(0)
    kx, kp = jax.random.split(key)
    params = init_params(kp)
    x = jax.random.normal(kx, (2, 4, 64, 64), jnp.float32)  # NCHW, batch=2, channels=4

    x_recon, mu, logvar = jax.jit(vae_forward)(params, x)
    jax.block_until_ready((x_recon, mu, logvar))

    assert x_recon.shape == (2, 4, 64, 64)
    assert mu.shape == (2, 2) and logvar.shape == (2, 2)
    assert jnp.all(jnp.isfinite(x_recon)) and jnp.all(jnp.isfinite(mu)) and jnp.all(jnp.isfinite(logvar))
    print("KERNEL_OK")
</pallas_src>

<mosaic_0001>
module attributes {stable_mosaic.version = 11 : i64} {
  func.func @_fused_matmul_kernel(%arg0: i32, %arg1: i32, %arg2: memref<256x196xbf16, #tpu.memory_space<vmem>>, %arg3: memref<196x128xbf16, #tpu.memory_space<vmem>>, %arg4: memref<1x128xf32, #tpu.memory_space<vmem>>, %arg5: memref<256x128xbf16, #tpu.memory_space<vmem>>) attributes {dimension_semantics = [#tpu.dimension_semantics<parallel>, #tpu.dimension_semantics<parallel>], iteration_bounds = array<i64: 8, 1>, scalar_prefetch = 0 : i64, scratch_operands = 0 : i64, tpu.core_type = #tpu.core_type<tc>, window_params = [{transform_indices = @transform_0, window_bounds = array<i64: 256, 196>}, {transform_indices = @transform_1, window_bounds = array<i64: 196, 128>}, {transform_indices = @transform_2, window_bounds = array<i64: 1, 128>}, {transform_indices = @transform_3, window_bounds = array<i64: 256, 128>}]} {
    %c0 = arith.constant 0 : index
    %c0_0 = arith.constant 0 : index
    %0 = vector.load %arg2[%c0, %c0_0] : memref<256x196xbf16, #tpu.memory_space<vmem>>, vector<256x196xbf16>
    %c0_1 = arith.constant 0 : index
    %c0_2 = arith.constant 0 : index
    %1 = vector.load %arg3[%c0_1, %c0_2] : memref<196x128xbf16, #tpu.memory_space<vmem>>, vector<196x128xbf16>
    %cst = arith.constant dense<0.000000e+00> : vector<256x128xf32>
    %2 = tpu.matmul %0, %1, %cst {dimension_numbers = #tpu.dot_dimension_numbers<[1], [0], [0], [1], [0, 0, 1, 1], [], []>} : vector<256x196xbf16>, vector<196x128xbf16>, vector<256x128xf32> -> vector<256x128xf32>
    %c0_3 = arith.constant 0 : index
    %c0_4 = arith.constant 0 : index
    %3 = vector.load %arg4[%c0_3, %c0_4] : memref<1x128xf32, #tpu.memory_space<vmem>>, vector<1x128xf32>
    %4 = vector.broadcast %3 : vector<1x128xf32> to vector<256x128xf32>
    %5 = arith.addf %2, %4 : vector<256x128xf32>
    %cst_5 = arith.constant 0.000000e+00 : f32
    %6 = vector.broadcast %cst_5 : f32 to vector<256x128xf32>
    %7 = arith.maximumf %5, %6 : vector<256x128xf32>
    %8 = arith.truncf %7 : vector<256x128xf32> to vector<256x128xbf16>
    %c0_6 = arith.constant 0 : index
    %c0_7 = arith.constant 0 : index
    %9 = vector.load %arg5[%c0_6, %c0_7] : memref<256x128xbf16, #tpu.memory_space<vmem>>, vector<256x128xbf16>
    tpu.vector_store %arg5[%c0_6, %c0_7], %8 {strides = array<i32>} : memref<256x128xbf16, #tpu.memory_space<vmem>>, vector<256x128xbf16>,
    return
  }
  func.func @transform_0(%arg0: i32, %arg1: i32) -> (i32, i32) {
    %c0_i32 = arith.constant 0 : i32
    %c0_i32_0 = arith.constant 0 : i32
    return %arg0, %c0_i32 : i32, i32
  }
  func.func @transform_1(%arg0: i32, %arg1: i32) -> (i32, i32) {
    %c0_i32 = arith.constant 0 : i32
    %c0_i32_0 = arith.constant 0 : i32
    return %c0_i32, %arg1 : i32, i32
  }
  func.func @transform_2(%arg0: i32, %arg1: i32) -> (i32, i32) {
    %c0_i32 = arith.constant 0 : i32
    %c0_i32_0 = arith.constant 0 : i32
    return %c0_i32, %arg1 : i32, i32
  }
  func.func @transform_3(%arg0: i32, %arg1: i32) -> (i32, i32) {
    %c0_i32 = arith.constant 0 : i32
    return %arg0, %arg1 : i32, i32
  }
}

module attributes {stable_mosaic.version = 11 : i64} {
  func.func @_fused_matmul_kernel(%arg0: i32, %arg1: i32, %arg2: memref<464x432xbf16, #tpu.memory_space<vmem>>, %arg3: memref<432x128xbf16, #tpu.memory_space<vmem>>, %arg4: memref<1x128xf32, #tpu.memory_space<vmem>>, %arg5: memref<464x128xbf16, #tpu.memory_space<vmem>>) attributes {dimension_semantics = [#tpu.dimension_semantics<parallel>, #tpu.dimension_semantics<parallel>], iteration_bounds = array<i64: 1, 1>, scalar_prefetch = 0 : i64, scratch_operands = 0 : i64, tpu.core_type = #tpu.core_type<tc>, window_params = [{transform_indices = @transform_0, window_bounds = array<i64: 464, 432>}, {transform_indices = @transform_1, window_bounds = array<i64: 432, 128>}, {transform_indices = @transform_2, window_bounds = array<i64: 1, 128>}, {transform_indices = @transform_3, window_bounds = array<i64: 464, 128>}]} {
    %c0 = arith.constant 0 : index
    %c0_0 = arith.constant 0 : index
    %0 = vector.load %arg2[%c0, %c0_0] : memref<464x432xbf16, #tpu.memory_space<vmem>>, vector<464x432xbf16>
    %c0_1 = arith.constant 0 : index
    %c0_2 = arith.constant 0 : index
    %1 = vector.load %arg3[%c0_1, %c0_2] : memref<432x128xbf16, #tpu.memory_space<vmem>>, vector<432x128xbf16>
    %cst = arith.constant dense<0.000000e+00> : vector<464x128xf32>
    %2 = tpu.matmul %0, %1, %cst {dimension_numbers = #tpu.dot_dimension_numbers<[1], [0], [0], [1], [0, 0, 1, 1], [], []>} : vector<464x432xbf16>, vector<432x128xbf16>, vector<464x128xf32> -> vector<464x128xf32>
    %c0_3 = arith.constant 0 : index
    %c0_4 = arith.constant 0 : index
    %3 = vector.load %arg4[%c0_3, %c0_4] : memref<1x128xf32, #tpu.memory_space<vmem>>, vector<1x128xf32>
    %4 = vector.broadcast %3 : vector<1x128xf32> to vector<464x128xf32>
    %5 = arith.addf %2, %4 : vector<464x128xf32>
    %cst_5 = arith.constant 0.000000e+00 : f32
    %6 = vector.broadcast %cst_5 : f32 to vector<464x128xf32>
    %7 = arith.maximumf %5, %6 : vector<464x128xf32>
    %8 = arith.truncf %7 : vector<464x128xf32> to vector<464x128xbf16>
    %c0_6 = arith.constant 0 : index
    %c0_7 = arith.constant 0 : index
    %9 = vector.load %arg5[%c0_6, %c0_7] : memref<464x128xbf16, #tpu.memory_space<vmem>>, vector<464x128xbf16>
    tpu.vector_store %arg5[%c0_6, %c0_7], %8 {strides = array<i32>} : memref<464x128xbf16, #tpu.memory_space<vmem>>, vector<464x128xbf16>,
    return
  }
  func.func @transform_0(%arg0: i32, %arg1: i32) -> (i32, i32) {
    %c0_i32 = arith.constant 0 : i32
    %c0_i32_0 = arith.constant 0 : i32
    return %arg0, %c0_i32 : i32, i32
  }
  func.func @transform_1(%arg0: i32, %arg1: i32) -> (i32, i32) {
    %c0_i32 = arith.constant 0 : i32
    %c0_i32_0 = arith.constant 0 : i32
    return %c0_i32, %arg1 : i32, i32
  }
  func.func @transform_2(%arg0: i32, %arg1: i32) -> (i32, i32) {
    %c0_i32 = arith.constant 0 : i32
    %c0_i32_0 = arith.constant 0 : i32
    return %c0_i32, %arg1 : i32, i32
  }
  func.func @transform_3(%arg0: i32, %arg1: i32) -> (i32, i32) {
    %c0_i32 = arith.constant 0 : i32
    return %arg0, %arg1 : i32, i32
  }
}

module attributes {stable_mosaic.version = 11 : i64} {
  func.func @_fused_matmul_kernel(%arg0: i32, %arg1: i32, %arg2: memref<128x576xbf16, #tpu.memory_space<vmem>>, %arg3: memref<576x128xbf16, #tpu.memory_space<vmem>>, %arg4: memref<1x128xf32, #tpu.memory_space<vmem>>, %arg5: memref<128x128xbf16, #tpu.memory_space<vmem>>) attributes {dimension_semantics = [#tpu.dimension_semantics<parallel>, #tpu.dimension_semantics<parallel>], iteration_bounds = array<i64: 1, 1>, scalar_prefetch = 0 : i64, scratch_operands = 0 : i64, tpu.core_type = #tpu.core_type<tc>, window_params = [{transform_indices = @transform_0, window_bounds = array<i64: 128, 576>}, {transform_indices = @transform_1, window_bounds = array<i64: 576, 128>}, {transform_indices = @transform_2, window_bounds = array<i64: 1, 128>}, {transform_indices = @transform_3, window_bounds = array<i64: 128, 128>}]} {
    %c0 = arith.constant 0 : index
    %c0_0 = arith.constant 0 : index
    %0 = vector.load %arg2[%c0, %c0_0] : memref<128x576xbf16, #tpu.memory_space<vmem>>, vector<128x576xbf16>
    %c0_1 = arith.constant 0 : index
    %c0_2 = arith.constant 0 : index
    %1 = vector.load %arg3[%c0_1, %c0_2] : memref<576x128xbf16, #tpu.memory_space<vmem>>, vector<576x128xbf16>
    %cst = arith.constant dense<0.000000e+00> : vector<128x128xf32>
    %2 = tpu.matmul %0, %1, %cst {dimension_numbers = #tpu.dot_dimension_numbers<[1], [0], [0], [1], [0, 0, 1, 1], [], []>} : vector<128x576xbf16>, vector<576x128xbf16>, vector<128x128xf32> -> vector<128x128xf32>
    %c0_3 = arith.constant 0 : index
    %c0_4 = arith.constant 0 : index
    %3 = vector.load %arg4[%c0_3, %c0_4] : memref<1x128xf32, #tpu.memory_space<vmem>>, vector<1x128xf32>
    %4 = vector.broadcast %3 : vector<1x128xf32> to vector<128x128xf32>
    %5 = arith.addf %2, %4 : vector<128x128xf32>
    %cst_5 = arith.constant 0.000000e+00 : f32
    %6 = vector.broadcast %cst_5 : f32 to vector<128x128xf32>
    %7 = arith.maximumf %5, %6 : vector<128x128xf32>
    %8 = arith.truncf %7 : vector<128x128xf32> to vector<128x128xbf16>
    %c0_6 = arith.constant 0 : index
    %c0_7 = arith.constant 0 : index
    %9 = vector.load %arg5[%c0_6, %c0_7] : memref<128x128xbf16, #tpu.memory_space<vmem>>, vector<128x128xbf16>
    tpu.vector_store %arg5[%c0_6, %c0_7], %8 {strides = array<i32>} : memref<128x128xbf16, #tpu.memory_space<vmem>>, vector<128x128xbf16>,
    return
  }
  func.func @transform_0(%arg0: i32, %arg1: i32) -> (i32, i32) {
    %c0_i32 = arith.constant 0 : i32
    %c0_i32_0 = arith.constant 0 : i32
    return %arg0, %c0_i32 : i32, i32
  }
  func.func @transform_1(%arg0: i32, %arg1: i32) -> (i32, i32) {
    %c0_i32 = arith.constant 0 : i32
    %c0_i32_0 = arith.constant 0 : i32
    return %c0_i32, %arg1 : i32, i32
  }
  func.func @transform_2(%arg0: i32, %arg1: i32) -> (i32, i32) {
    %c0_i32 = arith.constant 0 : i32
    %c0_i32_0 = arith.constant 0 : i32
    return %c0_i32, %arg1 : i32, i32
  }
  func.func @transform_3(%arg0: i32, %arg1: i32) -> (i32, i32) {
    %c0_i32 = arith.constant 0 : i32
    return %arg0, %arg1 : i32, i32
  }
}

module attributes {stable_mosaic.version = 11 : i64} {
  func.func @_fused_matmul_kernel(%arg0: i32, %arg1: i32, %arg2: memref<16x4608xbf16, #tpu.memory_space<vmem>>, %arg3: memref<4608x128xbf16, #tpu.memory_space<vmem>>, %arg4: memref<1x128xf32, #tpu.memory_space<vmem>>, %arg5: memref<16x128xf32, #tpu.memory_space<vmem>>) attributes {dimension_semantics = [#tpu.dimension_semantics<parallel>, #tpu.dimension_semantics<parallel>], iteration_bounds = array<i64: 1, 1>, scalar_prefetch = 0 : i64, scratch_operands = 0 : i64, tpu.core_type = #tpu.core_type<tc>, window_params = [{transform_indices = @transform_0, window_bounds = array<i64: 16, 4608>}, {transform_indices = @transform_1, window_bounds = array<i64: 4608, 128>}, {transform_indices = @transform_2, window_bounds = array<i64: 1, 128>}, {transform_indices = @transform_3, window_bounds = array<i64: 16, 128>}]} {
    %c0 = arith.constant 0 : index
    %c0_0 = arith.constant 0 : index
    %0 = vector.load %arg2[%c0, %c0_0] : memref<16x4608xbf16, #tpu.memory_space<vmem>>, vector<16x4608xbf16>
    %c0_1 = arith.constant 0 : index
    %c0_2 = arith.constant 0 : index
    %1 = vector.load %arg3[%c0_1, %c0_2] : memref<4608x128xbf16, #tpu.memory_space<vmem>>, vector<4608x128xbf16>
    %cst = arith.constant dense<0.000000e+00> : vector<16x128xf32>
    %2 = tpu.matmul %0, %1, %cst {dimension_numbers = #tpu.dot_dimension_numbers<[1], [0], [0], [1], [0, 0, 1, 1], [], []>} : vector<16x4608xbf16>, vector<4608x128xbf16>, vector<16x128xf32> -> vector<16x128xf32>
    %c0_3 = arith.constant 0 : index
    %c0_4 = arith.constant 0 : index
    %3 = vector.load %arg4[%c0_3, %c0_4] : memref<1x128xf32, #tpu.memory_space<vmem>>, vector<1x128xf32>
    %4 = vector.broadcast %3 : vector<1x128xf32> to vector<16x128xf32>
    %5 = arith.addf %2, %4 : vector<16x128xf32>
    %c0_5 = arith.constant 0 : index
    %c0_6 = arith.constant 0 : index
    %6 = vector.load %arg5[%c0_5, %c0_6] : memref<16x128xf32, #tpu.memory_space<vmem>>, vector<16x128xf32>
    tpu.vector_store %arg5[%c0_5, %c0_6], %5 {strides = array<i32>} : memref<16x128xf32, #tpu.memory_space<vmem>>, vector<16x128xf32>,
    return
  }
  func.func @transform_0(%arg0: i32, %arg1: i32) -> (i32, i32) {
    %c0_i32 = arith.constant 0 : i32
    %c0_i32_0 = arith.constant 0 : i32
    return %arg0, %c0_i32 : i32, i32
  }
  func.func @transform_1(%arg0: i32, %arg1: i32) -> (i32, i32) {
    %c0_i32 = arith.constant 0 : i32
    %c0_i32_0 = arith.constant 0 : i32
    return %c0_i32, %arg1 : i32, i32
  }
  func.func @transform_2(%arg0: i32, %arg1: i32) -> (i32, i32) {
    %c0_i32 = arith.constant 0 : i32
    %c0_i32_0 = arith.constant 0 : i32
    return %c0_i32, %arg1 : i32, i32
  }
  func.func @transform_3(%arg0: i32, %arg1: i32) -> (i32, i32) {
    %c0_i32 = arith.constant 0 : i32
    return %arg0, %arg1 : i32, i32
  }
}

module attributes {stable_mosaic.version = 11 : i64} {
  func.func @_fused_matmul_kernel(%arg0: i32, %arg1: i32, %arg2: memref<16x128xbf16, #tpu.memory_space<vmem>>, %arg3: memref<128x256xbf16, #tpu.memory_space<vmem>>, %arg4: memref<1x256xf32, #tpu.memory_space<vmem>>, %arg5: memref<16x256xbf16, #tpu.memory_space<vmem>>) attributes {dimension_semantics = [#tpu.dimension_semantics<parallel>, #tpu.dimension_semantics<parallel>], iteration_bounds = array<i64: 1, 1>, scalar_prefetch = 0 : i64, scratch_operands = 0 : i64, tpu.core_type = #tpu.core_type<tc>, window_params = [{transform_indices = @transform_0, window_bounds = array<i64: 16, 128>}, {transform_indices = @transform_1, window_bounds = array<i64: 128, 256>}, {transform_indices = @transform_2, window_bounds = array<i64: 1, 256>}, {transform_indices = @transform_3, window_bounds = array<i64: 16, 256>}]} {
    %c0 = arith.constant 0 : index
    %c0_0 = arith.constant 0 : index
    %0 = vector.load %arg2[%c0, %c0_0] : memref<16x128xbf16, #tpu.memory_space<vmem>>, vector<16x128xbf16>
    %c0_1 = arith.constant 0 : index
    %c0_2 = arith.constant 0 : index
    %1 = vector.load %arg3[%c0_1, %c0_2] : memref<128x256xbf16, #tpu.memory_space<vmem>>, vector<128x256xbf16>
    %cst = arith.constant dense<0.000000e+00> : vector<16x256xf32>
    %2 = tpu.matmul %0, %1, %cst {dimension_numbers = #tpu.dot_dimension_numbers<[1], [0], [0], [1], [0, 0, 1, 1], [], []>} : vector<16x128xbf16>, vector<128x256xbf16>, vector<16x256xf32> -> vector<16x256xf32>
    %c0_3 = arith.constant 0 : index
    %c0_4 = arith.constant 0 : index
    %3 = vector.load %arg4[%c0_3, %c0_4] : memref<1x256xf32, #tpu.memory_space<vmem>>, vector<1x256xf32>
    %4 = vector.broadcast %3 : vector<1x256xf32> to vector<16x256xf32>
    %5 = arith.addf %2, %4 : vector<16x256xf32>
    %cst_5 = arith.constant 0.000000e+00 : f32
    %6 = vector.broadcast %cst_5 : f32 to vector<16x256xf32>
    %7 = arith.maximumf %5, %6 : vector<16x256xf32>
    %8 = arith.truncf %7 : vector<16x256xf32> to vector<16x256xbf16>
    %c0_6 = arith.constant 0 : index
    %c0_7 = arith.constant 0 : index
    %9 = vector.load %arg5[%c0_6, %c0_7] : memref<16x256xbf16, #tpu.memory_space<vmem>>, vector<16x256xbf16>
    tpu.vector_store %arg5[%c0_6, %c0_7], %8 {strides = array<i32>} : memref<16x256xbf16, #tpu.memory_space<vmem>>, vector<16x256xbf16>,
    return
  }
  func.func @transform_0(%arg0: i32, %arg1: i32) -> (i32, i32) {
    %c0_i32 = arith.constant 0 : i32
    %c0_i32_0 = arith.constant 0 : i32
    return %arg0, %c0_i32 : i32, i32
  }
  func.func @transform_1(%arg0: i32, %arg1: i32) -> (i32, i32) {
    %c0_i32 = arith.constant 0 : i32
    %c0_i32_0 = arith.constant 0 : i32
    return %c0_i32, %arg1 : i32, i32
  }
  func.func @transform_2(%arg0: i32, %arg1: i32) -> (i32, i32) {
    %c0_i32 = arith.constant 0 : i32
    %c0_i32_0 = arith.constant 0 : i32
    return %c0_i32, %arg1 : i32, i32
  }
  func.func @transform_3(%arg0: i32, %arg1: i32) -> (i32, i32) {
    %c0_i32 = arith.constant 0 : i32
    return %arg0, %arg1 : i32, i32
  }
}

module attributes {stable_mosaic.version = 11 : i64} {
  func.func @_fused_matmul_kernel(%arg0: i32, %arg1: i32, %arg2: memref<16x256xbf16, #tpu.memory_space<vmem>>, %arg3: memref<256x512xbf16, #tpu.memory_space<vmem>>, %arg4: memref<1x512xf32, #tpu.memory_space<vmem>>, %arg5: memref<16x512xbf16, #tpu.memory_space<vmem>>) attributes {dimension_semantics = [#tpu.dimension_semantics<parallel>, #tpu.dimension_semantics<parallel>], iteration_bounds = array<i64: 1, 9>, scalar_prefetch = 0 : i64, scratch_operands = 0 : i64, tpu.core_type = #tpu.core_type<tc>, window_params = [{transform_indices = @transform_0, window_bounds = array<i64: 16, 256>}, {transform_indices = @transform_1, window_bounds = array<i64: 256, 512>}, {transform_indices = @transform_2, window_bounds = array<i64: 1, 512>}, {transform_indices = @transform_3, window_bounds = array<i64: 16, 512>}]} {
    %c0 = arith.constant 0 : index
    %c0_0 = arith.constant 0 : index
    %0 = vector.load %arg2[%c0, %c0_0] : memref<16x256xbf16, #tpu.memory_space<vmem>>, vector<16x256xbf16>
    %c0_1 = arith.constant 0 : index
    %c0_2 = arith.constant 0 : index
    %1 = vector.load %arg3[%c0_1, %c0_2] : memref<256x512xbf16, #tpu.memory_space<vmem>>, vector<256x512xbf16>
    %cst = arith.constant dense<0.000000e+00> : vector<16x512xf32>
    %2 = tpu.matmul %0, %1, %cst {dimension_numbers = #tpu.dot_dimension_numbers<[1], [0], [0], [1], [0, 0, 1, 1], [], []>} : vector<16x256xbf16>, vector<256x512xbf16>, vector<16x512xf32> -> vector<16x512xf32>
    %c0_3 = arith.constant 0 : index
    %c0_4 = arith.constant 0 : index
    %3 = vector.load %arg4[%c0_3, %c0_4] : memref<1x512xf32, #tpu.memory_space<vmem>>, vector<1x512xf32>
    %4 = vector.broadcast %3 : vector<1x512xf32> to vector<16x512xf32>
    %5 = arith.addf %2, %4 : vector<16x512xf32>
    %cst_5 = arith.constant 0.000000e+00 : f32
    %6 = vector.broadcast %cst_5 : f32 to vector<16x512xf32>
    %7 = arith.maximumf %5, %6 : vector<16x512xf32>
    %8 = arith.truncf %7 : vector<16x512xf32> to vector<16x512xbf16>
    %c0_6 = arith.constant 0 : index
    %c0_7 = arith.constant 0 : index
    %9 = vector.load %arg5[%c0_6, %c0_7] : memref<16x512xbf16, #tpu.memory_space<vmem>>, vector<16x512xbf16>
    tpu.vector_store %arg5[%c0_6, %c0_7], %8 {strides = array<i32>} : memref<16x512xbf16, #tpu.memory_space<vmem>>, vector<16x512xbf16>,
    return
  }
  func.func @transform_0(%arg0: i32, %arg1: i32) -> (i32, i32) {
    %c0_i32 = arith.constant 0 : i32
    %c0_i32_0 = arith.constant 0 : i32
    return %arg0, %c0_i32 : i32, i32
  }
  func.func @transform_1(%arg0: i32, %arg1: i32) -> (i32, i32) {
    %c0_i32 = arith.constant 0 : i32
    %c0_i32_0 = arith.constant 0 : i32
    return %c0_i32, %arg1 : i32, i32
  }
  func.func @transform_2(%arg0: i32, %arg1: i32) -> (i32, i32) {
    %c0_i32 = arith.constant 0 : i32
    %c0_i32_0 = arith.constant 0 : i32
    return %c0_i32, %arg1 : i32, i32
  }
  func.func @transform_3(%arg0: i32, %arg1: i32) -> (i32, i32) {
    %c0_i32 = arith.constant 0 : i32
    return %arg0, %arg1 : i32, i32
  }
}

module attributes {stable_mosaic.version = 11 : i64} {
  func.func @_fused_matmul_kernel(%arg0: i32, %arg1: i32, %arg2: memref<464x648xbf16, #tpu.memory_space<vmem>>, %arg3: memref<648x128xbf16, #tpu.memory_space<vmem>>, %arg4: memref<1x128xf32, #tpu.memory_space<vmem>>, %arg5: memref<464x128xbf16, #tpu.memory_space<vmem>>) attributes {dimension_semantics = [#tpu.dimension_semantics<parallel>, #tpu.dimension_semantics<parallel>], iteration_bounds = array<i64: 1, 1>, scalar_prefetch = 0 : i64, scratch_operands = 0 : i64, tpu.core_type = #tpu.core_type<tc>, window_params = [{transform_indices = @transform_0, window_bounds = array<i64: 464, 648>}, {transform_indices = @transform_1, window_bounds = array<i64: 648, 128>}, {transform_indices = @transform_2, window_bounds = array<i64: 1, 128>}, {transform_indices = @transform_3, window_bounds = array<i64: 464, 128>}]} {
    %c0 = arith.constant 0 : index
    %c0_0 = arith.constant 0 : index
    %0 = vector.load %arg2[%c0, %c0_0] : memref<464x648xbf16, #tpu.memory_space<vmem>>, vector<464x648xbf16>
    %c0_1 = arith.constant 0 : index
    %c0_2 = arith.constant 0 : index
    %1 = vector.load %arg3[%c0_1, %c0_2] : memref<648x128xbf16, #tpu.memory_space<vmem>>, vector<648x128xbf16>
    %cst = arith.constant dense<0.000000e+00> : vector<464x128xf32>
    %2 = tpu.matmul %0, %1, %cst {dimension_numbers = #tpu.dot_dimension_numbers<[1], [0], [0], [1], [0, 0, 1, 1], [], []>} : vector<464x648xbf16>, vector<648x128xbf16>, vector<464x128xf32> -> vector<464x128xf32>
    %c0_3 = arith.constant 0 : index
    %c0_4 = arith.constant 0 : index
    %3 = vector.load %arg4[%c0_3, %c0_4] : memref<1x128xf32, #tpu.memory_space<vmem>>, vector<1x128xf32>
    %4 = vector.broadcast %3 : vector<1x128xf32> to vector<464x128xf32>
    %5 = arith.addf %2, %4 : vector<464x128xf32>
    %cst_5 = arith.constant 0.000000e+00 : f32
    %6 = vector.broadcast %cst_5 : f32 to vector<464x128xf32>
    %7 = arith.maximumf %5, %6 : vector<464x128xf32>
    %8 = arith.truncf %7 : vector<464x128xf32> to vector<464x128xbf16>
    %c0_6 = arith.constant 0 : index
    %c0_7 = arith.constant 0 : index
    %9 = vector.load %arg5[%c0_6, %c0_7] : memref<464x128xbf16, #tpu.memory_space<vmem>>, vector<464x128xbf16>
    tpu.vector_store %arg5[%c0_6, %c0_7], %8 {strides = array<i32>} : memref<464x128xbf16, #tpu.memory_space<vmem>>, vector<464x128xbf16>,
    return
  }
  func.func @transform_0(%arg0: i32, %arg1: i32) -> (i32, i32) {
    %c0_i32 = arith.constant 0 : i32
    %c0_i32_0 = arith.constant 0 : i32
    return %arg0, %c0_i32 : i32, i32
  }
  func.func @transform_1(%arg0: i32, %arg1: i32) -> (i32, i32) {
    %c0_i32 = arith.constant 0 : i32
    %c0_i32_0 = arith.constant 0 : i32
    return %c0_i32, %arg1 : i32, i32
  }
  func.func @transform_2(%arg0: i32, %arg1: i32) -> (i32, i32) {
    %c0_i32 = arith.constant 0 : i32
    %c0_i32_0 = arith.constant 0 : i32
    return %c0_i32, %arg1 : i32, i32
  }
  func.func @transform_3(%arg0: i32, %arg1: i32) -> (i32, i32) {
    %c0_i32 = arith.constant 0 : i32
    return %arg0, %arg1 : i32, i32
  }
}

module attributes {stable_mosaic.version = 11 : i64} {
  func.func @_fused_matmul_kernel(%arg0: i32, %arg1: i32, %arg2: memref<256x432xbf16, #tpu.memory_space<vmem>>, %arg3: memref<432x128xbf16, #tpu.memory_space<vmem>>, %arg4: memref<1x128xf32, #tpu.memory_space<vmem>>, %arg5: memref<256x128xbf16, #tpu.memory_space<vmem>>) attributes {dimension_semantics = [#tpu.dimension_semantics<parallel>, #tpu.dimension_semantics<parallel>], iteration_bounds = array<i64: 7, 1>, scalar_prefetch = 0 : i64, scratch_operands = 0 : i64, tpu.core_type = #tpu.core_type<tc>, window_params = [{transform_indices = @transform_0, window_bounds = array<i64: 256, 432>}, {transform_indices = @transform_1, window_bounds = array<i64: 432, 128>}, {transform_indices = @transform_2, window_bounds = array<i64: 1, 128>}, {transform_indices = @transform_3, window_bounds = array<i64: 256, 128>}]} {
    %c0 = arith.constant 0 : index
    %c0_0 = arith.constant 0 : index
    %0 = vector.load %arg2[%c0, %c0_0] : memref<256x432xbf16, #tpu.memory_space<vmem>>, vector<256x432xbf16>
    %c0_1 = arith.constant 0 : index
    %c0_2 = arith.constant 0 : index
    %1 = vector.load %arg3[%c0_1, %c0_2] : memref<432x128xbf16, #tpu.memory_space<vmem>>, vector<432x128xbf16>
    %cst = arith.constant dense<0.000000e+00> : vector<256x128xf32>
    %2 = tpu.matmul %0, %1, %cst {dimension_numbers = #tpu.dot_dimension_numbers<[1], [0], [0], [1], [0, 0, 1, 1], [], []>} : vector<256x432xbf16>, vector<432x128xbf16>, vector<256x128xf32> -> vector<256x128xf32>
    %c0_3 = arith.constant 0 : index
    %c0_4 = arith.constant 0 : index
    %3 = vector.load %arg4[%c0_3, %c0_4] : memref<1x128xf32, #tpu.memory_space<vmem>>, vector<1x128xf32>
    %4 = vector.broadcast %3 : vector<1x128xf32> to vector<256x128xf32>
    %5 = arith.addf %2, %4 : vector<256x128xf32>
    %cst_5 = arith.constant 0.000000e+00 : f32
    %6 = vector.broadcast %cst_5 : f32 to vector<256x128xf32>
    %7 = arith.maximumf %5, %6 : vector<256x128xf32>
    %8 = arith.truncf %7 : vector<256x128xf32> to vector<256x128xbf16>
    %c0_6 = arith.constant 0 : index
    %c0_7 = arith.constant 0 : index
    %9 = vector.load %arg5[%c0_6, %c0_7] : memref<256x128xbf16, #tpu.memory_space<vmem>>, vector<256x128xbf16>
    tpu.vector_store %arg5[%c0_6, %c0_7], %8 {strides = array<i32>} : memref<256x128xbf16, #tpu.memory_space<vmem>>, vector<256x128xbf16>,
    return
  }
  func.func @transform_0(%arg0: i32, %arg1: i32) -> (i32, i32) {
    %c0_i32 = arith.constant 0 : i32
    %c0_i32_0 = arith.constant 0 : i32
    return %arg0, %c0_i32 : i32, i32
  }
  func.func @transform_1(%arg0: i32, %arg1: i32) -> (i32, i32) {
    %c0_i32 = arith.constant 0 : i32
    %c0_i32_0 = arith.constant 0 : i32
    return %c0_i32, %arg1 : i32, i32
  }
  func.func @transform_2(%arg0: i32, %arg1: i32) -> (i32, i32) {
    %c0_i32 = arith.constant 0 : i32
    %c0_i32_0 = arith.constant 0 : i32
    return %c0_i32, %arg1 : i32, i32
  }
  func.func @transform_3(%arg0: i32, %arg1: i32) -> (i32, i32) {
    %c0_i32 = arith.constant 0 : i32
    return %arg0, %arg1 : i32, i32
  }
}

module attributes {stable_mosaic.version = 11 : i64} {
  func.func @_fused_matmul_kernel(%arg0: i32, %arg1: i32, %arg2: memref<512x1568xbf16, #tpu.memory_space<vmem>>, %arg3: memref<1568x128xbf16, #tpu.memory_space<vmem>>, %arg4: memref<1x128xf32, #tpu.memory_space<vmem>>, %arg5: memref<512x128xf32, #tpu.memory_space<vmem>>) attributes {dimension_semantics = [#tpu.dimension_semantics<parallel>, #tpu.dimension_semantics<parallel>], iteration_bounds = array<i64: 16, 1>, scalar_prefetch = 0 : i64, scratch_operands = 0 : i64, tpu.core_type = #tpu.core_type<tc>, window_params = [{transform_indices = @transform_0, window_bounds = array<i64: 512, 1568>}, {transform_indices = @transform_1, window_bounds = array<i64: 1568, 128>}, {transform_indices = @transform_2, window_bounds = array<i64: 1, 128>}, {transform_indices = @transform_3, window_bounds = array<i64: 512, 128>}]} {
    %c0 = arith.constant 0 : index
    %c0_0 = arith.constant 0 : index
    %0 = vector.load %arg2[%c0, %c0_0] : memref<512x1568xbf16, #tpu.memory_space<vmem>>, vector<512x1568xbf16>
    %c0_1 = arith.constant 0 : index
    %c0_2 = arith.constant 0 : index
    %1 = vector.load %arg3[%c0_1, %c0_2] : memref<1568x128xbf16, #tpu.memory_space<vmem>>, vector<1568x128xbf16>
    %cst = arith.constant dense<0.000000e+00> : vector<512x128xf32>
    %2 = tpu.matmul %0, %1, %cst {dimension_numbers = #tpu.dot_dimension_numbers<[1], [0], [0], [1], [0, 0, 1, 1], [], []>} : vector<512x1568xbf16>, vector<1568x128xbf16>, vector<512x128xf32> -> vector<512x128xf32>
    %c0_3 = arith.constant 0 : index
    %c0_4 = arith.constant 0 : index
    %3 = vector.load %arg4[%c0_3, %c0_4] : memref<1x128xf32, #tpu.memory_space<vmem>>, vector<1x128xf32>
    %4 = vector.broadcast %3 : vector<1x128xf32> to vector<512x128xf32>
    %5 = arith.addf %2, %4 : vector<512x128xf32>
    %c0_5 = arith.constant 0 : index
    %c0_6 = arith.constant 0 : index
    %6 = vector.load %arg5[%c0_5, %c0_6] : memref<512x128xf32, #tpu.memory_space<vmem>>, vector<512x128xf32>
    tpu.vector_store %arg5[%c0_5, %c0_6], %5 {strides = array<i32>} : memref<512x128xf32, #tpu.memory_space<vmem>>, vector<512x128xf32>,
    return
  }
  func.func @transform_0(%arg0: i32, %arg1: i32) -> (i32, i32) {
    %c0_i32 = arith.constant 0 : i32
    %c0_i32_0 = arith.constant 0 : i32
    return %arg0, %c0_i32 : i32, i32
  }
  func.func @transform_1(%arg0: i32, %arg1: i32) -> (i32, i32) {
    %c0_i32 = arith.constant 0 : i32
    %c0_i32_0 = arith.constant 0 : i32
    return %c0_i32, %arg1 : i32, i32
  }
  func.func @transform_2(%arg0: i32, %arg1: i32) -> (i32, i32) {
    %c0_i32 = arith.constant 0 : i32
    %c0_i32_0 = arith.constant 0 : i32
    return %c0_i32, %arg1 : i32, i32
  }
  func.func @transform_3(%arg0: i32, %arg1: i32) -> (i32, i32) {
    %c0_i32 = arith.constant 0 : i32
    return %arg0, %arg1 : i32, i32
  }
}

</mosaic_0001>

<bundles_post_ra>
// kernel: vae_forward.9
= control target key start
LH: loop header
LB: loop body
LE: loop exit
PB: predicated region body
PF: predicated region fallthrough
CT: control target
= control target key end

     0   :  { %s1413_s12 = smov 0   ;;  %s1415_s13 = smov 0   ;;  %s1620_s0 = inlined_call_operand.vmem [shape: bf16[2048,196], index: 0, kind: input, shape index: {}]   ;;  %s1621_s1 = inlined_call_operand.vmem [shape: bf16[196,128], index: 1, kind: input, shape index: {}]   ;;  %s1622_s2 = inlined_call_operand.vmem [shape: f32[1,128], index: 2, kind: input, shape index: {}]   ;;  %s1623_s3 = inlined_call_operand.vmem [shape: bf16[2048,128], index: 3, kind: output, shape index: {}]  }
   0x1   :  { %s1417_s14 = smov 0  }
   0x2 LB: > { %s25_s15 = sadd.s32 1, %s1386_s13  ;;  %p1026_p0 = scmp.ge.s32.totalorder %s1390_s14, 1  ;;  %s1390_s14 = sphi %s1417_s14, %s13_s14   ;;  %s1386_s13 = sphi %s1415_s13, %s1625_s13   ;;  %s1382_s12 = sphi %s1413_s12, %s1624_s12  }
   0x3   : > { %p27_p1 = scmp.ge.s32.totalorder %s25_s15, 8  ;;  %p170_p2 = scmp.lt.s32.totalorder %s1390_s14, 9 }
   0x5   : > { %s1627_s15 = smov (%p27_p1, %s25_s15), 0  ;;  %p171_p3 = pnand %p1026_p0, %p170_p2 }
   0x6   : > { %v1307_v0 = vld [vmem:[%s1621_s1] sm:$0xff] (!%p171_p3)   ;;  %v1392_v1 = vmov (!%p171_p3), 0   ;;  %v1308_v2 = vld [vmem:[%s1621_s1 + $0x8] sm:$0xff] (!%p171_p3)   ;;  %s1027_s20 = sshll.u32 (!%p171_p3), %s1382_s12, 5  ;;  %v1309_v3 = vld [vmem:[%s1621_s1 + $0x10] sm:$0xff] (!%p171_p3)   ;;  %vm512_vm0 = vcmask (!%p171_p3), 556032  }
   0x7   : > { %174 = sbr.rel (%p171_p3) target bundleno = 336 (0x150), region = 32  ;;  %565 = vmatprep.subr.bf16.mxu0 (!%p171_p3), %v1392_v1  ;;  %1256 = vmatprep.subr.bf16.mxu1 (!%p171_p3), %v1392_v1  ;;  %p206_p4 = scmp.lt.s32.totalorder (!%p171_p3), %s1027_s20, 255  ;;  %v1310_v4 = vld [vmem:[%s1621_s1 + $0x18] sm:$0xff] (!%p171_p3)   ;;  %v1311_v6 = vld [vmem:[%s1621_s1 + $0x20] sm:$0xff] (!%p171_p3)   ;;  %v1312_v8 = vld [vmem:[%s1621_s1 + $0x28] sm:$0xff] (!%p171_p3)   ;;  %vm561_vm1 = vcmask (!%p171_p3), 1041408  }
   0x8   : > { %566 = vmatpush1.bf16.msra.mxu0 (!%p171_p3), %v1307_v0  ;;  %1269 = vmatpush1.bf16.msra.mxu1 (!%p171_p3), %v1307_v0  ;;  %v1313_v9 = vld [vmem:[%s1621_s1 + $0x30] sm:$0xff] (!%p171_p3)   ;;  %v1314_v10 = vld [vmem:[%s1621_s1 + $0x38] sm:$0xff] (!%p171_p3)   ;;  %v1315_v11 = vld [vmem:[%s1621_s1 + $0x40] sm:$0xff] (!%p171_p3)  }
   0x9   : > { %567 = vmatprep.subr.bf16.mxu0 (!%p171_p3), %v1392_v1  ;;  %1257 = vmatprep.subr.bf16.mxu1 (!%p171_p3), %v1392_v1  ;;  %v1316_v12 = vld [vmem:[%s1621_s1 + $0x48] sm:$0xff] (!%p171_p3)   ;;  %v1317_v13 = vld [vmem:[%s1621_s1 + $0x50] sm:$0xff] (!%p171_p3)   ;;  %v1318_v14 = vld [vmem:[%s1621_s1 + $0x58] sm:$0xff] (!%p171_p3)  }
   0xa   : > { %v1319_v15 = vld [vmem:[%s1621_s1 + $0x60] ss:$0 sps:$4 sm:$0x33] (!%p171_p3)  }
   0xb   : > { %v563_v16 = vsel (!%p171_p3), %vm561_vm1, %v1319_v15, 0  ;;  %v1555_v47 = vld [vmem:[%s1622_s2] ss:$0 sm:$0xff] (!%p171_p3) }
   0xc   : > { %568 = vmatpush1.bf16.msra.mxu0 (!%p171_p3), %v1308_v2  ;;  %1270 = vmatpush1.bf16.msra.mxu1 (!%p171_p3), %v1308_v2 }
   0xd   : > { %569 = vmatprep.subr.bf16.mxu0 (!%p171_p3), %v1392_v1  ;;  %1258 = vmatprep.subr.bf16.mxu1 (!%p171_p3), %v1392_v1 }
   0xe   : > { %s1629_s20 = smov (!%p206_p4, %s1027_s20), 255 }
   0xf   : > { %s1128_s23 = sshll.u32 %s1629_s20, 3  ;;  %s1031_s26 = sshll.u32 %s1629_s20, 2 }
  0x10   : > { %570 = vmatpush1.bf16.msra.mxu0 %v1309_v3  ;;  %1271 = vmatpush1.bf16.msra.mxu1 %v1309_v3  ;;  %s1455_s28 = scalar_lea.vmem %s1620_s0, %s1128_s23  ;;  %s1565_s29 = scalar_lea.vmem %s1623_s3, %s1031_s26 }
  0x11   : > { %571 = vmatprep.subr.bf16.mxu0 %v1392_v1  ;;  %1259 = vmatprep.subr.bf16.mxu1 %v1392_v1  ;;  %v1322_v5 = vld [vmem:[%s1455_s28 + $0x4] ss:$8 sps:$4 sm:$0xff]   ;;  %v1320_v17 = vld [vmem:[%s1455_s28] ss:$8 sps:$4 sm:$0xff]   ;;  %v1326_v19 = vld [vmem:[%s1455_s28 + $0x14] ss:$8 sps:$4 sm:$0xff]  }
  0x12   : > { %v1325_v7 = vld [vmem:[%s1455_s28 + $0x84] ss:$8 sps:$4 sm:$0xff]   ;;  %1078 = vmatprep.mubr.msk.bf16.mxu0 %vm512_vm0, %v1322_v5  ;;  %v1323_v18 = vld [vmem:[%s1455_s28 + $0x80] ss:$8 sps:$4 sm:$0xff]   ;;  %v1328_v20 = vld [vmem:[%s1455_s28 + $0x94] ss:$8 sps:$4 sm:$0xff]  }
  0x13   : > { %1086 = vmatprep.mubr.msk.bf16.mxu1 %vm512_vm0, %v1325_v7  ;;  %v1330_v21 = vld [vmem:[%s1455_s28 + $0x10] ss:$8 sps:$4 sm:$0xff]   ;;  %v1332_v23 = vld [vmem:[%s1455_s28 + $0x24] ss:$8 sps:$4 sm:$0xff]   ;;  %v1336_v25 = vld [vmem:[%s1455_s28 + $0x20] ss:$8 sps:$4 sm:$0xff]  }
  0x14   : > { %572 = vmatpush1.bf16.msra.mxu0 %v1310_v4  ;;  %1272 = vmatpush1.bf16.msra.mxu1 %v1310_v4  ;;  %v1331_v22 = vld [vmem:[%s1455_s28 + $0x90] ss:$8 sps:$4 sm:$0xff]   ;;  %v1334_v24 = vld [vmem:[%s1455_s28 + $0xa4] ss:$8 sps:$4 sm:$0xff]   ;;  %v1337_v26 = vld [vmem:[%s1455_s28 + $0xa0] ss:$8 sps:$4 sm:$0xff]  }
  0x15   : > { %573 = vmatprep.subr.bf16.mxu0 %v1392_v1  ;;  %1260 = vmatprep.subr.bf16.mxu1 %v1392_v1  ;;  %v1338_v27 = vld [vmem:[%s1455_s28 + $0x34] ss:$8 sps:$4 sm:$0xff]   ;;  %v1342_v29 = vld [vmem:[%s1455_s28 + $0x30] ss:$8 sps:$4 sm:$0xff]   ;;  %v1344_v31 = vld [vmem:[%s1455_s28 + $0x44] ss:$8 sps:$4 sm:$0xff]  }
  0x16   : > { %v1340_v28 = vld [vmem:[%s1455_s28 + $0xb4] ss:$8 sps:$4 sm:$0xff]   ;;  %v1343_v30 = vld [vmem:[%s1455_s28 + $0xb0] ss:$8 sps:$4 sm:$0xff]   ;;  %v1346_v32 = vld [vmem:[%s1455_s28 + $0xc4] ss:$8 sps:$4 sm:$0xff]  }
  0x17   : > { %v1348_v33 = vld [vmem:[%s1455_s28 + $0x40] ss:$8 sps:$4 sm:$0xff]   ;;  %v1350_v35 = vld [vmem:[%s1455_s28 + $0x54] ss:$8 sps:$4 sm:$0xff]   ;;  %v1354_v37 = vld [vmem:[%s1455_s28 + $0x50] ss:$8 sps:$4 sm:$0xff]  }
  0x18   : > { %574 = vmatpush1.bf16.msra.mxu0 %v1311_v6  ;;  %1273 = vmatpush1.bf16.msra.mxu1 %v1311_v6  ;;  %v1349_v34 = vld [vmem:[%s1455_s28 + $0xc0] ss:$8 sps:$4 sm:$0xff]   ;;  %v1352_v36 = vld [vmem:[%s1455_s28 + $0xd4] ss:$8 sps:$4 sm:$0xff]   ;;  %v1355_v38 = vld [vmem:[%s1455_s28 + $0xd0] ss:$8 sps:$4 sm:$0xff]  }
  0x19   : > { %575 = vmatprep.subr.bf16.mxu0 %v1392_v1  ;;  %1261 = vmatprep.subr.bf16.mxu1 %v1392_v1  ;;  %v1356_v39 = vld [vmem:[%s1455_s28 + $0x64] ss:$8 sps:$4 sm:$0xff]   ;;  %v1360_v41 = vld [vmem:[%s1455_s28 + $0x60] ss:$8 sps:$4 sm:$0xff]   ;;  %v1362_v43 = vld [vmem:[%s1455_s28 + $0x74] ss:$8 sps:$4 sm:$0xff]  }
  0x1a   : > { %v1358_v40 = vld [vmem:[%s1455_s28 + $0xe4] ss:$8 sps:$4 sm:$0xff]   ;;  %v1361_v42 = vld [vmem:[%s1455_s28 + $0xe0] ss:$8 sps:$4 sm:$0xff]   ;;  %v1364_v44 = vld [vmem:[%s1455_s28 + $0xf4] ss:$8 sps:$4 sm:$0xff]  }
  0x1b   : > { %v1366_v45 = vld [vmem:[%s1455_s28 + $0x70] ss:$8 sps:$4 sm:$0xff]  }
  0x1c   : > { %576 = vmatpush1.bf16.msra.mxu0 %v1312_v8  ;;  %1274 = vmatpush1.bf16.msra.mxu1 %v1312_v8  ;;  %v1367_v46 = vld [vmem:[%s1455_s28 + $0xf0] ss:$8 sps:$4 sm:$0xff]  }
  0x1d   : > { %577 = vmatprep.subr.bf16.mxu0 %v1392_v1  ;;  %1262 = vmatprep.subr.bf16.mxu1 %v1392_v1 }
  0x20   : > { %578 = vmatpush1.bf16.msra.mxu0 %v1313_v9  ;;  %1275 = vmatpush1.bf16.msra.mxu1 %v1313_v9 }
  0x21   : > { %579 = vmatprep.subr.bf16.mxu0 %v1392_v1  ;;  %1263 = vmatprep.subr.bf16.mxu1 %v1392_v1 }
  0x24   : > { %580 = vmatpush1.bf16.msra.mxu0 %v1314_v10  ;;  %1276 = vmatpush1.bf16.msra.mxu1 %v1314_v10 }
  0x25   : > { %581 = vmatprep.subr.bf16.mxu0 %v1392_v1  ;;  %1264 = vmatprep.subr.bf16.mxu1 %v1392_v1 }
  0x28   : > { %582 = vmatpush1.bf16.msra.mxu0 %v1315_v11  ;;  %1277 = vmatpush1.bf16.msra.mxu1 %v1315_v11 }
  0x29   : > { %583 = vmatprep.subr.bf16.mxu0 %v1392_v1  ;;  %1265 = vmatprep.subr.bf16.mxu1 %v1392_v1 }
  0x2c   : > { %584 = vmatpush1.bf16.msra.mxu0 %v1316_v12  ;;  %1278 = vmatpush1.bf16.msra.mxu1 %v1316_v12 }
  0x2d   : > { %585 = vmatprep.subr.bf16.mxu0 %v1392_v1  ;;  %1266 = vmatprep.subr.bf16.mxu1 %v1392_v1 }
  0x30   : > { %586 = vmatpush1.bf16.msra.mxu0 %v1317_v13  ;;  %1279 = vmatpush1.bf16.msra.mxu1 %v1317_v13 }
  0x31   : > { %587 = vmatprep.subr.bf16.mxu0 %v1392_v1  ;;  %1267 = vmatprep.subr.bf16.mxu1 %v1392_v1 }
  0x34   : > { %588 = vmatpush1.bf16.msra.mxu0 %v1318_v14  ;;  %1280 = vmatpush1.bf16.msra.mxu1 %v1318_v14 }
  0x35   : > { %589 = vmatprep.subr.bf16.mxu0 %v1392_v1  ;;  %1268 = vmatprep.subr.bf16.mxu1 %v1392_v1 }
  0x38   : > { %590 = vmatpush1.bf16.msra.mxu0 %v563_v16  ;;  %1281 = vmatpush1.bf16.msra.mxu1 %v563_v16 }
  0x3b   : > { %598 = vmatmul.mubr.bf16.vlgmr.msra.gmra.mrb[0].mxu0 %v1320_v17  ;;  %662 = vmatmul.mubr.bf16.vlgmr.msra.gmra.mrb[0].mxu1 %v1323_v18 }
  0x3c   : > { %1079 = vmatprep.mubr.msk.bf16.mxu0 %vm512_vm0, %v1326_v19  ;;  %1087 = vmatprep.mubr.msk.bf16.mxu1 %vm512_vm0, %v1328_v20 }
  0x43   : > { %606 = vmatmul.mubr.bf16.gmra.mrb[4].mxu0 %v1330_v21  ;;  %670 = vmatmul.mubr.bf16.gmra.mrb[4].mxu1 %v1331_v22 }
  0x44   : > { %1080 = vmatprep.mubr.msk.bf16.mxu0 %vm512_vm0, %v1332_v23  ;;  %1088 = vmatprep.mubr.msk.bf16.mxu1 %vm512_vm0, %v1334_v24 }
  0x4b   : > { %614 = vmatmul.mubr.bf16.gmra.mrb[8].mxu0 %v1336_v25  ;;  %678 = vmatmul.mubr.bf16.gmra.mrb[8].mxu1 %v1337_v26 }
  0x4c   : > { %1081 = vmatprep.mubr.msk.bf16.mxu0 %vm512_vm0, %v1338_v27  ;;  %1089 = vmatprep.mubr.msk.bf16.mxu1 %vm512_vm0, %v1340_v28 }
  0x53   : > { %622 = vmatmul.mubr.bf16.gmra.mrb[12].mxu0 %v1342_v29  ;;  %686 = vmatmul.mubr.bf16.gmra.mrb[12].mxu1 %v1343_v30 }
  0x54   : > { %1082 = vmatprep.mubr.msk.bf16.mxu0 %vm512_vm0, %v1344_v31  ;;  %1090 = vmatprep.mubr.msk.bf16.mxu1 %vm512_vm0, %v1346_v32 }
  0x5b   : > { %630 = vmatmul.mubr.bf16.gmra.mrb[16].mxu0 %v1348_v33  ;;  %694 = vmatmul.mubr.bf16.gmra.mrb[16].mxu1 %v1349_v34 }
  0x5c   : > { %1083 = vmatprep.mubr.msk.bf16.mxu0 %vm512_vm0, %v1350_v35  ;;  %1091 = vmatprep.mubr.msk.bf16.mxu1 %vm512_vm0, %v1352_v36 }
  0x63   : > { %638 = vmatmul.mubr.bf16.gmra.mrb[20].mxu0 %v1354_v37  ;;  %702 = vmatmul.mubr.bf16.gmra.mrb[20].mxu1 %v1355_v38 }
  0x64   : > { %1084 = vmatprep.mubr.msk.bf16.mxu0 %vm512_vm0, %v1356_v39  ;;  %1092 = vmatprep.mubr.msk.bf16.mxu1 %vm512_vm0, %v1358_v40 }
  0x6b   : > { %646 = vmatmul.mubr.bf16.gmra.mrb[24].mxu0 %v1360_v41  ;;  %710 = vmatmul.mubr.bf16.gmra.mrb[24].mxu1 %v1361_v42 }
  0x6c   : > { %1085 = vmatprep.mubr.msk.bf16.mxu0 %vm512_vm0, %v1362_v43  ;;  %1093 = vmatprep.mubr.msk.bf16.mxu1 %vm512_vm0, %v1364_v44 }
  0x73   : > { %654 = vmatmul.mubr.bf16.gmra.mrb[28].mxu0 %v1366_v45  ;;  %718 = vmatmul.mubr.bf16.gmra.mrb[28].mxu1 %v1367_v46 }
 0x10e   : > { %v599_v48 = vpop.f32.mrb[0].mxu0  ;;  %v663_v49 = vpop.f32.mrb[0].mxu1 }
 0x10f   : > { %v600_v50 = vadd.f32 %v1555_v47, %v599_v48  ;;  %v664_v51 = vadd.f32 %v1555_v47, %v663_v49  ;;  %v601_v52 = vpop.f32.mrb[1].mxu0  ;;  %v665_v53 = vpop.f32.mrb[1].mxu1 }
 0x110   : > { %v602_v54 = vpop.f32.mrb[2].mxu0  ;;  %v666_v55 = vpop.f32.mrb[2].mxu1 }
 0x111   : > { %v603_v56 = vadd.f32 %v1555_v47, %v602_v54  ;;  %v667_v57 = vadd.f32 %v1555_v47, %v666_v55  ;;  %v604_v58 = vpop.f32.mrb[3].mxu0  ;;  %v668_v59 = vpop.f32.mrb[3].mxu1  ;;  %v726_v60 = vmax.f32 %v600_v50, 0.0  ;;  %v742_v61 = vmax.f32 %v664_v51, 0.0 }
 0x113   : > { %v727_v62 = vmax.f32 %v603_v56, 0.0  ;;  %v743_v63 = vmax.f32 %v667_v57, 0.0 }
 0x115   : > { %v1164_v0 = vpack.c.bf16 %v727_v62, %v726_v60  ;;  %v1204_v1 = vpack.c.bf16 %v743_v63, %v742_v61 }
 0x116   : > { %v607_v2 = vpop.f32.mrb[4].mxu0  ;;  %v671_v3 = vpop.f32.mrb[4].mxu1 }
 0x117   : > { %1165 = vst [vmem:[%s1565_s29] sm:$0xff] %v1164_v0   ;;  %1248 = vst [vmem:[%s1565_s29 + $0x40] sm:$0xff] %v1204_v1   ;;  %v608_v4 = vadd.f32 %v1555_v47, %v607_v2  ;;  %v672_v5 = vadd.f32 %v1555_v47, %v671_v3  ;;  %v609_v6 = vpop.f32.mrb[5].mxu0  ;;  %v673_v7 = vpop.f32.mrb[5].mxu1 }
 0x118   : > { %v610_v8 = vpop.f32.mrb[6].mxu0  ;;  %v674_v9 = vpop.f32.mrb[6].mxu1 }
 0x119   : > { %v611_v10 = vadd.f32 %v1555_v47, %v610_v8  ;;  %v675_v11 = vadd.f32 %v1555_v47, %v674_v9  ;;  %v612_v12 = vpop.f32.mrb[7].mxu0  ;;  %v676_v13 = vpop.f32.mrb[7].mxu1  ;;  %v728_v14 = vmax.f32 %v608_v4, 0.0  ;;  %v744_v15 = vmax.f32 %v672_v5, 0.0 }
 0x11b   : > { %v729_v16 = vmax.f32 %v611_v10, 0.0  ;;  %v745_v17 = vmax.f32 %v675_v11, 0.0 }
 0x11d   : > { %v1169_v18 = vpack.c.bf16 %v729_v16, %v728_v14  ;;  %v1209_v19 = vpack.c.bf16 %v745_v17, %v744_v15 }
 0x11e   : > { %v615_v20 = vpop.f32.mrb[8].mxu0  ;;  %v679_v21 = vpop.f32.mrb[8].mxu1 }
 0x11f   : > { %1241 = vst [vmem:[%s1565_s29 + $0x8] sm:$0xff] %v1169_v18   ;;  %1249 = vst [vmem:[%s1565_s29 + $0x48] sm:$0xff] %v1209_v19   ;;  %v616_v22 = vadd.f32 %v1555_v47, %v615_v20  ;;  %v680_v23 = vadd.f32 %v1555_v47, %v679_v21  ;;  %v617_v24 = vpop.f32.mrb[9].mxu0  ;;  %v681_v25 = vpop.f32.mrb[9].mxu1 }
 0x120   : > { %v618_v26 = vpop.f32.mrb[10].mxu0  ;;  %v682_v27 = vpop.f32.mrb[10].mxu1 }
 0x121   : > { %v619_v28 = vadd.f32 %v1555_v47, %v618_v26  ;;  %v683_v29 = vadd.f32 %v1555_v47, %v682_v27  ;;  %v620_v30 = vpop.f32.mrb[11].mxu0  ;;  %v684_v31 = vpop.f32.mrb[11].mxu1  ;;  %v730_v32 = vmax.f32 %v616_v22, 0.0  ;;  %v746_v33 = vmax.f32 %v680_v23, 0.0 }
 0x123   : > { %v731_v34 = vmax.f32 %v619_v28, 0.0  ;;  %v747_v35 = vmax.f32 %v683_v29, 0.0 }
 0x125   : > { %v1174_v36 = vpack.c.bf16 %v731_v34, %v730_v32  ;;  %v1214_v37 = vpack.c.bf16 %v747_v35, %v746_v33 }
 0x126   : > { %v623_v38 = vpop.f32.mrb[12].mxu0  ;;  %v687_v39 = vpop.f32.mrb[12].mxu1 }
 0x127   : > { %1242 = vst [vmem:[%s1565_s29 + $0x10] sm:$0xff] %v1174_v36   ;;  %1250 = vst [vmem:[%s1565_s29 + $0x50] sm:$0xff] %v1214_v37   ;;  %v624_v40 = vadd.f32 %v1555_v47, %v623_v38  ;;  %v688_v41 = vadd.f32 %v1555_v47, %v687_v39  ;;  %v625_v42 = vpop.f32.mrb[13].mxu0  ;;  %v689_v43 = vpop.f32.mrb[13].mxu1 }
 0x128   : > { %v626_v44 = vpop.f32.mrb[14].mxu0  ;;  %v690_v45 = vpop.f32.mrb[14].mxu1 }
 0x129   : > { %v627_v46 = vadd.f32 %v1555_v47, %v626_v44  ;;  %v691_v48 = vadd.f32 %v1555_v47, %v690_v45  ;;  %v628_v49 = vpop.f32.mrb[15].mxu0  ;;  %v692_v50 = vpop.f32.mrb[15].mxu1  ;;  %v732_v51 = vmax.f32 %v624_v40, 0.0  ;;  %v748_v52 = vmax.f32 %v688_v41, 0.0 }
 0x12b   : > { %v733_v53 = vmax.f32 %v627_v46, 0.0  ;;  %v749_v54 = vmax.f32 %v691_v48, 0.0 }
 0x12d   : > { %v1179_v55 = vpack.c.bf16 %v733_v53, %v732_v51  ;;  %v1219_v56 = vpack.c.bf16 %v749_v54, %v748_v52 }
 0x12e   : > { %v631_v57 = vpop.f32.mrb[16].mxu0  ;;  %v695_v58 = vpop.f32.mrb[16].mxu1 }
 0x12f   : > { %1243 = vst [vmem:[%s1565_s29 + $0x18] sm:$0xff] %v1179_v55   ;;  %1251 = vst [vmem:[%s1565_s29 + $0x58] sm:$0xff] %v1219_v56   ;;  %v632_v59 = vadd.f32 %v1555_v47, %v631_v57  ;;  %v696_v60 = vadd.f32 %v1555_v47, %v695_v58  ;;  %v633_v61 = vpop.f32.mrb[17].mxu0  ;;  %v697_v62 = vpop.f32.mrb[17].mxu1 }
 0x130   : > { %v634_v63 = vpop.f32.mrb[18].mxu0  ;;  %v698_v0 = vpop.f32.mrb[18].mxu1 }
 0x131   : > { %v635_v1 = vadd.f32 %v1555_v47, %v634_v63  ;;  %v699_v2 = vadd.f32 %v1555_v47, %v698_v0  ;;  %v636_v3 = vpop.f32.mrb[19].mxu0  ;;  %v700_v4 = vpop.f32.mrb[19].mxu1  ;;  %v734_v5 = vmax.f32 %v632_v59, 0.0  ;;  %v750_v6 = vmax.f32 %v696_v60, 0.0 }
 0x133   : > { %v735_v7 = vmax.f32 %v635_v1, 0.0  ;;  %v751_v8 = vmax.f32 %v699_v2, 0.0 }
 0x135   : > { %v1184_v9 = vpack.c.bf16 %v735_v7, %v734_v5  ;;  %v1224_v10 = vpack.c.bf16 %v751_v8, %v750_v6 }
 0x136   : > { %v639_v11 = vpop.f32.mrb[20].mxu0  ;;  %v703_v12 = vpop.f32.mrb[20].mxu1 }
 0x137   : > { %1244 = vst [vmem:[%s1565_s29 + $0x20] sm:$0xff] %v1184_v9   ;;  %1252 = vst [vmem:[%s1565_s29 + $0x60] sm:$0xff] %v1224_v10   ;;  %v640_v13 = vadd.f32 %v1555_v47, %v639_v11  ;;  %v704_v14 = vadd.f32 %v1555_v47, %v703_v12  ;;  %v641_v15 = vpop.f32.mrb[21].mxu0  ;;  %v705_v16 = vpop.f32.mrb[21].mxu1 }
 0x138   : > { %v642_v17 = vpop.f32.mrb[22].mxu0  ;;  %v706_v18 = vpop.f32.mrb[22].mxu1 }
 0x139   : > { %v643_v19 = vadd.f32 %v1555_v47, %v642_v17  ;;  %v707_v20 = vadd.f32 %v1555_v47, %v706_v18  ;;  %v644_v21 = vpop.f32.mrb[23].mxu0  ;;  %v708_v22 = vpop.f32.mrb[23].mxu1  ;;  %v736_v23 = vmax.f32 %v640_v13, 0.0  ;;  %v752_v24 = vmax.f32 %v704_v14, 0.0 }
 0x13b   : > { %v737_v25 = vmax.f32 %v643_v19, 0.0  ;;  %v753_v26 = vmax.f32 %v707_v20, 0.0 }
 0x13d   : > { %v1189_v27 = vpack.c.bf16 %v737_v25, %v736_v23  ;;  %v1229_v28 = vpack.c.bf16 %v753_v26, %v752_v24 }
 0x13e   : > { %v647_v29 = vpop.f32.mrb[24].mxu0  ;;  %v711_v30 = vpop.f32.mrb[24].mxu1 }
 0x13f   : > { %1245 = vst [vmem:[%s1565_s29 + $0x28] sm:$0xff] %v1189_v27   ;;  %1253 = vst [vmem:[%s1565_s29 + $0x68] sm:$0xff] %v1229_v28   ;;  %v648_v31 = vadd.f32 %v1555_v47, %v647_v29  ;;  %v712_v32 = vadd.f32 %v1555_v47, %v711_v30  ;;  %v649_v33 = vpop.f32.mrb[25].mxu0  ;;  %v713_v34 = vpop.f32.mrb[25].mxu1 }
 0x140   : > { %v650_v35 = vpop.f32.mrb[26].mxu0  ;;  %v714_v36 = vpop.f32.mrb[26].mxu1 }
 0x141   : > { %v651_v37 = vadd.f32 %v1555_v47, %v650_v35  ;;  %v715_v38 = vadd.f32 %v1555_v47, %v714_v36  ;;  %v652_v39 = vpop.f32.mrb[27].mxu0  ;;  %v716_v40 = vpop.f32.mrb[27].mxu1  ;;  %v738_v41 = vmax.f32 %v648_v31, 0.0  ;;  %v754_v42 = vmax.f32 %v712_v32, 0.0 }
 0x143   : > { %v739_v43 = vmax.f32 %v651_v37, 0.0  ;;  %v755_v44 = vmax.f32 %v715_v38, 0.0 }
 0x145   : > { %v1194_v45 = vpack.c.bf16 %v739_v43, %v738_v41  ;;  %v1234_v46 = vpack.c.bf16 %v755_v44, %v754_v42 }
 0x146   : > { %v655_v48 = vpop.f32.mrb[28].mxu0  ;;  %v719_v49 = vpop.f32.mrb[28].mxu1 }
 0x147   : > { %1246 = vst [vmem:[%s1565_s29 + $0x30] sm:$0xff] %v1194_v45   ;;  %1254 = vst [vmem:[%s1565_s29 + $0x70] sm:$0xff] %v1234_v46   ;;  %v656_v50 = vadd.f32 %v1555_v47, %v655_v48  ;;  %v720_v51 = vadd.f32 %v1555_v47, %v719_v49  ;;  %v657_v52 = vpop.f32.mrb[29].mxu0  ;;  %v721_v53 = vpop.f32.mrb[29].mxu1 }
 0x148   : > { %v658_v54 = vpop.f32.mrb[30].mxu0  ;;  %v722_v55 = vpop.f32.mrb[30].mxu1 }
 0x149   : > { %v659_v56 = vadd.f32 %v1555_v47, %v658_v54  ;;  %v723_v57 = vadd.f32 %v1555_v47, %v722_v55  ;;  %v660_v58 = vpop.f32.mrb[31].mxu0  ;;  %v724_v59 = vpop.f32.mrb[31].mxu1  ;;  %v740_v60 = vmax.f32 %v656_v50, 0.0  ;;  %v756_v61 = vmax.f32 %v720_v51, 0.0 }
 0x14b   : > { %v741_v62 = vmax.f32 %v659_v56, 0.0  ;;  %v757_v63 = vmax.f32 %v723_v57, 0.0 }
 0x14d   : > { %v1199_v0 = vpack.c.bf16 %v741_v62, %v740_v60  ;;  %v1239_v1 = vpack.c.bf16 %v757_v63, %v756_v61 }
 0x14f   : > { %1247 = vst [vmem:[%s1565_s29 + $0x38] sm:$0xff] %v1199_v0   ;;  %1255 = vst [vmem:[%s1565_s29 + $0x78] sm:$0xff] %v1239_v1  }
 0x150 PF: > { %s13_s14 = sadd.s32 1, %s1390_s14   ;;  %s1624_s12 = smov %s1386_s13 }
 0x151   : > { %p10_p5 = scmp.ge.s32.totalorder %s13_s14, 10   ;;  %s1625_s13 = smov %s1627_s15 }
 0x153   :  { %12 = sbr.rel (!%p10_p5) target bundleno = 2 (0x2), region = 68 }

// kernel: vae_forward.10
= control target key start
LH: loop header
LB: loop body
LE: loop exit
PB: predicated region body
PF: predicated region fallthrough
CT: control target
= control target key end

     0   :  { %v2655_v0 = vmov 0   ;;  %vm905_vm0 = vcmask 392192   ;;  %s3311_s1 = inlined_call_operand.vmem [shape: bf16[432,128], index: 1, kind: input, shape index: {}]   ;;  %s3312_s0 = inlined_call_operand.vmem [shape: bf16[464,432], index: 0, kind: input, shape index: {}]   ;;  %s3313_s2 = inlined_call_operand.vmem [shape: f32[1,128], index: 2, kind: input, shape index: {}]   ;;  %s3314_s3 = inlined_call_operand.vmem [shape: bf16[464,128], index: 3, kind: output, shape index: {}]  }
   0x1   :  { %993 = vmatprep.subr.bf16.mxu1 %v2655_v0  ;;  %v2454_v1 = vld [vmem:[%s3311_s1] sm:$0xff]   ;;  %1258 = vmatprep.subr.bf16.mxu0 %v2655_v0  ;;  %v2455_v2 = vld [vmem:[%s3311_s1 + $0x8] sm:$0xff]   ;;  %v2456_v4 = vld [vmem:[%s3311_s1 + $0x10] sm:$0xff]  }
   0x2   :  { %994 = vmatpush1.bf16.msra.mxu1 %v2454_v1  ;;  %v2459_v3 = vld [vmem:[%s3311_s1 + $0x80] sm:$0xff]   ;;  %v2461_v5 = vld [vmem:[%s3311_s1 + $0x88] sm:$0xff]   ;;  %v2457_v6 = vld [vmem:[%s3311_s1 + $0x18] sm:$0xff]  }
   0x3   :  { %995 = vmatprep.subr.bf16.mxu1 %v2655_v0  ;;  %1259 = vmatpush1.bf16.msra.mxu0 %v2459_v3  ;;  %v2463_v7 = vld [vmem:[%s3311_s1 + $0x90] sm:$0xff]   ;;  %v2458_v8 = vld [vmem:[%s3311_s1 + $0x20] sm:$0xff]   ;;  %v2465_v9 = vld [vmem:[%s3311_s1 + $0x98] sm:$0xff]  }
   0x4   :  { %1260 = vmatprep.subr.bf16.mxu0 %v2655_v0  ;;  %v2460_v10 = vld [vmem:[%s3311_s1 + $0x28] sm:$0xff]   ;;  %v2467_v11 = vld [vmem:[%s3311_s1 + $0xa0] sm:$0xff]   ;;  %v2462_v12 = vld [vmem:[%s3311_s1 + $0x30] sm:$0xff]  }
   0x5   :  { %v2469_v13 = vld [vmem:[%s3311_s1 + $0xa8] sm:$0xff]   ;;  %v2464_v14 = vld [vmem:[%s3311_s1 + $0x38] sm:$0xff]   ;;  %v2471_v15 = vld [vmem:[%s3311_s1 + $0xb0] sm:$0xff]  }
   0x6   :  { %996 = vmatpush1.bf16.msra.mxu1 %v2455_v2  ;;  %v2483_v16 = vld [vmem:[%s3312_s0 + $0xc] ss:$16 sps:$4 sm:$0xff]   ;;  %v2486_v17 = vld [vmem:[%s3312_s0 + $0x4] ss:$16 sps:$4 sm:$0xff]   ;;  %v2481_v27 = vld [vmem:[%s3312_s0 + $0x8] ss:$16 sps:$4 sm:$0xff]  }
   0x7   :  { %997 = vmatprep.subr.bf16.mxu1 %v2655_v0  ;;  %1261 = vmatpush1.bf16.msra.mxu0 %v2461_v5  ;;  %v2466_v18 = vld [vmem:[%s3311_s1 + $0x40] sm:$0xff]   ;;  %v2473_v19 = vld [vmem:[%s3311_s1 + $0xb8] sm:$0xff]   ;;  %v2468_v20 = vld [vmem:[%s3311_s1 + $0x48] sm:$0xff]  }
   0x8   :  { %1262 = vmatprep.subr.bf16.mxu0 %v2655_v0  ;;  %2019 = vmatprep.mubr.msk.bf16.mxu0 %vm905_vm0, %v2483_v16  ;;  %v2475_v21 = vld [vmem:[%s3311_s1 + $0xc0] sm:$0xff]   ;;  %v2470_v22 = vld [vmem:[%s3311_s1 + $0x50] sm:$0xff]   ;;  %v2477_v23 = vld [vmem:[%s3311_s1 + $0xc8] sm:$0xff]  }
   0x9   :  { %1025 = vmatprep.mubr.bf16.mxu1 %v2486_v17  ;;  %v2472_v24 = vld [vmem:[%s3311_s1 + $0x58] sm:$0xff]   ;;  %v2479_v25 = vld [vmem:[%s3311_s1 + $0xd0] sm:$0xff]   ;;  %v2474_v26 = vld [vmem:[%s3311_s1 + $0x60] sm:$0xff]  }
   0xa   :  { %998 = vmatpush1.bf16.msra.mxu1 %v2456_v4  ;;  %v2487_v28 = vld [vmem:[%s3312_s0 + $0x2c] ss:$16 sps:$4 sm:$0xff]   ;;  %v2478_v30 = vld [vmem:[%s3311_s1 + $0x70] sm:$0xff]   ;;  %v2491_v31 = vld [vmem:[%s3312_s0 + $0x28] ss:$16 sps:$4 sm:$0xff]  }
   0xb   :  { %999 = vmatprep.subr.bf16.mxu1 %v2655_v0  ;;  %1263 = vmatpush1.bf16.msra.mxu0 %v2463_v7  ;;  %v2476_v29 = vld [vmem:[%s3311_s1 + $0x68] sm:$0xff]   ;;  %v2480_v33 = vld [vmem:[%s3311_s1 + $0x78] sm:$0xff]   ;;  %v2484_v34 = vld [vmem:[%s3312_s0] ss:$16 sps:$4 sm:$0xff]  }
   0xc   :  { %1264 = vmatprep.subr.bf16.mxu0 %v2655_v0  ;;  %v2493_v32 = vld [vmem:[%s3312_s0 + $0x4c] ss:$16 sps:$4 sm:$0xff]   ;;  %v2489_v35 = vld [vmem:[%s3312_s0 + $0x24] ss:$16 sps:$4 sm:$0xff]   ;;  %v2497_v36 = vld [vmem:[%s3312_s0 + $0x48] ss:$16 sps:$4 sm:$0xff]  }
   0xd   :  { %v2499_v37 = vld [vmem:[%s3312_s0 + $0x6c] ss:$16 sps:$4 sm:$0xff]   ;;  %v2492_v38 = vld [vmem:[%s3312_s0 + $0x20] ss:$16 sps:$4 sm:$0xff]   ;;  %v2495_v39 = vld [vmem:[%s3312_s0 + $0x44] ss:$16 sps:$4 sm:$0xff]  }
   0xe   :  { %1000 = vmatpush1.bf16.msra.mxu1 %v2457_v6  ;;  %v2503_v40 = vld [vmem:[%s3312_s0 + $0x68] ss:$16 sps:$4 sm:$0xff]   ;;  %v2505_v41 = vld [vmem:[%s3312_s0 + $0x8c] ss:$16 sps:$4 sm:$0xff]   ;;  %v2498_v42 = vld [vmem:[%s3312_s0 + $0x40] ss:$16 sps:$4 sm:$0xff]  }
   0xf   :  { %1001 = vmatprep.subr.bf16.mxu1 %v2655_v0  ;;  %1265 = vmatpush1.bf16.msra.mxu0 %v2465_v9  ;;  %v2501_v43 = vld [vmem:[%s3312_s0 + $0x64] ss:$16 sps:$4 sm:$0xff]   ;;  %v2509_v44 = vld [vmem:[%s3312_s0 + $0x88] ss:$16 sps:$4 sm:$0xff]   ;;  %v2511_v45 = vld [vmem:[%s3312_s0 + $0xac] ss:$16 sps:$4 sm:$0xff]  }
  0x10   :  { %1266 = vmatprep.subr.bf16.mxu0 %v2655_v0  ;;  %v2504_v46 = vld [vmem:[%s3312_s0 + $0x60] ss:$16 sps:$4 sm:$0xff]   ;;  %v2507_v47 = vld [vmem:[%s3312_s0 + $0x84] ss:$16 sps:$4 sm:$0xff]   ;;  %v2515_v48 = vld [vmem:[%s3312_s0 + $0xa8] ss:$16 sps:$4 sm:$0xff]  }
  0x11   :  { %v2517_v49 = vld [vmem:[%s3312_s0 + $0xcc] ss:$16 sps:$4 sm:$0xff]   ;;  %v2510_v50 = vld [vmem:[%s3312_s0 + $0x80] ss:$16 sps:$4 sm:$0xff]   ;;  %v2513_v51 = vld [vmem:[%s3312_s0 + $0xa4] ss:$16 sps:$4 sm:$0xff]  }
  0x12   :  { %1002 = vmatpush1.bf16.msra.mxu1 %v2458_v8  ;;  %v2521_v52 = vld [vmem:[%s3312_s0 + $0xc8] ss:$16 sps:$4 sm:$0xff]   ;;  %v2523_v53 = vld [vmem:[%s3312_s0 + $0xec] ss:$16 sps:$4 sm:$0xff]   ;;  %v2516_v54 = vld [vmem:[%s3312_s0 + $0xa0] ss:$16 sps:$4 sm:$0xff]  }
  0x13   :  { %1003 = vmatprep.subr.bf16.mxu1 %v2655_v0  ;;  %1267 = vmatpush1.bf16.msra.mxu0 %v2467_v11  ;;  %v2519_v55 = vld [vmem:[%s3312_s0 + $0xc4] ss:$16 sps:$4 sm:$0xff]   ;;  %v2527_v56 = vld [vmem:[%s3312_s0 + $0xe8] ss:$16 sps:$4 sm:$0xff]   ;;  %v2529_v57 = vld [vmem:[%s3312_s0 + $0x10c] ss:$16 sps:$4 sm:$0xff]  }
  0x14   :  { %1268 = vmatprep.subr.bf16.mxu0 %v2655_v0  ;;  %v2522_v58 = vld [vmem:[%s3312_s0 + $0xc0] ss:$16 sps:$4 sm:$0xff]   ;;  %v2525_v59 = vld [vmem:[%s3312_s0 + $0xe4] ss:$16 sps:$4 sm:$0xff]   ;;  %v2533_v60 = vld [vmem:[%s3312_s0 + $0x108] ss:$16 sps:$4 sm:$0xff]  }
  0x15   :  { %v2535_v61 = vld [vmem:[%s3312_s0 + $0x12c] ss:$16 sps:$4 sm:$0xff]   ;;  %v2528_v62 = vld [vmem:[%s3312_s0 + $0xe0] ss:$16 sps:$4 sm:$0xff]   ;;  %v2531_v63 = vld [vmem:[%s3312_s0 + $0x104] ss:$16 sps:$4 sm:$0xff]  }
  0x16   :  { %1004 = vmatpush1.bf16.msra.mxu1 %v2460_v10  ;;  %v2541_v1 = vld [vmem:[%s3312_s0 + $0x14c] ss:$16 sps:$4 sm:$0xff]   ;;  %v2534_v2 = vld [vmem:[%s3312_s0 + $0x100] ss:$16 sps:$4 sm:$0xff]   ;;  %v2537_v3 = vld [vmem:[%s3312_s0 + $0x124] ss:$16 sps:$4 sm:$0xff]  }
  0x17   :  { %1005 = vmatprep.subr.bf16.mxu1 %v2655_v0  ;;  %1269 = vmatpush1.bf16.msra.mxu0 %v2469_v13  ;;  %v2545_v4 = vld [vmem:[%s3312_s0 + $0x148] ss:$16 sps:$4 sm:$0xff]   ;;  %v2547_v5 = vld [vmem:[%s3312_s0 + $0x16c] ss:$16 sps:$4 sm:$0xff]   ;;  %v2540_v6 = vld [vmem:[%s3312_s0 + $0x120] ss:$16 sps:$4 sm:$0xff]  }
  0x18   :  { %1270 = vmatprep.subr.bf16.mxu0 %v2655_v0  ;;  %v2543_v7 = vld [vmem:[%s3312_s0 + $0x144] ss:$16 sps:$4 sm:$0xff]   ;;  %v2551_v8 = vld [vmem:[%s3312_s0 + $0x168] ss:$16 sps:$4 sm:$0xff]   ;;  %v2553_v9 = vld [vmem:[%s3312_s0 + $0x18c] ss:$16 sps:$4 sm:$0xff]  }
  0x19   :  { %v2546_v10 = vld [vmem:[%s3312_s0 + $0x140] ss:$16 sps:$4 sm:$0xff]   ;;  %v2549_v11 = vld [vmem:[%s3312_s0 + $0x164] ss:$16 sps:$4 sm:$0xff]   ;;  %v2559_v13 = vld [vmem:[%s3312_s0 + $0x1ac] ss:$16 sps:$4 sm:$0xff]  }
  0x1a   :  { %1006 = vmatpush1.bf16.msra.mxu1 %v2462_v12  ;;  %v2557_v12 = vld [vmem:[%s3312_s0 + $0x188] ss:$16 sps:$4 sm:$0xff]   ;;  %v2565_v17 = vld [vmem:[%s3312_s0 + $0x1cc] ss:$16 sps:$4 sm:$0xff]  }
  0x1b   :  { %1007 = vmatprep.subr.bf16.mxu1 %v2655_v0  ;;  %1271 = vmatpush1.bf16.msra.mxu0 %v2471_v15  ;;  %v2555_v15 = vld [vmem:[%s3312_s0 + $0x184] ss:$16 sps:$4 sm:$0xff]   ;;  %v2563_v16 = vld [vmem:[%s3312_s0 + $0x1a8] ss:$16 sps:$4 sm:$0xff]  }
  0x1c   :  { %1272 = vmatprep.subr.bf16.mxu0 %v2655_v0 }
  0x1e   :  { %1008 = vmatpush1.bf16.msra.mxu1 %v2464_v14  ;;  %v2552_v14 = vld [vmem:[%s3312_s0 + $0x160] ss:$16 sps:$4 sm:$0xff]  }
  0x1f   :  { %1009 = vmatprep.subr.bf16.mxu1 %v2655_v0  ;;  %1273 = vmatpush1.bf16.msra.mxu0 %v2473_v19  ;;  %v2561_v19 = vld [vmem:[%s3312_s0 + $0x1a4] ss:$16 sps:$4 sm:$0xff]  }
  0x20   :  { %1274 = vmatprep.subr.bf16.mxu0 %v2655_v0 }
  0x22   :  { %1010 = vmatpush1.bf16.msra.mxu1 %v2466_v18  ;;  %v2558_v18 = vld [vmem:[%s3312_s0 + $0x180] ss:$16 sps:$4 sm:$0xff]  }
  0x23   :  { %1011 = vmatprep.subr.bf16.mxu1 %v2655_v0  ;;  %1275 = vmatpush1.bf16.msra.mxu0 %v2475_v21  ;;  %v2571_v21 = vld [vmem:[%s3312_s0 + $0x1ec] ss:$16 sps:$4 sm:$0xff]  }
  0x24   :  { %1276 = vmatprep.subr.bf16.mxu0 %v2655_v0 }
  0x26   :  { %1012 = vmatpush1.bf16.msra.mxu1 %v2468_v20  ;;  %v2569_v20 = vld [vmem:[%s3312_s0 + $0x1c8] ss:$16 sps:$4 sm:$0xff]  }
  0x27   :  { %1013 = vmatprep.subr.bf16.mxu1 %v2655_v0  ;;  %1277 = vmatpush1.bf16.msra.mxu0 %v2477_v23  ;;  %v2567_v23 = vld [vmem:[%s3312_s0 + $0x1c4] ss:$16 sps:$4 sm:$0xff]  }
  0x28   :  { %1278 = vmatprep.subr.bf16.mxu0 %v2655_v0 }
  0x2a   :  { %1014 = vmatpush1.bf16.msra.mxu1 %v2470_v22  ;;  %v2564_v22 = vld [vmem:[%s3312_s0 + $0x1a0] ss:$16 sps:$4 sm:$0xff]  }
  0x2b   :  { %1015 = vmatprep.subr.bf16.mxu1 %v2655_v0  ;;  %1279 = vmatpush1.bf16.msra.mxu0 %v2479_v25  ;;  %v2577_v25 = vld [vmem:[%s3312_s0 + $0x20c] ss:$16 sps:$4 sm:$0xff]  }
  0x2e   :  { %1016 = vmatpush1.bf16.msra.mxu1 %v2472_v24  ;;  %1291 = vmatmul.mubr.bf16.vlgmr.msra.gmra.mrb[0].mxu0 %v2481_v27  ;;  %v2575_v24 = vld [vmem:[%s3312_s0 + $0x1e8] ss:$16 sps:$4 sm:$0xff]   ;;  %v2573_v27 = vld [vmem:[%s3312_s0 + $0x1e4] ss:$16 sps:$4 sm:$0xff]  }
  0x2f   :  { %1017 = vmatprep.subr.bf16.mxu1 %v2655_v0  ;;  %2020 = vmatprep.mubr.msk.bf16.mxu0 %vm905_vm0, %v2487_v28  ;;  %v2581_v28 = vld [vmem:[%s3312_s0 + $0x208] ss:$16 sps:$4 sm:$0xff]  }
  0x32   :  { %1018 = vmatpush1.bf16.msra.mxu1 %v2474_v26  ;;  %v2570_v26 = vld [vmem:[%s3312_s0 + $0x1c0] ss:$16 sps:$4 sm:$0xff]  }
  0x33   :  { %1019 = vmatprep.subr.bf16.mxu1 %v2655_v0 }
  0x36   :  { %1020 = vmatpush1.bf16.msra.mxu1 %v2476_v29  ;;  %1299 = vmatmul.mubr.bf16.gmra.mrb[4].mxu0 %v2491_v31  ;;  %v2583_v29 = vld [vmem:[%s3312_s0 + $0x22c] ss:$16 sps:$4 sm:$0xff]   ;;  %v2579_v31 = vld [vmem:[%s3312_s0 + $0x204] ss:$16 sps:$4 sm:$0xff]  }
  0x37   :  { %1021 = vmatprep.subr.bf16.mxu1 %v2655_v0  ;;  %2021 = vmatprep.mubr.msk.bf16.mxu0 %vm905_vm0, %v2493_v32  ;;  %v2587_v32 = vld [vmem:[%s3312_s0 + $0x228] ss:$16 sps:$4 sm:$0xff]  }
  0x3a   :  { %1022 = vmatpush1.bf16.msra.mxu1 %v2478_v30  ;;  %v2576_v30 = vld [vmem:[%s3312_s0 + $0x1e0] ss:$16 sps:$4 sm:$0xff]  }
  0x3b   :  { %1023 = vmatprep.subr.bf16.mxu1 %v2655_v0  ;;  %v2539_v0 = vld [vmem:[%s3312_s0 + $0x128] ss:$16 sps:$4 sm:$0xff]  }
  0x3e   :  { %1024 = vmatpush1.bf16.msra.mxu1 %v2480_v33  ;;  %1307 = vmatmul.mubr.bf16.gmra.mrb[8].mxu0 %v2497_v36  ;;  %v2589_v33 = vld [vmem:[%s3312_s0 + $0x24c] ss:$16 sps:$4 sm:$0xff]   ;;  %v2593_v36 = vld [vmem:[%s3312_s0 + $0x248] ss:$16 sps:$4 sm:$0xff]  }
  0x3f   :  { %2022 = vmatprep.mubr.msk.bf16.mxu0 %vm905_vm0, %v2499_v37  ;;  %v2595_v37 = vld [vmem:[%s3312_s0 + $0x26c] ss:$16 sps:$4 sm:$0xff]  }
  0x41   :  { %1026 = vmatmul.mubr.bf16.vlgmr.msra.gmra.mrb[0].mxu1 %v2484_v34  ;;  %v2582_v34 = vld [vmem:[%s3312_s0 + $0x200] ss:$16 sps:$4 sm:$0xff]  }
  0x42   :  { %1033 = vmatprep.mubr.bf16.mxu1 %v2489_v35  ;;  %v2585_v35 = vld [vmem:[%s3312_s0 + $0x224] ss:$16 sps:$4 sm:$0xff]  }
  0x46   :  { %1315 = vmatmul.mubr.bf16.gmra.mrb[12].mxu0 %v2503_v40  ;;  %v2599_v40 = vld [vmem:[%s3312_s0 + $0x268] ss:$16 sps:$4 sm:$0xff]  }
  0x47   :  { %2023 = vmatprep.mubr.msk.bf16.mxu0 %vm905_vm0, %v2505_v41  ;;  %v2601_v41 = vld [vmem:[%s3312_s0 + $0x28c] ss:$16 sps:$4 sm:$0xff]  }
  0x49   :  { %1034 = vmatmul.mubr.bf16.gmra.mrb[4].mxu1 %v2492_v38  ;;  %v2588_v38 = vld [vmem:[%s3312_s0 + $0x220] ss:$16 sps:$4 sm:$0xff]  }
  0x4a   :  { %1041 = vmatprep.mubr.bf16.mxu1 %v2495_v39  ;;  %v2591_v39 = vld [vmem:[%s3312_s0 + $0x244] ss:$16 sps:$4 sm:$0xff]  }
  0x4e   :  { %1323 = vmatmul.mubr.bf16.gmra.mrb[16].mxu0 %v2509_v44  ;;  %v2605_v44 = vld [vmem:[%s3312_s0 + $0x288] ss:$16 sps:$4 sm:$0xff]  }
  0x4f   :  { %2024 = vmatprep.mubr.msk.bf16.mxu0 %vm905_vm0, %v2511_v45  ;;  %v2607_v45 = vld [vmem:[%s3312_s0 + $0x2ac] ss:$16 sps:$4 sm:$0xff]  }
  0x51   :  { %1042 = vmatmul.mubr.bf16.gmra.mrb[8].mxu1 %v2498_v42  ;;  %v2594_v42 = vld [vmem:[%s3312_s0 + $0x240] ss:$16 sps:$4 sm:$0xff]  }
  0x52   :  { %1049 = vmatprep.mubr.bf16.mxu1 %v2501_v43  ;;  %v2597_v43 = vld [vmem:[%s3312_s0 + $0x264] ss:$16 sps:$4 sm:$0xff]  }
  0x56   :  { %1331 = vmatmul.mubr.bf16.gmra.mrb[20].mxu0 %v2515_v48  ;;  %v2611_v48 = vld [vmem:[%s3312_s0 + $0x2a8] ss:$16 sps:$4 sm:$0xff]  }
  0x57   :  { %2025 = vmatprep.mubr.msk.bf16.mxu0 %vm905_vm0, %v2517_v49  ;;  %v2613_v49 = vld [vmem:[%s3312_s0 + $0x2cc] ss:$16 sps:$4 sm:$0xff]  }
  0x59   :  { %1050 = vmatmul.mubr.bf16.gmra.mrb[12].mxu1 %v2504_v46  ;;  %v2600_v46 = vld [vmem:[%s3312_s0 + $0x260] ss:$16 sps:$4 sm:$0xff]  }
  0x5a   :  { %1057 = vmatprep.mubr.bf16.mxu1 %v2507_v47  ;;  %v2603_v47 = vld [vmem:[%s3312_s0 + $0x284] ss:$16 sps:$4 sm:$0xff]  }
  0x5e   :  { %1339 = vmatmul.mubr.bf16.gmra.mrb[24].mxu0 %v2521_v52  ;;  %v2617_v52 = vld [vmem:[%s3312_s0 + $0x2c8] ss:$16 sps:$4 sm:$0xff]  }
  0x5f   :  { %2026 = vmatprep.mubr.msk.bf16.mxu0 %vm905_vm0, %v2523_v53  ;;  %v2619_v53 = vld [vmem:[%s3312_s0 + $0x2ec] ss:$16 sps:$4 sm:$0xff]  }
  0x61   :  { %1058 = vmatmul.mubr.bf16.gmra.mrb[16].mxu1 %v2510_v50  ;;  %v2606_v50 = vld [vmem:[%s3312_s0 + $0x280] ss:$16 sps:$4 sm:$0xff]  }
  0x62   :  { %1065 = vmatprep.mubr.bf16.mxu1 %v2513_v51  ;;  %v2609_v51 = vld [vmem:[%s3312_s0 + $0x2a4] ss:$16 sps:$4 sm:$0xff]  }
  0x66   :  { %1347 = vmatmul.mubr.bf16.gmra.mrb[28].mxu0 %v2527_v56  ;;  %v2623_v56 = vld [vmem:[%s3312_s0 + $0x2e8] ss:$16 sps:$4 sm:$0xff]  }
  0x67   :  { %2027 = vmatprep.mubr.msk.bf16.mxu0 %vm905_vm0, %v2529_v57  ;;  %v2625_v57 = vld [vmem:[%s3312_s0 + $0x30c] ss:$16 sps:$4 sm:$0xff]  }
  0x69   :  { %1066 = vmatmul.mubr.bf16.gmra.mrb[20].mxu1 %v2516_v54  ;;  %v2612_v54 = vld [vmem:[%s3312_s0 + $0x2a0] ss:$16 sps:$4 sm:$0xff]  }
  0x6a   :  { %1073 = vmatprep.mubr.bf16.mxu1 %v2519_v55  ;;  %v2615_v55 = vld [vmem:[%s3312_s0 + $0x2c4] ss:$16 sps:$4 sm:$0xff]  }
  0x6e   :  { %1355 = vmatmul.mubr.bf16.gmra.mrb[32].mxu0 %v2533_v60  ;;  %v2629_v60 = vld [vmem:[%s3312_s0 + $0x308] ss:$16 sps:$4 sm:$0xff]  }
  0x6f   :  { %2028 = vmatprep.mubr.msk.bf16.mxu0 %vm905_vm0, %v2535_v61  ;;  %v2631_v61 = vld [vmem:[%s3312_s0 + $0x32c] ss:$16 sps:$4 sm:$0xff]  }
  0x71   :  { %1074 = vmatmul.mubr.bf16.gmra.mrb[24].mxu1 %v2522_v58  ;;  %v2618_v58 = vld [vmem:[%s3312_s0 + $0x2c0] ss:$16 sps:$4 sm:$0xff]  }
  0x72   :  { %1081 = vmatprep.mubr.bf16.mxu1 %v2525_v59  ;;  %v2621_v59 = vld [vmem:[%s3312_s0 + $0x2e4] ss:$16 sps:$4 sm:$0xff]  }
  0x76   :  { %1363 = vmatmul.mubr.bf16.gmra.mrb[36].mxu0 %v2539_v0  ;;  %v2635_v0 = vld [vmem:[%s3312_s0 + $0x328] ss:$16 sps:$4 sm:$0xff]  }
  0x77   :  { %2029 = vmatprep.mubr.msk.bf16.mxu0 %vm905_vm0, %v2541_v1  ;;  %v2637_v1 = vld [vmem:[%s3312_s0 + $0x34c] ss:$16 sps:$4 sm:$0xff]  }
  0x79   :  { %1082 = vmatmul.mubr.bf16.gmra.mrb[28].mxu1 %v2528_v62  ;;  %v2624_v62 = vld [vmem:[%s3312_s0 + $0x2e0] ss:$16 sps:$4 sm:$0xff]  }
  0x7a   :  { %1089 = vmatprep.mubr.bf16.mxu1 %v2531_v63  ;;  %v2627_v63 = vld [vmem:[%s3312_s0 + $0x304] ss:$16 sps:$4 sm:$0xff]  }
  0x7e   :  { %1371 = vmatmul.mubr.bf16.gmra.mrb[40].mxu0 %v2545_v4  ;;  %v2641_v4 = vld [vmem:[%s3312_s0 + $0x348] ss:$16 sps:$4 sm:$0xff]  }
  0x7f   :  { %2030 = vmatprep.mubr.msk.bf16.mxu0 %vm905_vm0, %v2547_v5  ;;  %v2643_v5 = vld [vmem:[%s3312_s0 + $0x36c] ss:$16 sps:$4 sm:$0xff]  }
  0x81   :  { %1090 = vmatmul.mubr.bf16.gmra.mrb[32].mxu1 %v2534_v2  ;;  %v2630_v2 = vld [vmem:[%s3312_s0 + $0x300] ss:$16 sps:$4 sm:$0xff]  }
  0x82   :  { %1097 = vmatprep.mubr.bf16.mxu1 %v2537_v3  ;;  %v2633_v3 = vld [vmem:[%s3312_s0 + $0x324] ss:$16 sps:$4 sm:$0xff]  }
  0x86   :  { %1379 = vmatmul.mubr.bf16.gmra.mrb[44].mxu0 %v2551_v8  ;;  %v2639_v8 = vld [vmem:[%s3312_s0 + $0x344] ss:$16 sps:$4 sm:$0xff]  }
  0x87   :  { %2031 = vmatprep.mubr.msk.bf16.mxu0 %vm905_vm0, %v2553_v9 }
  0x89   :  { %1098 = vmatmul.mubr.bf16.gmra.mrb[36].mxu1 %v2540_v6  ;;  %v2636_v6 = vld [vmem:[%s3312_s0 + $0x320] ss:$16 sps:$4 sm:$0xff]  }
  0x8a   :  { %1105 = vmatprep.mubr.bf16.mxu1 %v2543_v7 }
  0x8e   :  { %1387 = vmatmul.mubr.bf16.gmra.mrb[48].mxu0 %v2557_v12  ;;  %v2649_v12 = vld [vmem:[%s3312_s0 + $0x38c] ss:$16 sps:$4 sm:$0xff]  }
  0x8f   :  { %2032 = vmatprep.mubr.msk.bf16.mxu0 %vm905_vm0, %v2559_v13 }
  0x91   :  { %1106 = vmatmul.mubr.bf16.gmra.mrb[40].mxu1 %v2546_v10  ;;  %v2647_v10 = vld [vmem:[%s3312_s0 + $0x368] ss:$16 sps:$4 sm:$0xff]  }
  0x92   :  { %1113 = vmatprep.mubr.bf16.mxu1 %v2549_v11 }
  0x96   :  { %1395 = vmatmul.mubr.bf16.gmra.mrb[52].mxu0 %v2563_v16  ;;  %v2645_v16 = vld [vmem:[%s3312_s0 + $0x364] ss:$16 sps:$4 sm:$0xff]  }
  0x97   :  { %2033 = vmatprep.mubr.msk.bf16.mxu0 %vm905_vm0, %v2565_v17 }
  0x99   :  { %1114 = vmatmul.mubr.bf16.gmra.mrb[44].mxu1 %v2552_v14  ;;  %v2642_v14 = vld [vmem:[%s3312_s0 + $0x340] ss:$16 sps:$4 sm:$0xff]  }
  0x9a   :  { %1121 = vmatprep.mubr.bf16.mxu1 %v2555_v15 }
  0x9e   :  { %1403 = vmatmul.mubr.bf16.gmra.mrb[56].mxu0 %v2569_v20 }
  0x9f   :  { %2034 = vmatprep.mubr.msk.bf16.mxu0 %vm905_vm0, %v2571_v21  ;;  %v3155_v21 = vld [vmem:[%s3313_s2] ss:$0 sm:$0xff] }
  0xa1   :  { %1122 = vmatmul.mubr.bf16.gmra.mrb[48].mxu1 %v2558_v18  ;;  %v2653_v18 = vld [vmem:[%s3312_s0 + $0x388] ss:$16 sps:$4 sm:$0xff]  }
  0xa2   :  { %1129 = vmatprep.mubr.bf16.mxu1 %v2561_v19 }
  0xa6   :  { %1411 = vmatmul.mubr.bf16.gmra.mrb[60].mxu0 %v2575_v24 }
  0xa7   :  { %2035 = vmatprep.mubr.msk.bf16.mxu0 %vm905_vm0, %v2577_v25  ;;  %v2648_v25 = vld [vmem:[%s3312_s0 + $0x360] ss:$16 sps:$4 sm:$0xff]  }
  0xa9   :  { %1130 = vmatmul.mubr.bf16.gmra.mrb[52].mxu1 %v2564_v22 }
  0xaa   :  { %1137 = vmatprep.mubr.bf16.mxu1 %v2567_v23 }
  0xae   :  { %1419 = vmatmul.mubr.bf16.gmra.mrb[64].mxu0 %v2581_v28  ;;  %v2651_v28 = vld [vmem:[%s3312_s0 + $0x384] ss:$16 sps:$4 sm:$0xff]  }
  0xaf   :  { %2036 = vmatprep.mubr.msk.bf16.mxu0 %vm905_vm0, %v2583_v29 }
  0xb1   :  { %1138 = vmatmul.mubr.bf16.gmra.mrb[56].mxu1 %v2570_v26 }
  0xb2   :  { %1145 = vmatprep.mubr.bf16.mxu1 %v2573_v27 }
  0xb6   :  { %1427 = vmatmul.mubr.bf16.gmra.mrb[68].mxu0 %v2587_v32 }
  0xb7   :  { %2037 = vmatprep.mubr.msk.bf16.mxu0 %vm905_vm0, %v2589_v33 }
  0xb9   :  { %1146 = vmatmul.mubr.bf16.gmra.mrb[60].mxu1 %v2576_v30 }
  0xba   :  { %1153 = vmatprep.mubr.bf16.mxu1 %v2579_v31 }
  0xbe   :  { %1435 = vmatmul.mubr.bf16.gmra.mrb[72].mxu0 %v2593_v36 }
  0xbf   :  { %2038 = vmatprep.mubr.msk.bf16.mxu0 %vm905_vm0, %v2595_v37 }
  0xc1   :  { %1154 = vmatmul.mubr.bf16.gmra.mrb[64].mxu1 %v2582_v34 }
  0xc2   :  { %1161 = vmatprep.mubr.bf16.mxu1 %v2585_v35 }
  0xc6   :  { %1443 = vmatmul.mubr.bf16.gmra.mrb[76].mxu0 %v2599_v40 }
  0xc7   :  { %2039 = vmatprep.mubr.msk.bf16.mxu0 %vm905_vm0, %v2601_v41 }
  0xc9   :  { %1162 = vmatmul.mubr.bf16.gmra.mrb[68].mxu1 %v2588_v38 }
  0xca   :  { %1169 = vmatprep.mubr.bf16.mxu1 %v2591_v39 }
  0xce   :  { %1451 = vmatmul.mubr.bf16.gmra.mrb[80].mxu0 %v2605_v44 }
  0xcf   :  { %2040 = vmatprep.mubr.msk.bf16.mxu0 %vm905_vm0, %v2607_v45 }
  0xd1   :  { %1170 = vmatmul.mubr.bf16.gmra.mrb[72].mxu1 %v2594_v42  ;;  %v2654_v42 = vld [vmem:[%s3312_s0 + $0x380] ss:$16 sps:$4 sm:$0xff]  }
  0xd2   :  { %1177 = vmatprep.mubr.bf16.mxu1 %v2597_v43 }
  0xd6   :  { %1459 = vmatmul.mubr.bf16.gmra.mrb[84].mxu0 %v2611_v48 }
  0xd7   :  { %2041 = vmatprep.mubr.msk.bf16.mxu0 %vm905_vm0, %v2613_v49 }
  0xd9   :  { %1178 = vmatmul.mubr.bf16.gmra.mrb[76].mxu1 %v2600_v46 }
  0xda   :  { %1185 = vmatprep.mubr.bf16.mxu1 %v2603_v47 }
  0xde   :  { %1467 = vmatmul.mubr.bf16.gmra.mrb[88].mxu0 %v2617_v52 }
  0xdf   :  { %2042 = vmatprep.mubr.msk.bf16.mxu0 %vm905_vm0, %v2619_v53 }
  0xe1   :  { %1186 = vmatmul.mubr.bf16.gmra.mrb[80].mxu1 %v2606_v50 }
  0xe2   :  { %1193 = vmatprep.mubr.bf16.mxu1 %v2609_v51 }
  0xe6   :  { %1475 = vmatmul.mubr.bf16.gmra.mrb[92].mxu0 %v2623_v56 }
  0xe7   :  { %2043 = vmatprep.mubr.msk.bf16.mxu0 %vm905_vm0, %v2625_v57 }
  0xe9   :  { %1194 = vmatmul.mubr.bf16.gmra.mrb[84].mxu1 %v2612_v54 }
  0xea   :  { %1201 = vmatprep.mubr.bf16.mxu1 %v2615_v55 }
  0xee   :  { %1483 = vmatmul.mubr.bf16.gmra.mrb[96].mxu0 %v2629_v60 }
  0xef   :  { %2044 = vmatprep.mubr.msk.bf16.mxu0 %vm905_vm0, %v2631_v61 }
  0xf1   :  { %1202 = vmatmul.mubr.bf16.gmra.mrb[88].mxu1 %v2618_v58 }
  0xf2   :  { %1209 = vmatprep.mubr.bf16.mxu1 %v2621_v59 }
  0xf6   :  { %1491 = vmatmul.mubr.bf16.gmra.mrb[100].mxu0 %v2635_v0 }
  0xf7   :  { %2045 = vmatprep.mubr.msk.bf16.mxu0 %vm905_vm0, %v2637_v1 }
  0xf9   :  { %1210 = vmatmul.mubr.bf16.gmra.mrb[92].mxu1 %v2624_v62 }
  0xfa   :  { %1217 = vmatprep.mubr.bf16.mxu1 %v2627_v63 }
  0xfe   :  { %1499 = vmatmul.mubr.bf16.gmra.mrb[104].mxu0 %v2641_v4 }
  0xff   :  { %2046 = vmatprep.mubr.msk.bf16.mxu0 %vm905_vm0, %v2643_v5 }
 0x101   :  { %1218 = vmatmul.mubr.bf16.gmra.mrb[96].mxu1 %v2630_v2  ;;  %v1292_v7 = vpop.f32.mrb[0].mxu0 }
 0x102   :  { %1225 = vmatprep.mubr.bf16.mxu1 %v2633_v3  ;;  %v1294_v9 = vpop.f32.mrb[1].mxu0 }
 0x103   :  { %v1295_v11 = vpop.f32.mrb[2].mxu0 }
 0x104   :  { %v1297_v13 = vpop.f32.mrb[3].mxu0 }
 0x106   :  { %1507 = vmatmul.mubr.bf16.gmra.mrb[108].mxu0 %v2647_v10 }
 0x107   :  { %2047 = vmatprep.mubr.msk.bf16.mxu0 %vm905_vm0, %v2649_v12 }
 0x109   :  { %1226 = vmatmul.mubr.bf16.gmra.mrb[100].mxu1 %v2636_v6  ;;  %v1300_v15 = vpop.f32.mrb[4].mxu0 }
 0x10a   :  { %1233 = vmatprep.mubr.bf16.mxu1 %v2639_v8  ;;  %v1302_v17 = vpop.f32.mrb[5].mxu0 }
 0x10b   :  { %v1303_v19 = vpop.f32.mrb[6].mxu0 }
 0x10c   :  { %v1305_v20 = vpop.f32.mrb[7].mxu0 }
 0x10e   :  { %1515 = vmatmul.mubr.bf16.gmra.mrb[112].mxu0 %v2653_v18 }
 0x111   :  { %1234 = vmatmul.mubr.bf16.gmra.mrb[104].mxu1 %v2642_v14  ;;  %v1308_v26 = vpop.f32.mrb[8].mxu0 }
 0x112   :  { %1241 = vmatprep.mubr.bf16.mxu1 %v2645_v16  ;;  %v1310_v29 = vpop.f32.mrb[9].mxu0 }
 0x113   :  { %v1311_v33 = vpop.f32.mrb[10].mxu0 }
 0x114   :  { %v1027_v22 = vpop.f32.mrb[0].mxu1  ;;  %v1313_v34 = vpop.f32.mrb[11].mxu0 }
 0x115   :  { %v1028_v23 = vadd.f32 %v3155_v21, %v1027_v22  ;;  %v1029_v24 = vpop.f32.mrb[1].mxu1 }
 0x116   :  { %v1030_v27 = vpop.f32.mrb[2].mxu1 }
 0x117   :  { %v1293_v30 = vadd.f32 %v1292_v7, %v1028_v23  ;;  %v1031_v31 = vadd.f32 %v3155_v21, %v1030_v27  ;;  %v1032_v32 = vpop.f32.mrb[3].mxu1 }
 0x119   :  { %v1296_v35 = vadd.f32 %v1295_v11, %v1031_v31  ;;  %1242 = vmatmul.mubr.bf16.gmra.mrb[108].mxu1 %v2648_v25  ;;  %v1523_v36 = vmax.f32 %v1293_v30, 0.0  ;;  %v1316_v43 = vpop.f32.mrb[12].mxu0 }
 0x11a   :  { %1249 = vmatprep.mubr.bf16.mxu1 %v2651_v28  ;;  %v1318_v45 = vpop.f32.mrb[13].mxu0 }
 0x11b   :  { %v1524_v37 = vmax.f32 %v1296_v35, 0.0  ;;  %v1319_v49 = vpop.f32.mrb[14].mxu0 }
 0x11c   :  { %v1035_v38 = vpop.f32.mrb[4].mxu1  ;;  %v1321_v50 = vpop.f32.mrb[15].mxu0 }
 0x11d   :  { %v2167_v39 = vpack.c.bf16 %v1524_v37, %v1523_v36  ;;  %v1036_v40 = vadd.f32 %v3155_v21, %v1035_v38  ;;  %v1037_v41 = vpop.f32.mrb[5].mxu1 }
 0x11e   :  { %v1038_v44 = vpop.f32.mrb[6].mxu1 }
 0x11f   :  { %2168 = vst [vmem:[%s3314_s3] sm:$0xff] %v2167_v39   ;;  %v1301_v46 = vadd.f32 %v1300_v15, %v1036_v40  ;;  %v1039_v47 = vadd.f32 %v3155_v21, %v1038_v44  ;;  %v1040_v48 = vpop.f32.mrb[7].mxu1 }
 0x121   :  { %v1304_v51 = vadd.f32 %v1303_v19, %v1039_v47  ;;  %1250 = vmatmul.mubr.bf16.gmra.mrb[112].mxu1 %v2654_v42  ;;  %v1525_v52 = vmax.f32 %v1301_v46, 0.0  ;;  %v1324_v58 = vpop.f32.mrb[16].mxu0 }
 0x122   :  { %v1326_v60 = vpop.f32.mrb[17].mxu0 }
 0x123   :  { %v1526_v53 = vmax.f32 %v1304_v51, 0.0  ;;  %v1327_v0 = vpop.f32.mrb[18].mxu0 }
 0x124   :  { %v1043_v54 = vpop.f32.mrb[8].mxu1  ;;  %v1329_v1 = vpop.f32.mrb[19].mxu0 }
 0x125   :  { %v2172_v55 = vpack.c.bf16 %v1526_v53, %v1525_v52  ;;  %v1044_v56 = vadd.f32 %v3155_v21, %v1043_v54  ;;  %v1045_v57 = vpop.f32.mrb[9].mxu1 }
 0x126   :  { %v1046_v59 = vpop.f32.mrb[10].mxu1 }
 0x127   :  { %2309 = vst [vmem:[%s3314_s3 + $0x8] sm:$0xff] %v2172_v55   ;;  %v1309_v61 = vadd.f32 %v1308_v26, %v1044_v56  ;;  %v1047_v62 = vadd.f32 %v3155_v21, %v1046_v59  ;;  %v1048_v63 = vpop.f32.mrb[11].mxu1 }
 0x129   :  { %v1312_v2 = vadd.f32 %v1311_v33, %v1047_v62  ;;  %v1527_v3 = vmax.f32 %v1309_v61, 0.0  ;;  %v1332_v9 = vpop.f32.mrb[20].mxu0 }
 0x12a   :  { %v1334_v11 = vpop.f32.mrb[21].mxu0 }
 0x12b   :  { %v1528_v4 = vmax.f32 %v1312_v2, 0.0  ;;  %v1335_v15 = vpop.f32.mrb[22].mxu0 }
 0x12c   :  { %v1051_v5 = vpop.f32.mrb[12].mxu1  ;;  %v1337_v16 = vpop.f32.mrb[23].mxu0 }
 0x12d   :  { %v2177_v6 = vpack.c.bf16 %v1528_v4, %v1527_v3  ;;  %v1052_v7 = vadd.f32 %v3155_v21, %v1051_v5  ;;  %v1053_v8 = vpop.f32.mrb[13].mxu1 }
 0x12e   :  { %v1054_v10 = vpop.f32.mrb[14].mxu1 }
 0x12f   :  { %2310 = vst [vmem:[%s3314_s3 + $0x10] sm:$0xff] %v2177_v6   ;;  %v1317_v12 = vadd.f32 %v1316_v43, %v1052_v7  ;;  %v1055_v13 = vadd.f32 %v3155_v21, %v1054_v10  ;;  %v1056_v14 = vpop.f32.mrb[15].mxu1 }
 0x131   :  { %v1320_v17 = vadd.f32 %v1319_v49, %v1055_v13  ;;  %v1529_v18 = vmax.f32 %v1317_v12, 0.0  ;;  %v1340_v25 = vpop.f32.mrb[24].mxu0 }
 0x132   :  { %v1342_v27 = vpop.f32.mrb[25].mxu0 }
 0x133   :  { %v1530_v19 = vmax.f32 %v1320_v17, 0.0  ;;  %v1343_v31 = vpop.f32.mrb[26].mxu0 }
 0x134   :  { %v1059_v20 = vpop.f32.mrb[16].mxu1  ;;  %v1345_v32 = vpop.f32.mrb[27].mxu0 }
 0x135   :  { %v2182_v22 = vpack.c.bf16 %v1530_v19, %v1529_v18  ;;  %v1060_v23 = vadd.f32 %v3155_v21, %v1059_v20  ;;  %v1061_v24 = vpop.f32.mrb[17].mxu1 }
 0x136   :  { %v1062_v26 = vpop.f32.mrb[18].mxu1 }
 0x137   :  { %2311 = vst [vmem:[%s3314_s3 + $0x18] sm:$0xff] %v2182_v22   ;;  %v1325_v28 = vadd.f32 %v1324_v58, %v1060_v23  ;;  %v1063_v29 = vadd.f32 %v3155_v21, %v1062_v26  ;;  %v1064_v30 = vpop.f32.mrb[19].mxu1 }
 0x139   :  { %v1328_v33 = vadd.f32 %v1327_v0, %v1063_v29  ;;  %v1531_v34 = vmax.f32 %v1325_v28, 0.0  ;;  %v1348_v40 = vpop.f32.mrb[28].mxu0 }
 0x13a   :  { %v1350_v42 = vpop.f32.mrb[29].mxu0 }
 0x13b   :  { %v1532_v35 = vmax.f32 %v1328_v33, 0.0  ;;  %v1351_v46 = vpop.f32.mrb[30].mxu0 }
 0x13c   :  { %v1067_v36 = vpop.f32.mrb[20].mxu1  ;;  %v1353_v47 = vpop.f32.mrb[31].mxu0 }
 0x13d   :  { %v2187_v37 = vpack.c.bf16 %v1532_v35, %v1531_v34  ;;  %v1068_v38 = vadd.f32 %v3155_v21, %v1067_v36  ;;  %v1069_v39 = vpop.f32.mrb[21].mxu1 }
 0x13e   :  { %v1070_v41 = vpop.f32.mrb[22].mxu1 }
 0x13f   :  { %2312 = vst [vmem:[%s3314_s3 + $0x20] sm:$0xff] %v2187_v37   ;;  %v1333_v43 = vadd.f32 %v1332_v9, %v1068_v38  ;;  %v1071_v44 = vadd.f32 %v3155_v21, %v1070_v41  ;;  %v1072_v45 = vpop.f32.mrb[23].mxu1 }
 0x141   :  { %v1336_v48 = vadd.f32 %v1335_v15, %v1071_v44  ;;  %v1533_v49 = vmax.f32 %v1333_v43, 0.0  ;;  %v1356_v55 = vpop.f32.mrb[32].mxu0 }
 0x142   :  { %v1358_v57 = vpop.f32.mrb[33].mxu0 }
 0x143   :  { %v1534_v50 = vmax.f32 %v1336_v48, 0.0  ;;  %v1359_v61 = vpop.f32.mrb[34].mxu0 }
 0x144   :  { %v1075_v51 = vpop.f32.mrb[24].mxu1  ;;  %v1361_v62 = vpop.f32.mrb[35].mxu0 }
 0x145   :  { %v2192_v52 = vpack.c.bf16 %v1534_v50, %v1533_v49  ;;  %v1076_v53 = vadd.f32 %v3155_v21, %v1075_v51  ;;  %v1077_v54 = vpop.f32.mrb[25].mxu1 }
 0x146   :  { %v1078_v56 = vpop.f32.mrb[26].mxu1 }
 0x147   :  { %2313 = vst [vmem:[%s3314_s3 + $0x28] sm:$0xff] %v2192_v52   ;;  %v1341_v58 = vadd.f32 %v1340_v25, %v1076_v53  ;;  %v1079_v59 = vadd.f32 %v3155_v21, %v1078_v56  ;;  %v1080_v60 = vpop.f32.mrb[27].mxu1 }
 0x149   :  { %v1344_v63 = vadd.f32 %v1343_v31, %v1079_v59  ;;  %v1535_v0 = vmax.f32 %v1341_v58, 0.0  ;;  %v1364_v6 = vpop.f32.mrb[36].mxu0 }
 0x14a   :  { %v1366_v8 = vpop.f32.mrb[37].mxu0 }
 0x14b   :  { %v1536_v1 = vmax.f32 %v1344_v63, 0.0  ;;  %v1367_v12 = vpop.f32.mrb[38].mxu0 }
 0x14c   :  { %v1083_v2 = vpop.f32.mrb[28].mxu1  ;;  %v1369_v13 = vpop.f32.mrb[39].mxu0 }
 0x14d   :  { %v2197_v3 = vpack.c.bf16 %v1536_v1, %v1535_v0  ;;  %v1084_v4 = vadd.f32 %v3155_v21, %v1083_v2  ;;  %v1085_v5 = vpop.f32.mrb[29].mxu1 }
 0x14e   :  { %v1086_v7 = vpop.f32.mrb[30].mxu1 }
 0x14f   :  { %2314 = vst [vmem:[%s3314_s3 + $0x30] sm:$0xff] %v2197_v3   ;;  %v1349_v9 = vadd.f32 %v1348_v40, %v1084_v4  ;;  %v1087_v10 = vadd.f32 %v3155_v21, %v1086_v7  ;;  %v1088_v11 = vpop.f32.mrb[31].mxu1 }
 0x151   :  { %v1352_v14 = vadd.f32 %v1351_v46, %v1087_v10  ;;  %v1537_v15 = vmax.f32 %v1349_v9, 0.0  ;;  %v1372_v22 = vpop.f32.mrb[40].mxu0 }
 0x152   :  { %v1374_v24 = vpop.f32.mrb[41].mxu0 }
 0x153   :  { %v1538_v16 = vmax.f32 %v1352_v14, 0.0  ;;  %v1375_v28 = vpop.f32.mrb[42].mxu0 }
 0x154   :  { %v1091_v17 = vpop.f32.mrb[32].mxu1  ;;  %v1377_v29 = vpop.f32.mrb[43].mxu0 }
 0x155   :  { %v2202_v18 = vpack.c.bf16 %v1538_v16, %v1537_v15  ;;  %v1092_v19 = vadd.f32 %v3155_v21, %v1091_v17  ;;  %v1093_v20 = vpop.f32.mrb[33].mxu1 }
 0x156   :  { %v1094_v23 = vpop.f32.mrb[34].mxu1 }
 0x157   :  { %2315 = vst [vmem:[%s3314_s3 + $0x38] sm:$0xff] %v2202_v18   ;;  %v1357_v25 = vadd.f32 %v1356_v55, %v1092_v19  ;;  %v1095_v26 = vadd.f32 %v3155_v21, %v1094_v23  ;;  %v1096_v27 = vpop.f32.mrb[35].mxu1 }
 0x159   :  { %v1360_v30 = vadd.f32 %v1359_v61, %v1095_v26  ;;  %v1539_v31 = vmax.f32 %v1357_v25, 0.0  ;;  %v1380_v37 = vpop.f32.mrb[44].mxu0 }
 0x15a   :  { %v1382_v39 = vpop.f32.mrb[45].mxu0 }
 0x15b   :  { %v1540_v32 = vmax.f32 %v1360_v30, 0.0  ;;  %v1383_v43 = vpop.f32.mrb[46].mxu0 }
 0x15c   :  { %v1099_v33 = vpop.f32.mrb[36].mxu1  ;;  %v1385_v44 = vpop.f32.mrb[47].mxu0 }
 0x15d   :  { %v2207_v34 = vpack.c.bf16 %v1540_v32, %v1539_v31  ;;  %v1100_v35 = vadd.f32 %v3155_v21, %v1099_v33  ;;  %v1101_v36 = vpop.f32.mrb[37].mxu1 }
 0x15e   :  { %v1102_v38 = vpop.f32.mrb[38].mxu1 }
 0x15f   :  { %2316 = vst [vmem:[%s3314_s3 + $0x40] sm:$0xff] %v2207_v34   ;;  %v1365_v40 = vadd.f32 %v1364_v6, %v1100_v35  ;;  %v1103_v41 = vadd.f32 %v3155_v21, %v1102_v38  ;;  %v1104_v42 = vpop.f32.mrb[39].mxu1 }
 0x161   :  { %v1368_v45 = vadd.f32 %v1367_v12, %v1103_v41  ;;  %v1541_v46 = vmax.f32 %v1365_v40, 0.0  ;;  %v1388_v52 = vpop.f32.mrb[48].mxu0 }
 0x162   :  { %v1390_v54 = vpop.f32.mrb[49].mxu0 }
 0x163   :  { %v1542_v47 = vmax.f32 %v1368_v45, 0.0  ;;  %v1391_v58 = vpop.f32.mrb[50].mxu0 }
 0x164   :  { %v1107_v48 = vpop.f32.mrb[40].mxu1  ;;  %v1393_v59 = vpop.f32.mrb[51].mxu0 }
 0x165   :  { %v2212_v49 = vpack.c.bf16 %v1542_v47, %v1541_v46  ;;  %v1108_v50 = vadd.f32 %v3155_v21, %v1107_v48  ;;  %v1109_v51 = vpop.f32.mrb[41].mxu1 }
 0x166   :  { %v1110_v53 = vpop.f32.mrb[42].mxu1 }
 0x167   :  { %2317 = vst [vmem:[%s3314_s3 + $0x48] sm:$0xff] %v2212_v49   ;;  %v1373_v55 = vadd.f32 %v1372_v22, %v1108_v50  ;;  %v1111_v56 = vadd.f32 %v3155_v21, %v1110_v53  ;;  %v1112_v57 = vpop.f32.mrb[43].mxu1 }
 0x169   :  { %v1376_v60 = vadd.f32 %v1375_v28, %v1111_v56  ;;  %v1543_v61 = vmax.f32 %v1373_v55, 0.0  ;;  %v1396_v3 = vpop.f32.mrb[52].mxu0 }
 0x16a   :  { %v1398_v5 = vpop.f32.mrb[53].mxu0 }
 0x16b   :  { %v1544_v62 = vmax.f32 %v1376_v60, 0.0  ;;  %v1399_v9 = vpop.f32.mrb[54].mxu0 }
 0x16c   :  { %v1115_v63 = vpop.f32.mrb[44].mxu1  ;;  %v1401_v10 = vpop.f32.mrb[55].mxu0 }
 0x16d   :  { %v2217_v0 = vpack.c.bf16 %v1544_v62, %v1543_v61  ;;  %v1116_v1 = vadd.f32 %v3155_v21, %v1115_v63  ;;  %v1117_v2 = vpop.f32.mrb[45].mxu1 }
 0x16e   :  { %v1118_v4 = vpop.f32.mrb[46].mxu1 }
 0x16f   :  { %2318 = vst [vmem:[%s3314_s3 + $0x50] sm:$0xff] %v2217_v0   ;;  %v1381_v6 = vadd.f32 %v1380_v37, %v1116_v1  ;;  %v1119_v7 = vadd.f32 %v3155_v21, %v1118_v4  ;;  %v1120_v8 = vpop.f32.mrb[47].mxu1 }
 0x171   :  { %v1384_v11 = vadd.f32 %v1383_v43, %v1119_v7  ;;  %v1545_v12 = vmax.f32 %v1381_v6, 0.0  ;;  %v1404_v18 = vpop.f32.mrb[56].mxu0 }
 0x172   :  { %v1406_v20 = vpop.f32.mrb[57].mxu0 }
 0x173   :  { %v1546_v13 = vmax.f32 %v1384_v11, 0.0  ;;  %v1407_v25 = vpop.f32.mrb[58].mxu0 }
 0x174   :  { %v1123_v14 = vpop.f32.mrb[48].mxu1  ;;  %v1409_v26 = vpop.f32.mrb[59].mxu0 }
 0x175   :  { %v2222_v15 = vpack.c.bf16 %v1546_v13, %v1545_v12  ;;  %v1124_v16 = vadd.f32 %v3155_v21, %v1123_v14  ;;  %v1125_v17 = vpop.f32.mrb[49].mxu1 }
 0x176   :  { %v1126_v19 = vpop.f32.mrb[50].mxu1 }
 0x177   :  { %2319 = vst [vmem:[%s3314_s3 + $0x58] sm:$0xff] %v2222_v15   ;;  %v1389_v22 = vadd.f32 %v1388_v52, %v1124_v16  ;;  %v1127_v23 = vadd.f32 %v3155_v21, %v1126_v19  ;;  %v1128_v24 = vpop.f32.mrb[51].mxu1 }
 0x179   :  { %v1392_v27 = vadd.f32 %v1391_v58, %v1127_v23  ;;  %v1547_v28 = vmax.f32 %v1389_v22, 0.0  ;;  %v1412_v34 = vpop.f32.mrb[60].mxu0 }
 0x17a   :  { %v1414_v36 = vpop.f32.mrb[61].mxu0 }
 0x17b   :  { %v1548_v29 = vmax.f32 %v1392_v27, 0.0  ;;  %v1415_v40 = vpop.f32.mrb[62].mxu0 }
 0x17c   :  { %v1131_v30 = vpop.f32.mrb[52].mxu1  ;;  %v1417_v41 = vpop.f32.mrb[63].mxu0 }
 0x17d   :  { %v2227_v31 = vpack.c.bf16 %v1548_v29, %v1547_v28  ;;  %v1132_v32 = vadd.f32 %v3155_v21, %v1131_v30  ;;  %v1133_v33 = vpop.f32.mrb[53].mxu1 }
 0x17e   :  { %v1134_v35 = vpop.f32.mrb[54].mxu1 }
 0x17f   :  { %2320 = vst [vmem:[%s3314_s3 + $0x60] sm:$0xff] %v2227_v31   ;;  %v1397_v37 = vadd.f32 %v1396_v3, %v1132_v32  ;;  %v1135_v38 = vadd.f32 %v3155_v21, %v1134_v35  ;;  %v1136_v39 = vpop.f32.mrb[55].mxu1 }
 0x181   :  { %v1400_v42 = vadd.f32 %v1399_v9, %v1135_v38  ;;  %v1549_v43 = vmax.f32 %v1397_v37, 0.0  ;;  %v1420_v49 = vpop.f32.mrb[64].mxu0 }
 0x182   :  { %v1422_v51 = vpop.f32.mrb[65].mxu0 }
 0x183   :  { %v1550_v44 = vmax.f32 %v1400_v42, 0.0  ;;  %v1423_v55 = vpop.f32.mrb[66].mxu0 }
 0x184   :  { %v1139_v45 = vpop.f32.mrb[56].mxu1  ;;  %v1425_v56 = vpop.f32.mrb[67].mxu0 }
 0x185   :  { %v2232_v46 = vpack.c.bf16 %v1550_v44, %v1549_v43  ;;  %v1140_v47 = vadd.f32 %v3155_v21, %v1139_v45  ;;  %v1141_v48 = vpop.f32.mrb[57].mxu1 }
 0x186   :  { %v1142_v50 = vpop.f32.mrb[58].mxu1 }
 0x187   :  { %2321 = vst [vmem:[%s3314_s3 + $0x68] sm:$0xff] %v2232_v46   ;;  %v1405_v52 = vadd.f32 %v1404_v18, %v1140_v47  ;;  %v1143_v53 = vadd.f32 %v3155_v21, %v1142_v50  ;;  %v1144_v54 = vpop.f32.mrb[59].mxu1 }
 0x189   :  { %v1408_v57 = vadd.f32 %v1407_v25, %v1143_v53  ;;  %v1551_v58 = vmax.f32 %v1405_v52, 0.0  ;;  %v1428_v0 = vpop.f32.mrb[68].mxu0 }
 0x18a   :  { %v1430_v2 = vpop.f32.mrb[69].mxu0 }
 0x18b   :  { %v1552_v59 = vmax.f32 %v1408_v57, 0.0  ;;  %v1431_v6 = vpop.f32.mrb[70].mxu0 }
 0x18c   :  { %v1147_v60 = vpop.f32.mrb[60].mxu1  ;;  %v1433_v7 = vpop.f32.mrb[71].mxu0 }
 0x18d   :  { %v2237_v61 = vpack.c.bf16 %v1552_v59, %v1551_v58  ;;  %v1148_v62 = vadd.f32 %v3155_v21, %v1147_v60  ;;  %v1149_v63 = vpop.f32.mrb[61].mxu1 }
 0x18e   :  { %v1150_v1 = vpop.f32.mrb[62].mxu1 }
 0x18f   :  { %2322 = vst [vmem:[%s3314_s3 + $0x70] sm:$0xff] %v2237_v61   ;;  %v1413_v3 = vadd.f32 %v1412_v34, %v1148_v62  ;;  %v1151_v4 = vadd.f32 %v3155_v21, %v1150_v1  ;;  %v1152_v5 = vpop.f32.mrb[63].mxu1 }
 0x191   :  { %v1416_v8 = vadd.f32 %v1415_v40, %v1151_v4  ;;  %v1553_v9 = vmax.f32 %v1413_v3, 0.0  ;;  %v1436_v15 = vpop.f32.mrb[72].mxu0 }
 0x192   :  { %v1438_v17 = vpop.f32.mrb[73].mxu0 }
 0x193   :  { %v1554_v10 = vmax.f32 %v1416_v8, 0.0  ;;  %v1439_v22 = vpop.f32.mrb[74].mxu0 }
 0x194   :  { %v1155_v11 = vpop.f32.mrb[64].mxu1  ;;  %v1441_v23 = vpop.f32.mrb[75].mxu0 }
 0x195   :  { %v2242_v12 = vpack.c.bf16 %v1554_v10, %v1553_v9  ;;  %v1156_v13 = vadd.f32 %v3155_v21, %v1155_v11  ;;  %v1157_v14 = vpop.f32.mrb[65].mxu1 }
 0x196   :  { %v1158_v16 = vpop.f32.mrb[66].mxu1 }
 0x197   :  { %2323 = vst [vmem:[%s3314_s3 + $0x78] sm:$0xff] %v2242_v12   ;;  %v1421_v18 = vadd.f32 %v1420_v49, %v1156_v13  ;;  %v1159_v19 = vadd.f32 %v3155_v21, %v1158_v16  ;;  %v1160_v20 = vpop.f32.mrb[67].mxu1 }
 0x199   :  { %v1424_v24 = vadd.f32 %v1423_v55, %v1159_v19  ;;  %v1555_v25 = vmax.f32 %v1421_v18, 0.0  ;;  %v1444_v31 = vpop.f32.mrb[76].mxu0 }
 0x19a   :  { %v1446_v33 = vpop.f32.mrb[77].mxu0 }
 0x19b   :  { %v1556_v26 = vmax.f32 %v1424_v24, 0.0  ;;  %v1447_v37 = vpop.f32.mrb[78].mxu0 }
 0x19c   :  { %v1163_v27 = vpop.f32.mrb[68].mxu1  ;;  %v1449_v38 = vpop.f32.mrb[79].mxu0 }
 0x19d   :  { %v2247_v28 = vpack.c.bf16 %v1556_v26, %v1555_v25  ;;  %v1164_v29 = vadd.f32 %v3155_v21, %v1163_v27  ;;  %v1165_v30 = vpop.f32.mrb[69].mxu1 }
 0x19e   :  { %v1166_v32 = vpop.f32.mrb[70].mxu1 }
 0x19f   :  { %2324 = vst [vmem:[%s3314_s3 + $0x80] sm:$0xff] %v2247_v28   ;;  %v1429_v34 = vadd.f32 %v1428_v0, %v1164_v29  ;;  %v1167_v35 = vadd.f32 %v3155_v21, %v1166_v32  ;;  %v1168_v36 = vpop.f32.mrb[71].mxu1 }
 0x1a1   :  { %v1432_v39 = vadd.f32 %v1431_v6, %v1167_v35  ;;  %v1557_v40 = vmax.f32 %v1429_v34, 0.0  ;;  %v1452_v46 = vpop.f32.mrb[80].mxu0 }
 0x1a2   :  { %v1454_v48 = vpop.f32.mrb[81].mxu0 }
 0x1a3   :  { %v1558_v41 = vmax.f32 %v1432_v39, 0.0  ;;  %v1455_v52 = vpop.f32.mrb[82].mxu0 }
 0x1a4   :  { %v1171_v42 = vpop.f32.mrb[72].mxu1  ;;  %v1457_v53 = vpop.f32.mrb[83].mxu0 }
 0x1a5   :  { %v2252_v43 = vpack.c.bf16 %v1558_v41, %v1557_v40  ;;  %v1172_v44 = vadd.f32 %v3155_v21, %v1171_v42  ;;  %v1173_v45 = vpop.f32.mrb[73].mxu1 }
 0x1a6   :  { %v1174_v47 = vpop.f32.mrb[74].mxu1 }
 0x1a7   :  { %2325 = vst [vmem:[%s3314_s3 + $0x88] sm:$0xff] %v2252_v43   ;;  %v1437_v49 = vadd.f32 %v1436_v15, %v1172_v44  ;;  %v1175_v50 = vadd.f32 %v3155_v21, %v1174_v47  ;;  %v1176_v51 = vpop.f32.mrb[75].mxu1 }
 0x1a9   :  { %v1440_v54 = vadd.f32 %v1439_v22, %v1175_v50  ;;  %v1559_v55 = vmax.f32 %v1437_v49, 0.0  ;;  %v1460_v61 = vpop.f32.mrb[84].mxu0 }
 0x1aa   :  { %v1462_v63 = vpop.f32.mrb[85].mxu0 }
 0x1ab   :  { %v1560_v56 = vmax.f32 %v1440_v54, 0.0  ;;  %v1463_v3 = vpop.f32.mrb[86].mxu0 }
 0x1ac   :  { %v1179_v57 = vpop.f32.mrb[76].mxu1  ;;  %v1465_v4 = vpop.f32.mrb[87].mxu0 }
 0x1ad   :  { %v2257_v58 = vpack.c.bf16 %v1560_v56, %v1559_v55  ;;  %v1180_v59 = vadd.f32 %v3155_v21, %v1179_v57  ;;  %v1181_v60 = vpop.f32.mrb[77].mxu1 }
 0x1ae   :  { %v1182_v62 = vpop.f32.mrb[78].mxu1 }
 0x1af   :  { %2326 = vst [vmem:[%s3314_s3 + $0x90] sm:$0xff] %v2257_v58   ;;  %v1445_v0 = vadd.f32 %v1444_v31, %v1180_v59  ;;  %v1183_v1 = vadd.f32 %v3155_v21, %v1182_v62  ;;  %v1184_v2 = vpop.f32.mrb[79].mxu1 }
 0x1b1   :  { %v1448_v5 = vadd.f32 %v1447_v37, %v1183_v1  ;;  %v1561_v6 = vmax.f32 %v1445_v0, 0.0  ;;  %v1468_v12 = vpop.f32.mrb[88].mxu0 }
 0x1b2   :  { %v1470_v14 = vpop.f32.mrb[89].mxu0 }
 0x1b3   :  { %v1562_v7 = vmax.f32 %v1448_v5, 0.0  ;;  %v1471_v18 = vpop.f32.mrb[90].mxu0 }
 0x1b4   :  { %v1187_v8 = vpop.f32.mrb[80].mxu1  ;;  %v1473_v19 = vpop.f32.mrb[91].mxu0 }
 0x1b5   :  { %v2262_v9 = vpack.c.bf16 %v1562_v7, %v1561_v6  ;;  %v1188_v10 = vadd.f32 %v3155_v21, %v1187_v8  ;;  %v1189_v11 = vpop.f32.mrb[81].mxu1 }
 0x1b6   :  { %v1190_v13 = vpop.f32.mrb[82].mxu1 }
 0x1b7   :  { %2327 = vst [vmem:[%s3314_s3 + $0x98] sm:$0xff] %v2262_v9   ;;  %v1453_v15 = vadd.f32 %v1452_v46, %v1188_v10  ;;  %v1191_v16 = vadd.f32 %v3155_v21, %v1190_v13  ;;  %v1192_v17 = vpop.f32.mrb[83].mxu1 }
 0x1b9   :  { %v1456_v20 = vadd.f32 %v1455_v52, %v1191_v16  ;;  %v1563_v22 = vmax.f32 %v1453_v15, 0.0  ;;  %v1476_v28 = vpop.f32.mrb[92].mxu0 }
 0x1ba   :  { %v1478_v30 = vpop.f32.mrb[93].mxu0 }
 0x1bb   :  { %v1564_v23 = vmax.f32 %v1456_v20, 0.0  ;;  %v1479_v34 = vpop.f32.mrb[94].mxu0 }
 0x1bc   :  { %v1195_v24 = vpop.f32.mrb[84].mxu1  ;;  %v1481_v35 = vpop.f32.mrb[95].mxu0 }
 0x1bd   :  { %v2267_v25 = vpack.c.bf16 %v1564_v23, %v1563_v22  ;;  %v1196_v26 = vadd.f32 %v3155_v21, %v1195_v24  ;;  %v1197_v27 = vpop.f32.mrb[85].mxu1 }
 0x1be   :  { %v1198_v29 = vpop.f32.mrb[86].mxu1 }
 0x1bf   :  { %2328 = vst [vmem:[%s3314_s3 + $0xa0] sm:$0xff] %v2267_v25   ;;  %v1461_v31 = vadd.f32 %v1460_v61, %v1196_v26  ;;  %v1199_v32 = vadd.f32 %v3155_v21, %v1198_v29  ;;  %v1200_v33 = vpop.f32.mrb[87].mxu1 }
 0x1c1   :  { %v1464_v36 = vadd.f32 %v1463_v3, %v1199_v32  ;;  %v1565_v37 = vmax.f32 %v1461_v31, 0.0  ;;  %v1484_v43 = vpop.f32.mrb[96].mxu0 }
 0x1c2   :  { %v1486_v45 = vpop.f32.mrb[97].mxu0 }
 0x1c3   :  { %v1566_v38 = vmax.f32 %v1464_v36, 0.0  ;;  %v1487_v49 = vpop.f32.mrb[98].mxu0 }
 0x1c4   :  { %v1203_v39 = vpop.f32.mrb[88].mxu1  ;;  %v1489_v50 = vpop.f32.mrb[99].mxu0 }
 0x1c5   :  { %v2272_v40 = vpack.c.bf16 %v1566_v38, %v1565_v37  ;;  %v1204_v41 = vadd.f32 %v3155_v21, %v1203_v39  ;;  %v1205_v42 = vpop.f32.mrb[89].mxu1 }
 0x1c6   :  { %v1206_v44 = vpop.f32.mrb[90].mxu1 }
 0x1c7   :  { %2329 = vst [vmem:[%s3314_s3 + $0xa8] sm:$0xff] %v2272_v40   ;;  %v1469_v46 = vadd.f32 %v1468_v12, %v1204_v41  ;;  %v1207_v47 = vadd.f32 %v3155_v21, %v1206_v44  ;;  %v1208_v48 = vpop.f32.mrb[91].mxu1 }
 0x1c9   :  { %v1472_v51 = vadd.f32 %v1471_v18, %v1207_v47  ;;  %v1567_v52 = vmax.f32 %v1469_v46, 0.0  ;;  %v1492_v58 = vpop.f32.mrb[100].mxu0 }
 0x1ca   :  { %v1494_v60 = vpop.f32.mrb[101].mxu0 }
 0x1cb   :  { %v1568_v53 = vmax.f32 %v1472_v51, 0.0  ;;  %v1495_v0 = vpop.f32.mrb[102].mxu0 }
 0x1cc   :  { %v1211_v54 = vpop.f32.mrb[92].mxu1  ;;  %v1497_v1 = vpop.f32.mrb[103].mxu0 }
 0x1cd   :  { %v2277_v55 = vpack.c.bf16 %v1568_v53, %v1567_v52  ;;  %v1212_v56 = vadd.f32 %v3155_v21, %v1211_v54  ;;  %v1213_v57 = vpop.f32.mrb[93].mxu1 }
 0x1ce   :  { %v1214_v59 = vpop.f32.mrb[94].mxu1 }
 0x1cf   :  { %2330 = vst [vmem:[%s3314_s3 + $0xb0] sm:$0xff] %v2277_v55   ;;  %v1477_v61 = vadd.f32 %v1476_v28, %v1212_v56  ;;  %v1215_v62 = vadd.f32 %v3155_v21, %v1214_v59  ;;  %v1216_v63 = vpop.f32.mrb[95].mxu1 }
 0x1d1   :  { %v1480_v2 = vadd.f32 %v1479_v34, %v1215_v62  ;;  %v1569_v3 = vmax.f32 %v1477_v61, 0.0  ;;  %v1500_v9 = vpop.f32.mrb[104].mxu0 }
 0x1d2   :  { %v1502_v11 = vpop.f32.mrb[105].mxu0 }
 0x1d3   :  { %v1570_v4 = vmax.f32 %v1480_v2, 0.0  ;;  %v1503_v15 = vpop.f32.mrb[106].mxu0 }
 0x1d4   :  { %v1219_v5 = vpop.f32.mrb[96].mxu1  ;;  %v1505_v16 = vpop.f32.mrb[107].mxu0 }
 0x1d5   :  { %v2282_v6 = vpack.c.bf16 %v1570_v4, %v1569_v3  ;;  %v1220_v7 = vadd.f32 %v3155_v21, %v1219_v5  ;;  %v1221_v8 = vpop.f32.mrb[97].mxu1 }
 0x1d6   :  { %v1222_v10 = vpop.f32.mrb[98].mxu1 }
 0x1d7   :  { %2331 = vst [vmem:[%s3314_s3 + $0xb8] sm:$0xff] %v2282_v6   ;;  %v1485_v12 = vadd.f32 %v1484_v43, %v1220_v7  ;;  %v1223_v13 = vadd.f32 %v3155_v21, %v1222_v10  ;;  %v1224_v14 = vpop.f32.mrb[99].mxu1 }
 0x1d9   :  { %v1488_v17 = vadd.f32 %v1487_v49, %v1223_v13  ;;  %v1571_v18 = vmax.f32 %v1485_v12, 0.0  ;;  %v1508_v25 = vpop.f32.mrb[108].mxu0 }
 0x1da   :  { %v1510_v27 = vpop.f32.mrb[109].mxu0 }
 0x1db   :  { %v1572_v19 = vmax.f32 %v1488_v17, 0.0  ;;  %v1511_v31 = vpop.f32.mrb[110].mxu0 }
 0x1dc   :  { %v1227_v20 = vpop.f32.mrb[100].mxu1  ;;  %v1513_v32 = vpop.f32.mrb[111].mxu0 }
 0x1dd   :  { %v2287_v22 = vpack.c.bf16 %v1572_v19, %v1571_v18  ;;  %v1228_v23 = vadd.f32 %v3155_v21, %v1227_v20  ;;  %v1229_v24 = vpop.f32.mrb[101].mxu1 }
 0x1de   :  { %v1230_v26 = vpop.f32.mrb[102].mxu1 }
 0x1df   :  { %2332 = vst [vmem:[%s3314_s3 + $0xc0] sm:$0xff] %v2287_v22   ;;  %v1493_v28 = vadd.f32 %v1492_v58, %v1228_v23  ;;  %v1231_v29 = vadd.f32 %v3155_v21, %v1230_v26  ;;  %v1232_v30 = vpop.f32.mrb[103].mxu1 }
 0x1e1   :  { %v1496_v33 = vadd.f32 %v1495_v0, %v1231_v29  ;;  %v1573_v34 = vmax.f32 %v1493_v28, 0.0  ;;  %v1516_v40 = vpop.f32.mrb[112].mxu0 }
 0x1e2   :  { %v1518_v42 = vpop.f32.mrb[113].mxu0 }
 0x1e3   :  { %v1574_v35 = vmax.f32 %v1496_v33, 0.0  ;;  %v1519_v46 = vpop.f32.mrb[114].mxu0 }
 0x1e4   :  { %v1235_v36 = vpop.f32.mrb[104].mxu1  ;;  %v1521_v47 = vpop.f32.mrb[115].mxu0 }
 0x1e5   :  { %v2292_v37 = vpack.c.bf16 %v1574_v35, %v1573_v34  ;;  %v1236_v38 = vadd.f32 %v3155_v21, %v1235_v36  ;;  %v1237_v39 = vpop.f32.mrb[105].mxu1 }
 0x1e6   :  { %v1238_v41 = vpop.f32.mrb[106].mxu1 }
 0x1e7   :  { %2333 = vst [vmem:[%s3314_s3 + $0xc8] sm:$0xff] %v2292_v37   ;;  %v1501_v43 = vadd.f32 %v1500_v9, %v1236_v38  ;;  %v1239_v44 = vadd.f32 %v3155_v21, %v1238_v41  ;;  %v1240_v45 = vpop.f32.mrb[107].mxu1 }
 0x1e9   :  { %v1504_v48 = vadd.f32 %v1503_v15, %v1239_v44  ;;  %v1575_v49 = vmax.f32 %v1501_v43, 0.0 }
 0x1eb   :  { %v1576_v50 = vmax.f32 %v1504_v48, 0.0 }
 0x1ec   :  { %v1243_v51 = vpop.f32.mrb[108].mxu1 }
 0x1ed   :  { %v2297_v52 = vpack.c.bf16 %v1576_v50, %v1575_v49  ;;  %v1244_v53 = vadd.f32 %v3155_v21, %v1243_v51  ;;  %v1245_v54 = vpop.f32.mrb[109].mxu1 }
 0x1ee   :  { %v1246_v55 = vpop.f32.mrb[110].mxu1 }
 0x1ef   :  { %2334 = vst [vmem:[%s3314_s3 + $0xd0] sm:$0xff] %v2297_v52   ;;  %v1509_v56 = vadd.f32 %v1508_v25, %v1244_v53  ;;  %v1247_v57 = vadd.f32 %v3155_v21, %v1246_v55  ;;  %v1248_v58 = vpop.f32.mrb[111].mxu1 }
 0x1f1   :  { %v1512_v59 = vadd.f32 %v1511_v31, %v1247_v57  ;;  %v1577_v60 = vmax.f32 %v1509_v56, 0.0 }
 0x1f3   :  { %v1578_v61 = vmax.f32 %v1512_v59, 0.0 }
 0x1f4   :  { %v1251_v62 = vpop.f32.mrb[112].mxu1 }
 0x1f5   :  { %v2302_v63 = vpack.c.bf16 %v1578_v61, %v1577_v60  ;;  %v1252_v0 = vadd.f32 %v3155_v21, %v1251_v62  ;;  %v1253_v1 = vpop.f32.mrb[113].mxu1 }
 0x1f6   :  { %v1254_v2 = vpop.f32.mrb[114].mxu1 }
 0x1f7   :  { %2335 = vst [vmem:[%s3314_s3 + $0xd8] sm:$0xff] %v2302_v63   ;;  %v1517_v3 = vadd.f32 %v1516_v40, %v1252_v0  ;;  %v1255_v4 = vadd.f32 %v3155_v21, %v1254_v2  ;;  %v1256_v5 = vpop.f32.mrb[115].mxu1 }
 0x1f9   :  { %v1520_v6 = vadd.f32 %v1519_v46, %v1255_v4  ;;  %v1579_v7 = vmax.f32 %v1517_v3, 0.0 }
 0x1fb   :  { %v1580_v8 = vmax.f32 %v1520_v6, 0.0 }
 0x1fd   :  { %v2307_v9 = vpack.c.bf16 %v1580_v8, %v1579_v7 }
 0x1ff   :  { %2336 = vst [vmem:[%s3314_s3 + $0xe0] sm:$0xff] %v2307_v9  }

// kernel: vae_forward.11
= control target key start
LH: loop header
LB: loop body
LE: loop exit
PB: predicated region body
PF: predicated region fallthrough
CT: control target
= control target key end

     0   :  { %vm558_vm0 = vcmask 523264   ;;  %s1733_s1 = inlined_call_operand.vmem [shape: bf16[576,128], index: 1, kind: input, shape index: {}]   ;;  %s1734_s0 = inlined_call_operand.vmem [shape: bf16[128,576], index: 0, kind: input, shape index: {}]   ;;  %s1735_s2 = inlined_call_operand.vmem [shape: f32[1,128], index: 2, kind: input, shape index: {}]   ;;  %s1736_s3 = inlined_call_operand.vmem [shape: bf16[128,128], index: 3, kind: output, shape index: {}]  }
   0x1   :  { %v1310_v0 = vld [vmem:[%s1733_s1 + $0x40] sm:$0xff]   ;;  %v1314_v4 = vld [vmem:[%s1733_s1 + $0x48] sm:$0xff]   ;;  %v1318_v8 = vld [vmem:[%s1733_s1 + $0x50] sm:$0xff]  }
   0x2   :  { %v1311_v1 = vld [vmem:[%s1733_s1 + $0xc0] sm:$0xff]   ;;  %1138 = vmatprep.subr.bf16.mxu0 %v1310_v0  ;;  %v1315_v5 = vld [vmem:[%s1733_s1 + $0xc8] sm:$0xff]   ;;  %v1319_v9 = vld [vmem:[%s1733_s1 + $0xd0] sm:$0xff]  }
   0x3   :  { %v1312_v2 = vld [vmem:[%s1733_s1] sm:$0xff]   ;;  %1202 = vmatprep.subr.bf16.mxu1 %v1311_v1  ;;  %v1316_v6 = vld [vmem:[%s1733_s1 + $0x8] sm:$0xff]   ;;  %v1320_v10 = vld [vmem:[%s1733_s1 + $0x10] sm:$0xff]  }
   0x4   :  { %v1313_v3 = vld [vmem:[%s1733_s1 + $0x80] sm:$0xff]   ;;  %1139 = vmatpush3.bf16.msra.mxu0 %v1312_v2  ;;  %v1317_v7 = vld [vmem:[%s1733_s1 + $0x88] sm:$0xff]   ;;  %v1321_v11 = vld [vmem:[%s1733_s1 + $0x90] sm:$0xff]  }
   0x5   :  { %1203 = vmatpush3.bf16.msra.mxu1 %v1313_v3  ;;  %1140 = vmatprep.subr.bf16.mxu0 %v1314_v4  ;;  %v1322_v12 = vld [vmem:[%s1733_s1 + $0x58] sm:$0xff]   ;;  %v1326_v16 = vld [vmem:[%s1733_s1 + $0x60] sm:$0xff]   ;;  %v1330_v20 = vld [vmem:[%s1733_s1 + $0x68] sm:$0xff]  }
   0x6   :  { %1204 = vmatprep.subr.bf16.mxu1 %v1315_v5  ;;  %v1323_v13 = vld [vmem:[%s1733_s1 + $0xd8] sm:$0xff]   ;;  %v1327_v17 = vld [vmem:[%s1733_s1 + $0xe0] sm:$0xff]   ;;  %v1331_v21 = vld [vmem:[%s1733_s1 + $0xe8] sm:$0xff]  }
   0x7   :  { %v1324_v14 = vld [vmem:[%s1733_s1 + $0x18] sm:$0xff]   ;;  %v1328_v18 = vld [vmem:[%s1733_s1 + $0x20] sm:$0xff]   ;;  %v1332_v22 = vld [vmem:[%s1733_s1 + $0x28] sm:$0xff]  }
   0x8   :  { %1141 = vmatpush3.bf16.msra.mxu0 %v1316_v6  ;;  %v1325_v15 = vld [vmem:[%s1733_s1 + $0x98] sm:$0xff]   ;;  %v1329_v19 = vld [vmem:[%s1733_s1 + $0xa0] sm:$0xff]   ;;  %v1333_v23 = vld [vmem:[%s1733_s1 + $0xa8] sm:$0xff]  }
   0x9   :  { %1205 = vmatpush3.bf16.msra.mxu1 %v1317_v7  ;;  %1142 = vmatprep.subr.bf16.mxu0 %v1318_v8  ;;  %v1334_v24 = vld [vmem:[%s1733_s1 + $0x70] sm:$0xff]   ;;  %v1338_v28 = vld [vmem:[%s1733_s1 + $0x78] sm:$0xff]   ;;  %v1347_v35 = vld [vmem:[%s1734_s0 + $0xc] ss:$20 sps:$4 sm:$0xff]  }
   0xa   :  { %1206 = vmatprep.subr.bf16.mxu1 %v1319_v9  ;;  %v1335_v25 = vld [vmem:[%s1733_s1 + $0xf0] sm:$0xff]   ;;  %v1339_v29 = vld [vmem:[%s1733_s1 + $0xf8] sm:$0xff]   ;;  %v1348_v36 = vld [vmem:[%s1733_s1 + $0x100] sm:$0xff]   ;;  %712 = vmatprep.mubr.bf16.mxu1 %v1347_v35 }
   0xb   :  { %v1336_v26 = vld [vmem:[%s1733_s1 + $0x30] sm:$0xff]   ;;  %v1340_v30 = vld [vmem:[%s1733_s1 + $0x38] sm:$0xff]   ;;  %v1349_v37 = vld [vmem:[%s1734_s0 + $0x2c] ss:$20 sps:$4 sm:$0xff]  }
   0xc   :  { %1143 = vmatpush3.bf16.msra.mxu0 %v1320_v10  ;;  %v1337_v27 = vld [vmem:[%s1733_s1 + $0xb0] sm:$0xff]   ;;  %v1341_v31 = vld [vmem:[%s1733_s1 + $0xb8] sm:$0xff]   ;;  %v1361_v42 = vld [vmem:[%s1733_s1 + $0x108] sm:$0xff]  }
   0xd   :  { %1207 = vmatpush3.bf16.msra.mxu1 %v1321_v11  ;;  %1144 = vmatprep.subr.bf16.mxu0 %v1322_v12  ;;  %v1342_v32 = vld [vmem:[%s1734_s0] ss:$20 sps:$4 sm:$0xff]   ;;  %v1344_v33 = vld [vmem:[%s1734_s0 + $0x4] ss:$20 sps:$4 sm:$0xff]   ;;  %v1345_v34 = vld [vmem:[%s1734_s0 + $0x8] ss:$20 sps:$4 sm:$0xff]  }
   0xe   :  { %1208 = vmatprep.subr.bf16.mxu1 %v1323_v13  ;;  %615 = vmatprep.mubr.bf16.mxu0 %v1344_v33  ;;  %v1351_v38 = vld [vmem:[%s1734_s0 + $0x34] ss:$20 sps:$4 sm:$0xff]   ;;  %v1354_v40 = vld [vmem:[%s1734_s0 + $0x30] ss:$20 sps:$4 sm:$0xff]   ;;  %v1360_v45 = vld [vmem:[%s1734_s0 + $0x58] ss:$20 sps:$4 sm:$0xff]  }
   0xf   :  { %v1353_v39 = vld [vmem:[%s1734_s0 + $0x28] ss:$20 sps:$4 sm:$0xff]   ;;  %v1359_v44 = vld [vmem:[%s1734_s0 + $0x50] ss:$20 sps:$4 sm:$0xff]   ;;  %v1366_v50 = vld [vmem:[%s1734_s0 + $0x78] ss:$20 sps:$4 sm:$0xff]  }
  0x10   :  { %1145 = vmatpush3.bf16.msra.mxu0 %v1324_v14  ;;  %v1355_v41 = vld [vmem:[%s1734_s0 + $0x54] ss:$20 sps:$4 sm:$0xff]   ;;  %v1357_v43 = vld [vmem:[%s1734_s0 + $0x5c] ss:$20 sps:$4 sm:$0xff]   ;;  %v1364_v48 = vld [vmem:[%s1734_s0 + $0x84] ss:$20 sps:$4 sm:$0xff]  }
  0x11   :  { %1209 = vmatpush3.bf16.msra.mxu1 %v1325_v15  ;;  %1146 = vmatprep.subr.bf16.mxu0 %v1326_v16  ;;  %v1374_v46 = vld [vmem:[%s1733_s1 + $0x110] sm:$0xff]   ;;  %v1387_v49 = vld [vmem:[%s1733_s1 + $0x118] sm:$0xff]   ;;  %v1370_v53 = vld [vmem:[%s1734_s0 + $0xac] ss:$20 sps:$4 sm:$0xff]  }
  0x12   :  { %1210 = vmatprep.subr.bf16.mxu1 %v1327_v17  ;;  %v1362_v47 = vld [vmem:[%s1734_s0 + $0x7c] ss:$20 sps:$4 sm:$0xff]   ;;  %v1367_v51 = vld [vmem:[%s1734_s0 + $0x80] ss:$20 sps:$4 sm:$0xff]   ;;  %v1368_v52 = vld [vmem:[%s1734_s0 + $0xa4] ss:$20 sps:$4 sm:$0xff]  }
  0x13   :  { %v1372_v54 = vld [vmem:[%s1734_s0 + $0xa0] ss:$20 sps:$4 sm:$0xff]   ;;  %v1373_v55 = vld [vmem:[%s1734_s0 + $0xa8] ss:$20 sps:$4 sm:$0xff]   ;;  %v1380_v59 = vld [vmem:[%s1734_s0 + $0xd0] ss:$20 sps:$4 sm:$0xff]  }
  0x14   :  { %1147 = vmatpush3.bf16.msra.mxu0 %v1328_v18  ;;  %v1375_v56 = vld [vmem:[%s1734_s0 + $0xcc] ss:$20 sps:$4 sm:$0xff]   ;;  %v1377_v57 = vld [vmem:[%s1734_s0 + $0xd4] ss:$20 sps:$4 sm:$0xff]   ;;  %v1383_v61 = vld [vmem:[%s1734_s0 + $0xfc] ss:$20 sps:$4 sm:$0xff]  }
  0x15   :  { %1211 = vmatpush3.bf16.msra.mxu1 %v1329_v19  ;;  %1148 = vmatprep.subr.bf16.mxu0 %v1330_v20  ;;  %v1379_v58 = vld [vmem:[%s1734_s0 + $0xc8] ss:$20 sps:$4 sm:$0xff]   ;;  %v1385_v62 = vld [vmem:[%s1734_s0 + $0xf0] ss:$20 sps:$4 sm:$0xff]   ;;  %v1386_v63 = vld [vmem:[%s1734_s0 + $0xf8] ss:$20 sps:$4 sm:$0xff]  }
  0x16   :  { %1212 = vmatprep.subr.bf16.mxu1 %v1331_v21  ;;  %v1381_v60 = vld [vmem:[%s1734_s0 + $0xf4] ss:$20 sps:$4 sm:$0xff]   ;;  %v1388_v0 = vld [vmem:[%s1734_s0 + $0x11c] ss:$20 sps:$4 sm:$0xff]   ;;  %v1390_v1 = vld [vmem:[%s1734_s0 + $0x124] ss:$20 sps:$4 sm:$0xff]  }
  0x17   :  { %v1392_v2 = vld [vmem:[%s1734_s0 + $0x118] ss:$20 sps:$4 sm:$0xff]   ;;  %v1393_v3 = vld [vmem:[%s1734_s0 + $0x120] ss:$20 sps:$4 sm:$0xff]   ;;  %v1394_v4 = vld [vmem:[%s1734_s0 + $0x10] ss:$20 sps:$4 sm:$0xff]  }
  0x18   :  { %1149 = vmatpush3.bf16.msra.mxu0 %v1332_v22  ;;  %v1395_v5 = vld [vmem:[%s1734_s0 + $0xb0] ss:$20 sps:$4 sm:$0xff]   ;;  %v1396_v6 = vld [vmem:[%s1734_s0 + $0x38] ss:$20 sps:$4 sm:$0xff]   ;;  %v1398_v8 = vld [vmem:[%s1734_s0 + $0x60] ss:$20 sps:$4 sm:$0xff]  }
  0x19   :  { %1213 = vmatpush3.bf16.msra.mxu1 %v1333_v23  ;;  %1150 = vmatprep.subr.bf16.mxu0 %v1334_v24  ;;  %v1397_v7 = vld [vmem:[%s1734_s0 + $0xd8] ss:$20 sps:$4 sm:$0xff]   ;;  %v1399_v9 = vld [vmem:[%s1734_s0 + $0x100] ss:$20 sps:$4 sm:$0xff]   ;;  %v1400_v10 = vld [vmem:[%s1734_s0 + $0x88] ss:$20 sps:$4 sm:$0xff]  }
  0x1a   :  { %1214 = vmatprep.subr.bf16.mxu1 %v1335_v25  ;;  %v1401_v11 = vld [vmem:[%s1734_s0 + $0x128] ss:$20 sps:$4 sm:$0xff]   ;;  %v1661_v14 = vld [vmem:[%s1735_s2] ss:$0 sm:$0xff] }
  0x1c   :  { %1151 = vmatpush3.bf16.msra.mxu0 %v1336_v26 }
  0x1d   :  { %1215 = vmatpush3.bf16.msra.mxu1 %v1337_v27  ;;  %1152 = vmatprep.subr.bf16.mxu0 %v1338_v28 }
  0x1e   :  { %1216 = vmatprep.subr.bf16.mxu1 %v1339_v29 }
  0x20   :  { %1153 = vmatpush3.bf16.msra.mxu0 %v1340_v30 }
  0x21   :  { %1217 = vmatpush3.bf16.msra.mxu1 %v1341_v31  ;;  %1278 = vmatprep.subr.bf16.mxu0 %v1348_v36 }
  0x22   :  { %1302 = vmatprep.subr.bf16.mxu1 %v1348_v36 }
  0x23   :  { %616 = vmatmul.mubr.bf16.vlgmr.msra.gmra.mrb[0].mxu0 %v1342_v32 }
  0x24   :  { %713 = vmatmul.mubr.bf16.vlgmr.msra.gmra.mrb[0].mxu1 %v1345_v34  ;;  %1279 = vmatpush3.bf16.msra.mxu0 %v1348_v36 }
  0x25   :  { %1306 = vmatpush3.bf16.msra.mxu1 %v1348_v36  ;;  %623 = vmatprep.mubr.bf16.mxu0 %v1349_v37 }
  0x26   :  { %720 = vmatprep.mubr.bf16.mxu1 %v1351_v38  ;;  %1280 = vmatprep.subr.bf16.mxu0 %v1361_v42 }
  0x27   :  { %1303 = vmatprep.subr.bf16.mxu1 %v1361_v42 }
  0x28   :  { %1281 = vmatpush3.bf16.msra.mxu0 %v1361_v42 }
  0x29   :  { %1307 = vmatpush3.bf16.msra.mxu1 %v1361_v42  ;;  %1282 = vmatprep.subr.bf16.mxu0 %v1374_v46 }
  0x2a   :  { %1304 = vmatprep.subr.bf16.mxu1 %v1374_v46 }
  0x2b   :  { %624 = vmatmul.mubr.bf16.gmra.mrb[4].mxu0 %v1353_v39 }
  0x2c   :  { %721 = vmatmul.mubr.bf16.gmra.mrb[4].mxu1 %v1354_v40  ;;  %631 = vmatprep.mubr.bf16.mxu0 %v1355_v41 }
  0x2d   :  { %728 = vmatprep.mubr.bf16.mxu1 %v1357_v43  ;;  %1283 = vmatpush3.bf16.msra.mxu0 %v1374_v46 }
  0x2e   :  { %1308 = vmatpush3.bf16.msra.mxu1 %v1374_v46  ;;  %1284 = vmatprep.subr.bf16.mxu0 %v1387_v49 }
  0x2f   :  { %1305 = vmatprep.subr.bf16.mxu1 %v1387_v49 }
  0x31   :  { %1285 = vmatpush3.bf16.msra.mxu0 %v1387_v49 }
  0x32   :  { %1309 = vmatpush3.bf16.msra.mxu1 %v1387_v49 }
  0x33   :  { %632 = vmatmul.mubr.bf16.gmra.mrb[8].mxu0 %v1359_v44 }
  0x34   :  { %729 = vmatmul.mubr.bf16.gmra.mrb[8].mxu1 %v1360_v45  ;;  %639 = vmatprep.mubr.bf16.mxu0 %v1362_v47 }
  0x35   :  { %736 = vmatprep.mubr.bf16.mxu1 %v1364_v48 }
  0x3b   :  { %640 = vmatmul.mubr.bf16.gmra.mrb[12].mxu0 %v1366_v50 }
  0x3c   :  { %737 = vmatmul.mubr.bf16.gmra.mrb[12].mxu1 %v1367_v51  ;;  %647 = vmatprep.mubr.bf16.mxu0 %v1368_v52 }
  0x3d   :  { %744 = vmatprep.mubr.bf16.mxu1 %v1370_v53 }
  0x43   :  { %648 = vmatmul.mubr.bf16.gmra.mrb[16].mxu0 %v1372_v54 }
  0x44   :  { %745 = vmatmul.mubr.bf16.gmra.mrb[16].mxu1 %v1373_v55  ;;  %655 = vmatprep.mubr.bf16.mxu0 %v1375_v56 }
  0x45   :  { %752 = vmatprep.mubr.bf16.mxu1 %v1377_v57 }
  0x4b   :  { %656 = vmatmul.mubr.bf16.gmra.mrb[20].mxu0 %v1379_v58 }
  0x4c   :  { %753 = vmatmul.mubr.bf16.gmra.mrb[20].mxu1 %v1380_v59  ;;  %663 = vmatprep.mubr.bf16.mxu0 %v1381_v60 }
  0x4d   :  { %760 = vmatprep.mubr.bf16.mxu1 %v1383_v61 }
  0x53   :  { %664 = vmatmul.mubr.bf16.gmra.mrb[24].mxu0 %v1385_v62 }
  0x54   :  { %761 = vmatmul.mubr.bf16.gmra.mrb[24].mxu1 %v1386_v63  ;;  %671 = vmatprep.mubr.bf16.mxu0 %v1388_v0 }
  0x55   :  { %768 = vmatprep.mubr.bf16.mxu1 %v1390_v1 }
  0x5b   :  { %672 = vmatmul.mubr.bf16.gmra.mrb[28].mxu0 %v1392_v2 }
  0x5c   :  { %769 = vmatmul.mubr.bf16.gmra.mrb[28].mxu1 %v1393_v3  ;;  %1286 = vmatprep.mubr.msk.bf16.mxu0 %vm558_vm0, %v1394_v4 }
  0x5d   :  { %1294 = vmatprep.mubr.msk.bf16.mxu1 %vm558_vm0, %v1395_v5 }
  0x63   :  { %1287 = vmatmul.mubr.msk.bf16.vlgmr.msra.gmra.mrb[32].mxu0 %vm558_vm0, %v1396_v6 }
  0x64   :  { %1295 = vmatmul.mubr.msk.bf16.vlgmr.msra.gmra.mrb[32].mxu1 %vm558_vm0, %v1397_v7  ;;  %1290 = vmatprep.mubr.msk.bf16.mxu0 %vm558_vm0, %v1398_v8 }
  0x65   :  { %1298 = vmatprep.mubr.msk.bf16.mxu1 %vm558_vm0, %v1399_v9 }
  0x6b   :  { %1291 = vmatmul.mubr.msk.bf16.gmra.mrb[36].mxu0 %vm558_vm0, %v1400_v10 }
  0x6c   :  { %1299 = vmatmul.mubr.msk.bf16.gmra.mrb[36].mxu1 %vm558_vm0, %v1401_v11 }
  0xf6   :  { %v1154_v12 = vpop.f32.mrb[0].mxu0 }
  0xf7   :  { %v1218_v13 = vpop.f32.mrb[0].mxu1  ;;  %v1155_v15 = vpop.f32.mrb[1].mxu0 }
  0xf8   :  { %v1156_v16 = vadd.f32 %v1155_v15, %v1154_v12  ;;  %v1219_v17 = vpop.f32.mrb[1].mxu1  ;;  %v1157_v18 = vpop.f32.mrb[2].mxu0 }
  0xf9   :  { %v1220_v19 = vadd.f32 %v1219_v17, %v1218_v13  ;;  %v1221_v20 = vpop.f32.mrb[2].mxu1  ;;  %v1158_v21 = vpop.f32.mrb[3].mxu0 }
  0xfa   :  { %v618_v22 = vadd.f32 %v1156_v16, %v1661_v14  ;;  %v1159_v23 = vadd.f32 %v1158_v21, %v1157_v18  ;;  %v1222_v24 = vpop.f32.mrb[3].mxu1 }
  0xfb   :  { %v1223_v25 = vadd.f32 %v1222_v24, %v1221_v20 }
  0xfc   :  { %v621_v26 = vadd.f32 %v1159_v23, %v1661_v14  ;;  %v1665_v27 = vadd.f32 %v1220_v19, %v618_v22 }
  0xfe   :  { %v1160_v28 = vpop.f32.mrb[4].mxu0  ;;  %v1667_v29 = vadd.f32 %v1223_v25, %v621_v26 }
  0xff   :  { %v1224_v30 = vpop.f32.mrb[4].mxu1  ;;  %v1161_v31 = vpop.f32.mrb[5].mxu0 }
 0x100   :  { %v1162_v32 = vadd.f32 %v1161_v31, %v1160_v28  ;;  %v1225_v33 = vpop.f32.mrb[5].mxu1  ;;  %v1163_v34 = vpop.f32.mrb[6].mxu0 }
 0x101   :  { %v1226_v35 = vadd.f32 %v1225_v33, %v1224_v30  ;;  %v1227_v36 = vpop.f32.mrb[6].mxu1  ;;  %v1164_v37 = vpop.f32.mrb[7].mxu0 }
 0x102   :  { %v626_v38 = vadd.f32 %v1162_v32, %v1661_v14  ;;  %v1165_v39 = vadd.f32 %v1164_v37, %v1163_v34  ;;  %v1228_v40 = vpop.f32.mrb[7].mxu1 }
 0x103   :  { %v1229_v41 = vadd.f32 %v1228_v40, %v1227_v36 }
 0x104   :  { %v629_v42 = vadd.f32 %v1165_v39, %v1661_v14  ;;  %v1671_v43 = vadd.f32 %v1226_v35, %v626_v38 }
 0x106   :  { %v1166_v44 = vpop.f32.mrb[8].mxu0  ;;  %v1673_v45 = vadd.f32 %v1229_v41, %v629_v42 }
 0x107   :  { %v1230_v46 = vpop.f32.mrb[8].mxu1  ;;  %v1167_v47 = vpop.f32.mrb[9].mxu0 }
 0x108   :  { %v1168_v48 = vadd.f32 %v1167_v47, %v1166_v44  ;;  %v1231_v49 = vpop.f32.mrb[9].mxu1  ;;  %v1169_v50 = vpop.f32.mrb[10].mxu0 }
 0x109   :  { %v1232_v51 = vadd.f32 %v1231_v49, %v1230_v46  ;;  %v1233_v52 = vpop.f32.mrb[10].mxu1  ;;  %v1170_v53 = vpop.f32.mrb[11].mxu0 }
 0x10a   :  { %v634_v54 = vadd.f32 %v1168_v48, %v1661_v14  ;;  %v1171_v55 = vadd.f32 %v1170_v53, %v1169_v50  ;;  %v1234_v56 = vpop.f32.mrb[11].mxu1 }
 0x10b   :  { %v1235_v57 = vadd.f32 %v1234_v56, %v1233_v52 }
 0x10c   :  { %v637_v58 = vadd.f32 %v1171_v55, %v1661_v14  ;;  %v1677_v59 = vadd.f32 %v1232_v51, %v634_v54 }
 0x10e   :  { %v1172_v60 = vpop.f32.mrb[12].mxu0  ;;  %v1679_v61 = vadd.f32 %v1235_v57, %v637_v58 }
 0x10f   :  { %v1236_v62 = vpop.f32.mrb[12].mxu1  ;;  %v1173_v63 = vpop.f32.mrb[13].mxu0 }
 0x110   :  { %v1174_v0 = vadd.f32 %v1173_v63, %v1172_v60  ;;  %v1237_v1 = vpop.f32.mrb[13].mxu1  ;;  %v1175_v2 = vpop.f32.mrb[14].mxu0 }
 0x111   :  { %v1238_v3 = vadd.f32 %v1237_v1, %v1236_v62  ;;  %v1239_v4 = vpop.f32.mrb[14].mxu1  ;;  %v1176_v5 = vpop.f32.mrb[15].mxu0 }
 0x112   :  { %v642_v6 = vadd.f32 %v1174_v0, %v1661_v14  ;;  %v1177_v7 = vadd.f32 %v1176_v5, %v1175_v2  ;;  %v1240_v8 = vpop.f32.mrb[15].mxu1 }
 0x113   :  { %v1241_v9 = vadd.f32 %v1240_v8, %v1239_v4 }
 0x114   :  { %v645_v10 = vadd.f32 %v1177_v7, %v1661_v14  ;;  %v1683_v11 = vadd.f32 %v1238_v3, %v642_v6 }
 0x116   :  { %v1178_v12 = vpop.f32.mrb[16].mxu0  ;;  %v1685_v13 = vadd.f32 %v1241_v9, %v645_v10 }
 0x117   :  { %v1242_v15 = vpop.f32.mrb[16].mxu1  ;;  %v1179_v16 = vpop.f32.mrb[17].mxu0 }
 0x118   :  { %v1180_v17 = vadd.f32 %v1179_v16, %v1178_v12  ;;  %v1243_v18 = vpop.f32.mrb[17].mxu1  ;;  %v1181_v19 = vpop.f32.mrb[18].mxu0 }
 0x119   :  { %v1244_v20 = vadd.f32 %v1243_v18, %v1242_v15  ;;  %v1245_v21 = vpop.f32.mrb[18].mxu1  ;;  %v1182_v22 = vpop.f32.mrb[19].mxu0 }
 0x11a   :  { %v650_v23 = vadd.f32 %v1180_v17, %v1661_v14  ;;  %v1183_v24 = vadd.f32 %v1182_v22, %v1181_v19  ;;  %v1246_v25 = vpop.f32.mrb[19].mxu1 }
 0x11b   :  { %v1247_v26 = vadd.f32 %v1246_v25, %v1245_v21 }
 0x11c   :  { %v653_v28 = vadd.f32 %v1183_v24, %v1661_v14  ;;  %v747_v30 = vadd.f32 %v1244_v20, %v650_v23 }
 0x11e   :  { %v1184_v31 = vpop.f32.mrb[20].mxu0  ;;  %v1689_v32 = vadd.f32 %v1247_v26, %v653_v28 }
 0x11f   :  { %v1248_v33 = vpop.f32.mrb[20].mxu1  ;;  %v1185_v34 = vpop.f32.mrb[21].mxu0 }
 0x120   :  { %v1186_v35 = vadd.f32 %v1185_v34, %v1184_v31  ;;  %v1249_v36 = vpop.f32.mrb[21].mxu1  ;;  %v1187_v37 = vpop.f32.mrb[22].mxu0 }
 0x121   :  { %v1250_v38 = vadd.f32 %v1249_v36, %v1248_v33  ;;  %v1251_v39 = vpop.f32.mrb[22].mxu1  ;;  %v1188_v40 = vpop.f32.mrb[23].mxu0 }
 0x122   :  { %v658_v41 = vadd.f32 %v1186_v35, %v1661_v14  ;;  %v1189_v42 = vadd.f32 %v1188_v40, %v1187_v37  ;;  %v1252_v44 = vpop.f32.mrb[23].mxu1 }
 0x123   :  { %v1253_v46 = vadd.f32 %v1252_v44, %v1251_v39 }
 0x124   :  { %v661_v47 = vadd.f32 %v1189_v42, %v1661_v14  ;;  %v755_v48 = vadd.f32 %v1250_v38, %v658_v41 }
 0x126   :  { %v1190_v49 = vpop.f32.mrb[24].mxu0  ;;  %v758_v50 = vadd.f32 %v1253_v46, %v661_v47 }
 0x127   :  { %v1254_v51 = vpop.f32.mrb[24].mxu1  ;;  %v1191_v52 = vpop.f32.mrb[25].mxu0 }
 0x128   :  { %v1192_v53 = vadd.f32 %v1191_v52, %v1190_v49  ;;  %v1255_v54 = vpop.f32.mrb[25].mxu1  ;;  %v1193_v55 = vpop.f32.mrb[26].mxu0 }
 0x129   :  { %v1256_v56 = vadd.f32 %v1255_v54, %v1254_v51  ;;  %v1257_v57 = vpop.f32.mrb[26].mxu1  ;;  %v1194_v58 = vpop.f32.mrb[27].mxu0 }
 0x12a   :  { %v666_v60 = vadd.f32 %v1192_v53, %v1661_v14  ;;  %v1195_v62 = vadd.f32 %v1194_v58, %v1193_v55  ;;  %v1258_v63 = vpop.f32.mrb[27].mxu1 }
 0x12b   :  { %v1259_v0 = vadd.f32 %v1258_v63, %v1257_v57 }
 0x12c   :  { %v669_v1 = vadd.f32 %v1195_v62, %v1661_v14  ;;  %v763_v2 = vadd.f32 %v1256_v56, %v666_v60 }
 0x12e   :  { %v1196_v3 = vpop.f32.mrb[28].mxu0  ;;  %v1695_v4 = vadd.f32 %v1259_v0, %v669_v1 }
 0x12f   :  { %v1260_v5 = vpop.f32.mrb[28].mxu1  ;;  %v1197_v6 = vpop.f32.mrb[29].mxu0 }
 0x130   :  { %v1198_v7 = vadd.f32 %v1197_v6, %v1196_v3  ;;  %v1261_v8 = vpop.f32.mrb[29].mxu1  ;;  %v1199_v9 = vpop.f32.mrb[30].mxu0 }
 0x131   :  { %v1262_v10 = vadd.f32 %v1261_v8, %v1260_v5  ;;  %v1263_v12 = vpop.f32.mrb[30].mxu1  ;;  %v1200_v15 = vpop.f32.mrb[31].mxu0 }
 0x132   :  { %v674_v16 = vadd.f32 %v1198_v7, %v1661_v14  ;;  %v1201_v17 = vadd.f32 %v1200_v15, %v1199_v9  ;;  %v1264_v18 = vpop.f32.mrb[31].mxu1 }
 0x133   :  { %v1265_v19 = vadd.f32 %v1264_v18, %v1263_v12 }
 0x134   :  { %v677_v20 = vadd.f32 %v1201_v17, %v1661_v14  ;;  %v771_v21 = vadd.f32 %v1262_v10, %v674_v16 }
 0x136   :  { %v1288_v22 = vpop.f32.mrb[32].mxu0  ;;  %v774_v23 = vadd.f32 %v1265_v19, %v677_v20 }
 0x137   :  { %v820_v24 = vadd.f32 %v1288_v22, %v1671_v43  ;;  %v1296_v25 = vpop.f32.mrb[32].mxu1  ;;  %v811_v26 = vpop.f32.mrb[33].mxu0 }
 0x138   :  { %v852_v28 = vadd.f32 %v1296_v25, %v755_v48  ;;  %v812_v31 = vadd.f32 %v811_v26, %v1665_v27  ;;  %v843_v33 = vpop.f32.mrb[33].mxu1  ;;  %v1289_v34 = vpop.f32.mrb[34].mxu0 }
 0x139   :  { %v844_v35 = vadd.f32 %v843_v33, %v747_v30  ;;  %v823_v36 = vadd.f32 %v1289_v34, %v1673_v45  ;;  %v1297_v37 = vpop.f32.mrb[34].mxu1  ;;  %v814_v38 = vpop.f32.mrb[35].mxu0  ;;  %v876_v41 = vmax.f32 %v820_v24, 0.0 }
 0x13a   :  { %v855_v39 = vadd.f32 %v1297_v37, %v758_v50  ;;  %v815_v14 = vadd.f32 %v814_v38, %v1667_v29  ;;  %v846_v40 = vpop.f32.mrb[35].mxu1  ;;  %v884_v44 = vmax.f32 %v852_v28, 0.0  ;;  %v874_v46 = vmax.f32 %v812_v31, 0.0 }
 0x13b   :  { %v877_v42 = vmax.f32 %v823_v36, 0.0  ;;  %v847_v43 = vadd.f32 %v846_v40, %v1689_v32  ;;  %v882_v27 = vmax.f32 %v844_v35, 0.0 }
 0x13c   :  { %v885_v47 = vmax.f32 %v855_v39, 0.0  ;;  %v875_v48 = vmax.f32 %v815_v14, 0.0 }
 0x13d   :  { %v1099_v49 = vpack.c.bf16 %v877_v42, %v876_v41  ;;  %v883_v51 = vmax.f32 %v847_v43, 0.0 }
 0x13e   :  { %v1119_v30 = vpack.c.bf16 %v885_v47, %v884_v44  ;;  %v1094_v52 = vpack.c.bf16 %v875_v48, %v874_v46  ;;  %v1292_v45 = vpop.f32.mrb[36].mxu0 }
 0x13f   :  { %1131 = vst [vmem:[%s1736_s3 + $0x8] sm:$0xff] %v1099_v49   ;;  %v1114_v29 = vpack.c.bf16 %v883_v51, %v882_v27  ;;  %v836_v50 = vadd.f32 %v1292_v45, %v1683_v11  ;;  %v1300_v53 = vpop.f32.mrb[36].mxu1  ;;  %v827_v54 = vpop.f32.mrb[37].mxu0 }
 0x140   :  { %1135 = vst [vmem:[%s1736_s3 + $0x28] sm:$0xff] %v1119_v30   ;;  %1095 = vst [vmem:[%s1736_s3] sm:$0xff] %v1094_v52   ;;  %v868_v32 = vadd.f32 %v1300_v53, %v771_v21  ;;  %v828_v55 = vadd.f32 %v827_v54, %v1677_v59  ;;  %v859_v56 = vpop.f32.mrb[37].mxu1  ;;  %v1293_v57 = vpop.f32.mrb[38].mxu0 }
 0x141   :  { %1134 = vst [vmem:[%s1736_s3 + $0x20] sm:$0xff] %v1114_v29   ;;  %v860_v11 = vadd.f32 %v859_v56, %v763_v2  ;;  %v839_v58 = vadd.f32 %v1293_v57, %v1685_v13  ;;  %v1301_v60 = vpop.f32.mrb[38].mxu1  ;;  %v830_v62 = vpop.f32.mrb[39].mxu0  ;;  %v880_v3 = vmax.f32 %v836_v50, 0.0 }
 0x142   :  { %v871_v63 = vadd.f32 %v1301_v60, %v774_v23  ;;  %v831_v0 = vadd.f32 %v830_v62, %v1679_v61  ;;  %v862_v1 = vpop.f32.mrb[39].mxu1  ;;  %v888_v59 = vmax.f32 %v868_v32, 0.0  ;;  %v878_v7 = vmax.f32 %v828_v55, 0.0 }
 0x143   :  { %v881_v5 = vmax.f32 %v839_v58, 0.0  ;;  %v863_v6 = vadd.f32 %v862_v1, %v1695_v4  ;;  %v886_v10 = vmax.f32 %v860_v11, 0.0 }
 0x144   :  { %v889_v8 = vmax.f32 %v871_v63, 0.0  ;;  %v879_v9 = vmax.f32 %v831_v0, 0.0 }
 0x145   :  { %v1109_v12 = vpack.c.bf16 %v881_v5, %v880_v3  ;;  %v887_v15 = vmax.f32 %v863_v6, 0.0 }
 0x146   :  { %v1129_v2 = vpack.c.bf16 %v889_v8, %v888_v59  ;;  %v1104_v16 = vpack.c.bf16 %v879_v9, %v878_v7 }
 0x147   :  { %1133 = vst [vmem:[%s1736_s3 + $0x18] sm:$0xff] %v1109_v12   ;;  %v1124_v13 = vpack.c.bf16 %v887_v15, %v886_v10 }
 0x148   :  { %1137 = vst [vmem:[%s1736_s3 + $0x38] sm:$0xff] %v1129_v2   ;;  %1132 = vst [vmem:[%s1736_s3 + $0x10] sm:$0xff] %v1104_v16  }
 0x149   :  { %1136 = vst [vmem:[%s1736_s3 + $0x30] sm:$0xff] %v1124_v13  }

// kernel: vae_forward.13
= control target key start
LH: loop header
LB: loop body
LE: loop exit
PB: predicated region body
PF: predicated region fallthrough
CT: control target
= control target key end

     0   :  { %v243_v1 = vmov 0   ;;  %v35_v18 = vlaneseq  ;;  %s324_s1 = inlined_call_operand.vmem [shape: bf16[128,256], index: 1, kind: input, shape index: {}]   ;;  %s325_s0 = inlined_call_operand.vmem [shape: bf16[16,128], index: 0, kind: input, shape index: {}]   ;;  %s326_s2 = inlined_call_operand.vmem [shape: f32[1,256], index: 2, kind: input, shape index: {}]   ;;  %s327_s3 = inlined_call_operand.vmem [shape: bf16[16,256], index: 3, kind: output, shape index: {}]  }
   0x1   :  { %v218_v0 = vld [vmem:[%s324_s1 + $0x4] ss:$8 sps:$4 sm:$0xff]   ;;  %163 = vmatprep.mubr.bf16.mxu0 %v243_v1  ;;  %v220_v2 = vld [vmem:[%s324_s1] ss:$8 sps:$4 sm:$0xff]   ;;  %v221_v3 = vld [vmem:[%s324_s1 + $0x14] ss:$8 sps:$4 sm:$0xff]  }
   0x2   :  { %131 = vmatprep.subr.bf16.mxu0 %v218_v0  ;;  %v223_v4 = vld [vmem:[%s324_s1 + $0x10] ss:$8 sps:$4 sm:$0xff]   ;;  %v224_v5 = vld [vmem:[%s324_s1 + $0x24] ss:$8 sps:$4 sm:$0xff]   ;;  %v226_v6 = vld [vmem:[%s324_s1 + $0x20] ss:$8 sps:$4 sm:$0xff]  }
   0x3   :  { %132 = vmatpush1.bf16.msra.mxu0 %v220_v2  ;;  %v227_v7 = vld [vmem:[%s324_s1 + $0x34] ss:$8 sps:$4 sm:$0xff]   ;;  %v229_v8 = vld [vmem:[%s324_s1 + $0x30] ss:$8 sps:$4 sm:$0xff]   ;;  %v230_v9 = vld [vmem:[%s324_s1 + $0x44] ss:$8 sps:$4 sm:$0xff]  }
   0x4   :  { %133 = vmatprep.subr.bf16.mxu0 %v221_v3  ;;  %v232_v10 = vld [vmem:[%s324_s1 + $0x40] ss:$8 sps:$4 sm:$0xff]   ;;  %v233_v11 = vld [vmem:[%s324_s1 + $0x54] ss:$8 sps:$4 sm:$0xff]   ;;  %v235_v12 = vld [vmem:[%s324_s1 + $0x50] ss:$8 sps:$4 sm:$0xff]  }
   0x5   :  { %v236_v13 = vld [vmem:[%s324_s1 + $0x64] ss:$8 sps:$4 sm:$0xff]   ;;  %v238_v14 = vld [vmem:[%s324_s1 + $0x60] ss:$8 sps:$4 sm:$0xff]   ;;  %v239_v15 = vld [vmem:[%s324_s1 + $0x74] ss:$8 sps:$4 sm:$0xff]  }
   0x6   :  { %v241_v16 = vld [vmem:[%s324_s1 + $0x70] ss:$8 sps:$4 sm:$0xff]   ;;  %v242_v17 = vld [vmem:[%s325_s0] sm:$0xff]   ;;  %v36_v19 = vshrl.u32 %v35_v18, 7 }
   0x7   :  { %134 = vmatpush1.bf16.msra.mxu0 %v223_v4  ;;  %v33_v21 = vld [vmem:[%s326_s2] sm:$0x3] }
   0x8   :  { %135 = vmatprep.subr.bf16.mxu0 %v224_v5  ;;  %v37_v20 = vsub.s32 0, %v36_v19  ;;  %v41_v22 = vsub.s32 1, %v36_v19 }
   0xa   :  { %v38_v23 = vrot.slane %v33_v21, %v37_v20  ;;  %v42_v24 = vrot.slane %v33_v21, %v41_v22 }
   0xb   :  { %136 = vmatpush1.bf16.msra.mxu0 %v226_v6 }
   0xc   :  { %137 = vmatprep.subr.bf16.mxu0 %v227_v7 }
   0xf   :  { %138 = vmatpush1.bf16.msra.mxu0 %v229_v8 }
  0x10   :  { %139 = vmatprep.subr.bf16.mxu0 %v230_v9 }
  0x13   :  { %140 = vmatpush1.bf16.msra.mxu0 %v232_v10 }
  0x14   :  { %141 = vmatprep.subr.bf16.mxu0 %v233_v11 }
  0x17   :  { %142 = vmatpush1.bf16.msra.mxu0 %v235_v12 }
  0x18   :  { %143 = vmatprep.subr.bf16.mxu0 %v236_v13 }
  0x1b   :  { %144 = vmatpush1.bf16.msra.mxu0 %v238_v14 }
  0x1c   :  { %145 = vmatprep.subr.bf16.mxu0 %v239_v15 }
  0x1f   :  { %146 = vmatpush1.bf16.msra.mxu0 %v241_v16 }
  0x22   :  { %164 = vmatmul.mubr.bf16.vlgmr.msra.gmra.mrb[0].mxu0 %v242_v17 }
  0xf5   :  { %v165_v25 = vpop.f32.mrb[0].mxu0 }
  0xf6   :  { %v166_v26 = vadd.f32 %v165_v25, %v38_v23  ;;  %v167_v27 = vpop.f32.mrb[1].mxu0 }
  0xf7   :  { %v168_v28 = vadd.f32 %v167_v27, %v42_v24  ;;  %v169_v29 = vpop.f32.mrb[2].mxu0 }
  0xf8   :  { %v174_v30 = vmax.f32 %v166_v26, 0.0  ;;  %v170_v31 = vadd.f32 %v169_v29, %v38_v23  ;;  %v171_v32 = vpop.f32.mrb[3].mxu0 }
  0xf9   :  { %v175_v33 = vmax.f32 %v168_v28, 0.0  ;;  %v172_v34 = vadd.f32 %v171_v32, %v42_v24 }
  0xfa   :  { %v176_v35 = vmax.f32 %v170_v31, 0.0 }
  0xfb   :  { %v215_v36 = vpack.c.bf16 %v175_v33, %v174_v30  ;;  %v177_v37 = vmax.f32 %v172_v34, 0.0 }
  0xfd   :  { %190 = vst [vmem:[%s327_s3] sm:$0xff] %v215_v36  ;;  %v216_v38 = vpack.c.bf16 %v177_v37, %v176_v35 }
  0xff   :  { %191 = vst [vmem:[%s327_s3 + $0x8] sm:$0xff] %v216_v38 }

// kernel: vae_forward.12
= control target key start
LH: loop header
LB: loop body
LE: loop exit
PB: predicated region body
PF: predicated region fallthrough
CT: control target
= control target key end

     0   :  { %s5356_s1 = inlined_call_operand.vmem [shape: bf16[4608,128], index: 1, kind: input, shape index: {}]   ;;  %s5357_s0 = inlined_call_operand.vmem [shape: bf16[16,4608], index: 0, kind: input, shape index: {}]   ;;  %s5358_s2 = inlined_call_operand.vmem [shape: f32[1,128], index: 2, kind: input, shape index: {}]   ;;  %s5359_s3 = inlined_call_operand.vmem [shape: f32[16,128], index: 3, kind: output, shape index: {}]  }
   0x1   :  { %v4007_v0 = vld [vmem:[%s5356_s1 + $0x40] sm:$0xff]   ;;  %v4011_v4 = vld [vmem:[%s5356_s1 + $0x48] sm:$0xff]   ;;  %v4015_v8 = vld [vmem:[%s5356_s1 + $0x50] sm:$0xff]  }
   0x2   :  { %v4008_v1 = vld [vmem:[%s5356_s1 + $0xc0] sm:$0xff]   ;;  %3611 = vmatprep.subr.bf16.mxu0 %v4007_v0  ;;  %v4012_v5 = vld [vmem:[%s5356_s1 + $0xc8] sm:$0xff]   ;;  %v4016_v9 = vld [vmem:[%s5356_s1 + $0xd0] sm:$0xff]  }
   0x3   :  { %v4009_v2 = vld [vmem:[%s5356_s1] sm:$0xff]   ;;  %3633 = vmatprep.subr.bf16.mxu1 %v4008_v1  ;;  %v4013_v6 = vld [vmem:[%s5356_s1 + $0x8] sm:$0xff]   ;;  %v4017_v10 = vld [vmem:[%s5356_s1 + $0x10] sm:$0xff]  }
   0x4   :  { %v4010_v3 = vld [vmem:[%s5356_s1 + $0x80] sm:$0xff]   ;;  %3612 = vmatpush3.bf16.msra.mxu0 %v4009_v2  ;;  %v4014_v7 = vld [vmem:[%s5356_s1 + $0x88] sm:$0xff]   ;;  %v4018_v11 = vld [vmem:[%s5356_s1 + $0x90] sm:$0xff]  }
   0x5   :  { %3634 = vmatpush3.bf16.msra.mxu1 %v4010_v3  ;;  %3613 = vmatprep.subr.bf16.mxu0 %v4011_v4  ;;  %v4019_v12 = vld [vmem:[%s5356_s1 + $0x58] sm:$0xff]   ;;  %v4023_v16 = vld [vmem:[%s5356_s1 + $0x60] sm:$0xff]   ;;  %v4027_v20 = vld [vmem:[%s5356_s1 + $0x68] sm:$0xff]  }
   0x6   :  { %3635 = vmatprep.subr.bf16.mxu1 %v4012_v5  ;;  %v4020_v13 = vld [vmem:[%s5356_s1 + $0xd8] sm:$0xff]   ;;  %v4024_v17 = vld [vmem:[%s5356_s1 + $0xe0] sm:$0xff]   ;;  %v4028_v21 = vld [vmem:[%s5356_s1 + $0xe8] sm:$0xff]  }
   0x7   :  { %v4021_v14 = vld [vmem:[%s5356_s1 + $0x18] sm:$0xff]   ;;  %v4025_v18 = vld [vmem:[%s5356_s1 + $0x20] sm:$0xff]   ;;  %v4029_v22 = vld [vmem:[%s5356_s1 + $0x28] sm:$0xff]  }
   0x8   :  { %3614 = vmatpush3.bf16.msra.mxu0 %v4013_v6  ;;  %v4022_v15 = vld [vmem:[%s5356_s1 + $0x98] sm:$0xff]   ;;  %v4026_v19 = vld [vmem:[%s5356_s1 + $0xa0] sm:$0xff]   ;;  %v4030_v23 = vld [vmem:[%s5356_s1 + $0xa8] sm:$0xff]  }
   0x9   :  { %3636 = vmatpush3.bf16.msra.mxu1 %v4014_v7  ;;  %3615 = vmatprep.subr.bf16.mxu0 %v4015_v8  ;;  %v4031_v24 = vld [vmem:[%s5356_s1 + $0x70] sm:$0xff]   ;;  %v4035_v28 = vld [vmem:[%s5356_s1 + $0x78] sm:$0xff]   ;;  %v4045_v36 = vld [vmem:[%s5356_s1 + $0x140] sm:$0xff]  }
   0xa   :  { %3637 = vmatprep.subr.bf16.mxu1 %v4016_v9  ;;  %v4032_v25 = vld [vmem:[%s5356_s1 + $0xf0] sm:$0xff]   ;;  %v4036_v29 = vld [vmem:[%s5356_s1 + $0xf8] sm:$0xff]   ;;  %v4046_v37 = vld [vmem:[%s5356_s1 + $0x1c0] sm:$0xff]  }
   0xb   :  { %v4033_v26 = vld [vmem:[%s5356_s1 + $0x30] sm:$0xff]   ;;  %v4037_v30 = vld [vmem:[%s5356_s1 + $0x38] sm:$0xff]   ;;  %v4047_v38 = vld [vmem:[%s5356_s1 + $0x100] sm:$0xff]  }
   0xc   :  { %3616 = vmatpush3.bf16.msra.mxu0 %v4017_v10  ;;  %v4034_v27 = vld [vmem:[%s5356_s1 + $0xb0] sm:$0xff]   ;;  %v4038_v31 = vld [vmem:[%s5356_s1 + $0xb8] sm:$0xff]   ;;  %v4048_v39 = vld [vmem:[%s5356_s1 + $0x180] sm:$0xff]  }
   0xd   :  { %3638 = vmatpush3.bf16.msra.mxu1 %v4018_v11  ;;  %3617 = vmatprep.subr.bf16.mxu0 %v4019_v12  ;;  %v4039_v32 = vld [vmem:[%s5357_s0] ss:$144 sps:$4 sm:$0xff]   ;;  %v4041_v33 = vld [vmem:[%s5357_s0 + $0x4] ss:$144 sps:$4 sm:$0xff]   ;;  %v4042_v34 = vld [vmem:[%s5357_s0 + $0x8] ss:$144 sps:$4 sm:$0xff]  }
   0xe   :  { %3639 = vmatprep.subr.bf16.mxu1 %v4020_v13  ;;  %v4044_v35 = vld [vmem:[%s5357_s0 + $0xc] ss:$144 sps:$4 sm:$0xff]   ;;  %2574 = vmatprep.mubr.bf16.mxu0 %v4041_v33  ;;  %v4053_v44 = vld [vmem:[%s5356_s1 + $0x150] sm:$0xff]   ;;  %v4061_v52 = vld [vmem:[%s5356_s1 + $0x160] sm:$0xff]  }
   0xf   :  { %2615 = vmatprep.mubr.bf16.mxu1 %v4044_v35  ;;  %v4049_v40 = vld [vmem:[%s5356_s1 + $0x148] sm:$0xff]   ;;  %v4054_v45 = vld [vmem:[%s5356_s1 + $0x1d0] sm:$0xff]   ;;  %v4057_v48 = vld [vmem:[%s5356_s1 + $0x158] sm:$0xff]  }
  0x10   :  { %3618 = vmatpush3.bf16.msra.mxu0 %v4021_v14  ;;  %v4050_v41 = vld [vmem:[%s5356_s1 + $0x1c8] sm:$0xff]   ;;  %v4055_v46 = vld [vmem:[%s5356_s1 + $0x110] sm:$0xff]   ;;  %v4058_v49 = vld [vmem:[%s5356_s1 + $0x1d8] sm:$0xff]  }
  0x11   :  { %3640 = vmatpush3.bf16.msra.mxu1 %v4022_v15  ;;  %3619 = vmatprep.subr.bf16.mxu0 %v4023_v16  ;;  %v4051_v42 = vld [vmem:[%s5356_s1 + $0x108] sm:$0xff]   ;;  %v4056_v47 = vld [vmem:[%s5356_s1 + $0x190] sm:$0xff]   ;;  %v4059_v50 = vld [vmem:[%s5356_s1 + $0x118] sm:$0xff]  }
  0x12   :  { %3641 = vmatprep.subr.bf16.mxu1 %v4024_v17  ;;  %v4052_v43 = vld [vmem:[%s5356_s1 + $0x188] sm:$0xff]   ;;  %v4060_v51 = vld [vmem:[%s5356_s1 + $0x198] sm:$0xff]   ;;  %v4062_v53 = vld [vmem:[%s5356_s1 + $0x1e0] sm:$0xff]  }
  0x13   :  { %v4063_v54 = vld [vmem:[%s5356_s1 + $0x120] sm:$0xff]   ;;  %v4065_v56 = vld [vmem:[%s5356_s1 + $0x168] sm:$0xff]   ;;  %v4069_v60 = vld [vmem:[%s5356_s1 + $0x170] sm:$0xff]  }
  0x14   :  { %3620 = vmatpush3.bf16.msra.mxu0 %v4025_v18  ;;  %v4064_v55 = vld [vmem:[%s5356_s1 + $0x1a0] sm:$0xff]   ;;  %v4066_v57 = vld [vmem:[%s5356_s1 + $0x1e8] sm:$0xff]   ;;  %v4070_v61 = vld [vmem:[%s5356_s1 + $0x1f0] sm:$0xff]  }
  0x15   :  { %3642 = vmatpush3.bf16.msra.mxu1 %v4026_v19  ;;  %3621 = vmatprep.subr.bf16.mxu0 %v4027_v20  ;;  %v4067_v58 = vld [vmem:[%s5356_s1 + $0x128] sm:$0xff]   ;;  %v4071_v62 = vld [vmem:[%s5356_s1 + $0x130] sm:$0xff]   ;;  %v4073_v0 = vld [vmem:[%s5356_s1 + $0x178] sm:$0xff]  }
  0x16   :  { %3643 = vmatprep.subr.bf16.mxu1 %v4028_v21  ;;  %v4068_v59 = vld [vmem:[%s5356_s1 + $0x1a8] sm:$0xff]   ;;  %v4072_v63 = vld [vmem:[%s5356_s1 + $0x1b0] sm:$0xff]   ;;  %v4074_v1 = vld [vmem:[%s5356_s1 + $0x1f8] sm:$0xff]  }
  0x17   :  { %v4075_v2 = vld [vmem:[%s5356_s1 + $0x138] sm:$0xff]   ;;  %v4077_v4 = vld [vmem:[%s5357_s0 + $0x10] ss:$144 sps:$4 sm:$0xff]   ;;  %v4079_v5 = vld [vmem:[%s5357_s0 + $0x14] ss:$144 sps:$4 sm:$0xff]  }
  0x18   :  { %3622 = vmatpush3.bf16.msra.mxu0 %v4029_v22  ;;  %v4076_v3 = vld [vmem:[%s5356_s1 + $0x1b8] sm:$0xff]   ;;  %v4083_v8 = vld [vmem:[%s5356_s1 + $0x240] sm:$0xff]   ;;  %v4087_v12 = vld [vmem:[%s5356_s1 + $0x248] sm:$0xff]  }
  0x19   :  { %3644 = vmatpush3.bf16.msra.mxu1 %v4030_v23  ;;  %3623 = vmatprep.subr.bf16.mxu0 %v4031_v24  ;;  %v4080_v6 = vld [vmem:[%s5357_s0 + $0x18] ss:$144 sps:$4 sm:$0xff]   ;;  %v4082_v7 = vld [vmem:[%s5357_s0 + $0x1c] ss:$144 sps:$4 sm:$0xff]   ;;  %v4084_v9 = vld [vmem:[%s5356_s1 + $0x2c0] sm:$0xff]  }
  0x1a   :  { %3645 = vmatprep.subr.bf16.mxu1 %v4032_v25  ;;  %v4085_v10 = vld [vmem:[%s5356_s1 + $0x200] sm:$0xff]   ;;  %v4088_v13 = vld [vmem:[%s5356_s1 + $0x2c8] sm:$0xff]   ;;  %v4091_v16 = vld [vmem:[%s5356_s1 + $0x250] sm:$0xff]  }
  0x1b   :  { %v4086_v11 = vld [vmem:[%s5356_s1 + $0x280] sm:$0xff]   ;;  %v4089_v14 = vld [vmem:[%s5356_s1 + $0x208] sm:$0xff]   ;;  %v4092_v17 = vld [vmem:[%s5356_s1 + $0x2d0] sm:$0xff]  }
  0x1c   :  { %3624 = vmatpush3.bf16.msra.mxu0 %v4033_v26  ;;  %v4090_v15 = vld [vmem:[%s5356_s1 + $0x288] sm:$0xff]   ;;  %v4093_v18 = vld [vmem:[%s5356_s1 + $0x210] sm:$0xff]   ;;  %v4095_v20 = vld [vmem:[%s5356_s1 + $0x258] sm:$0xff]  }
  0x1d   :  { %3646 = vmatpush3.bf16.msra.mxu1 %v4034_v27  ;;  %3625 = vmatprep.subr.bf16.mxu0 %v4035_v28  ;;  %v4094_v19 = vld [vmem:[%s5356_s1 + $0x290] sm:$0xff]   ;;  %v4096_v21 = vld [vmem:[%s5356_s1 + $0x2d8] sm:$0xff]   ;;  %v4099_v24 = vld [vmem:[%s5356_s1 + $0x260] sm:$0xff]  }
  0x1e   :  { %3647 = vmatprep.subr.bf16.mxu1 %v4036_v29  ;;  %v4097_v22 = vld [vmem:[%s5356_s1 + $0x218] sm:$0xff]   ;;  %v4100_v25 = vld [vmem:[%s5356_s1 + $0x2e0] sm:$0xff]   ;;  %v4103_v28 = vld [vmem:[%s5356_s1 + $0x268] sm:$0xff]  }
  0x1f   :  { %v4098_v23 = vld [vmem:[%s5356_s1 + $0x298] sm:$0xff]   ;;  %v4101_v26 = vld [vmem:[%s5356_s1 + $0x220] sm:$0xff]   ;;  %v4104_v29 = vld [vmem:[%s5356_s1 + $0x2e8] sm:$0xff]  }
  0x20   :  { %3626 = vmatpush3.bf16.msra.mxu0 %v4037_v30  ;;  %v4102_v27 = vld [vmem:[%s5356_s1 + $0x2a0] sm:$0xff]   ;;  %v4105_v30 = vld [vmem:[%s5356_s1 + $0x228] sm:$0xff]   ;;  %v4108_v33 = vld [vmem:[%s5356_s1 + $0x2f0] sm:$0xff]  }
  0x21   :  { %3648 = vmatpush3.bf16.msra.mxu1 %v4038_v31  ;;  %3655 = vmatprep.subr.bf16.mxu0 %v4045_v36  ;;  %v4106_v31 = vld [vmem:[%s5356_s1 + $0x2a8] sm:$0xff]   ;;  %v4110_v35 = vld [vmem:[%s5356_s1 + $0x2b0] sm:$0xff]   ;;  %v4111_v36 = vld [vmem:[%s5356_s1 + $0x278] sm:$0xff]  }
  0x22   :  { %3677 = vmatprep.subr.bf16.mxu1 %v4046_v37  ;;  %v4112_v37 = vld [vmem:[%s5356_s1 + $0x2f8] sm:$0xff]  }
  0x23   :  { %2575 = vmatmul.mubr.bf16.vlgmr.msra.gmra.mrb[0].mxu0 %v4039_v32  ;;  %v4107_v32 = vld [vmem:[%s5356_s1 + $0x270] sm:$0xff]  }
  0x24   :  { %2616 = vmatmul.mubr.bf16.vlgmr.msra.gmra.mrb[0].mxu1 %v4042_v34  ;;  %3656 = vmatpush3.bf16.msra.mxu0 %v4047_v38  ;;  %v4109_v34 = vld [vmem:[%s5356_s1 + $0x230] sm:$0xff]   ;;  %v4113_v38 = vld [vmem:[%s5356_s1 + $0x238] sm:$0xff]  }
  0x25   :  { %3678 = vmatpush3.bf16.msra.mxu1 %v4048_v39  ;;  %3657 = vmatprep.subr.bf16.mxu0 %v4049_v40  ;;  %v4114_v39 = vld [vmem:[%s5356_s1 + $0x2b8] sm:$0xff]   ;;  %v4115_v40 = vld [vmem:[%s5357_s0 + $0x20] ss:$144 sps:$4 sm:$0xff]  }
  0x26   :  { %3679 = vmatprep.subr.bf16.mxu1 %v4050_v41  ;;  %2656 = vmatprep.mubr.bf16.mxu0 %v4079_v5  ;;  %v4117_v41 = vld [vmem:[%s5357_s0 + $0x24] ss:$144 sps:$4 sm:$0xff]  }
  0x27   :  { %2697 = vmatprep.mubr.bf16.mxu1 %v4082_v7  ;;  %v4146_v5 = vld [vmem:[%s5356_s1 + $0x3f0] sm:$0xff]  }
  0x28   :  { %3658 = vmatpush3.bf16.msra.mxu0 %v4051_v42  ;;  %v4118_v42 = vld [vmem:[%s5357_s0 + $0x28] ss:$144 sps:$4 sm:$0xff]   ;;  %v4148_v7 = vld [vmem:[%s5356_s1 + $0x3b0] sm:$0xff]  }
  0x29   :  { %3680 = vmatpush3.bf16.msra.mxu1 %v4052_v43  ;;  %3659 = vmatprep.subr.bf16.mxu0 %v4053_v44  ;;  %v4120_v43 = vld [vmem:[%s5357_s0 + $0x2c] ss:$144 sps:$4 sm:$0xff]   ;;  %v4121_v44 = vld [vmem:[%s5356_s1 + $0x340] sm:$0xff]  }
  0x2a   :  { %3681 = vmatprep.subr.bf16.mxu1 %v4054_v45  ;;  %v4122_v45 = vld [vmem:[%s5356_s1 + $0x3c0] sm:$0xff]  }
  0x2c   :  { %3660 = vmatpush3.bf16.msra.mxu0 %v4055_v46  ;;  %v4123_v46 = vld [vmem:[%s5356_s1 + $0x300] sm:$0xff]  }
  0x2d   :  { %3682 = vmatpush3.bf16.msra.mxu1 %v4056_v47  ;;  %3661 = vmatprep.subr.bf16.mxu0 %v4057_v48  ;;  %v4124_v47 = vld [vmem:[%s5356_s1 + $0x380] sm:$0xff]   ;;  %v4125_v48 = vld [vmem:[%s5356_s1 + $0x348] sm:$0xff]  }
  0x2e   :  { %3683 = vmatprep.subr.bf16.mxu1 %v4058_v49  ;;  %v4126_v49 = vld [vmem:[%s5356_s1 + $0x3c8] sm:$0xff]  }
  0x30   :  { %3662 = vmatpush3.bf16.msra.mxu0 %v4059_v50  ;;  %v4127_v50 = vld [vmem:[%s5356_s1 + $0x308] sm:$0xff]  }
  0x31   :  { %3684 = vmatpush3.bf16.msra.mxu1 %v4060_v51  ;;  %3663 = vmatprep.subr.bf16.mxu0 %v4061_v52  ;;  %v4128_v51 = vld [vmem:[%s5356_s1 + $0x388] sm:$0xff]   ;;  %v4129_v52 = vld [vmem:[%s5356_s1 + $0x350] sm:$0xff]  }
  0x32   :  { %3685 = vmatprep.subr.bf16.mxu1 %v4062_v53  ;;  %v4130_v53 = vld [vmem:[%s5356_s1 + $0x3d0] sm:$0xff]  }
  0x34   :  { %3664 = vmatpush3.bf16.msra.mxu0 %v4063_v54  ;;  %v4131_v54 = vld [vmem:[%s5356_s1 + $0x310] sm:$0xff]  }
  0x35   :  { %3686 = vmatpush3.bf16.msra.mxu1 %v4064_v55  ;;  %3665 = vmatprep.subr.bf16.mxu0 %v4065_v56  ;;  %v4132_v55 = vld [vmem:[%s5356_s1 + $0x390] sm:$0xff]   ;;  %v4133_v56 = vld [vmem:[%s5356_s1 + $0x358] sm:$0xff]  }
  0x36   :  { %3687 = vmatprep.subr.bf16.mxu1 %v4066_v57  ;;  %v4134_v57 = vld [vmem:[%s5356_s1 + $0x3d8] sm:$0xff]  }
  0x38   :  { %3666 = vmatpush3.bf16.msra.mxu0 %v4067_v58  ;;  %v4135_v58 = vld [vmem:[%s5356_s1 + $0x318] sm:$0xff]  }
  0x39   :  { %3688 = vmatpush3.bf16.msra.mxu1 %v4068_v59  ;;  %3667 = vmatprep.subr.bf16.mxu0 %v4069_v60  ;;  %v4136_v59 = vld [vmem:[%s5356_s1 + $0x398] sm:$0xff]   ;;  %v4137_v60 = vld [vmem:[%s5356_s1 + $0x360] sm:$0xff]  }
  0x3a   :  { %3689 = vmatprep.subr.bf16.mxu1 %v4070_v61  ;;  %v4138_v61 = vld [vmem:[%s5356_s1 + $0x3e0] sm:$0xff]  }
  0x3c   :  { %3668 = vmatpush3.bf16.msra.mxu0 %v4071_v62  ;;  %v4139_v62 = vld [vmem:[%s5356_s1 + $0x320] sm:$0xff]  }
  0x3d   :  { %3690 = vmatpush3.bf16.msra.mxu1 %v4072_v63  ;;  %3669 = vmatprep.subr.bf16.mxu0 %v4073_v0  ;;  %v4140_v63 = vld [vmem:[%s5356_s1 + $0x3a0] sm:$0xff]   ;;  %v4141_v0 = vld [vmem:[%s5356_s1 + $0x368] sm:$0xff]  }
  0x3e   :  { %3691 = vmatprep.subr.bf16.mxu1 %v4074_v1  ;;  %v4142_v1 = vld [vmem:[%s5356_s1 + $0x3e8] sm:$0xff]  }
  0x40   :  { %3670 = vmatpush3.bf16.msra.mxu0 %v4075_v2  ;;  %v4143_v2 = vld [vmem:[%s5356_s1 + $0x328] sm:$0xff]  }
  0x41   :  { %3692 = vmatpush3.bf16.msra.mxu1 %v4076_v3  ;;  %3699 = vmatprep.subr.bf16.mxu0 %v4083_v8  ;;  %v4144_v3 = vld [vmem:[%s5356_s1 + $0x3a8] sm:$0xff]   ;;  %v4149_v8 = vld [vmem:[%s5356_s1 + $0x378] sm:$0xff]  }
  0x42   :  { %3721 = vmatprep.subr.bf16.mxu1 %v4084_v9  ;;  %v4150_v9 = vld [vmem:[%s5356_s1 + $0x3f8] sm:$0xff]  }
  0x43   :  { %2657 = vmatmul.mubr.bf16.vlgmr.msra.gmra.mrb[4].mxu0 %v4077_v4  ;;  %v4145_v4 = vld [vmem:[%s5356_s1 + $0x370] sm:$0xff]  }
  0x44   :  { %2698 = vmatmul.mubr.bf16.vlgmr.msra.gmra.mrb[4].mxu1 %v4080_v6  ;;  %3700 = vmatpush3.bf16.msra.mxu0 %v4085_v10  ;;  %v4147_v6 = vld [vmem:[%s5356_s1 + $0x330] sm:$0xff]   ;;  %v4151_v10 = vld [vmem:[%s5356_s1 + $0x338] sm:$0xff]  }
  0x45   :  { %3722 = vmatpush3.bf16.msra.mxu1 %v4086_v11  ;;  %3701 = vmatprep.subr.bf16.mxu0 %v4087_v12  ;;  %v4152_v11 = vld [vmem:[%s5356_s1 + $0x3b8] sm:$0xff]   ;;  %v4153_v12 = vld [vmem:[%s5357_s0 + $0x30] ss:$144 sps:$4 sm:$0xff]  }
  0x46   :  { %3723 = vmatprep.subr.bf16.mxu1 %v4088_v13  ;;  %2738 = vmatprep.mubr.bf16.mxu0 %v4117_v41  ;;  %v4155_v13 = vld [vmem:[%s5357_s0 + $0x34] ss:$144 sps:$4 sm:$0xff]  }
  0x47   :  { %2779 = vmatprep.mubr.bf16.mxu1 %v4120_v43  ;;  %v4184_v41 = vld [vmem:[%s5356_s1 + $0x4f0] sm:$0xff]  }
  0x48   :  { %3702 = vmatpush3.bf16.msra.mxu0 %v4089_v14  ;;  %v4156_v14 = vld [vmem:[%s5357_s0 + $0x38] ss:$144 sps:$4 sm:$0xff]   ;;  %v4186_v43 = vld [vmem:[%s5356_s1 + $0x4b0] sm:$0xff]  }
  0x49   :  { %3724 = vmatpush3.bf16.msra.mxu1 %v4090_v15  ;;  %3703 = vmatprep.subr.bf16.mxu0 %v4091_v16  ;;  %v4158_v15 = vld [vmem:[%s5357_s0 + $0x3c] ss:$144 sps:$4 sm:$0xff]   ;;  %v4159_v16 = vld [vmem:[%s5356_s1 + $0x440] sm:$0xff]  }
  0x4a   :  { %3725 = vmatprep.subr.bf16.mxu1 %v4092_v17  ;;  %v4160_v17 = vld [vmem:[%s5356_s1 + $0x4c0] sm:$0xff]  }
  0x4c   :  { %3704 = vmatpush3.bf16.msra.mxu0 %v4093_v18  ;;  %v4161_v18 = vld [vmem:[%s5356_s1 + $0x400] sm:$0xff]  }
  0x4d   :  { %3726 = vmatpush3.bf16.msra.mxu1 %v4094_v19  ;;  %3705 = vmatprep.subr.bf16.mxu0 %v4095_v20  ;;  %v4162_v19 = vld [vmem:[%s5356_s1 + $0x480] sm:$0xff]   ;;  %v4163_v20 = vld [vmem:[%s5356_s1 + $0x448] sm:$0xff]  }
  0x4e   :  { %3727 = vmatprep.subr.bf16.mxu1 %v4096_v21  ;;  %v4164_v21 = vld [vmem:[%s5356_s1 + $0x4c8] sm:$0xff]  }
  0x50   :  { %3706 = vmatpush3.bf16.msra.mxu0 %v4097_v22  ;;  %v4165_v22 = vld [vmem:[%s5356_s1 + $0x408] sm:$0xff]  }
  0x51   :  { %3728 = vmatpush3.bf16.msra.mxu1 %v4098_v23  ;;  %3707 = vmatprep.subr.bf16.mxu0 %v4099_v24  ;;  %v4166_v23 = vld [vmem:[%s5356_s1 + $0x488] sm:$0xff]   ;;  %v4167_v24 = vld [vmem:[%s5356_s1 + $0x450] sm:$0xff]  }
  0x52   :  { %3729 = vmatprep.subr.bf16.mxu1 %v4100_v25  ;;  %v4168_v25 = vld [vmem:[%s5356_s1 + $0x4d0] sm:$0xff]  }
  0x54   :  { %3708 = vmatpush3.bf16.msra.mxu0 %v4101_v26  ;;  %v4169_v26 = vld [vmem:[%s5356_s1 + $0x410] sm:$0xff]  }
  0x55   :  { %3730 = vmatpush3.bf16.msra.mxu1 %v4102_v27  ;;  %3709 = vmatprep.subr.bf16.mxu0 %v4103_v28  ;;  %v4170_v27 = vld [vmem:[%s5356_s1 + $0x490] sm:$0xff]   ;;  %v4171_v28 = vld [vmem:[%s5356_s1 + $0x458] sm:$0xff]  }
  0x56   :  { %3731 = vmatprep.subr.bf16.mxu1 %v4104_v29  ;;  %v4172_v29 = vld [vmem:[%s5356_s1 + $0x4d8] sm:$0xff]  }
  0x58   :  { %3710 = vmatpush3.bf16.msra.mxu0 %v4105_v30  ;;  %v4173_v30 = vld [vmem:[%s5356_s1 + $0x418] sm:$0xff]  }
  0x59   :  { %3732 = vmatpush3.bf16.msra.mxu1 %v4106_v31  ;;  %3711 = vmatprep.subr.bf16.mxu0 %v4107_v32  ;;  %v4174_v31 = vld [vmem:[%s5356_s1 + $0x498] sm:$0xff]   ;;  %v4175_v32 = vld [vmem:[%s5356_s1 + $0x460] sm:$0xff]  }
  0x5a   :  { %3733 = vmatprep.subr.bf16.mxu1 %v4108_v33  ;;  %v4176_v33 = vld [vmem:[%s5356_s1 + $0x4e0] sm:$0xff]  }
  0x5c   :  { %3712 = vmatpush3.bf16.msra.mxu0 %v4109_v34  ;;  %v4177_v34 = vld [vmem:[%s5356_s1 + $0x420] sm:$0xff]  }
  0x5d   :  { %3734 = vmatpush3.bf16.msra.mxu1 %v4110_v35  ;;  %3713 = vmatprep.subr.bf16.mxu0 %v4111_v36  ;;  %v4178_v35 = vld [vmem:[%s5356_s1 + $0x4a0] sm:$0xff]   ;;  %v4179_v36 = vld [vmem:[%s5356_s1 + $0x468] sm:$0xff]  }
  0x5e   :  { %3735 = vmatprep.subr.bf16.mxu1 %v4112_v37  ;;  %v4180_v37 = vld [vmem:[%s5356_s1 + $0x4e8] sm:$0xff]  }
  0x60   :  { %3714 = vmatpush3.bf16.msra.mxu0 %v4113_v38  ;;  %v4181_v38 = vld [vmem:[%s5356_s1 + $0x428] sm:$0xff]  }
  0x61   :  { %3736 = vmatpush3.bf16.msra.mxu1 %v4114_v39  ;;  %3743 = vmatprep.subr.bf16.mxu0 %v4121_v44  ;;  %v4182_v39 = vld [vmem:[%s5356_s1 + $0x4a8] sm:$0xff]   ;;  %v4187_v44 = vld [vmem:[%s5356_s1 + $0x478] sm:$0xff]  }
  0x62   :  { %3765 = vmatprep.subr.bf16.mxu1 %v4122_v45  ;;  %v4188_v45 = vld [vmem:[%s5356_s1 + $0x4f8] sm:$0xff]  }
  0x63   :  { %2739 = vmatmul.mubr.bf16.vlgmr.msra.gmra.mrb[8].mxu0 %v4115_v40  ;;  %v4183_v40 = vld [vmem:[%s5356_s1 + $0x470] sm:$0xff]  }
  0x64   :  { %2780 = vmatmul.mubr.bf16.vlgmr.msra.gmra.mrb[8].mxu1 %v4118_v42  ;;  %3744 = vmatpush3.bf16.msra.mxu0 %v4123_v46  ;;  %v4185_v42 = vld [vmem:[%s5356_s1 + $0x430] sm:$0xff]   ;;  %v4189_v46 = vld [vmem:[%s5356_s1 + $0x438] sm:$0xff]  }
  0x65   :  { %3766 = vmatpush3.bf16.msra.mxu1 %v4124_v47  ;;  %3745 = vmatprep.subr.bf16.mxu0 %v4125_v48  ;;  %v4190_v47 = vld [vmem:[%s5356_s1 + $0x4b8] sm:$0xff]   ;;  %v4191_v48 = vld [vmem:[%s5357_s0 + $0x40] ss:$144 sps:$4 sm:$0xff]  }
  0x66   :  { %3767 = vmatprep.subr.bf16.mxu1 %v4126_v49  ;;  %2820 = vmatprep.mubr.bf16.mxu0 %v4155_v13  ;;  %v4193_v49 = vld [vmem:[%s5357_s0 + $0x44] ss:$144 sps:$4 sm:$0xff]  }
  0x67   :  { %2861 = vmatprep.mubr.bf16.mxu1 %v4158_v15  ;;  %v4222_v13 = vld [vmem:[%s5356_s1 + $0x5f0] sm:$0xff]  }
  0x68   :  { %3746 = vmatpush3.bf16.msra.mxu0 %v4127_v50  ;;  %v4194_v50 = vld [vmem:[%s5357_s0 + $0x48] ss:$144 sps:$4 sm:$0xff]   ;;  %v4224_v15 = vld [vmem:[%s5356_s1 + $0x5b0] sm:$0xff]  }
  0x69   :  { %3768 = vmatpush3.bf16.msra.mxu1 %v4128_v51  ;;  %3747 = vmatprep.subr.bf16.mxu0 %v4129_v52  ;;  %v4196_v51 = vld [vmem:[%s5357_s0 + $0x4c] ss:$144 sps:$4 sm:$0xff]   ;;  %v4197_v52 = vld [vmem:[%s5356_s1 + $0x540] sm:$0xff]  }
  0x6a   :  { %3769 = vmatprep.subr.bf16.mxu1 %v4130_v53  ;;  %v4198_v53 = vld [vmem:[%s5356_s1 + $0x5c0] sm:$0xff]  }
  0x6c   :  { %3748 = vmatpush3.bf16.msra.mxu0 %v4131_v54  ;;  %v4199_v54 = vld [vmem:[%s5356_s1 + $0x500] sm:$0xff]  }
  0x6d   :  { %3770 = vmatpush3.bf16.msra.mxu1 %v4132_v55  ;;  %3749 = vmatprep.subr.bf16.mxu0 %v4133_v56  ;;  %v4200_v55 = vld [vmem:[%s5356_s1 + $0x580] sm:$0xff]   ;;  %v4201_v56 = vld [vmem:[%s5356_s1 + $0x548] sm:$0xff]  }
  0x6e   :  { %3771 = vmatprep.subr.bf16.mxu1 %v4134_v57  ;;  %v4202_v57 = vld [vmem:[%s5356_s1 + $0x5c8] sm:$0xff]  }
  0x70   :  { %3750 = vmatpush3.bf16.msra.mxu0 %v4135_v58  ;;  %v4203_v58 = vld [vmem:[%s5356_s1 + $0x508] sm:$0xff]  }
  0x71   :  { %3772 = vmatpush3.bf16.msra.mxu1 %v4136_v59  ;;  %3751 = vmatprep.subr.bf16.mxu0 %v4137_v60  ;;  %v4204_v59 = vld [vmem:[%s5356_s1 + $0x588] sm:$0xff]   ;;  %v4205_v60 = vld [vmem:[%s5356_s1 + $0x550] sm:$0xff]  }
  0x72   :  { %3773 = vmatprep.subr.bf16.mxu1 %v4138_v61  ;;  %v4206_v61 = vld [vmem:[%s5356_s1 + $0x5d0] sm:$0xff]  }
  0x74   :  { %3752 = vmatpush3.bf16.msra.mxu0 %v4139_v62  ;;  %v4207_v62 = vld [vmem:[%s5356_s1 + $0x510] sm:$0xff]  }
  0x75   :  { %3774 = vmatpush3.bf16.msra.mxu1 %v4140_v63  ;;  %3753 = vmatprep.subr.bf16.mxu0 %v4141_v0  ;;  %v4208_v63 = vld [vmem:[%s5356_s1 + $0x590] sm:$0xff]   ;;  %v4209_v0 = vld [vmem:[%s5356_s1 + $0x558] sm:$0xff]  }
  0x76   :  { %3775 = vmatprep.subr.bf16.mxu1 %v4142_v1  ;;  %v4210_v1 = vld [vmem:[%s5356_s1 + $0x5d8] sm:$0xff]  }
  0x78   :  { %3754 = vmatpush3.bf16.msra.mxu0 %v4143_v2  ;;  %v4211_v2 = vld [vmem:[%s5356_s1 + $0x518] sm:$0xff]  }
  0x79   :  { %3776 = vmatpush3.bf16.msra.mxu1 %v4144_v3  ;;  %3755 = vmatprep.subr.bf16.mxu0 %v4145_v4  ;;  %v4212_v3 = vld [vmem:[%s5356_s1 + $0x598] sm:$0xff]   ;;  %v4213_v4 = vld [vmem:[%s5356_s1 + $0x560] sm:$0xff]  }
  0x7a   :  { %3777 = vmatprep.subr.bf16.mxu1 %v4146_v5  ;;  %v4214_v5 = vld [vmem:[%s5356_s1 + $0x5e0] sm:$0xff]  }
  0x7c   :  { %3756 = vmatpush3.bf16.msra.mxu0 %v4147_v6  ;;  %v4215_v6 = vld [vmem:[%s5356_s1 + $0x520] sm:$0xff]  }
  0x7d   :  { %3778 = vmatpush3.bf16.msra.mxu1 %v4148_v7  ;;  %3757 = vmatprep.subr.bf16.mxu0 %v4149_v8  ;;  %v4216_v7 = vld [vmem:[%s5356_s1 + $0x5a0] sm:$0xff]   ;;  %v4217_v8 = vld [vmem:[%s5356_s1 + $0x568] sm:$0xff]  }
  0x7e   :  { %3779 = vmatprep.subr.bf16.mxu1 %v4150_v9  ;;  %v4218_v9 = vld [vmem:[%s5356_s1 + $0x5e8] sm:$0xff]  }
  0x80   :  { %3758 = vmatpush3.bf16.msra.mxu0 %v4151_v10  ;;  %v4219_v10 = vld [vmem:[%s5356_s1 + $0x528] sm:$0xff]  }
  0x81   :  { %3780 = vmatpush3.bf16.msra.mxu1 %v4152_v11  ;;  %3787 = vmatprep.subr.bf16.mxu0 %v4159_v16  ;;  %v4220_v11 = vld [vmem:[%s5356_s1 + $0x5a8] sm:$0xff]   ;;  %v4225_v16 = vld [vmem:[%s5356_s1 + $0x578] sm:$0xff]  }
  0x82   :  { %3809 = vmatprep.subr.bf16.mxu1 %v4160_v17  ;;  %v4226_v17 = vld [vmem:[%s5356_s1 + $0x5f8] sm:$0xff]  }
  0x83   :  { %2821 = vmatmul.mubr.bf16.vlgmr.msra.gmra.mrb[12].mxu0 %v4153_v12  ;;  %v4221_v12 = vld [vmem:[%s5356_s1 + $0x570] sm:$0xff]  }
  0x84   :  { %2862 = vmatmul.mubr.bf16.vlgmr.msra.gmra.mrb[12].mxu1 %v4156_v14  ;;  %3788 = vmatpush3.bf16.msra.mxu0 %v4161_v18  ;;  %v4223_v14 = vld [vmem:[%s5356_s1 + $0x530] sm:$0xff]   ;;  %v4227_v18 = vld [vmem:[%s5356_s1 + $0x538] sm:$0xff]  }
  0x85   :  { %3810 = vmatpush3.bf16.msra.mxu1 %v4162_v19  ;;  %3789 = vmatprep.subr.bf16.mxu0 %v4163_v20  ;;  %v4228_v19 = vld [vmem:[%s5356_s1 + $0x5b8] sm:$0xff]   ;;  %v4229_v20 = vld [vmem:[%s5357_s0 + $0x50] ss:$144 sps:$4 sm:$0xff]  }
  0x86   :  { %3811 = vmatprep.subr.bf16.mxu1 %v4164_v21  ;;  %2902 = vmatprep.mubr.bf16.mxu0 %v4193_v49  ;;  %v4231_v21 = vld [vmem:[%s5357_s0 + $0x54] ss:$144 sps:$4 sm:$0xff]  }
  0x87   :  { %2943 = vmatprep.mubr.bf16.mxu1 %v4196_v51  ;;  %v4260_v49 = vld [vmem:[%s5356_s1 + $0x6f0] sm:$0xff]  }
  0x88   :  { %3790 = vmatpush3.bf16.msra.mxu0 %v4165_v22  ;;  %v4232_v22 = vld [vmem:[%s5357_s0 + $0x58] ss:$144 sps:$4 sm:$0xff]   ;;  %v4262_v51 = vld [vmem:[%s5356_s1 + $0x6b0] sm:$0xff]  }
  0x89   :  { %3812 = vmatpush3.bf16.msra.mxu1 %v4166_v23  ;;  %3791 = vmatprep.subr.bf16.mxu0 %v4167_v24  ;;  %v4234_v23 = vld [vmem:[%s5357_s0 + $0x5c] ss:$144 sps:$4 sm:$0xff]   ;;  %v4235_v24 = vld [vmem:[%s5356_s1 + $0x640] sm:$0xff]  }
  0x8a   :  { %3813 = vmatprep.subr.bf16.mxu1 %v4168_v25  ;;  %v4236_v25 = vld [vmem:[%s5356_s1 + $0x6c0] sm:$0xff]  }
  0x8c   :  { %3792 = vmatpush3.bf16.msra.mxu0 %v4169_v26  ;;  %v4237_v26 = vld [vmem:[%s5356_s1 + $0x600] sm:$0xff]  }
  0x8d   :  { %3814 = vmatpush3.bf16.msra.mxu1 %v4170_v27  ;;  %3793 = vmatprep.subr.bf16.mxu0 %v4171_v28  ;;  %v4238_v27 = vld [vmem:[%s5356_s1 + $0x680] sm:$0xff]   ;;  %v4239_v28 = vld [vmem:[%s5356_s1 + $0x648] sm:$0xff]  }
  0x8e   :  { %3815 = vmatprep.subr.bf16.mxu1 %v4172_v29  ;;  %v4240_v29 = vld [vmem:[%s5356_s1 + $0x6c8] sm:$0xff]  }
  0x90   :  { %3794 = vmatpush3.bf16.msra.mxu0 %v4173_v30  ;;  %v4241_v30 = vld [vmem:[%s5356_s1 + $0x608] sm:$0xff]  }
  0x91   :  { %3816 = vmatpush3.bf16.msra.mxu1 %v4174_v31  ;;  %3795 = vmatprep.subr.bf16.mxu0 %v4175_v32  ;;  %v4242_v31 = vld [vmem:[%s5356_s1 + $0x688] sm:$0xff]   ;;  %v4243_v32 = vld [vmem:[%s5356_s1 + $0x650] sm:$0xff]  }
  0x92   :  { %3817 = vmatprep.subr.bf16.mxu1 %v4176_v33  ;;  %v4244_v33 = vld [vmem:[%s5356_s1 + $0x6d0] sm:$0xff]  }
  0x94   :  { %3796 = vmatpush3.bf16.msra.mxu0 %v4177_v34  ;;  %v4245_v34 = vld [vmem:[%s5356_s1 + $0x610] sm:$0xff]  }
  0x95   :  { %3818 = vmatpush3.bf16.msra.mxu1 %v4178_v35  ;;  %3797 = vmatprep.subr.bf16.mxu0 %v4179_v36  ;;  %v4246_v35 = vld [vmem:[%s5356_s1 + $0x690] sm:$0xff]   ;;  %v4247_v36 = vld [vmem:[%s5356_s1 + $0x658] sm:$0xff]  }
  0x96   :  { %3819 = vmatprep.subr.bf16.mxu1 %v4180_v37  ;;  %v4248_v37 = vld [vmem:[%s5356_s1 + $0x6d8] sm:$0xff]  }
  0x98   :  { %3798 = vmatpush3.bf16.msra.mxu0 %v4181_v38  ;;  %v4249_v38 = vld [vmem:[%s5356_s1 + $0x618] sm:$0xff]  }
  0x99   :  { %3820 = vmatpush3.bf16.msra.mxu1 %v4182_v39  ;;  %3799 = vmatprep.subr.bf16.mxu0 %v4183_v40  ;;  %v4250_v39 = vld [vmem:[%s5356_s1 + $0x698] sm:$0xff]   ;;  %v4251_v40 = vld [vmem:[%s5356_s1 + $0x660] sm:$0xff]  }
  0x9a   :  { %3821 = vmatprep.subr.bf16.mxu1 %v4184_v41  ;;  %v4252_v41 = vld [vmem:[%s5356_s1 + $0x6e0] sm:$0xff]  }
  0x9c   :  { %3800 = vmatpush3.bf16.msra.mxu0 %v4185_v42  ;;  %v4253_v42 = vld [vmem:[%s5356_s1 + $0x620] sm:$0xff]  }
  0x9d   :  { %3822 = vmatpush3.bf16.msra.mxu1 %v4186_v43  ;;  %3801 = vmatprep.subr.bf16.mxu0 %v4187_v44  ;;  %v4254_v43 = vld [vmem:[%s5356_s1 + $0x6a0] sm:$0xff]   ;;  %v4255_v44 = vld [vmem:[%s5356_s1 + $0x668] sm:$0xff]  }
  0x9e   :  { %3823 = vmatprep.subr.bf16.mxu1 %v4188_v45  ;;  %v4256_v45 = vld [vmem:[%s5356_s1 + $0x6e8] sm:$0xff]  }
  0xa0   :  { %3802 = vmatpush3.bf16.msra.mxu0 %v4189_v46  ;;  %v4257_v46 = vld [vmem:[%s5356_s1 + $0x628] sm:$0xff]  }
  0xa1   :  { %3824 = vmatpush3.bf16.msra.mxu1 %v4190_v47  ;;  %3831 = vmatprep.subr.bf16.mxu0 %v4197_v52  ;;  %v4258_v47 = vld [vmem:[%s5356_s1 + $0x6a8] sm:$0xff]   ;;  %v4263_v52 = vld [vmem:[%s5356_s1 + $0x678] sm:$0xff]  }
  0xa2   :  { %3853 = vmatprep.subr.bf16.mxu1 %v4198_v53  ;;  %v4264_v53 = vld [vmem:[%s5356_s1 + $0x6f8] sm:$0xff]  }
  0xa3   :  { %2903 = vmatmul.mubr.bf16.vlgmr.msra.gmra.mrb[16].mxu0 %v4191_v48  ;;  %v4259_v48 = vld [vmem:[%s5356_s1 + $0x670] sm:$0xff]  }
  0xa4   :  { %2944 = vmatmul.mubr.bf16.vlgmr.msra.gmra.mrb[16].mxu1 %v4194_v50  ;;  %3832 = vmatpush3.bf16.msra.mxu0 %v4199_v54  ;;  %v4261_v50 = vld [vmem:[%s5356_s1 + $0x630] sm:$0xff]   ;;  %v4265_v54 = vld [vmem:[%s5356_s1 + $0x638] sm:$0xff]  }
  0xa5   :  { %3854 = vmatpush3.bf16.msra.mxu1 %v4200_v55  ;;  %3833 = vmatprep.subr.bf16.mxu0 %v4201_v56  ;;  %v4266_v55 = vld [vmem:[%s5356_s1 + $0x6b8] sm:$0xff]   ;;  %v4267_v56 = vld [vmem:[%s5357_s0 + $0x60] ss:$144 sps:$4 sm:$0xff]  }
  0xa6   :  { %3855 = vmatprep.subr.bf16.mxu1 %v4202_v57  ;;  %2984 = vmatprep.mubr.bf16.mxu0 %v4231_v21  ;;  %v4269_v57 = vld [vmem:[%s5357_s0 + $0x64] ss:$144 sps:$4 sm:$0xff]   ;;  %v4286_v21 = vld [vmem:[%s5356_s1 + $0x7d8] sm:$0xff]  }
  0xa7   :  { %3025 = vmatprep.mubr.bf16.mxu1 %v4234_v23  ;;  %v4288_v23 = vld [vmem:[%s5356_s1 + $0x798] sm:$0xff]  }
  0xa8   :  { %3834 = vmatpush3.bf16.msra.mxu0 %v4203_v58  ;;  %v4270_v58 = vld [vmem:[%s5357_s0 + $0x68] ss:$144 sps:$4 sm:$0xff]  }
  0xa9   :  { %3856 = vmatpush3.bf16.msra.mxu1 %v4204_v59  ;;  %3835 = vmatprep.subr.bf16.mxu0 %v4205_v60  ;;  %v4272_v59 = vld [vmem:[%s5357_s0 + $0x6c] ss:$144 sps:$4 sm:$0xff]   ;;  %v4273_v60 = vld [vmem:[%s5356_s1 + $0x740] sm:$0xff]  }
  0xaa   :  { %3857 = vmatprep.subr.bf16.mxu1 %v4206_v61  ;;  %v4274_v61 = vld [vmem:[%s5356_s1 + $0x7c0] sm:$0xff]  }
  0xac   :  { %3836 = vmatpush3.bf16.msra.mxu0 %v4207_v62  ;;  %v4275_v62 = vld [vmem:[%s5356_s1 + $0x700] sm:$0xff]  }
  0xad   :  { %3858 = vmatpush3.bf16.msra.mxu1 %v4208_v63  ;;  %3837 = vmatprep.subr.bf16.mxu0 %v4209_v0  ;;  %v4276_v63 = vld [vmem:[%s5356_s1 + $0x780] sm:$0xff]   ;;  %v4277_v0 = vld [vmem:[%s5356_s1 + $0x748] sm:$0xff]  }
  0xae   :  { %3859 = vmatprep.subr.bf16.mxu1 %v4210_v1 }
  0xb0   :  { %3838 = vmatpush3.bf16.msra.mxu0 %v4211_v2  ;;  %v4278_v2 = vld [vmem:[%s5356_s1 + $0x7c8] sm:$0xff]  }
  0xb1   :  { %3860 = vmatpush3.bf16.msra.mxu1 %v4212_v3  ;;  %3839 = vmatprep.subr.bf16.mxu0 %v4213_v4  ;;  %v4279_v4 = vld [vmem:[%s5356_s1 + $0x708] sm:$0xff]  }
  0xb2   :  { %3861 = vmatprep.subr.bf16.mxu1 %v4214_v5 }
  0xb4   :  { %3840 = vmatpush3.bf16.msra.mxu0 %v4215_v6  ;;  %v4280_v6 = vld [vmem:[%s5356_s1 + $0x788] sm:$0xff]  }
  0xb5   :  { %3862 = vmatpush3.bf16.msra.mxu1 %v4216_v7  ;;  %3841 = vmatprep.subr.bf16.mxu0 %v4217_v8 }
  0xb6   :  { %3863 = vmatprep.subr.bf16.mxu1 %v4218_v9  ;;  %v4281_v9 = vld [vmem:[%s5356_s1 + $0x750] sm:$0xff]  }
  0xb8   :  { %3842 = vmatpush3.bf16.msra.mxu0 %v4219_v10 }
  0xb9   :  { %3864 = vmatpush3.bf16.msra.mxu1 %v4220_v11  ;;  %3843 = vmatprep.subr.bf16.mxu0 %v4221_v12  ;;  %v4282_v12 = vld [vmem:[%s5356_s1 + $0x7d0] sm:$0xff]  }
  0xba   :  { %3865 = vmatprep.subr.bf16.mxu1 %v4222_v13 }
  0xbc   :  { %3844 = vmatpush3.bf16.msra.mxu0 %v4223_v14  ;;  %v4283_v14 = vld [vmem:[%s5356_s1 + $0x710] sm:$0xff]  }
  0xbd   :  { %3866 = vmatpush3.bf16.msra.mxu1 %v4224_v15  ;;  %3845 = vmatprep.subr.bf16.mxu0 %v4225_v16  ;;  %v4284_v16 = vld [vmem:[%s5356_s1 + $0x790] sm:$0xff]  }
  0xbe   :  { %3867 = vmatprep.subr.bf16.mxu1 %v4226_v17 }
  0xc0   :  { %3846 = vmatpush3.bf16.msra.mxu0 %v4227_v18 }
  0xc1   :  { %3868 = vmatpush3.bf16.msra.mxu1 %v4228_v19  ;;  %3875 = vmatprep.subr.bf16.mxu0 %v4235_v24  ;;  %v4285_v19 = vld [vmem:[%s5356_s1 + $0x758] sm:$0xff]   ;;  %v4289_v24 = vld [vmem:[%s5356_s1 + $0x760] sm:$0xff]  }
  0xc2   :  { %3897 = vmatprep.subr.bf16.mxu1 %v4236_v25  ;;  %v4290_v25 = vld [vmem:[%s5356_s1 + $0x7e0] sm:$0xff]  }
  0xc3   :  { %2985 = vmatmul.mubr.bf16.vlgmr.msra.gmra.mrb[20].mxu0 %v4229_v20 }
  0xc4   :  { %3026 = vmatmul.mubr.bf16.vlgmr.msra.gmra.mrb[20].mxu1 %v4232_v22  ;;  %3876 = vmatpush3.bf16.msra.mxu0 %v4237_v26  ;;  %v4287_v22 = vld [vmem:[%s5356_s1 + $0x718] sm:$0xff]   ;;  %v4291_v26 = vld [vmem:[%s5356_s1 + $0x720] sm:$0xff]  }
  0xc5   :  { %3898 = vmatpush3.bf16.msra.mxu1 %v4238_v27  ;;  %3877 = vmatprep.subr.bf16.mxu0 %v4239_v28  ;;  %v4292_v27 = vld [vmem:[%s5356_s1 + $0x7a0] sm:$0xff]  }
  0xc6   :  { %3899 = vmatprep.subr.bf16.mxu1 %v4240_v29  ;;  %3066 = vmatprep.mubr.bf16.mxu0 %v4269_v57  ;;  %v3286_v28 = vld [vmem:[%s5358_s2] ss:$0 sm:$0xff] }
  0xc7   :  { %3107 = vmatprep.mubr.bf16.mxu1 %v4272_v59  ;;  %v4317_v59 = vld [vmem:[%s5356_s1 + $0x808] sm:$0xff]  }
  0xc8   :  { %3878 = vmatpush3.bf16.msra.mxu0 %v4241_v30  ;;  %v4293_v30 = vld [vmem:[%s5356_s1 + $0x768] sm:$0xff]  }
  0xc9   :  { %3900 = vmatpush3.bf16.msra.mxu1 %v4242_v31  ;;  %3879 = vmatprep.subr.bf16.mxu0 %v4243_v32  ;;  %v4294_v32 = vld [vmem:[%s5356_s1 + $0x7e8] sm:$0xff]  }
  0xca   :  { %3901 = vmatprep.subr.bf16.mxu1 %v4244_v33 }
  0xcc   :  { %3880 = vmatpush3.bf16.msra.mxu0 %v4245_v34  ;;  %v4295_v34 = vld [vmem:[%s5356_s1 + $0x728] sm:$0xff]  }
  0xcd   :  { %3902 = vmatpush3.bf16.msra.mxu1 %v4246_v35  ;;  %3881 = vmatprep.subr.bf16.mxu0 %v4247_v36  ;;  %v4296_v36 = vld [vmem:[%s5356_s1 + $0x7a8] sm:$0xff]  }
  0xce   :  { %3903 = vmatprep.subr.bf16.mxu1 %v4248_v37  ;;  %v4297_v37 = vld [vmem:[%s5356_s1 + $0x770] sm:$0xff]  }
  0xd0   :  { %3882 = vmatpush3.bf16.msra.mxu0 %v4249_v38  ;;  %v4298_v38 = vld [vmem:[%s5356_s1 + $0x7f0] sm:$0xff]  }
  0xd1   :  { %3904 = vmatpush3.bf16.msra.mxu1 %v4250_v39  ;;  %3883 = vmatprep.subr.bf16.mxu0 %v4251_v40  ;;  %v4299_v39 = vld [vmem:[%s5356_s1 + $0x730] sm:$0xff]  }
  0xd2   :  { %3905 = vmatprep.subr.bf16.mxu1 %v4252_v41  ;;  %v4300_v40 = vld [vmem:[%s5356_s1 + $0x7b0] sm:$0xff]   ;;  %v4301_v41 = vld [vmem:[%s5356_s1 + $0x778] sm:$0xff]  }
  0xd4   :  { %3884 = vmatpush3.bf16.msra.mxu0 %v4253_v42  ;;  %v4302_v42 = vld [vmem:[%s5356_s1 + $0x7f8] sm:$0xff]  }
  0xd5   :  { %3906 = vmatpush3.bf16.msra.mxu1 %v4254_v43  ;;  %3885 = vmatprep.subr.bf16.mxu0 %v4255_v44  ;;  %v4303_v43 = vld [vmem:[%s5356_s1 + $0x738] sm:$0xff]  }
  0xd6   :  { %3907 = vmatprep.subr.bf16.mxu1 %v4256_v45  ;;  %v4304_v44 = vld [vmem:[%s5356_s1 + $0x7b8] sm:$0xff]   ;;  %v4305_v45 = vld [vmem:[%s5357_s0 + $0x70] ss:$144 sps:$4 sm:$0xff]  }
  0xd8   :  { %3886 = vmatpush3.bf16.msra.mxu0 %v4257_v46  ;;  %v4307_v46 = vld [vmem:[%s5357_s0 + $0x74] ss:$144 sps:$4 sm:$0xff]  }
  0xd9   :  { %3908 = vmatpush3.bf16.msra.mxu1 %v4258_v47  ;;  %3887 = vmatprep.subr.bf16.mxu0 %v4259_v48  ;;  %v4308_v47 = vld [vmem:[%s5357_s0 + $0x78] ss:$144 sps:$4 sm:$0xff]   ;;  %v4310_v48 = vld [vmem:[%s5357_s0 + $0x7c] ss:$144 sps:$4 sm:$0xff]  }
  0xda   :  { %3909 = vmatprep.subr.bf16.mxu1 %v4260_v49  ;;  %v4311_v49 = vld [vmem:[%s5356_s1 + $0x840] sm:$0xff]  }
  0xdc   :  { %3888 = vmatpush3.bf16.msra.mxu0 %v4261_v50  ;;  %v4312_v50 = vld [vmem:[%s5356_s1 + $0x8c0] sm:$0xff]  }
  0xdd   :  { %3910 = vmatpush3.bf16.msra.mxu1 %v4262_v51  ;;  %3889 = vmatprep.subr.bf16.mxu0 %v4263_v52  ;;  %v4313_v51 = vld [vmem:[%s5356_s1 + $0x800] sm:$0xff]  }
  0xde   :  { %3911 = vmatprep.subr.bf16.mxu1 %v4264_v53  ;;  %v4314_v52 = vld [vmem:[%s5356_s1 + $0x880] sm:$0xff]  }
  0xe0   :  { %3890 = vmatpush3.bf16.msra.mxu0 %v4265_v54  ;;  %v4315_v54 = vld [vmem:[%s5356_s1 + $0x848] sm:$0xff]  }
  0xe1   :  { %3912 = vmatpush3.bf16.msra.mxu1 %v4266_v55  ;;  %3919 = vmatprep.subr.bf16.mxu0 %v4273_v60 }
  0xe2   :  { %3941 = vmatprep.subr.bf16.mxu1 %v4274_v61  ;;  %v4318_v61 = vld [vmem:[%s5356_s1 + $0x888] sm:$0xff]  }
  0xe3   :  { %3067 = vmatmul.mubr.bf16.vlgmr.msra.gmra.mrb[24].mxu0 %v4267_v56  ;;  %v4316_v56 = vld [vmem:[%s5356_s1 + $0x8c8] sm:$0xff]  }
  0xe4   :  { %3108 = vmatmul.mubr.bf16.vlgmr.msra.gmra.mrb[24].mxu1 %v4270_v58  ;;  %3920 = vmatpush3.bf16.msra.mxu0 %v4275_v62 }
  0xe5   :  { %3942 = vmatpush3.bf16.msra.mxu1 %v4276_v63  ;;  %3921 = vmatprep.subr.bf16.mxu0 %v4277_v0 }
  0xe6   :  { %3943 = vmatprep.subr.bf16.mxu1 %v4278_v2  ;;  %3148 = vmatprep.mubr.bf16.mxu0 %v4307_v46 }
  0xe7   :  { %3189 = vmatprep.mubr.bf16.mxu1 %v4310_v48 }
  0xe8   :  { %3922 = vmatpush3.bf16.msra.mxu0 %v4279_v4 }
  0xe9   :  { %3944 = vmatpush3.bf16.msra.mxu1 %v4280_v6  ;;  %3923 = vmatprep.subr.bf16.mxu0 %v4281_v9  ;;  %v4321_v6 = vld [vmem:[%s5356_s1 + $0x810] sm:$0xff]  }
  0xea   :  { %3945 = vmatprep.subr.bf16.mxu1 %v4282_v12  ;;  %v4322_v9 = vld [vmem:[%s5356_s1 + $0x890] sm:$0xff]  }
  0xec   :  { %3924 = vmatpush3.bf16.msra.mxu0 %v4283_v14  ;;  %v4325_v14 = vld [vmem:[%s5356_s1 + $0x818] sm:$0xff]  }
  0xed   :  { %3946 = vmatpush3.bf16.msra.mxu1 %v4284_v16  ;;  %3925 = vmatprep.subr.bf16.mxu0 %v4285_v19  ;;  %v4326_v16 = vld [vmem:[%s5356_s1 + $0x898] sm:$0xff]   ;;  %v4329_v19 = vld [vmem:[%s5356_s1 + $0x820] sm:$0xff]  }
  0xee   :  { %3947 = vmatprep.subr.bf16.mxu1 %v4286_v21  ;;  %v4331_v21 = vld [vmem:[%s5356_s1 + $0x868] sm:$0xff]  }
  0xf0   :  { %3926 = vmatpush3.bf16.msra.mxu0 %v4287_v22  ;;  %v4332_v22 = vld [vmem:[%s5356_s1 + $0x8e8] sm:$0xff]  }
  0xf1   :  { %3948 = vmatpush3.bf16.msra.mxu1 %v4288_v23  ;;  %3927 = vmatprep.subr.bf16.mxu0 %v4289_v24  ;;  %v4333_v23 = vld [vmem:[%s5356_s1 + $0x828] sm:$0xff]  }
  0xf2   :  { %3949 = vmatprep.subr.bf16.mxu1 %v4290_v25  ;;  %v4334_v24 = vld [vmem:[%s5356_s1 + $0x8a8] sm:$0xff]   ;;  %v4335_v25 = vld [vmem:[%s5356_s1 + $0x870] sm:$0xff]  }
  0xf4   :  { %3928 = vmatpush3.bf16.msra.mxu0 %v4291_v26  ;;  %v4336_v26 = vld [vmem:[%s5356_s1 + $0x8f0] sm:$0xff]  }
  0xf5   :  { %3950 = vmatpush3.bf16.msra.mxu1 %v4292_v27  ;;  %3929 = vmatprep.subr.bf16.mxu0 %v4293_v30  ;;  %v4337_v27 = vld [vmem:[%s5356_s1 + $0x830] sm:$0xff]   ;;  %v4340_v30 = vld [vmem:[%s5356_s1 + $0x8f8] sm:$0xff]  }
  0xf6   :  { %v3627_v1 = vpop.f32.mrb[0].mxu0  ;;  %3951 = vmatprep.subr.bf16.mxu1 %v4294_v32  ;;  %v4342_v32 = vld [vmem:[%s5356_s1 + $0x8b8] sm:$0xff]  }
  0xf7   :  { %v3649_v3 = vpop.f32.mrb[0].mxu1  ;;  %v3628_v5 = vpop.f32.mrb[1].mxu0 }
  0xf8   :  { %v3629_v7 = vadd.f32 %v3628_v5, %v3627_v1  ;;  %v3650_v8 = vpop.f32.mrb[1].mxu1  ;;  %v3630_v11 = vpop.f32.mrb[2].mxu0  ;;  %3930 = vmatpush3.bf16.msra.mxu0 %v4295_v34  ;;  %v4319_v1 = vld [vmem:[%s5356_s1 + $0x850] sm:$0xff]  }
  0xf9   :  { %v3651_v10 = vadd.f32 %v3650_v8, %v3649_v3  ;;  %v3652_v13 = vpop.f32.mrb[2].mxu1  ;;  %v3631_v15 = vpop.f32.mrb[3].mxu0  ;;  %3952 = vmatpush3.bf16.msra.mxu1 %v4296_v36  ;;  %3931 = vmatprep.subr.bf16.mxu0 %v4297_v37  ;;  %v4320_v3 = vld [vmem:[%s5356_s1 + $0x8d0] sm:$0xff]   ;;  %v4348_v36 = vld [vmem:[%s5357_s0 + $0x8c] ss:$144 sps:$4 sm:$0xff]  }
  0xfa   :  { %v3632_v17 = vadd.f32 %v3631_v15, %v3630_v11  ;;  %v3653_v18 = vpop.f32.mrb[3].mxu1  ;;  %v2577_v29 = vadd.f32 %v3629_v7, %v3286_v28  ;;  %3953 = vmatprep.subr.bf16.mxu1 %v4298_v38  ;;  %v4323_v11 = vld [vmem:[%s5356_s1 + $0x858] sm:$0xff]   ;;  %v4345_v34 = vld [vmem:[%s5357_s0 + $0x84] ss:$144 sps:$4 sm:$0xff]  }
  0xfb   :  { %v3654_v20 = vadd.f32 %v3653_v18, %v3652_v13  ;;  %v4324_v13 = vld [vmem:[%s5356_s1 + $0x8d8] sm:$0xff]   ;;  %v4328_v18 = vld [vmem:[%s5356_s1 + $0x8e0] sm:$0xff]  }
  0xfc   :  { %v2580_v31 = vadd.f32 %v3632_v17, %v3286_v28  ;;  %v2618_v33 = vadd.f32 %v3651_v10, %v2577_v29  ;;  %3932 = vmatpush3.bf16.msra.mxu0 %v4299_v39  ;;  %v4327_v17 = vld [vmem:[%s5356_s1 + $0x860] sm:$0xff]   ;;  %v4338_v28 = vld [vmem:[%s5356_s1 + $0x8b0] sm:$0xff]   ;;  %v4339_v29 = vld [vmem:[%s5356_s1 + $0x878] sm:$0xff]  }
  0xfd   :  { %3954 = vmatpush3.bf16.msra.mxu1 %v4300_v40  ;;  %3933 = vmatprep.subr.bf16.mxu0 %v4301_v41 }
  0xfe   :  { %v5197_v35 = vadd.f32 %v3654_v20, %v2580_v31  ;;  %3955 = vmatprep.subr.bf16.mxu1 %v4302_v42  ;;  %v4330_v20 = vld [vmem:[%s5356_s1 + $0x8a0] sm:$0xff]   ;;  %v4341_v31 = vld [vmem:[%s5356_s1 + $0x838] sm:$0xff]  }
 0x100   :  { %3934 = vmatpush3.bf16.msra.mxu0 %v4303_v43 }
 0x101   :  { %3956 = vmatpush3.bf16.msra.mxu1 %v4304_v44  ;;  %3963 = vmatprep.subr.bf16.mxu0 %v4311_v49 }
 0x102   :  { %3985 = vmatprep.subr.bf16.mxu1 %v4312_v50 }
 0x103   :  { %3149 = vmatmul.mubr.bf16.vlgmr.msra.gmra.mrb[28].mxu0 %v4305_v45 }
 0x104   :  { %3190 = vmatmul.mubr.bf16.vlgmr.msra.gmra.mrb[28].mxu1 %v4308_v47  ;;  %3964 = vmatpush3.bf16.msra.mxu0 %v4313_v51 }
 0x105   :  { %3986 = vmatpush3.bf16.msra.mxu1 %v4314_v52  ;;  %3965 = vmatprep.subr.bf16.mxu0 %v4315_v54 }
 0x106   :  { %3987 = vmatprep.subr.bf16.mxu1 %v4316_v56  ;;  %3230 = vmatprep.mubr.bf16.mxu0 %v4345_v34 }
 0x107   :  { %3271 = vmatprep.mubr.bf16.mxu1 %v4348_v36 }
 0x108   :  { %3966 = vmatpush3.bf16.msra.mxu0 %v4317_v59 }
 0x109   :  { %3988 = vmatpush3.bf16.msra.mxu1 %v4318_v61  ;;  %3967 = vmatprep.subr.bf16.mxu0 %v4319_v1 }
 0x10a   :  { %3989 = vmatprep.subr.bf16.mxu1 %v4320_v3 }
 0x10c   :  { %3968 = vmatpush3.bf16.msra.mxu0 %v4321_v6 }
 0x10d   :  { %3990 = vmatpush3.bf16.msra.mxu1 %v4322_v9  ;;  %3969 = vmatprep.subr.bf16.mxu0 %v4323_v11 }
 0x10e   :  { %3991 = vmatprep.subr.bf16.mxu1 %v4324_v13 }
 0x110   :  { %3970 = vmatpush3.bf16.msra.mxu0 %v4325_v14 }
 0x111   :  { %3992 = vmatpush3.bf16.msra.mxu1 %v4326_v16  ;;  %3971 = vmatprep.subr.bf16.mxu0 %v4327_v17 }
 0x112   :  { %3993 = vmatprep.subr.bf16.mxu1 %v4328_v18 }
 0x114   :  { %3972 = vmatpush3.bf16.msra.mxu0 %v4329_v19 }
 0x115   :  { %3994 = vmatpush3.bf16.msra.mxu1 %v4330_v20  ;;  %3973 = vmatprep.subr.bf16.mxu0 %v4331_v21 }
 0x116   :  { %v3671_v53 = vpop.f32.mrb[4].mxu0  ;;  %3995 = vmatprep.subr.bf16.mxu1 %v4332_v22 }
 0x117   :  { %v3672_v55 = vpop.f32.mrb[5].mxu0  ;;  %v3693_v57 = vpop.f32.mrb[4].mxu1 }
 0x118   :  { %v3673_v58 = vadd.f32 %v3672_v55, %v3671_v53  ;;  %v3694_v60 = vpop.f32.mrb[5].mxu1  ;;  %v3674_v0 = vpop.f32.mrb[6].mxu0  ;;  %3974 = vmatpush3.bf16.msra.mxu0 %v4333_v23 }
 0x119   :  { %v3695_v63 = vadd.f32 %v3694_v60, %v3693_v57  ;;  %v3696_v2 = vpop.f32.mrb[6].mxu1  ;;  %v3675_v5 = vpop.f32.mrb[7].mxu0  ;;  %3996 = vmatpush3.bf16.msra.mxu1 %v4334_v24  ;;  %3975 = vmatprep.subr.bf16.mxu0 %v4335_v25 }
 0x11a   :  { %v2659_v62 = vadd.f32 %v3673_v58, %v2618_v33  ;;  %v3676_v7 = vadd.f32 %v3675_v5, %v3674_v0  ;;  %v3697_v8 = vpop.f32.mrb[7].mxu1  ;;  %3997 = vmatprep.subr.bf16.mxu1 %v4336_v26  ;;  %v4343_v33 = vld [vmem:[%s5357_s0 + $0x80] ss:$144 sps:$4 sm:$0xff]  }
 0x11b   :  { %v3698_v10 = vadd.f32 %v3697_v8, %v3696_v2 }
 0x11c   :  { %v5268_v4 = vadd.f32 %v3695_v63, %v2659_v62  ;;  %v2662_v12 = vadd.f32 %v3676_v7, %v5197_v35  ;;  %3976 = vmatpush3.bf16.msra.mxu0 %v4337_v27  ;;  %v4346_v35 = vld [vmem:[%s5357_s0 + $0x88] ss:$144 sps:$4 sm:$0xff]  }
 0x11d   :  { %3998 = vmatpush3.bf16.msra.mxu1 %v4338_v28  ;;  %3977 = vmatprep.subr.bf16.mxu0 %v4339_v29 }
 0x11e   :  { %v2703_v15 = vadd.f32 %v3698_v10, %v2662_v12  ;;  %3999 = vmatprep.subr.bf16.mxu1 %v4340_v30 }
 0x120   :  { %3978 = vmatpush3.bf16.msra.mxu0 %v4341_v31 }
 0x121   :  { %4000 = vmatpush3.bf16.msra.mxu1 %v4342_v32 }
 0x123   :  { %3231 = vmatmul.mubr.bf16.vlgmr.msra.gmra.mrb[32].mxu0 %v4343_v33 }
 0x124   :  { %3272 = vmatmul.mubr.bf16.vlgmr.msra.gmra.mrb[32].mxu1 %v4346_v35 }
 0x136   :  { %v3715_v37 = vpop.f32.mrb[8].mxu0 }
 0x137   :  { %v3737_v38 = vpop.f32.mrb[8].mxu1  ;;  %v3716_v39 = vpop.f32.mrb[9].mxu0 }
 0x138   :  { %v3717_v40 = vadd.f32 %v3716_v39, %v3715_v37  ;;  %v3738_v41 = vpop.f32.mrb[9].mxu1  ;;  %v3718_v42 = vpop.f32.mrb[10].mxu0 }
 0x139   :  { %v3739_v43 = vadd.f32 %v3738_v41, %v3737_v38  ;;  %v3740_v44 = vpop.f32.mrb[10].mxu1  ;;  %v3719_v45 = vpop.f32.mrb[11].mxu0 }
 0x13a   :  { %v2741_v46 = vadd.f32 %v3717_v40, %v5268_v4  ;;  %v3720_v47 = vadd.f32 %v3719_v45, %v3718_v42  ;;  %v3741_v48 = vpop.f32.mrb[11].mxu1 }
 0x13b   :  { %v3742_v49 = vadd.f32 %v3741_v48, %v3740_v44 }
 0x13c   :  { %v2782_v50 = vadd.f32 %v3739_v43, %v2741_v46  ;;  %v2744_v51 = vadd.f32 %v3720_v47, %v2703_v15 }
 0x13e   :  { %v2785_v52 = vadd.f32 %v3742_v49, %v2744_v51 }
 0x156   :  { %v3759_v53 = vpop.f32.mrb[12].mxu0 }
 0x157   :  { %v3781_v54 = vpop.f32.mrb[12].mxu1  ;;  %v3760_v55 = vpop.f32.mrb[13].mxu0 }
 0x158   :  { %v3761_v56 = vadd.f32 %v3760_v55, %v3759_v53  ;;  %v3782_v57 = vpop.f32.mrb[13].mxu1  ;;  %v3762_v58 = vpop.f32.mrb[14].mxu0 }
 0x159   :  { %v3783_v59 = vadd.f32 %v3782_v57, %v3781_v54  ;;  %v3784_v60 = vpop.f32.mrb[14].mxu1  ;;  %v3763_v61 = vpop.f32.mrb[15].mxu0 }
 0x15a   :  { %v2823_v62 = vadd.f32 %v3761_v56, %v2782_v50  ;;  %v3764_v63 = vadd.f32 %v3763_v61, %v3762_v58  ;;  %v3785_v0 = vpop.f32.mrb[15].mxu1 }
 0x15b   :  { %v3786_v1 = vadd.f32 %v3785_v0, %v3784_v60 }
 0x15c   :  { %v2864_v2 = vadd.f32 %v3783_v59, %v2823_v62  ;;  %v2826_v3 = vadd.f32 %v3764_v63, %v2785_v52 }
 0x15e   :  { %v2867_v4 = vadd.f32 %v3786_v1, %v2826_v3 }
 0x176   :  { %v3803_v5 = vpop.f32.mrb[16].mxu0 }
 0x177   :  { %v3804_v6 = vpop.f32.mrb[17].mxu0  ;;  %v3825_v7 = vpop.f32.mrb[16].mxu1 }
 0x178   :  { %v3805_v8 = vadd.f32 %v3804_v6, %v3803_v5  ;;  %v3806_v9 = vpop.f32.mrb[18].mxu0  ;;  %v3826_v10 = vpop.f32.mrb[17].mxu1 }
 0x179   :  { %v3807_v11 = vpop.f32.mrb[19].mxu0  ;;  %v3827_v13 = vadd.f32 %v3826_v10, %v3825_v7  ;;  %v3828_v14 = vpop.f32.mrb[18].mxu1 }
 0x17a   :  { %v2905_v12 = vadd.f32 %v3805_v8, %v2864_v2  ;;  %v3808_v15 = vadd.f32 %v3807_v11, %v3806_v9  ;;  %v3829_v16 = vpop.f32.mrb[19].mxu1 }
 0x17b   :  { %v3830_v19 = vadd.f32 %v3829_v16, %v3828_v14 }
 0x17c   :  { %v2946_v17 = vadd.f32 %v3827_v13, %v2905_v12  ;;  %v2908_v18 = vadd.f32 %v3808_v15, %v2867_v4 }
 0x17e   :  { %v2949_v20 = vadd.f32 %v3830_v19, %v2908_v18 }
 0x196   :  { %v3847_v21 = vpop.f32.mrb[20].mxu0 }
 0x197   :  { %v3869_v22 = vpop.f32.mrb[20].mxu1  ;;  %v3848_v23 = vpop.f32.mrb[21].mxu0 }
 0x198   :  { %v3849_v24 = vadd.f32 %v3848_v23, %v3847_v21  ;;  %v3870_v25 = vpop.f32.mrb[21].mxu1  ;;  %v3850_v26 = vpop.f32.mrb[22].mxu0 }
 0x199   :  { %v3871_v27 = vadd.f32 %v3870_v25, %v3869_v22  ;;  %v3872_v28 = vpop.f32.mrb[22].mxu1  ;;  %v3851_v29 = vpop.f32.mrb[23].mxu0 }
 0x19a   :  { %v2987_v30 = vadd.f32 %v3849_v24, %v2946_v17  ;;  %v3852_v31 = vadd.f32 %v3851_v29, %v3850_v26  ;;  %v3873_v32 = vpop.f32.mrb[23].mxu1 }
 0x19b   :  { %v3874_v33 = vadd.f32 %v3873_v32, %v3872_v28 }
 0x19c   :  { %v3028_v34 = vadd.f32 %v3871_v27, %v2987_v30  ;;  %v2990_v35 = vadd.f32 %v3852_v31, %v2949_v20 }
 0x19e   :  { %v3031_v36 = vadd.f32 %v3874_v33, %v2990_v35 }
 0x1b6   :  { %v3891_v37 = vpop.f32.mrb[24].mxu0 }
 0x1b7   :  { %v3913_v38 = vpop.f32.mrb[24].mxu1  ;;  %v3892_v39 = vpop.f32.mrb[25].mxu0 }
 0x1b8   :  { %v3893_v40 = vadd.f32 %v3892_v39, %v3891_v37  ;;  %v3914_v41 = vpop.f32.mrb[25].mxu1  ;;  %v3894_v42 = vpop.f32.mrb[26].mxu0 }
 0x1b9   :  { %v3915_v43 = vadd.f32 %v3914_v41, %v3913_v38  ;;  %v3916_v44 = vpop.f32.mrb[26].mxu1  ;;  %v3895_v45 = vpop.f32.mrb[27].mxu0 }
 0x1ba   :  { %v3069_v46 = vadd.f32 %v3893_v40, %v3028_v34  ;;  %v3896_v47 = vadd.f32 %v3895_v45, %v3894_v42  ;;  %v3917_v48 = vpop.f32.mrb[27].mxu1 }
 0x1bb   :  { %v3918_v49 = vadd.f32 %v3917_v48, %v3916_v44 }
 0x1bc   :  { %v3110_v50 = vadd.f32 %v3915_v43, %v3069_v46  ;;  %v3072_v51 = vadd.f32 %v3896_v47, %v3031_v36 }
 0x1be   :  { %v3113_v52 = vadd.f32 %v3918_v49, %v3072_v51 }
 0x1d6   :  { %v3935_v53 = vpop.f32.mrb[28].mxu0 }
 0x1d7   :  { %v3957_v54 = vpop.f32.mrb[28].mxu1  ;;  %v3936_v55 = vpop.f32.mrb[29].mxu0 }
 0x1d8   :  { %v3937_v56 = vadd.f32 %v3936_v55, %v3935_v53  ;;  %v3958_v57 = vpop.f32.mrb[29].mxu1  ;;  %v3938_v58 = vpop.f32.mrb[30].mxu0 }
 0x1d9   :  { %v3959_v59 = vadd.f32 %v3958_v57, %v3957_v54  ;;  %v3960_v60 = vpop.f32.mrb[30].mxu1  ;;  %v3939_v61 = vpop.f32.mrb[31].mxu0 }
 0x1da   :  { %v3151_v62 = vadd.f32 %v3937_v56, %v3110_v50  ;;  %v3940_v63 = vadd.f32 %v3939_v61, %v3938_v58  ;;  %v3961_v0 = vpop.f32.mrb[31].mxu1 }
 0x1db   :  { %v3962_v1 = vadd.f32 %v3961_v0, %v3960_v60 }
 0x1dc   :  { %v3192_v2 = vadd.f32 %v3959_v59, %v3151_v62  ;;  %v3154_v3 = vadd.f32 %v3940_v63, %v3113_v52 }
 0x1de   :  { %v3195_v4 = vadd.f32 %v3962_v1, %v3154_v3 }
 0x1f6   :  { %v3979_v5 = vpop.f32.mrb[32].mxu0 }
 0x1f7   :  { %v3980_v6 = vpop.f32.mrb[33].mxu0  ;;  %v4001_v7 = vpop.f32.mrb[32].mxu1 }
 0x1f8   :  { %v3981_v8 = vadd.f32 %v3980_v6, %v3979_v5  ;;  %v3982_v9 = vpop.f32.mrb[34].mxu0  ;;  %v4002_v10 = vpop.f32.mrb[33].mxu1 }
 0x1f9   :  { %v3983_v11 = vpop.f32.mrb[35].mxu0  ;;  %v4003_v13 = vadd.f32 %v4002_v10, %v4001_v7  ;;  %v4004_v14 = vpop.f32.mrb[34].mxu1 }
 0x1fa   :  { %v3233_v12 = vadd.f32 %v3981_v8, %v3192_v2  ;;  %v3984_v15 = vadd.f32 %v3983_v11, %v3982_v9  ;;  %v4005_v16 = vpop.f32.mrb[35].mxu1 }
 0x1fb   :  { %v4006_v19 = vadd.f32 %v4005_v16, %v4004_v14 }
 0x1fc   :  { %v3274_v17 = vadd.f32 %v4003_v13, %v3233_v12  ;;  %v3236_v18 = vadd.f32 %v3984_v15, %v3195_v4 }
 0x1fe   :  { %3280 = vst [vmem:[%s5359_s3] sm:$0xff] %v3274_v17  ;;  %v3277_v20 = vadd.f32 %v4006_v19, %v3236_v18 }
 0x200   :  { %3281 = vst [vmem:[%s5359_s3 + $0x8] sm:$0xff] %v3277_v20 }

// kernel: vae_forward.14
= control target key start
LH: loop header
LB: loop body
LE: loop exit
PB: predicated region body
PF: predicated region fallthrough
CT: control target
= control target key end

     0   :  { %s1332_s12 = smov 0   ;;  %s1334_s13 = smov 0   ;;  %s1616_s0 = inlined_call_operand.vmem [shape: bf16[16,256], index: 0, kind: input, shape index: {}]   ;;  %s1617_s1 = inlined_call_operand.vmem [shape: bf16[256,4608], index: 1, kind: input, shape index: {}]   ;;  %s1618_s2 = inlined_call_operand.vmem [shape: f32[1,4608], index: 2, kind: input, shape index: {}]   ;;  %s1619_s3 = inlined_call_operand.vmem [shape: bf16[16,4608], index: 3, kind: output, shape index: {}]  }
   0x1   :  { %s1336_s14 = smov 0   ;;  %s1338_s15 = smov 0  }
   0x2   :  { %s1340_s16 = smov 0  }
   0x3 LB: > { %s22_s17 = sadd.s32 1, %s1306_s15  ;;  %s1040_s18 = sadd.s32 4294967295, %s1310_s16   ;;  %s1310_s16 = sphi %s1340_s16, %s13_s16   ;;  %s1306_s15 = sphi %s1338_s15, %s1624_s15   ;;  %s1302_s14 = sphi %s1336_s14, %s1623_s14   ;;  %s1298_s13 = sphi %s1334_s13, %s1622_s13   ;;  %s1294_s12 = sphi %s1332_s12, %s1621_s12  }
   0x4   : > { %p23_p0 = scmp.ge.s32.totalorder %s22_s17, 9  ;;  %p65_p1 = scmp.ne.s32.totalorder %s1298_s13, %s1294_s12 }
   0x5   : > { %p66_p2 = scmp.eq.s32.totalorder %s1310_s16, 0  ;;  %p123_p4 = scmp.eq.s32.totalorder %s1040_s18, 8 }
   0x6   : > { %s1626_s17 = smov (%p23_p0, %s22_s17), 0  ;;  %s58_s20 = sadd.s32 1, %s1298_s13 }
   0x7   : > { %p67_p3 = por %p66_p2, %p65_p1  ;;  %s55_s19 = ssub.s32 %s1306_s15, %s1626_s17 }
   0x8   : > { %p56_p5 = scmp.eq.s32.totalorder %s55_s19, 0  ;;  %p1367_p6 = por %p123_p4, %p65_p1 }
   0x9   : > { %p1044_p7 = scmp.ge.s32.totalorder %s1310_s16, 9 }
   0xa   : > { %s1372_s22 = scalar_select %p56_p5, %s1298_s13, %s58_s20  }
   0xb   : > { %155 = sbr.rel (%p1044_p7) target bundleno = 54 (0x36), region = 20 }
  0x12   : > { %158 = sbr.rel (!%p67_p3) target bundleno = 54 (0x36), region = 24  ;;  %s160_s23 = sand.u32 (%p67_p3), 1, %s1298_s13  }
  0x13   : > { %s1127_s24 = sshll.u32 (%p67_p3), %s1306_s15, 4  ;;  %s1045_s25 = sshll.u32 (%p67_p3), %s160_s23, 9 }
  0x14   : > { %s1380_s28 = scalar_lea.vmem (%p67_p3), %s1617_s1, %s1127_s24  ;;  %s1385_s29 = scalar_lea.vmem (%p67_p3), [#allocation2], %s1045_s25 }
  0x15   : > { %v178_v0 = vld [vmem:[%s1380_s28] sm:$0xff] (%p67_p3)  ;;  %v180_v1 = vld [vmem:[%s1380_s28 + $0x8] sm:$0xff] (%p67_p3)  ;;  %v182_v2 = vld [vmem:[%s1380_s28 + $0x90] sm:$0xff] (%p67_p3) }
  0x16   : > { %179 = vst [vmem:[%s1385_s29] sm:$0xff] (%p67_p3), %v178_v0  ;;  %181 = vst [vmem:[%s1385_s29 + $0x8] sm:$0xff] (%p67_p3), %v180_v1  ;;  %v184_v3 = vld [vmem:[%s1380_s28 + $0x98] sm:$0xff] (%p67_p3)  ;;  %v186_v4 = vld [vmem:[%s1380_s28 + $0x120] sm:$0xff] (%p67_p3) }
  0x17   : > { %183 = vst [vmem:[%s1385_s29 + $0x10] sm:$0xff] (%p67_p3), %v182_v2  ;;  %v188_v5 = vld [vmem:[%s1380_s28 + $0x128] sm:$0xff] (%p67_p3)  ;;  %185 = vst [vmem:[%s1385_s29 + $0x18] sm:$0xff] (%p67_p3), %v184_v3  ;;  %v190_v6 = vld [vmem:[%s1380_s28 + $0x1b0] sm:$0xff] (%p67_p3) }
  0x18   : > { %187 = vst [vmem:[%s1385_s29 + $0x20] sm:$0xff] (%p67_p3), %v186_v4  ;;  %189 = vst [vmem:[%s1385_s29 + $0x28] sm:$0xff] (%p67_p3), %v188_v5  ;;  %v192_v7 = vld [vmem:[%s1380_s28 + $0x1b8] sm:$0xff] (%p67_p3)  ;;  %v194_v8 = vld [vmem:[%s1380_s28 + $0x240] sm:$0xff] (%p67_p3) }
  0x19   : > { %191 = vst [vmem:[%s1385_s29 + $0x30] sm:$0xff] %v190_v6  ;;  %193 = vst [vmem:[%s1385_s29 + $0x38] sm:$0xff] %v192_v7  ;;  %v196_v9 = vld [vmem:[%s1380_s28 + $0x248] sm:$0xff]  ;;  %v198_v10 = vld [vmem:[%s1380_s28 + $0x2d0] sm:$0xff] }
  0x1a   : > { %195 = vst [vmem:[%s1385_s29 + $0x40] sm:$0xff] %v194_v8  ;;  %v200_v11 = vld [vmem:[%s1380_s28 + $0x2d8] sm:$0xff]  ;;  %197 = vst [vmem:[%s1385_s29 + $0x48] sm:$0xff] %v196_v9  ;;  %v202_v12 = vld [vmem:[%s1380_s28 + $0x360] sm:$0xff] }
  0x1b   : > { %199 = vst [vmem:[%s1385_s29 + $0x50] sm:$0xff] %v198_v10  ;;  %201 = vst [vmem:[%s1385_s29 + $0x58] sm:$0xff] %v200_v11  ;;  %v204_v13 = vld [vmem:[%s1380_s28 + $0x368] sm:$0xff]  ;;  %v206_v14 = vld [vmem:[%s1380_s28 + $0x3f0] sm:$0xff] }
  0x1c   : > { %203 = vst [vmem:[%s1385_s29 + $0x60] sm:$0xff] %v202_v12  ;;  %205 = vst [vmem:[%s1385_s29 + $0x68] sm:$0xff] %v204_v13  ;;  %v208_v15 = vld [vmem:[%s1380_s28 + $0x3f8] sm:$0xff]  ;;  %v210_v16 = vld [vmem:[%s1380_s28 + $0x480] sm:$0xff] }
  0x1d   : > { %207 = vst [vmem:[%s1385_s29 + $0x70] sm:$0xff] %v206_v14  ;;  %v212_v17 = vld [vmem:[%s1380_s28 + $0x488] sm:$0xff]  ;;  %209 = vst [vmem:[%s1385_s29 + $0x78] sm:$0xff] %v208_v15  ;;  %v214_v18 = vld [vmem:[%s1380_s28 + $0x510] sm:$0xff] }
  0x1e   : > { %211 = vst [vmem:[%s1385_s29 + $0x80] sm:$0xff] %v210_v16  ;;  %213 = vst [vmem:[%s1385_s29 + $0x88] sm:$0xff] %v212_v17  ;;  %v216_v19 = vld [vmem:[%s1380_s28 + $0x518] sm:$0xff]  ;;  %v218_v20 = vld [vmem:[%s1380_s28 + $0x5a0] sm:$0xff] }
  0x1f   : > { %215 = vst [vmem:[%s1385_s29 + $0x90] sm:$0xff] %v214_v18  ;;  %217 = vst [vmem:[%s1385_s29 + $0x98] sm:$0xff] %v216_v19  ;;  %v220_v21 = vld [vmem:[%s1380_s28 + $0x5a8] sm:$0xff]  ;;  %v222_v22 = vld [vmem:[%s1380_s28 + $0x630] sm:$0xff] }
  0x20   : > { %219 = vst [vmem:[%s1385_s29 + $0xa0] sm:$0xff] %v218_v20  ;;  %v224_v23 = vld [vmem:[%s1380_s28 + $0x638] sm:$0xff]  ;;  %221 = vst [vmem:[%s1385_s29 + $0xa8] sm:$0xff] %v220_v21  ;;  %v226_v24 = vld [vmem:[%s1380_s28 + $0x6c0] sm:$0xff] }
  0x21   : > { %223 = vst [vmem:[%s1385_s29 + $0xb0] sm:$0xff] %v222_v22  ;;  %225 = vst [vmem:[%s1385_s29 + $0xb8] sm:$0xff] %v224_v23  ;;  %v228_v25 = vld [vmem:[%s1380_s28 + $0x6c8] sm:$0xff]  ;;  %v230_v26 = vld [vmem:[%s1380_s28 + $0x750] sm:$0xff] }
  0x22   : > { %227 = vst [vmem:[%s1385_s29 + $0xc0] sm:$0xff] %v226_v24  ;;  %229 = vst [vmem:[%s1385_s29 + $0xc8] sm:$0xff] %v228_v25  ;;  %v232_v27 = vld [vmem:[%s1380_s28 + $0x758] sm:$0xff]  ;;  %v234_v28 = vld [vmem:[%s1380_s28 + $0x7e0] sm:$0xff] }
  0x23   : > { %231 = vst [vmem:[%s1385_s29 + $0xd0] sm:$0xff] %v230_v26  ;;  %v236_v29 = vld [vmem:[%s1380_s28 + $0x7e8] sm:$0xff]  ;;  %233 = vst [vmem:[%s1385_s29 + $0xd8] sm:$0xff] %v232_v27  ;;  %v238_v30 = vld [vmem:[%s1380_s28 + $0x870] sm:$0xff] }
  0x24   : > { %235 = vst [vmem:[%s1385_s29 + $0xe0] sm:$0xff] %v234_v28  ;;  %237 = vst [vmem:[%s1385_s29 + $0xe8] sm:$0xff] %v236_v29  ;;  %v240_v31 = vld [vmem:[%s1380_s28 + $0x878] sm:$0xff]  ;;  %v242_v32 = vld [vmem:[%s1380_s28 + $0x900] sm:$0xff] }
  0x25   : > { %239 = vst [vmem:[%s1385_s29 + $0xf0] sm:$0xff] %v238_v30  ;;  %241 = vst [vmem:[%s1385_s29 + $0xf8] sm:$0xff] %v240_v31  ;;  %v244_v33 = vld [vmem:[%s1380_s28 + $0x908] sm:$0xff]  ;;  %v246_v34 = vld [vmem:[%s1380_s28 + $0x990] sm:$0xff] }
  0x26   : > { %243 = vst [vmem:[%s1385_s29 + $0x100] sm:$0xff] %v242_v32  ;;  %v248_v35 = vld [vmem:[%s1380_s28 + $0x998] sm:$0xff]  ;;  %245 = vst [vmem:[%s1385_s29 + $0x108] sm:$0xff] %v244_v33  ;;  %v250_v36 = vld [vmem:[%s1380_s28 + $0xa20] sm:$0xff] }
  0x27   : > { %247 = vst [vmem:[%s1385_s29 + $0x110] sm:$0xff] %v246_v34  ;;  %249 = vst [vmem:[%s1385_s29 + $0x118] sm:$0xff] %v248_v35  ;;  %v252_v37 = vld [vmem:[%s1380_s28 + $0xa28] sm:$0xff]  ;;  %v254_v38 = vld [vmem:[%s1380_s28 + $0xab0] sm:$0xff] }
  0x28   : > { %251 = vst [vmem:[%s1385_s29 + $0x120] sm:$0xff] %v250_v36  ;;  %253 = vst [vmem:[%s1385_s29 + $0x128] sm:$0xff] %v252_v37  ;;  %v256_v39 = vld [vmem:[%s1380_s28 + $0xab8] sm:$0xff]  ;;  %v258_v40 = vld [vmem:[%s1380_s28 + $0xb40] sm:$0xff] }
  0x29   : > { %255 = vst [vmem:[%s1385_s29 + $0x130] sm:$0xff] %v254_v38  ;;  %v260_v41 = vld [vmem:[%s1380_s28 + $0xb48] sm:$0xff]  ;;  %257 = vst [vmem:[%s1385_s29 + $0x138] sm:$0xff] %v256_v39  ;;  %v262_v42 = vld [vmem:[%s1380_s28 + $0xbd0] sm:$0xff] }
  0x2a   : > { %259 = vst [vmem:[%s1385_s29 + $0x140] sm:$0xff] %v258_v40  ;;  %261 = vst [vmem:[%s1385_s29 + $0x148] sm:$0xff] %v260_v41  ;;  %v264_v43 = vld [vmem:[%s1380_s28 + $0xbd8] sm:$0xff]  ;;  %v266_v44 = vld [vmem:[%s1380_s28 + $0xc60] sm:$0xff] }
  0x2b   : > { %263 = vst [vmem:[%s1385_s29 + $0x150] sm:$0xff] %v262_v42  ;;  %265 = vst [vmem:[%s1385_s29 + $0x158] sm:$0xff] %v264_v43  ;;  %v268_v45 = vld [vmem:[%s1380_s28 + $0xc68] sm:$0xff]  ;;  %v270_v46 = vld [vmem:[%s1380_s28 + $0xcf0] sm:$0xff] }
  0x2c   : > { %267 = vst [vmem:[%s1385_s29 + $0x160] sm:$0xff] %v266_v44  ;;  %v272_v47 = vld [vmem:[%s1380_s28 + $0xcf8] sm:$0xff]  ;;  %269 = vst [vmem:[%s1385_s29 + $0x168] sm:$0xff] %v268_v45  ;;  %v274_v48 = vld [vmem:[%s1380_s28 + $0xd80] sm:$0xff] }
  0x2d   : > { %271 = vst [vmem:[%s1385_s29 + $0x170] sm:$0xff] %v270_v46  ;;  %273 = vst [vmem:[%s1385_s29 + $0x178] sm:$0xff] %v272_v47  ;;  %v276_v49 = vld [vmem:[%s1380_s28 + $0xd88] sm:$0xff]  ;;  %v278_v50 = vld [vmem:[%s1380_s28 + $0xe10] sm:$0xff] }
  0x2e   : > { %275 = vst [vmem:[%s1385_s29 + $0x180] sm:$0xff] %v274_v48  ;;  %277 = vst [vmem:[%s1385_s29 + $0x188] sm:$0xff] %v276_v49  ;;  %v280_v51 = vld [vmem:[%s1380_s28 + $0xe18] sm:$0xff]  ;;  %v282_v52 = vld [vmem:[%s1380_s28 + $0xea0] sm:$0xff] }
  0x2f   : > { %279 = vst [vmem:[%s1385_s29 + $0x190] sm:$0xff] %v278_v50  ;;  %v284_v53 = vld [vmem:[%s1380_s28 + $0xea8] sm:$0xff]  ;;  %281 = vst [vmem:[%s1385_s29 + $0x198] sm:$0xff] %v280_v51  ;;  %v286_v54 = vld [vmem:[%s1380_s28 + $0xf30] sm:$0xff] }
  0x30   : > { %283 = vst [vmem:[%s1385_s29 + $0x1a0] sm:$0xff] %v282_v52  ;;  %285 = vst [vmem:[%s1385_s29 + $0x1a8] sm:$0xff] %v284_v53  ;;  %v288_v55 = vld [vmem:[%s1380_s28 + $0xf38] sm:$0xff]  ;;  %v290_v56 = vld [vmem:[%s1380_s28 + $0xfc0] sm:$0xff] }
  0x31   : > { %287 = vst [vmem:[%s1385_s29 + $0x1b0] sm:$0xff] %v286_v54  ;;  %289 = vst [vmem:[%s1385_s29 + $0x1b8] sm:$0xff] %v288_v55  ;;  %v292_v57 = vld [vmem:[%s1380_s28 + $0xfc8] sm:$0xff]  ;;  %v294_v58 = vld [vmem:[%s1380_s28 + $0x1050] sm:$0xff] }
  0x32   : > { %291 = vst [vmem:[%s1385_s29 + $0x1c0] sm:$0xff] %v290_v56  ;;  %v296_v59 = vld [vmem:[%s1380_s28 + $0x1058] sm:$0xff]  ;;  %293 = vst [vmem:[%s1385_s29 + $0x1c8] sm:$0xff] %v292_v57  ;;  %v298_v60 = vld [vmem:[%s1380_s28 + $0x10e0] sm:$0xff] }
  0x33   : > { %295 = vst [vmem:[%s1385_s29 + $0x1d0] sm:$0xff] %v294_v58  ;;  %297 = vst [vmem:[%s1385_s29 + $0x1d8] sm:$0xff] %v296_v59  ;;  %v300_v61 = vld [vmem:[%s1380_s28 + $0x10e8] sm:$0xff]  ;;  %v302_v62 = vld [vmem:[%s1380_s28 + $0x1170] sm:$0xff] }
  0x34   : > { %299 = vst [vmem:[%s1385_s29 + $0x1e0] sm:$0xff] %v298_v60  ;;  %301 = vst [vmem:[%s1385_s29 + $0x1e8] sm:$0xff] %v300_v61  ;;  %v304_v63 = vld [vmem:[%s1380_s28 + $0x1178] sm:$0xff] }
  0x35   : > { %303 = vst [vmem:[%s1385_s29 + $0x1f0] sm:$0xff] %v302_v62  ;;  %305 = vst [vmem:[%s1385_s29 + $0x1f8] sm:$0xff] %v304_v63 }
  0x36 PF: > { %p1048_p8 = scmp.ge.s32.totalorder %s1310_s16, 1  ;;  %p318_p9 = scmp.lt.s32.totalorder %s1310_s16, 10 }
  0x38   : > { %p319_p10 = pnand %p1048_p8, %p318_p9 }
  0x39   : > { %s325_s30 = sand.u32 (!%p319_p10), 1, %s1294_s12   ;;  %v1271_v0 = vld [vmem:[%s1616_s0 + $0x4] ss:$8 sps:$4 sm:$0xff] (!%p319_p10)   ;;  %s1051_s10 = sshll.u32 (!%p319_p10), %s1302_s14, 2 }
  0x3a   : > { %322 = sbr.rel (%p319_p10) target bundleno = 355 (0x163), region = 51  ;;  %s1049_s4 = sshll.u32 (!%p319_p10), %s325_s30, 9  ;;  %822 = vmatprep.mubr.bf16.mxu0 (!%p319_p10), %v1271_v0  ;;  %865 = vmatprep.mubr.bf16.mxu1 (!%p319_p10), %v1271_v0 }
  0x3b   : > { %s1520_s7 = scalar_lea.vmem (!%p319_p10), [#allocation2], %s1049_s4  ;;  %p366_p11 = scmp.lt.s32.totalorder (!%p319_p10), %s1051_s10, 35 }
  0x3c   : > { %v1173_v1 = vld [vmem:[%s1520_s7 + $0x4] ss:$16 sps:$4 sm:$0xff] (!%p319_p10)   ;;  %v1175_v2 = vld [vmem:[%s1520_s7 + $0xc] ss:$16 sps:$4 sm:$0xff] (!%p319_p10)   ;;  %v1177_v3 = vld [vmem:[%s1520_s7] ss:$16 sps:$4 sm:$0xff] (!%p319_p10)  }
  0x3d   : > { %790 = vmatprep.subr.bf16.mxu0 (!%p319_p10), %v1173_v1  ;;  %v1178_v4 = vld [vmem:[%s1520_s7 + $0x8] ss:$16 sps:$4 sm:$0xff] (!%p319_p10)   ;;  %833 = vmatprep.subr.bf16.mxu1 (!%p319_p10), %v1175_v2  ;;  %v1179_v5 = vld [vmem:[%s1520_s7 + $0x24] ss:$16 sps:$4 sm:$0xff] (!%p319_p10)   ;;  %v1181_v6 = vld [vmem:[%s1520_s7 + $0x2c] ss:$16 sps:$4 sm:$0xff] (!%p319_p10)   ;;  %v440_v2 = vlaneseq (!%p319_p10) }
  0x3e   : > { %791 = vmatpush1.bf16.msra.mxu0 (!%p319_p10), %v1177_v3  ;;  %834 = vmatpush1.bf16.msra.mxu1 (!%p319_p10), %v1178_v4  ;;  %v1183_v7 = vld [vmem:[%s1520_s7 + $0x20] ss:$16 sps:$4 sm:$0xff] (!%p319_p10)   ;;  %v1184_v8 = vld [vmem:[%s1520_s7 + $0x28] ss:$16 sps:$4 sm:$0xff] (!%p319_p10)   ;;  %v1185_v9 = vld [vmem:[%s1520_s7 + $0x44] ss:$16 sps:$4 sm:$0xff] (!%p319_p10)  }
  0x3f   : > { %792 = vmatprep.subr.bf16.mxu0 (!%p319_p10), %v1179_v5  ;;  %835 = vmatprep.subr.bf16.mxu1 (!%p319_p10), %v1181_v6  ;;  %v1187_v10 = vld [vmem:[%s1520_s7 + $0x4c] ss:$16 sps:$4 sm:$0xff] (!%p319_p10)   ;;  %v1189_v11 = vld [vmem:[%s1520_s7 + $0x40] ss:$16 sps:$4 sm:$0xff] (!%p319_p10)   ;;  %v1190_v12 = vld [vmem:[%s1520_s7 + $0x48] ss:$16 sps:$4 sm:$0xff] (!%p319_p10)  }
  0x40   : > { %v1191_v13 = vld [vmem:[%s1520_s7 + $0x64] ss:$16 sps:$4 sm:$0xff] (!%p319_p10)   ;;  %v1193_v14 = vld [vmem:[%s1520_s7 + $0x6c] ss:$16 sps:$4 sm:$0xff] (!%p319_p10)   ;;  %v1195_v15 = vld [vmem:[%s1520_s7 + $0x60] ss:$16 sps:$4 sm:$0xff] (!%p319_p10)  }
  0x41   : > { %v1196_v16 = vld [vmem:[%s1520_s7 + $0x68] ss:$16 sps:$4 sm:$0xff]   ;;  %v1197_v17 = vld [vmem:[%s1520_s7 + $0x84] ss:$16 sps:$4 sm:$0xff]   ;;  %v1199_v18 = vld [vmem:[%s1520_s7 + $0x8c] ss:$16 sps:$4 sm:$0xff]  }
  0x42   : > { %793 = vmatpush1.bf16.msra.mxu0 %v1183_v7  ;;  %836 = vmatpush1.bf16.msra.mxu1 %v1184_v8  ;;  %v1201_v19 = vld [vmem:[%s1520_s7 + $0x80] ss:$16 sps:$4 sm:$0xff]   ;;  %v1202_v20 = vld [vmem:[%s1520_s7 + $0x88] ss:$16 sps:$4 sm:$0xff]   ;;  %v1203_v21 = vld [vmem:[%s1520_s7 + $0xa4] ss:$16 sps:$4 sm:$0xff]  }
  0x43   : > { %794 = vmatprep.subr.bf16.mxu0 %v1185_v9  ;;  %837 = vmatprep.subr.bf16.mxu1 %v1187_v10  ;;  %v1205_v22 = vld [vmem:[%s1520_s7 + $0xac] ss:$16 sps:$4 sm:$0xff]   ;;  %v1207_v23 = vld [vmem:[%s1520_s7 + $0xa0] ss:$16 sps:$4 sm:$0xff]   ;;  %v1208_v24 = vld [vmem:[%s1520_s7 + $0xa8] ss:$16 sps:$4 sm:$0xff]  }
  0x44   : > { %v1209_v25 = vld [vmem:[%s1520_s7 + $0xc4] ss:$16 sps:$4 sm:$0xff]   ;;  %v1211_v26 = vld [vmem:[%s1520_s7 + $0xcc] ss:$16 sps:$4 sm:$0xff]   ;;  %v1213_v27 = vld [vmem:[%s1520_s7 + $0xc0] ss:$16 sps:$4 sm:$0xff]  }
  0x45   : > { %v1214_v28 = vld [vmem:[%s1520_s7 + $0xc8] ss:$16 sps:$4 sm:$0xff]   ;;  %v1215_v29 = vld [vmem:[%s1520_s7 + $0xe4] ss:$16 sps:$4 sm:$0xff]   ;;  %v1217_v30 = vld [vmem:[%s1520_s7 + $0xec] ss:$16 sps:$4 sm:$0xff]  }
  0x46   : > { %795 = vmatpush1.bf16.msra.mxu0 %v1189_v11  ;;  %838 = vmatpush1.bf16.msra.mxu1 %v1190_v12  ;;  %v1219_v31 = vld [vmem:[%s1520_s7 + $0xe0] ss:$16 sps:$4 sm:$0xff]   ;;  %v1220_v32 = vld [vmem:[%s1520_s7 + $0xe8] ss:$16 sps:$4 sm:$0xff]   ;;  %v1221_v33 = vld [vmem:[%s1520_s7 + $0x104] ss:$16 sps:$4 sm:$0xff]  }
  0x47   : > { %796 = vmatprep.subr.bf16.mxu0 %v1191_v13  ;;  %839 = vmatprep.subr.bf16.mxu1 %v1193_v14  ;;  %v1223_v34 = vld [vmem:[%s1520_s7 + $0x10c] ss:$16 sps:$4 sm:$0xff]   ;;  %v1225_v35 = vld [vmem:[%s1520_s7 + $0x100] ss:$16 sps:$4 sm:$0xff]   ;;  %v1226_v36 = vld [vmem:[%s1520_s7 + $0x108] ss:$16 sps:$4 sm:$0xff]  }
  0x48   : > { %v1227_v37 = vld [vmem:[%s1520_s7 + $0x124] ss:$16 sps:$4 sm:$0xff]   ;;  %v1229_v38 = vld [vmem:[%s1520_s7 + $0x12c] ss:$16 sps:$4 sm:$0xff]   ;;  %v1231_v39 = vld [vmem:[%s1520_s7 + $0x120] ss:$16 sps:$4 sm:$0xff]  }
  0x49   : > { %v1232_v40 = vld [vmem:[%s1520_s7 + $0x128] ss:$16 sps:$4 sm:$0xff]   ;;  %v1233_v41 = vld [vmem:[%s1520_s7 + $0x144] ss:$16 sps:$4 sm:$0xff]   ;;  %v1235_v42 = vld [vmem:[%s1520_s7 + $0x14c] ss:$16 sps:$4 sm:$0xff]  }
  0x4a   : > { %797 = vmatpush1.bf16.msra.mxu0 %v1195_v15  ;;  %840 = vmatpush1.bf16.msra.mxu1 %v1196_v16  ;;  %v1237_v43 = vld [vmem:[%s1520_s7 + $0x140] ss:$16 sps:$4 sm:$0xff]   ;;  %v1238_v44 = vld [vmem:[%s1520_s7 + $0x148] ss:$16 sps:$4 sm:$0xff]   ;;  %v1239_v45 = vld [vmem:[%s1520_s7 + $0x164] ss:$16 sps:$4 sm:$0xff]  }
  0x4b   : > { %798 = vmatprep.subr.bf16.mxu0 %v1197_v17  ;;  %841 = vmatprep.subr.bf16.mxu1 %v1199_v18  ;;  %v1241_v46 = vld [vmem:[%s1520_s7 + $0x16c] ss:$16 sps:$4 sm:$0xff]   ;;  %v1243_v47 = vld [vmem:[%s1520_s7 + $0x160] ss:$16 sps:$4 sm:$0xff]   ;;  %v1244_v48 = vld [vmem:[%s1520_s7 + $0x168] ss:$16 sps:$4 sm:$0xff]  }
  0x4c   : > { %v1245_v49 = vld [vmem:[%s1520_s7 + $0x184] ss:$16 sps:$4 sm:$0xff]   ;;  %v1247_v50 = vld [vmem:[%s1520_s7 + $0x18c] ss:$16 sps:$4 sm:$0xff]   ;;  %v1249_v51 = vld [vmem:[%s1520_s7 + $0x180] ss:$16 sps:$4 sm:$0xff]  }
  0x4d   : > { %v1250_v52 = vld [vmem:[%s1520_s7 + $0x188] ss:$16 sps:$4 sm:$0xff]   ;;  %v1251_v53 = vld [vmem:[%s1520_s7 + $0x1a4] ss:$16 sps:$4 sm:$0xff]   ;;  %v1253_v54 = vld [vmem:[%s1520_s7 + $0x1ac] ss:$16 sps:$4 sm:$0xff]  }
  0x4e   : > { %799 = vmatpush1.bf16.msra.mxu0 %v1201_v19  ;;  %842 = vmatpush1.bf16.msra.mxu1 %v1202_v20  ;;  %v1255_v55 = vld [vmem:[%s1520_s7 + $0x1a0] ss:$16 sps:$4 sm:$0xff]   ;;  %v1256_v56 = vld [vmem:[%s1520_s7 + $0x1a8] ss:$16 sps:$4 sm:$0xff]   ;;  %v1257_v57 = vld [vmem:[%s1520_s7 + $0x1c4] ss:$16 sps:$4 sm:$0xff]  }
  0x4f   : > { %800 = vmatprep.subr.bf16.mxu0 %v1203_v21  ;;  %843 = vmatprep.subr.bf16.mxu1 %v1205_v22  ;;  %v1259_v58 = vld [vmem:[%s1520_s7 + $0x1cc] ss:$16 sps:$4 sm:$0xff]   ;;  %v1261_v59 = vld [vmem:[%s1520_s7 + $0x1c0] ss:$16 sps:$4 sm:$0xff]   ;;  %v1262_v60 = vld [vmem:[%s1520_s7 + $0x1c8] ss:$16 sps:$4 sm:$0xff]  }
  0x50   : > { %v1263_v61 = vld [vmem:[%s1520_s7 + $0x1e4] ss:$16 sps:$4 sm:$0xff]   ;;  %v1265_v62 = vld [vmem:[%s1520_s7 + $0x1ec] ss:$16 sps:$4 sm:$0xff]   ;;  %v1267_v63 = vld [vmem:[%s1520_s7 + $0x1e0] ss:$16 sps:$4 sm:$0xff]  }
  0x51   : > { %v1268_v0 = vld [vmem:[%s1520_s7 + $0x1e8] ss:$16 sps:$4 sm:$0xff]   ;;  %s1628_s10 = smov (!%p366_p11, %s1051_s10), 35  ;;  %v441_v3 = vshrl.u32 %v440_v2, 7  ;;  %s1050_s20 = sshll.u32 %s325_s30, 5 }
  0x52   : > { %801 = vmatpush1.bf16.msra.mxu0 %v1207_v23  ;;  %844 = vmatpush1.bf16.msra.mxu1 %v1208_v24  ;;  %v1269_v1 = vld [vmem:[%s1616_s0] ss:$8 sps:$4 sm:$0xff]   ;;  %s368_s19 = scalar_lea.vmem %s1618_s2, %s1628_s10  ;;  %s356_s12 = scalar_lea.vmem [#allocation3], %s1050_s20 }
  0x53   : > { %802 = vmatprep.subr.bf16.mxu0 %v1209_v25  ;;  %845 = vmatprep.subr.bf16.mxu1 %v1211_v26  ;;  %v442_v4 = vsub.s32 0, %v441_v3  ;;  %v450_v5 = vsub.s32 2, %v441_v3  ;;  %v438_v6 = vld [vmem:[%s368_s19] sm:$0xf]  ;;  %v446_v7 = vsub.s32 1, %v441_v3  ;;  %v454_v8 = vsub.s32 3, %v441_v3 }
  0x54   : > { %s1132_s23 = sshll.u32 (%p1367_p6), %s1302_s14, 4 }
  0x55   : > { %v443_v9 = vrot.slane %v438_v6, %v442_v4  ;;  %v451_v10 = vrot.slane %v438_v6, %v450_v5  ;;  %v447_v11 = vrot.slane %v438_v6, %v446_v7  ;;  %v455_v12 = vrot.slane %v438_v6, %v454_v8  ;;  %s924_s26 = scalar_lea.vmem (%p1367_p6), %s1619_s3, %s1132_s23 }
  0x56   : > { %803 = vmatpush1.bf16.msra.mxu0 %v1213_v27  ;;  %846 = vmatpush1.bf16.msra.mxu1 %v1214_v28 }
  0x57   : > { %804 = vmatprep.subr.bf16.mxu0 %v1215_v29  ;;  %847 = vmatprep.subr.bf16.mxu1 %v1217_v30 }
  0x5a   : > { %805 = vmatpush1.bf16.msra.mxu0 %v1219_v31  ;;  %848 = vmatpush1.bf16.msra.mxu1 %v1220_v32 }
  0x5b   : > { %806 = vmatprep.subr.bf16.mxu0 %v1221_v33  ;;  %849 = vmatprep.subr.bf16.mxu1 %v1223_v34 }
  0x5e   : > { %807 = vmatpush1.bf16.msra.mxu0 %v1225_v35  ;;  %850 = vmatpush1.bf16.msra.mxu1 %v1226_v36 }
  0x5f   : > { %808 = vmatprep.subr.bf16.mxu0 %v1227_v37  ;;  %851 = vmatprep.subr.bf16.mxu1 %v1229_v38 }
  0x62   : > { %809 = vmatpush1.bf16.msra.mxu0 %v1231_v39  ;;  %852 = vmatpush1.bf16.msra.mxu1 %v1232_v40 }
  0x63   : > { %810 = vmatprep.subr.bf16.mxu0 %v1233_v41  ;;  %853 = vmatprep.subr.bf16.mxu1 %v1235_v42 }
  0x66   : > { %811 = vmatpush1.bf16.msra.mxu0 %v1237_v43  ;;  %854 = vmatpush1.bf16.msra.mxu1 %v1238_v44 }
  0x67   : > { %812 = vmatprep.subr.bf16.mxu0 %v1239_v45  ;;  %855 = vmatprep.subr.bf16.mxu1 %v1241_v46 }
  0x6a   : > { %813 = vmatpush1.bf16.msra.mxu0 %v1243_v47  ;;  %856 = vmatpush1.bf16.msra.mxu1 %v1244_v48 }
  0x6b   : > { %814 = vmatprep.subr.bf16.mxu0 %v1245_v49  ;;  %857 = vmatprep.subr.bf16.mxu1 %v1247_v50 }
  0x6e   : > { %815 = vmatpush1.bf16.msra.mxu0 %v1249_v51  ;;  %858 = vmatpush1.bf16.msra.mxu1 %v1250_v52 }
  0x6f   : > { %816 = vmatprep.subr.bf16.mxu0 %v1251_v53  ;;  %859 = vmatprep.subr.bf16.mxu1 %v1253_v54 }
  0x72   : > { %817 = vmatpush1.bf16.msra.mxu0 %v1255_v55  ;;  %860 = vmatpush1.bf16.msra.mxu1 %v1256_v56 }
  0x73   : > { %818 = vmatprep.subr.bf16.mxu0 %v1257_v57  ;;  %861 = vmatprep.subr.bf16.mxu1 %v1259_v58 }
  0x76   : > { %819 = vmatpush1.bf16.msra.mxu0 %v1261_v59  ;;  %862 = vmatpush1.bf16.msra.mxu1 %v1262_v60 }
  0x77   : > { %820 = vmatprep.subr.bf16.mxu0 %v1263_v61  ;;  %863 = vmatprep.subr.bf16.mxu1 %v1265_v62 }
  0x7a   : > { %821 = vmatpush1.bf16.msra.mxu0 %v1267_v63  ;;  %864 = vmatpush1.bf16.msra.mxu1 %v1268_v0 }
  0x7d   : > { %823 = vmatmul.mubr.bf16.vlgmr.msra.gmra.mrb[0].mxu0 %v1269_v1  ;;  %866 = vmatmul.mubr.bf16.vlgmr.msra.gmra.mrb[0].mxu1 %v1269_v1 }
 0x150   : > { %v824_v13 = vpop.f32.mrb[0].mxu0  ;;  %v867_v14 = vpop.f32.mrb[0].mxu1 }
 0x151   : > { %v825_v15 = vadd.f32 %v824_v13, %v443_v9  ;;  %v868_v16 = vadd.f32 %v867_v14, %v451_v10  ;;  %v826_v17 = vpop.f32.mrb[1].mxu0  ;;  %v869_v18 = vpop.f32.mrb[1].mxu1 }
 0x152   : > { %v827_v19 = vadd.f32 %v826_v17, %v447_v11  ;;  %v870_v20 = vadd.f32 %v869_v18, %v455_v12  ;;  %v828_v21 = vpop.f32.mrb[2].mxu0  ;;  %v871_v22 = vpop.f32.mrb[2].mxu1 }
 0x153   : > { %v876_v23 = vmax.f32 %v825_v15, 0.0  ;;  %v878_v24 = vmax.f32 %v868_v16, 0.0  ;;  %v829_v25 = vadd.f32 %v828_v21, %v443_v9  ;;  %v872_v26 = vadd.f32 %v871_v22, %v451_v10  ;;  %v830_v27 = vpop.f32.mrb[3].mxu0  ;;  %v873_v28 = vpop.f32.mrb[3].mxu1 }
 0x154   : > { %v877_v29 = vmax.f32 %v827_v19, 0.0  ;;  %v879_v30 = vmax.f32 %v870_v20, 0.0  ;;  %v831_v31 = vadd.f32 %v830_v27, %v447_v11  ;;  %v874_v32 = vadd.f32 %v873_v28, %v455_v12  ;;  %918 = sbr.rel (!%p1367_p6) target bundleno = 355 (0x163), region = 59 }
 0x155   : > { %v880_v33 = vmax.f32 %v829_v25, 0.0  ;;  %v882_v34 = vmax.f32 %v872_v26, 0.0 }
 0x156   : > { %v1128_v35 = vpack.c.bf16 %v877_v29, %v876_v23  ;;  %v1129_v36 = vpack.c.bf16 %v879_v30, %v878_v24  ;;  %v881_v37 = vmax.f32 %v831_v31, 0.0  ;;  %v883_v38 = vmax.f32 %v874_v32, 0.0 }
 0x158   : > { %908 = vst [vmem:[%s356_s12] sm:$0xff] %v1128_v35  ;;  %909 = vst [vmem:[%s356_s12 + $0x8] sm:$0xff] %v1129_v36  ;;  %v1130_v39 = vpack.c.bf16 %v881_v37, %v880_v33  ;;  %v1131_v40 = vpack.c.bf16 %v883_v38, %v882_v34 }
 0x15a   : > { %910 = vst [vmem:[%s356_s12 + $0x10] sm:$0xff] %v1130_v39  ;;  %911 = vst [vmem:[%s356_s12 + $0x18] sm:$0xff] %v1131_v40 }
 0x15f   : > { %v937_v41 = vld [vmem:[%s356_s12] sm:$0xff]  ;;  %v939_v42 = vld [vmem:[%s356_s12 + $0x8] sm:$0xff] }
 0x160   : > { %938 = vst [vmem:[%s924_s26] sm:$0xff] %v937_v41  ;;  %940 = vst [vmem:[%s924_s26 + $0x8] sm:$0xff] %v939_v42 }
 0x161   : > { %v941_v43 = vld [vmem:[%s356_s12 + $0x10] sm:$0xff]  ;;  %v943_v44 = vld [vmem:[%s356_s12 + $0x18] sm:$0xff] }
 0x162   : > { %942 = vst [vmem:[%s924_s26 + $0x90] sm:$0xff] %v941_v43  ;;  %944 = vst [vmem:[%s924_s26 + $0x98] sm:$0xff] %v943_v44 }
 0x163 PF: > { %s13_s16 = sadd.s32 1, %s1310_s16   ;;  %s1621_s12 = smov %s1298_s13 }
 0x164   : > { %p10_p12 = scmp.ge.s32.totalorder %s13_s16, 11   ;;  %s1622_s13 = smov %s1372_s22 }
 0x165   : > { %s1623_s14 = smov %s1306_s15  ;;  %s1624_s15 = smov %s1626_s17 }
 0x166   :  { %12 = sbr.rel (!%p10_p12) target bundleno = 3 (0x3), region = 119 }

// kernel: vae_forward.15
= control target key start
LH: loop header
LB: loop body
LE: loop exit
PB: predicated region body
PF: predicated region fallthrough
CT: control target
= control target key end

     0   :  { %v3701_v0 = vmov 0   ;;  %vm1449_vm0 = vcmask 1043456   ;;  %vm1361_vm1 = vcmask 64512   ;;  %s4757_s1 = inlined_call_operand.vmem [shape: bf16[648,128], index: 1, kind: input, shape index: {}]   ;;  %s4758_s0 = inlined_call_operand.vmem [shape: bf16[464,648], index: 0, kind: input, shape index: {}]   ;;  %s4759_s2 = inlined_call_operand.vmem [shape: f32[1,128], index: 2, kind: input, shape index: {}]   ;;  %s4760_s3 = inlined_call_operand.vmem [shape: bf16[464,128], index: 3, kind: output, shape index: {}]  }
   0x1   :  { %1453 = vmatprep.subr.bf16.mxu1 %v3701_v0  ;;  %1718 = vmatprep.subr.bf16.mxu0 %v3701_v0  ;;  %v3399_v1 = vld [vmem:[%s4757_s1] sm:$0xff]   ;;  %v3401_v3 = vld [vmem:[%s4757_s1 + $0x8] sm:$0xff]   ;;  %v3403_v5 = vld [vmem:[%s4757_s1 + $0x10] sm:$0xff]  }
   0x2   :  { %v3730_v2 = vld [vmem:[%s4757_s1 + $0x80] sm:$0xff]   ;;  %1454 = vmatpush1.bf16.msra.mxu1 %v3399_v1  ;;  %v3740_v4 = vld [vmem:[%s4757_s1 + $0x88] sm:$0xff]   ;;  %v3751_v6 = vld [vmem:[%s4757_s1 + $0x90] sm:$0xff]  }
   0x3   :  { %1719 = vmatpush1.bf16.msra.mxu0 %v3730_v2  ;;  %1455 = vmatprep.subr.bf16.mxu1 %v3701_v0  ;;  %v3405_v7 = vld [vmem:[%s4757_s1 + $0x18] sm:$0xff]   ;;  %v3407_v9 = vld [vmem:[%s4757_s1 + $0x20] sm:$0xff]   ;;  %v3409_v11 = vld [vmem:[%s4757_s1 + $0x28] sm:$0xff]  }
   0x4   :  { %1720 = vmatprep.subr.bf16.mxu0 %v3701_v0  ;;  %v3762_v8 = vld [vmem:[%s4757_s1 + $0x98] sm:$0xff]   ;;  %v3773_v10 = vld [vmem:[%s4757_s1 + $0xa0] sm:$0xff]   ;;  %v3784_v12 = vld [vmem:[%s4757_s1 + $0xa8] sm:$0xff]  }
   0x5   :  { %v3411_v13 = vld [vmem:[%s4757_s1 + $0x30] sm:$0xff]   ;;  %v3413_v15 = vld [vmem:[%s4757_s1 + $0x38] sm:$0xff]   ;;  %v3415_v17 = vld [vmem:[%s4757_s1 + $0x40] sm:$0xff]  }
   0x6   :  { %1456 = vmatpush1.bf16.msra.mxu1 %v3401_v3  ;;  %v3795_v14 = vld [vmem:[%s4757_s1 + $0xb0] sm:$0xff]   ;;  %v3806_v16 = vld [vmem:[%s4757_s1 + $0xb8] sm:$0xff]   ;;  %v3817_v18 = vld [vmem:[%s4757_s1 + $0xc0] sm:$0xff]  }
   0x7   :  { %1721 = vmatpush1.bf16.msra.mxu0 %v3740_v4  ;;  %1457 = vmatprep.subr.bf16.mxu1 %v3701_v0  ;;  %v3433_v19 = vld [vmem:[%s4758_s0 + $0x4] ss:$24 sps:$4 sm:$0xff]   ;;  %v3417_v20 = vld [vmem:[%s4757_s1 + $0x48] sm:$0xff]   ;;  %v3419_v23 = vld [vmem:[%s4757_s1 + $0x50] sm:$0xff]  }
   0x8   :  { %1722 = vmatprep.subr.bf16.mxu0 %v3701_v0  ;;  %v3436_v21 = vld [vmem:[%s4758_s0 + $0xc] ss:$24 sps:$4 sm:$0xff]   ;;  %1485 = vmatprep.mubr.bf16.mxu1 %v3433_v19  ;;  %v3845_v24 = vld [vmem:[%s4757_s1 + $0xd0] sm:$0xff]   ;;  %v3421_v25 = vld [vmem:[%s4757_s1 + $0x58] sm:$0xff]  }
   0x9   :  { %v3834_v22 = vld [vmem:[%s4757_s1 + $0xc8] sm:$0xff]   ;;  %1750 = vmatprep.mubr.bf16.mxu0 %v3436_v21  ;;  %v3856_v26 = vld [vmem:[%s4757_s1 + $0xd8] sm:$0xff]   ;;  %v3423_v27 = vld [vmem:[%s4757_s1 + $0x60] sm:$0xff]  }
   0xa   :  { %1458 = vmatpush1.bf16.msra.mxu1 %v3403_v5  ;;  %v3867_v28 = vld [vmem:[%s4757_s1 + $0xe0] sm:$0xff]   ;;  %v3425_v29 = vld [vmem:[%s4757_s1 + $0x68] sm:$0xff]   ;;  %v3427_v31 = vld [vmem:[%s4757_s1 + $0x70] sm:$0xff]  }
   0xb   :  { %1723 = vmatpush1.bf16.msra.mxu0 %v3751_v6  ;;  %1459 = vmatprep.subr.bf16.mxu1 %v3701_v0  ;;  %v3878_v30 = vld [vmem:[%s4757_s1 + $0xe8] sm:$0xff]   ;;  %v3889_v32 = vld [vmem:[%s4757_s1 + $0xf0] sm:$0xff]   ;;  %v3429_v33 = vld [vmem:[%s4757_s1 + $0x78] sm:$0xff]  }
   0xc   :  { %1724 = vmatprep.subr.bf16.mxu0 %v3701_v0  ;;  %v3900_v34 = vld [vmem:[%s4757_s1 + $0xf8] sm:$0xff]   ;;  %v3434_v36 = vld [vmem:[%s4758_s0 + $0x8] ss:$24 sps:$4 sm:$0xff]   ;;  %v3438_v37 = vld [vmem:[%s4758_s0 + $0x34] ss:$24 sps:$4 sm:$0xff]  }
   0xd   :  { %v3431_v35 = vld [vmem:[%s4758_s0] ss:$24 sps:$4 sm:$0xff]   ;;  %v3440_v39 = vld [vmem:[%s4758_s0 + $0x3c] ss:$24 sps:$4 sm:$0xff]   ;;  %v3448_v40 = vld [vmem:[%s4757_s1 + $0x108] sm:$0xff]  }
   0xe   :  { %1460 = vmatpush1.bf16.msra.mxu1 %v3405_v7  ;;  %v3437_v38 = vld [vmem:[%s4757_s1 + $0x100] sm:$0xff]   ;;  %v3442_v41 = vld [vmem:[%s4758_s0 + $0x30] ss:$24 sps:$4 sm:$0xff]   ;;  %v3470_v46 = vld [vmem:[%s4757_s1 + $0x118] sm:$0xff]  }
   0xf   :  { %1725 = vmatpush1.bf16.msra.mxu0 %v3762_v8  ;;  %1461 = vmatprep.subr.bf16.mxu1 %v3701_v0  ;;  %v3443_v42 = vld [vmem:[%s4758_s0 + $0x38] ss:$24 sps:$4 sm:$0xff]   ;;  %v3444_v43 = vld [vmem:[%s4758_s0 + $0x64] ss:$24 sps:$4 sm:$0xff]   ;;  %v3450_v48 = vld [vmem:[%s4758_s0 + $0x68] ss:$24 sps:$4 sm:$0xff]  }
  0x10   :  { %1726 = vmatprep.subr.bf16.mxu0 %v3701_v0  ;;  %v3446_v44 = vld [vmem:[%s4758_s0 + $0x6c] ss:$24 sps:$4 sm:$0xff]   ;;  %v3457_v45 = vld [vmem:[%s4757_s1 + $0x110] sm:$0xff]   ;;  %v3449_v47 = vld [vmem:[%s4758_s0 + $0x60] ss:$24 sps:$4 sm:$0xff]  }
  0x11   :  { %v3451_v49 = vld [vmem:[%s4758_s0 + $0x94] ss:$24 sps:$4 sm:$0xff]   ;;  %v3481_v51 = vld [vmem:[%s4757_s1 + $0x120] sm:$0xff]   ;;  %v3455_v53 = vld [vmem:[%s4758_s0 + $0x90] ss:$24 sps:$4 sm:$0xff]  }
  0x12   :  { %1462 = vmatpush1.bf16.msra.mxu1 %v3407_v9  ;;  %v3453_v50 = vld [vmem:[%s4758_s0 + $0x9c] ss:$24 sps:$4 sm:$0xff]   ;;  %v3490_v52 = vld [vmem:[%s4757_s1 + $0x128] sm:$0xff]   ;;  %v3456_v54 = vld [vmem:[%s4758_s0 + $0x98] ss:$24 sps:$4 sm:$0xff]  }
  0x13   :  { %1727 = vmatpush1.bf16.msra.mxu0 %v3773_v10  ;;  %1463 = vmatprep.subr.bf16.mxu1 %v3701_v0  ;;  %v3458_v55 = vld [vmem:[%s4758_s0 + $0xc4] ss:$24 sps:$4 sm:$0xff]   ;;  %v3503_v57 = vld [vmem:[%s4757_s1 + $0x130] sm:$0xff]   ;;  %v3523_v59 = vld [vmem:[%s4757_s1 + $0x140] ss:$0 sps:$4 sm:$0xff]  }
  0x14   :  { %1728 = vmatprep.subr.bf16.mxu0 %v3701_v0  ;;  %v3460_v56 = vld [vmem:[%s4758_s0 + $0xcc] ss:$24 sps:$4 sm:$0xff]   ;;  %v3514_v58 = vld [vmem:[%s4757_s1 + $0x138] sm:$0xff]   ;;  %v3463_v61 = vld [vmem:[%s4758_s0 + $0xc8] ss:$24 sps:$4 sm:$0xff]   ;;  %v1451_v1 = vsel %vm1449_vm0, %v3523_v59, 0 }
  0x15   :  { %v3462_v60 = vld [vmem:[%s4758_s0 + $0xc0] ss:$24 sps:$4 sm:$0xff]   ;;  %v3464_v62 = vld [vmem:[%s4758_s0 + $0xf4] ss:$24 sps:$4 sm:$0xff]   ;;  %v3560_v59 = vld [vmem:[%s4758_s0 + $0x3c4] ss:$24 sps:$4 sm:$0xff]  }
  0x16   :  { %1464 = vmatpush1.bf16.msra.mxu1 %v3409_v11  ;;  %v3466_v63 = vld [vmem:[%s4758_s0 + $0xfc] ss:$24 sps:$4 sm:$0xff]   ;;  %v3469_v3 = vld [vmem:[%s4758_s0 + $0xf8] ss:$24 sps:$4 sm:$0xff]   ;;  %v3473_v5 = vld [vmem:[%s4758_s0 + $0x12c] ss:$24 sps:$4 sm:$0xff]  }
  0x17   :  { %1729 = vmatpush1.bf16.msra.mxu0 %v3784_v12  ;;  %1465 = vmatprep.subr.bf16.mxu1 %v3701_v0  ;;  %v3476_v7 = vld [vmem:[%s4758_s0 + $0x128] ss:$24 sps:$4 sm:$0xff]   ;;  %v3479_v9 = vld [vmem:[%s4758_s0 + $0x15c] ss:$24 sps:$4 sm:$0xff]   ;;  %v3483_v11 = vld [vmem:[%s4758_s0 + $0x158] ss:$24 sps:$4 sm:$0xff]  }
  0x18   :  { %1730 = vmatprep.subr.bf16.mxu0 %v3701_v0  ;;  %v3496_v19 = vld [vmem:[%s4758_s0 + $0x1b8] ss:$24 sps:$4 sm:$0xff]  }
  0x19   :  { %v3501_v21 = vld [vmem:[%s4758_s0 + $0x1e0] ss:$24 sps:$4 sm:$0xff]  }
  0x1a   :  { %1466 = vmatpush1.bf16.msra.mxu1 %v3411_v13  ;;  %v3486_v13 = vld [vmem:[%s4758_s0 + $0x18c] ss:$24 sps:$4 sm:$0xff]  }
  0x1b   :  { %1731 = vmatpush1.bf16.msra.mxu0 %v3795_v14  ;;  %1467 = vmatprep.subr.bf16.mxu1 %v3701_v0 }
  0x1c   :  { %1732 = vmatprep.subr.bf16.mxu0 %v3701_v0 }
  0x1e   :  { %1468 = vmatpush1.bf16.msra.mxu1 %v3413_v15  ;;  %v3489_v15 = vld [vmem:[%s4758_s0 + $0x188] ss:$24 sps:$4 sm:$0xff]  }
  0x1f   :  { %1733 = vmatpush1.bf16.msra.mxu0 %v3806_v16  ;;  %1469 = vmatprep.subr.bf16.mxu1 %v3701_v0 }
  0x20   :  { %1734 = vmatprep.subr.bf16.mxu0 %v3701_v0 }
  0x22   :  { %1470 = vmatpush1.bf16.msra.mxu1 %v3415_v17  ;;  %v3493_v17 = vld [vmem:[%s4758_s0 + $0x1bc] ss:$24 sps:$4 sm:$0xff]  }
  0x23   :  { %1735 = vmatpush1.bf16.msra.mxu0 %v3817_v18  ;;  %1471 = vmatprep.subr.bf16.mxu1 %v3701_v0 }
  0x24   :  { %1736 = vmatprep.subr.bf16.mxu0 %v3701_v0 }
  0x26   :  { %1472 = vmatpush1.bf16.msra.mxu1 %v3417_v20  ;;  %v3497_v20 = vld [vmem:[%s4758_s0 + $0x1e4] ss:$24 sps:$4 sm:$0xff]  }
  0x27   :  { %1737 = vmatpush1.bf16.msra.mxu0 %v3834_v22  ;;  %1473 = vmatprep.subr.bf16.mxu1 %v3701_v0 }
  0x28   :  { %1738 = vmatprep.subr.bf16.mxu0 %v3701_v0 }
  0x2a   :  { %1474 = vmatpush1.bf16.msra.mxu1 %v3419_v23  ;;  %v3504_v23 = vld [vmem:[%s4758_s0 + $0x214] ss:$24 sps:$4 sm:$0xff]  }
  0x2b   :  { %1739 = vmatpush1.bf16.msra.mxu0 %v3845_v24  ;;  %1475 = vmatprep.subr.bf16.mxu1 %v3701_v0 }
  0x2c   :  { %1740 = vmatprep.subr.bf16.mxu0 %v3701_v0 }
  0x2e   :  { %1476 = vmatpush1.bf16.msra.mxu1 %v3421_v25  ;;  %v3508_v25 = vld [vmem:[%s4758_s0 + $0x210] ss:$24 sps:$4 sm:$0xff]  }
  0x2f   :  { %1741 = vmatpush1.bf16.msra.mxu0 %v3856_v26  ;;  %1477 = vmatprep.subr.bf16.mxu1 %v3701_v0 }
  0x30   :  { %1742 = vmatprep.subr.bf16.mxu0 %v3701_v0 }
  0x32   :  { %1478 = vmatpush1.bf16.msra.mxu1 %v3423_v27  ;;  %v3510_v27 = vld [vmem:[%s4758_s0 + $0x244] ss:$24 sps:$4 sm:$0xff]  }
  0x33   :  { %1743 = vmatpush1.bf16.msra.mxu0 %v3867_v28  ;;  %1479 = vmatprep.subr.bf16.mxu1 %v3701_v0 }
  0x34   :  { %1744 = vmatprep.subr.bf16.mxu0 %v3701_v0 }
  0x36   :  { %1480 = vmatpush1.bf16.msra.mxu1 %v3425_v29  ;;  %v3515_v29 = vld [vmem:[%s4758_s0 + $0x240] ss:$24 sps:$4 sm:$0xff]  }
  0x37   :  { %1745 = vmatpush1.bf16.msra.mxu0 %v3878_v30  ;;  %1481 = vmatprep.subr.bf16.mxu1 %v3701_v0 }
  0x38   :  { %1746 = vmatprep.subr.bf16.mxu0 %v3701_v0 }
  0x3a   :  { %1482 = vmatpush1.bf16.msra.mxu1 %v3427_v31  ;;  %v3517_v31 = vld [vmem:[%s4758_s0 + $0x274] ss:$24 sps:$4 sm:$0xff]  }
  0x3b   :  { %1747 = vmatpush1.bf16.msra.mxu0 %v3889_v32  ;;  %1483 = vmatprep.subr.bf16.mxu1 %v3701_v0 }
  0x3c   :  { %1748 = vmatprep.subr.bf16.mxu0 %v3701_v0 }
  0x3e   :  { %1484 = vmatpush1.bf16.msra.mxu1 %v3429_v33  ;;  %v3521_v33 = vld [vmem:[%s4758_s0 + $0x270] ss:$24 sps:$4 sm:$0xff]  }
  0x3f   :  { %1749 = vmatpush1.bf16.msra.mxu0 %v3900_v34  ;;  %3134 = vmatprep.subr.bf16.mxu1 %v3701_v0 }
  0x40   :  { %1983 = vmatprep.subr.bf16.mxu0 %v3701_v0 }
  0x41   :  { %1486 = vmatmul.mubr.bf16.vlgmr.msra.gmra.mrb[0].mxu1 %v3431_v35  ;;  %v3524_v35 = vld [vmem:[%s4758_s0 + $0x2a4] ss:$24 sps:$4 sm:$0xff]  }
  0x42   :  { %1751 = vmatmul.mubr.bf16.vlgmr.msra.gmra.mrb[0].mxu0 %v3434_v36  ;;  %1493 = vmatprep.mubr.bf16.mxu1 %v3438_v37  ;;  %v3526_v36 = vld [vmem:[%s4758_s0 + $0x2ac] ss:$24 sps:$4 sm:$0xff]   ;;  %v3528_v37 = vld [vmem:[%s4758_s0 + $0x2a0] ss:$24 sps:$4 sm:$0xff]  }
  0x43   :  { %1984 = vmatpush1.bf16.msra.mxu0 %v3437_v38  ;;  %3150 = vmatpush1.bf16.msra.mxu1 %v3730_v2  ;;  %v3468_v2 = vld [vmem:[%s4758_s0 + $0xf0] ss:$24 sps:$4 sm:$0xff]  }
  0x44   :  { %1758 = vmatprep.mubr.bf16.mxu0 %v3440_v39  ;;  %1985 = vmatprep.subr.bf16.mxu0 %v3701_v0  ;;  %v3529_v38 = vld [vmem:[%s4758_s0 + $0x2a8] ss:$24 sps:$4 sm:$0xff]   ;;  %v3530_v39 = vld [vmem:[%s4758_s0 + $0x2d4] ss:$24 sps:$4 sm:$0xff]  }
  0x45   :  { %3135 = vmatprep.subr.bf16.mxu1 %v3701_v0 }
  0x47   :  { %1986 = vmatpush1.bf16.msra.mxu0 %v3448_v40  ;;  %3151 = vmatpush1.bf16.msra.mxu1 %v3740_v4  ;;  %v3471_v4 = vld [vmem:[%s4758_s0 + $0x124] ss:$24 sps:$4 sm:$0xff]   ;;  %v3534_v40 = vld [vmem:[%s4758_s0 + $0x14] ss:$24 sps:$4 sm:$0xff]  }
  0x48   :  { %1987 = vmatprep.subr.bf16.mxu0 %v3701_v0  ;;  %3136 = vmatprep.subr.bf16.mxu1 %v3701_v0 }
  0x49   :  { %1494 = vmatmul.mubr.bf16.gmra.mrb[4].mxu1 %v3442_v41  ;;  %v3535_v41 = vld [vmem:[%s4758_s0 + $0x2d0] ss:$24 sps:$4 sm:$0xff]  }
  0x4a   :  { %1759 = vmatmul.mubr.bf16.gmra.mrb[4].mxu0 %v3443_v42  ;;  %1501 = vmatprep.mubr.bf16.mxu1 %v3444_v43  ;;  %v3532_v42 = vld [vmem:[%s4758_s0 + $0x10] ss:$24 sps:$4 sm:$0xff]   ;;  %v3536_v43 = vld [vmem:[%s4758_s0 + $0x304] ss:$24 sps:$4 sm:$0xff]  }
  0x4b   :  { %1766 = vmatprep.mubr.bf16.mxu0 %v3446_v44  ;;  %1988 = vmatpush1.bf16.msra.mxu0 %v3457_v45  ;;  %v3538_v44 = vld [vmem:[%s4758_s0 + $0x44] ss:$24 sps:$4 sm:$0xff]   ;;  %v3540_v45 = vld [vmem:[%s4758_s0 + $0x300] ss:$24 sps:$4 sm:$0xff]  }
  0x4c   :  { %3152 = vmatpush1.bf16.msra.mxu1 %v3751_v6  ;;  %1989 = vmatprep.subr.bf16.mxu0 %v3701_v0  ;;  %v3475_v6 = vld [vmem:[%s4758_s0 + $0x120] ss:$24 sps:$4 sm:$0xff]  }
  0x4d   :  { %3137 = vmatprep.subr.bf16.mxu1 %v3701_v0 }
  0x4f   :  { %1990 = vmatpush1.bf16.msra.mxu0 %v3470_v46  ;;  %v3541_v46 = vld [vmem:[%s4758_s0 + $0x40] ss:$24 sps:$4 sm:$0xff]  }
  0x50   :  { %3153 = vmatpush1.bf16.msra.mxu1 %v3762_v8  ;;  %1991 = vmatprep.subr.bf16.mxu0 %v3701_v0  ;;  %v3477_v8 = vld [vmem:[%s4758_s0 + $0x154] ss:$24 sps:$4 sm:$0xff]  }
  0x51   :  { %1502 = vmatmul.mubr.bf16.gmra.mrb[8].mxu1 %v3449_v47  ;;  %3138 = vmatprep.subr.bf16.mxu1 %v3701_v0  ;;  %v3542_v47 = vld [vmem:[%s4758_s0 + $0x334] ss:$24 sps:$4 sm:$0xff]  }
  0x52   :  { %1767 = vmatmul.mubr.bf16.gmra.mrb[8].mxu0 %v3450_v48  ;;  %1509 = vmatprep.mubr.bf16.mxu1 %v3451_v49  ;;  %v3544_v48 = vld [vmem:[%s4758_s0 + $0x74] ss:$24 sps:$4 sm:$0xff]   ;;  %v3546_v49 = vld [vmem:[%s4758_s0 + $0x330] ss:$24 sps:$4 sm:$0xff]  }
  0x53   :  { %1774 = vmatprep.mubr.bf16.mxu0 %v3453_v50  ;;  %1992 = vmatpush1.bf16.msra.mxu0 %v3481_v51  ;;  %v3547_v50 = vld [vmem:[%s4758_s0 + $0x70] ss:$24 sps:$4 sm:$0xff]   ;;  %v3548_v51 = vld [vmem:[%s4758_s0 + $0x364] ss:$24 sps:$4 sm:$0xff]  }
  0x54   :  { %3154 = vmatpush1.bf16.msra.mxu1 %v3773_v10  ;;  %1993 = vmatprep.subr.bf16.mxu0 %v3701_v0  ;;  %v3482_v10 = vld [vmem:[%s4758_s0 + $0x150] ss:$24 sps:$4 sm:$0xff]  }
  0x55   :  { %3139 = vmatprep.subr.bf16.mxu1 %v3701_v0 }
  0x57   :  { %1994 = vmatpush1.bf16.msra.mxu0 %v3490_v52  ;;  %v3550_v52 = vld [vmem:[%s4758_s0 + $0xa4] ss:$24 sps:$4 sm:$0xff]  }
  0x58   :  { %3155 = vmatpush1.bf16.msra.mxu1 %v3784_v12  ;;  %1995 = vmatprep.subr.bf16.mxu0 %v3701_v0  ;;  %v3484_v12 = vld [vmem:[%s4758_s0 + $0x184] ss:$24 sps:$4 sm:$0xff]  }
  0x59   :  { %1510 = vmatmul.mubr.bf16.gmra.mrb[12].mxu1 %v3455_v53  ;;  %3140 = vmatprep.subr.bf16.mxu1 %v3701_v0  ;;  %v3552_v53 = vld [vmem:[%s4758_s0 + $0x360] ss:$24 sps:$4 sm:$0xff]  }
  0x5a   :  { %1775 = vmatmul.mubr.bf16.gmra.mrb[12].mxu0 %v3456_v54  ;;  %1517 = vmatprep.mubr.bf16.mxu1 %v3458_v55  ;;  %v3553_v54 = vld [vmem:[%s4758_s0 + $0xa0] ss:$24 sps:$4 sm:$0xff]   ;;  %v3554_v55 = vld [vmem:[%s4758_s0 + $0x394] ss:$24 sps:$4 sm:$0xff]  }
  0x5b   :  { %1782 = vmatprep.mubr.bf16.mxu0 %v3460_v56  ;;  %1996 = vmatpush1.bf16.msra.mxu0 %v3503_v57  ;;  %v3556_v56 = vld [vmem:[%s4758_s0 + $0xd4] ss:$24 sps:$4 sm:$0xff]   ;;  %v3558_v57 = vld [vmem:[%s4758_s0 + $0x390] ss:$24 sps:$4 sm:$0xff]  }
  0x5c   :  { %3156 = vmatpush1.bf16.msra.mxu1 %v3795_v14  ;;  %1997 = vmatprep.subr.bf16.mxu0 %v3701_v0  ;;  %v3488_v14 = vld [vmem:[%s4758_s0 + $0x180] ss:$24 sps:$4 sm:$0xff]  }
  0x5d   :  { %3141 = vmatprep.subr.bf16.mxu1 %v3701_v0 }
  0x5f   :  { %1998 = vmatpush1.bf16.msra.mxu0 %v3514_v58  ;;  %v3559_v58 = vld [vmem:[%s4758_s0 + $0xd0] ss:$24 sps:$4 sm:$0xff]  }
  0x60   :  { %1999 = vmatprep.subr.bf16.mxu0 %v3701_v0  ;;  %3157 = vmatpush1.bf16.msra.mxu1 %v3806_v16  ;;  %v3491_v16 = vld [vmem:[%s4758_s0 + $0x1b4] ss:$24 sps:$4 sm:$0xff]  }
  0x61   :  { %1518 = vmatmul.mubr.bf16.gmra.mrb[16].mxu1 %v3462_v60  ;;  %3142 = vmatprep.subr.bf16.mxu1 %v3701_v0  ;;  %v3562_v60 = vld [vmem:[%s4758_s0 + $0x104] ss:$24 sps:$4 sm:$0xff]  }
  0x62   :  { %1783 = vmatmul.mubr.bf16.gmra.mrb[16].mxu0 %v3463_v61  ;;  %1525 = vmatprep.mubr.bf16.mxu1 %v3464_v62  ;;  %v3564_v61 = vld [vmem:[%s4758_s0 + $0x3c0] ss:$24 sps:$4 sm:$0xff]  }
  0x63   :  { %1790 = vmatprep.mubr.bf16.mxu0 %v3466_v63  ;;  %2000 = vmatpush1.bf16.msra.mxu0 %v1451_v1  ;;  %v3565_v62 = vld [vmem:[%s4758_s0 + $0x100] ss:$24 sps:$4 sm:$0xff]   ;;  %v3566_v63 = vld [vmem:[%s4758_s0 + $0x3f4] ss:$24 sps:$4 sm:$0xff]  }
  0x64   :  { %3158 = vmatpush1.bf16.msra.mxu1 %v3817_v18  ;;  %v3495_v18 = vld [vmem:[%s4758_s0 + $0x1b0] ss:$24 sps:$4 sm:$0xff]   ;;  %v3568_v1 = vld [vmem:[%s4758_s0 + $0x134] ss:$24 sps:$4 sm:$0xff]  }
  0x65   :  { %3143 = vmatprep.subr.bf16.mxu1 %v3701_v0 }
  0x68   :  { %3159 = vmatpush1.bf16.msra.mxu1 %v3834_v22  ;;  %v3502_v22 = vld [vmem:[%s4758_s0 + $0x1e8] ss:$24 sps:$4 sm:$0xff]  }
  0x69   :  { %1526 = vmatmul.mubr.bf16.gmra.mrb[20].mxu1 %v3468_v2  ;;  %3144 = vmatprep.subr.bf16.mxu1 %v3701_v0  ;;  %v3570_v2 = vld [vmem:[%s4758_s0 + $0x3f0] ss:$24 sps:$4 sm:$0xff]  }
  0x6a   :  { %1791 = vmatmul.mubr.bf16.gmra.mrb[20].mxu0 %v3469_v3  ;;  %1533 = vmatprep.mubr.bf16.mxu1 %v3471_v4  ;;  %v3571_v3 = vld [vmem:[%s4758_s0 + $0x130] ss:$24 sps:$4 sm:$0xff]   ;;  %v3572_v4 = vld [vmem:[%s4758_s0 + $0x424] ss:$24 sps:$4 sm:$0xff]  }
  0x6b   :  { %1798 = vmatprep.mubr.bf16.mxu0 %v3473_v5  ;;  %v3574_v5 = vld [vmem:[%s4758_s0 + $0x164] ss:$24 sps:$4 sm:$0xff]  }
  0x6c   :  { %3160 = vmatpush1.bf16.msra.mxu1 %v3845_v24  ;;  %v3506_v24 = vld [vmem:[%s4758_s0 + $0x21c] ss:$24 sps:$4 sm:$0xff]  }
  0x6d   :  { %3145 = vmatprep.subr.bf16.mxu1 %v3701_v0 }
  0x70   :  { %3161 = vmatpush1.bf16.msra.mxu1 %v3856_v26  ;;  %v3509_v26 = vld [vmem:[%s4758_s0 + $0x218] ss:$24 sps:$4 sm:$0xff]  }
  0x71   :  { %1534 = vmatmul.mubr.bf16.gmra.mrb[24].mxu1 %v3475_v6  ;;  %3146 = vmatprep.subr.bf16.mxu1 %v3701_v0  ;;  %v3576_v6 = vld [vmem:[%s4758_s0 + $0x420] ss:$24 sps:$4 sm:$0xff]  }
  0x72   :  { %1799 = vmatmul.mubr.bf16.gmra.mrb[24].mxu0 %v3476_v7  ;;  %1541 = vmatprep.mubr.bf16.mxu1 %v3477_v8  ;;  %v3577_v7 = vld [vmem:[%s4758_s0 + $0x160] ss:$24 sps:$4 sm:$0xff]   ;;  %v3578_v8 = vld [vmem:[%s4758_s0 + $0x454] ss:$24 sps:$4 sm:$0xff]  }
  0x73   :  { %1806 = vmatprep.mubr.bf16.mxu0 %v3479_v9  ;;  %v3580_v9 = vld [vmem:[%s4758_s0 + $0x194] ss:$24 sps:$4 sm:$0xff]  }
  0x74   :  { %3162 = vmatpush1.bf16.msra.mxu1 %v3867_v28  ;;  %v3512_v28 = vld [vmem:[%s4758_s0 + $0x24c] ss:$24 sps:$4 sm:$0xff]  }
  0x75   :  { %3147 = vmatprep.subr.bf16.mxu1 %v3701_v0 }
  0x78   :  { %3163 = vmatpush1.bf16.msra.mxu1 %v3878_v30  ;;  %v3516_v30 = vld [vmem:[%s4758_s0 + $0x248] ss:$24 sps:$4 sm:$0xff]  }
  0x79   :  { %1542 = vmatmul.mubr.bf16.gmra.mrb[28].mxu1 %v3482_v10  ;;  %3148 = vmatprep.subr.bf16.mxu1 %v3701_v0  ;;  %v3582_v10 = vld [vmem:[%s4758_s0 + $0x450] ss:$24 sps:$4 sm:$0xff]  }
  0x7a   :  { %1807 = vmatmul.mubr.bf16.gmra.mrb[28].mxu0 %v3483_v11  ;;  %1549 = vmatprep.mubr.bf16.mxu1 %v3484_v12  ;;  %v3583_v11 = vld [vmem:[%s4758_s0 + $0x190] ss:$24 sps:$4 sm:$0xff]   ;;  %v3584_v12 = vld [vmem:[%s4758_s0 + $0x484] ss:$24 sps:$4 sm:$0xff]  }
  0x7b   :  { %1814 = vmatprep.mubr.bf16.mxu0 %v3486_v13  ;;  %v3586_v13 = vld [vmem:[%s4758_s0 + $0x1c4] ss:$24 sps:$4 sm:$0xff]  }
  0x7c   :  { %3164 = vmatpush1.bf16.msra.mxu1 %v3889_v32  ;;  %v3519_v32 = vld [vmem:[%s4758_s0 + $0x27c] ss:$24 sps:$4 sm:$0xff]  }
  0x7d   :  { %3149 = vmatprep.subr.bf16.mxu1 %v3701_v0  ;;  %v3499_v0 = vld [vmem:[%s4758_s0 + $0x1ec] ss:$24 sps:$4 sm:$0xff]  }
  0x80   :  { %3165 = vmatpush1.bf16.msra.mxu1 %v3900_v34  ;;  %v3522_v34 = vld [vmem:[%s4758_s0 + $0x278] ss:$24 sps:$4 sm:$0xff]  }
  0x81   :  { %1550 = vmatmul.mubr.bf16.gmra.mrb[32].mxu1 %v3488_v14  ;;  %v3588_v14 = vld [vmem:[%s4758_s0 + $0x480] ss:$24 sps:$4 sm:$0xff]  }
  0x82   :  { %1815 = vmatmul.mubr.bf16.gmra.mrb[32].mxu0 %v3489_v15  ;;  %1557 = vmatprep.mubr.bf16.mxu1 %v3491_v16  ;;  %v3589_v15 = vld [vmem:[%s4758_s0 + $0x1c0] ss:$24 sps:$4 sm:$0xff]   ;;  %v3590_v16 = vld [vmem:[%s4758_s0 + $0x4b4] ss:$24 sps:$4 sm:$0xff]  }
  0x83   :  { %1822 = vmatprep.mubr.bf16.mxu0 %v3493_v17  ;;  %v3592_v17 = vld [vmem:[%s4758_s0 + $0x1f4] ss:$24 sps:$4 sm:$0xff]  }
  0x89   :  { %1558 = vmatmul.mubr.bf16.gmra.mrb[36].mxu1 %v3495_v18  ;;  %v3594_v18 = vld [vmem:[%s4758_s0 + $0x4b0] ss:$24 sps:$4 sm:$0xff]  }
  0x8a   :  { %1823 = vmatmul.mubr.bf16.gmra.mrb[36].mxu0 %v3496_v19  ;;  %1565 = vmatprep.mubr.bf16.mxu1 %v3497_v20  ;;  %v3595_v19 = vld [vmem:[%s4758_s0 + $0x1f0] ss:$24 sps:$4 sm:$0xff]   ;;  %v3596_v20 = vld [vmem:[%s4758_s0 + $0x4e4] ss:$24 sps:$4 sm:$0xff]  }
  0x8b   :  { %1830 = vmatprep.mubr.bf16.mxu0 %v3499_v0  ;;  %v3598_v0 = vld [vmem:[%s4758_s0 + $0x224] ss:$24 sps:$4 sm:$0xff]  }
  0x91   :  { %1566 = vmatmul.mubr.bf16.gmra.mrb[40].mxu1 %v3501_v21  ;;  %v3600_v21 = vld [vmem:[%s4758_s0 + $0x4e0] ss:$24 sps:$4 sm:$0xff]  }
  0x92   :  { %1831 = vmatmul.mubr.bf16.gmra.mrb[40].mxu0 %v3502_v22  ;;  %1573 = vmatprep.mubr.bf16.mxu1 %v3504_v23  ;;  %v3601_v22 = vld [vmem:[%s4758_s0 + $0x220] ss:$24 sps:$4 sm:$0xff]   ;;  %v3602_v23 = vld [vmem:[%s4758_s0 + $0x514] ss:$24 sps:$4 sm:$0xff]  }
  0x93   :  { %1838 = vmatprep.mubr.bf16.mxu0 %v3506_v24  ;;  %v3604_v24 = vld [vmem:[%s4758_s0 + $0x254] ss:$24 sps:$4 sm:$0xff]  }
  0x99   :  { %1574 = vmatmul.mubr.bf16.gmra.mrb[44].mxu1 %v3508_v25 }
  0x9a   :  { %1839 = vmatmul.mubr.bf16.gmra.mrb[44].mxu0 %v3509_v26  ;;  %1581 = vmatprep.mubr.bf16.mxu1 %v3510_v27  ;;  %v3606_v27 = vld [vmem:[%s4758_s0 + $0x510] ss:$24 sps:$4 sm:$0xff]  }
  0x9b   :  { %1846 = vmatprep.mubr.bf16.mxu0 %v3512_v28  ;;  %v3607_v28 = vld [vmem:[%s4758_s0 + $0x250] ss:$24 sps:$4 sm:$0xff]  }
  0xa1   :  { %1582 = vmatmul.mubr.bf16.gmra.mrb[48].mxu1 %v3515_v29 }
  0xa2   :  { %1847 = vmatmul.mubr.bf16.gmra.mrb[48].mxu0 %v3516_v30  ;;  %1589 = vmatprep.mubr.bf16.mxu1 %v3517_v31  ;;  %v3608_v30 = vld [vmem:[%s4758_s0 + $0x544] ss:$24 sps:$4 sm:$0xff]  }
  0xa3   :  { %1854 = vmatprep.mubr.bf16.mxu0 %v3519_v32  ;;  %v3610_v32 = vld [vmem:[%s4758_s0 + $0x284] ss:$24 sps:$4 sm:$0xff]  }
  0xa9   :  { %1590 = vmatmul.mubr.bf16.gmra.mrb[52].mxu1 %v3521_v33 }
  0xaa   :  { %1855 = vmatmul.mubr.bf16.gmra.mrb[52].mxu0 %v3522_v34  ;;  %1597 = vmatprep.mubr.bf16.mxu1 %v3524_v35  ;;  %v3612_v35 = vld [vmem:[%s4758_s0 + $0x540] ss:$24 sps:$4 sm:$0xff]  }
  0xab   :  { %1862 = vmatprep.mubr.bf16.mxu0 %v3526_v36  ;;  %v3613_v36 = vld [vmem:[%s4758_s0 + $0x280] ss:$24 sps:$4 sm:$0xff]  }
  0xb1   :  { %1598 = vmatmul.mubr.bf16.gmra.mrb[56].mxu1 %v3528_v37 }
  0xb2   :  { %1863 = vmatmul.mubr.bf16.gmra.mrb[56].mxu0 %v3529_v38  ;;  %1605 = vmatprep.mubr.bf16.mxu1 %v3530_v39  ;;  %v3616_v38 = vld [vmem:[%s4758_s0 + $0x2dc] ss:$24 sps:$4 sm:$0xff]  }
  0xb3   :  { %2816 = vmatprep.mubr.msk.bf16.mxu0 %vm1361_vm1, %v3534_v40  ;;  %v3617_v40 = vld [vmem:[%s4758_s0 + $0x2b4] ss:$24 sps:$4 sm:$0xff]  }
  0xb9   :  { %1606 = vmatmul.mubr.bf16.gmra.mrb[60].mxu1 %v3535_v41 }
  0xba   :  { %2016 = vmatmul.mubr.bf16.vlgmr.msra.gmra.mrb[0].mxu0 %v3532_v42  ;;  %1613 = vmatprep.mubr.bf16.mxu1 %v3536_v43  ;;  %v3614_v42 = vld [vmem:[%s4758_s0 + $0x2d8] ss:$24 sps:$4 sm:$0xff]  }
  0xbb   :  { %2817 = vmatprep.mubr.msk.bf16.mxu0 %vm1361_vm1, %v3538_v44  ;;  %v3619_v44 = vld [vmem:[%s4758_s0 + $0x2b0] ss:$24 sps:$4 sm:$0xff]  }
  0xc1   :  { %1614 = vmatmul.mubr.bf16.gmra.mrb[64].mxu1 %v3540_v45 }
  0xc2   :  { %2024 = vmatmul.mubr.bf16.gmra.mrb[4].mxu0 %v3541_v46  ;;  %1621 = vmatprep.mubr.bf16.mxu1 %v3542_v47  ;;  %v3620_v46 = vld [vmem:[%s4758_s0 + $0x30c] ss:$24 sps:$4 sm:$0xff]  }
  0xc3   :  { %2818 = vmatprep.mubr.msk.bf16.mxu0 %vm1361_vm1, %v3544_v48  ;;  %v3622_v48 = vld [vmem:[%s4758_s0 + $0x2e4] ss:$24 sps:$4 sm:$0xff]  }
  0xc9   :  { %1622 = vmatmul.mubr.bf16.gmra.mrb[68].mxu1 %v3546_v49 }
  0xca   :  { %2032 = vmatmul.mubr.bf16.gmra.mrb[8].mxu0 %v3547_v50  ;;  %1629 = vmatprep.mubr.bf16.mxu1 %v3548_v51  ;;  %v3624_v51 = vld [vmem:[%s4758_s0 + $0x308] ss:$24 sps:$4 sm:$0xff]  }
  0xcb   :  { %2819 = vmatprep.mubr.msk.bf16.mxu0 %vm1361_vm1, %v3550_v52  ;;  %v3625_v52 = vld [vmem:[%s4758_s0 + $0x2e0] ss:$24 sps:$4 sm:$0xff]  }
  0xd1   :  { %1630 = vmatmul.mubr.bf16.gmra.mrb[72].mxu1 %v3552_v53 }
  0xd2   :  { %2040 = vmatmul.mubr.bf16.gmra.mrb[12].mxu0 %v3553_v54  ;;  %1637 = vmatprep.mubr.bf16.mxu1 %v3554_v55  ;;  %v3626_v54 = vld [vmem:[%s4758_s0 + $0x33c] ss:$24 sps:$4 sm:$0xff]  }
  0xd3   :  { %2820 = vmatprep.mubr.msk.bf16.mxu0 %vm1361_vm1, %v3556_v56  ;;  %v3628_v56 = vld [vmem:[%s4758_s0 + $0x314] ss:$24 sps:$4 sm:$0xff]  }
  0xd9   :  { %1638 = vmatmul.mubr.bf16.gmra.mrb[76].mxu1 %v3558_v57 }
  0xda   :  { %2048 = vmatmul.mubr.bf16.gmra.mrb[16].mxu0 %v3559_v58  ;;  %1645 = vmatprep.mubr.bf16.mxu1 %v3560_v59  ;;  %v3630_v59 = vld [vmem:[%s4758_s0 + $0x338] ss:$24 sps:$4 sm:$0xff]  }
  0xdb   :  { %2821 = vmatprep.mubr.msk.bf16.mxu0 %vm1361_vm1, %v3562_v60  ;;  %v3631_v60 = vld [vmem:[%s4758_s0 + $0x310] ss:$24 sps:$4 sm:$0xff]  }
  0xe1   :  { %1646 = vmatmul.mubr.bf16.gmra.mrb[80].mxu1 %v3564_v61 }
  0xe2   :  { %2056 = vmatmul.mubr.bf16.gmra.mrb[20].mxu0 %v3565_v62  ;;  %1653 = vmatprep.mubr.bf16.mxu1 %v3566_v63  ;;  %v3632_v62 = vld [vmem:[%s4758_s0 + $0x36c] ss:$24 sps:$4 sm:$0xff]  }
  0xe3   :  { %2822 = vmatprep.mubr.msk.bf16.mxu0 %vm1361_vm1, %v3568_v1  ;;  %v3634_v1 = vld [vmem:[%s4758_s0 + $0x344] ss:$24 sps:$4 sm:$0xff]  }
  0xe9   :  { %1654 = vmatmul.mubr.bf16.gmra.mrb[84].mxu1 %v3570_v2 }
  0xea   :  { %2064 = vmatmul.mubr.bf16.gmra.mrb[24].mxu0 %v3571_v3  ;;  %1661 = vmatprep.mubr.bf16.mxu1 %v3572_v4  ;;  %v3636_v4 = vld [vmem:[%s4758_s0 + $0x368] ss:$24 sps:$4 sm:$0xff]  }
  0xeb   :  { %2823 = vmatprep.mubr.msk.bf16.mxu0 %vm1361_vm1, %v3574_v5  ;;  %v3637_v5 = vld [vmem:[%s4758_s0 + $0x340] ss:$24 sps:$4 sm:$0xff]  }
  0xf1   :  { %1662 = vmatmul.mubr.bf16.gmra.mrb[88].mxu1 %v3576_v6 }
  0xf2   :  { %2072 = vmatmul.mubr.bf16.gmra.mrb[28].mxu0 %v3577_v7  ;;  %1669 = vmatprep.mubr.bf16.mxu1 %v3578_v8  ;;  %v3638_v7 = vld [vmem:[%s4758_s0 + $0x39c] ss:$24 sps:$4 sm:$0xff]  }
  0xf3   :  { %2824 = vmatprep.mubr.msk.bf16.mxu0 %vm1361_vm1, %v3580_v9  ;;  %v3640_v9 = vld [vmem:[%s4758_s0 + $0x374] ss:$24 sps:$4 sm:$0xff]  }
  0xf9   :  { %1670 = vmatmul.mubr.bf16.gmra.mrb[92].mxu1 %v3582_v10 }
  0xfa   :  { %2080 = vmatmul.mubr.bf16.gmra.mrb[32].mxu0 %v3583_v11  ;;  %1677 = vmatprep.mubr.bf16.mxu1 %v3584_v12  ;;  %v3642_v12 = vld [vmem:[%s4758_s0 + $0x398] ss:$24 sps:$4 sm:$0xff]  }
  0xfb   :  { %2825 = vmatprep.mubr.msk.bf16.mxu0 %vm1361_vm1, %v3586_v13  ;;  %v3643_v13 = vld [vmem:[%s4758_s0 + $0x370] ss:$24 sps:$4 sm:$0xff]  }
 0x101   :  { %1678 = vmatmul.mubr.bf16.gmra.mrb[96].mxu1 %v3588_v14 }
 0x102   :  { %2088 = vmatmul.mubr.bf16.gmra.mrb[36].mxu0 %v3589_v15  ;;  %1685 = vmatprep.mubr.bf16.mxu1 %v3590_v16  ;;  %v3644_v15 = vld [vmem:[%s4758_s0 + $0x3cc] ss:$24 sps:$4 sm:$0xff]  }
 0x103   :  { %2826 = vmatprep.mubr.msk.bf16.mxu0 %vm1361_vm1, %v3592_v17  ;;  %v3646_v17 = vld [vmem:[%s4758_s0 + $0x3a4] ss:$24 sps:$4 sm:$0xff]  }
 0x109   :  { %1686 = vmatmul.mubr.bf16.gmra.mrb[100].mxu1 %v3594_v18 }
 0x10a   :  { %2096 = vmatmul.mubr.bf16.gmra.mrb[40].mxu0 %v3595_v19  ;;  %1693 = vmatprep.mubr.bf16.mxu1 %v3596_v20  ;;  %v3648_v20 = vld [vmem:[%s4758_s0 + $0x3c8] ss:$24 sps:$4 sm:$0xff]  }
 0x10b   :  { %2827 = vmatprep.mubr.msk.bf16.mxu0 %vm1361_vm1, %v3598_v0  ;;  %v3649_v0 = vld [vmem:[%s4758_s0 + $0x3a0] ss:$24 sps:$4 sm:$0xff]  }
 0x111   :  { %1694 = vmatmul.mubr.bf16.gmra.mrb[104].mxu1 %v3600_v21 }
 0x112   :  { %2104 = vmatmul.mubr.bf16.gmra.mrb[44].mxu0 %v3601_v22  ;;  %1701 = vmatprep.mubr.bf16.mxu1 %v3602_v23  ;;  %v3650_v22 = vld [vmem:[%s4758_s0 + $0x3fc] ss:$24 sps:$4 sm:$0xff]  }
 0x113   :  { %2828 = vmatprep.mubr.msk.bf16.mxu0 %vm1361_vm1, %v3604_v24  ;;  %v3652_v24 = vld [vmem:[%s4758_s0 + $0x3d4] ss:$24 sps:$4 sm:$0xff]  }
 0x114   :  { %v4309_v25 = vpop.f32.mrb[0].mxu1 }
 0x115   :  { %v1489_v26 = vpop.f32.mrb[1].mxu1 }
 0x116   :  { %v4317_v29 = vpop.f32.mrb[2].mxu1 }
 0x117   :  { %v1492_v31 = vpop.f32.mrb[3].mxu1 }
 0x119   :  { %1702 = vmatmul.mubr.bf16.gmra.mrb[108].mxu1 %v3606_v27 }
 0x11a   :  { %2112 = vmatmul.mubr.bf16.gmra.mrb[48].mxu0 %v3607_v28  ;;  %1709 = vmatprep.mubr.bf16.mxu1 %v3608_v30  ;;  %v3654_v28 = vld [vmem:[%s4758_s0 + $0x3f8] ss:$24 sps:$4 sm:$0xff]  }
 0x11b   :  { %2829 = vmatprep.mubr.msk.bf16.mxu0 %vm1361_vm1, %v3610_v32  ;;  %v3655_v30 = vld [vmem:[%s4758_s0 + $0x3d0] ss:$24 sps:$4 sm:$0xff]   ;;  %v3656_v32 = vld [vmem:[%s4758_s0 + $0x42c] ss:$24 sps:$4 sm:$0xff]  }
 0x11c   :  { %v4326_v33 = vpop.f32.mrb[4].mxu1 }
 0x11d   :  { %v1497_v34 = vpop.f32.mrb[5].mxu1 }
 0x11e   :  { %v4334_v37 = vpop.f32.mrb[6].mxu1 }
 0x11f   :  { %v1500_v39 = vpop.f32.mrb[7].mxu1 }
 0x120   :  { %v3660_v39 = vld [vmem:[%s4758_s0 + $0x428] ss:$24 sps:$4 sm:$0xff]  }
 0x121   :  { %1710 = vmatmul.mubr.bf16.gmra.mrb[112].mxu1 %v3612_v35  ;;  %v3658_v35 = vld [vmem:[%s4758_s0 + $0x404] ss:$24 sps:$4 sm:$0xff]  }
 0x122   :  { %2120 = vmatmul.mubr.bf16.gmra.mrb[52].mxu0 %v3613_v36  ;;  %1870 = vmatprep.mubr.bf16.mxu1 %v3616_v38 }
 0x123   :  { %2830 = vmatprep.mubr.msk.bf16.mxu0 %vm1361_vm1, %v3617_v40  ;;  %v3661_v40 = vld [vmem:[%s4758_s0 + $0x400] ss:$24 sps:$4 sm:$0xff]  }
 0x124   :  { %v4343_v41 = vpop.f32.mrb[8].mxu1 }
 0x125   :  { %v1505_v43 = vpop.f32.mrb[9].mxu1 }
 0x126   :  { %v4351_v45 = vpop.f32.mrb[10].mxu1  ;;  %v3662_v43 = vld [vmem:[%s4758_s0 + $0x45c] ss:$24 sps:$4 sm:$0xff]  }
 0x127   :  { %v1508_v47 = vpop.f32.mrb[11].mxu1 }
 0x129   :  { %1871 = vmatmul.mubr.bf16.vlgmr.msra.gmra.mrb[60].mxu1 %v3614_v42 }
 0x12a   :  { %2128 = vmatmul.mubr.bf16.gmra.mrb[56].mxu0 %v3619_v44  ;;  %1878 = vmatprep.mubr.bf16.mxu1 %v3620_v46  ;;  %v3664_v46 = vld [vmem:[%s4758_s0 + $0x434] ss:$24 sps:$4 sm:$0xff]  }
 0x12b   :  { %2831 = vmatprep.mubr.msk.bf16.mxu0 %vm1361_vm1, %v3622_v48 }
 0x12c   :  { %v4360_v49 = vpop.f32.mrb[12].mxu1 }
 0x12d   :  { %v1513_v50 = vpop.f32.mrb[13].mxu1 }
 0x12e   :  { %v4368_v53 = vpop.f32.mrb[14].mxu1  ;;  %v3666_v50 = vld [vmem:[%s4758_s0 + $0x458] ss:$24 sps:$4 sm:$0xff]  }
 0x12f   :  { %v1516_v55 = vpop.f32.mrb[15].mxu1 }
 0x131   :  { %1879 = vmatmul.mubr.bf16.gmra.mrb[64].mxu1 %v3624_v51  ;;  %v3667_v51 = vld [vmem:[%s4758_s0 + $0x430] ss:$24 sps:$4 sm:$0xff]  }
 0x132   :  { %2136 = vmatmul.mubr.bf16.gmra.mrb[60].mxu0 %v3625_v52  ;;  %1886 = vmatprep.mubr.bf16.mxu1 %v3626_v54  ;;  %v3668_v54 = vld [vmem:[%s4758_s0 + $0x48c] ss:$24 sps:$4 sm:$0xff]  }
 0x133   :  { %2832 = vmatprep.mubr.msk.bf16.mxu0 %vm1361_vm1, %v3628_v56  ;;  %v3670_v56 = vld [vmem:[%s4758_s0 + $0x464] ss:$24 sps:$4 sm:$0xff]  }
 0x134   :  { %v4377_v57 = vpop.f32.mrb[16].mxu1 }
 0x135   :  { %v1521_v58 = vpop.f32.mrb[17].mxu1 }
 0x136   :  { %v4385_v61 = vpop.f32.mrb[18].mxu1 }
 0x137   :  { %v1524_v63 = vpop.f32.mrb[19].mxu1 }
 0x139   :  { %1887 = vmatmul.mubr.bf16.gmra.mrb[68].mxu1 %v3630_v59 }
 0x13a   :  { %2144 = vmatmul.mubr.bf16.gmra.mrb[64].mxu0 %v3631_v60  ;;  %1894 = vmatprep.mubr.bf16.mxu1 %v3632_v62  ;;  %v3672_v60 = vld [vmem:[%s4758_s0 + $0x488] ss:$24 sps:$4 sm:$0xff]  }
 0x13b   :  { %2833 = vmatprep.mubr.msk.bf16.mxu0 %vm1361_vm1, %v3634_v1  ;;  %v3673_v62 = vld [vmem:[%s4758_s0 + $0x460] ss:$24 sps:$4 sm:$0xff]   ;;  %v3674_v1 = vld [vmem:[%s4758_s0 + $0x4bc] ss:$24 sps:$4 sm:$0xff]  }
 0x13c   :  { %v4394_v2 = vpop.f32.mrb[20].mxu1 }
 0x13d   :  { %v1529_v3 = vpop.f32.mrb[21].mxu1 }
 0x13e   :  { %v4402_v6 = vpop.f32.mrb[22].mxu1 }
 0x13f   :  { %v1532_v8 = vpop.f32.mrb[23].mxu1 }
 0x140   :  { %v3678_v8 = vld [vmem:[%s4758_s0 + $0x4b8] ss:$24 sps:$4 sm:$0xff]  }
 0x141   :  { %1895 = vmatmul.mubr.bf16.gmra.mrb[72].mxu1 %v3636_v4  ;;  %v3676_v4 = vld [vmem:[%s4758_s0 + $0x494] ss:$24 sps:$4 sm:$0xff]  }
 0x142   :  { %2152 = vmatmul.mubr.bf16.gmra.mrb[68].mxu0 %v3637_v5  ;;  %1902 = vmatprep.mubr.bf16.mxu1 %v3638_v7 }
 0x143   :  { %2834 = vmatprep.mubr.msk.bf16.mxu0 %vm1361_vm1, %v3640_v9  ;;  %v3679_v9 = vld [vmem:[%s4758_s0 + $0x490] ss:$24 sps:$4 sm:$0xff]  }
 0x144   :  { %v4411_v10 = vpop.f32.mrb[24].mxu1 }
 0x145   :  { %v1537_v11 = vpop.f32.mrb[25].mxu1 }
 0x146   :  { %v4419_v14 = vpop.f32.mrb[26].mxu1 }
 0x147   :  { %v1540_v16 = vpop.f32.mrb[27].mxu1 }
 0x149   :  { %1903 = vmatmul.mubr.bf16.gmra.mrb[76].mxu1 %v3642_v12  ;;  %v3680_v12 = vld [vmem:[%s4758_s0 + $0x4ec] ss:$24 sps:$4 sm:$0xff]  }
 0x14a   :  { %2160 = vmatmul.mubr.bf16.gmra.mrb[72].mxu0 %v3643_v13  ;;  %1910 = vmatprep.mubr.bf16.mxu1 %v3644_v15  ;;  %v3682_v15 = vld [vmem:[%s4758_s0 + $0x4c4] ss:$24 sps:$4 sm:$0xff]  }
 0x14b   :  { %2835 = vmatprep.mubr.msk.bf16.mxu0 %vm1361_vm1, %v3646_v17 }
 0x14c   :  { %v4428_v18 = vpop.f32.mrb[28].mxu1 }
 0x14d   :  { %v1545_v19 = vpop.f32.mrb[29].mxu1 }
 0x14e   :  { %v4436_v21 = vpop.f32.mrb[30].mxu1  ;;  %v3684_v19 = vld [vmem:[%s4758_s0 + $0x4e8] ss:$24 sps:$4 sm:$0xff]  }
 0x14f   :  { %v1548_v23 = vpop.f32.mrb[31].mxu1 }
 0x151   :  { %1911 = vmatmul.mubr.bf16.gmra.mrb[80].mxu1 %v3648_v20  ;;  %v3685_v20 = vld [vmem:[%s4758_s0 + $0x4c0] ss:$24 sps:$4 sm:$0xff]  }
 0x152   :  { %2168 = vmatmul.mubr.bf16.gmra.mrb[76].mxu0 %v3649_v0  ;;  %1918 = vmatprep.mubr.bf16.mxu1 %v3650_v22  ;;  %v3686_v22 = vld [vmem:[%s4758_s0 + $0x51c] ss:$24 sps:$4 sm:$0xff]  }
 0x153   :  { %2836 = vmatprep.mubr.msk.bf16.mxu0 %vm1361_vm1, %v3652_v24  ;;  %v3688_v24 = vld [vmem:[%s4758_s0 + $0x4f4] ss:$24 sps:$4 sm:$0xff]  }
 0x154   :  { %v4445_v26 = vpop.f32.mrb[32].mxu1 }
 0x155   :  { %v1553_v27 = vpop.f32.mrb[33].mxu1 }
 0x156   :  { %v4453_v31 = vpop.f32.mrb[34].mxu1 }
 0x157   :  { %v1556_v34 = vpop.f32.mrb[35].mxu1 }
 0x159   :  { %1919 = vmatmul.mubr.bf16.gmra.mrb[84].mxu1 %v3654_v28 }
 0x15a   :  { %2176 = vmatmul.mubr.bf16.gmra.mrb[80].mxu0 %v3655_v30  ;;  %1926 = vmatprep.mubr.bf16.mxu1 %v3656_v32  ;;  %v3690_v30 = vld [vmem:[%s4758_s0 + $0x518] ss:$24 sps:$4 sm:$0xff]  }
 0x15b   :  { %2837 = vmatprep.mubr.msk.bf16.mxu0 %vm1361_vm1, %v3658_v35  ;;  %v3691_v32 = vld [vmem:[%s4758_s0 + $0x4f0] ss:$24 sps:$4 sm:$0xff]   ;;  %v3692_v35 = vld [vmem:[%s4758_s0 + $0x54c] ss:$24 sps:$4 sm:$0xff]  }
 0x15c   :  { %v4462_v36 = vpop.f32.mrb[36].mxu1 }
 0x15d   :  { %v1561_v38 = vpop.f32.mrb[37].mxu1 }
 0x15e   :  { %v4470_v42 = vpop.f32.mrb[38].mxu1 }
 0x15f   :  { %v1564_v44 = vpop.f32.mrb[39].mxu1 }
 0x161   :  { %1927 = vmatmul.mubr.bf16.gmra.mrb[88].mxu1 %v3660_v39  ;;  %v3694_v39 = vld [vmem:[%s4758_s0 + $0x524] ss:$24 sps:$4 sm:$0xff]  }
 0x162   :  { %2184 = vmatmul.mubr.bf16.gmra.mrb[84].mxu0 %v3661_v40  ;;  %1934 = vmatprep.mubr.bf16.mxu1 %v3662_v43  ;;  %v4566_v40 = vld [vmem:[%s4759_s2] ss:$0 sm:$0xff] }
 0x163   :  { %2838 = vmatprep.mubr.msk.bf16.mxu0 %vm1361_vm1, %v3664_v46  ;;  %v1488_v43 = vadd.f32 %v4566_v40, %v4309_v25  ;;  %v3696_v46 = vld [vmem:[%s4758_s0 + $0x548] ss:$24 sps:$4 sm:$0xff]  }
 0x164   :  { %v4479_v47 = vpop.f32.mrb[40].mxu1 }
 0x165   :  { %v1569_v48 = vpop.f32.mrb[41].mxu1 }
 0x166   :  { %v4487_v52 = vpop.f32.mrb[42].mxu1  ;;  %v1491_v48 = vadd.f32 %v4566_v40, %v4317_v29  ;;  %v1496_v29 = vadd.f32 %v4566_v40, %v4326_v33 }
 0x167   :  { %v1572_v55 = vpop.f32.mrb[43].mxu1 }
 0x169   :  { %1935 = vmatmul.mubr.bf16.gmra.mrb[92].mxu1 %v3666_v50 }
 0x16a   :  { %2192 = vmatmul.mubr.bf16.gmra.mrb[88].mxu0 %v3667_v51  ;;  %1942 = vmatprep.mubr.bf16.mxu1 %v3668_v54  ;;  %v3697_v54 = vld [vmem:[%s4758_s0 + $0x520] ss:$24 sps:$4 sm:$0xff]  }
 0x16b   :  { %2839 = vmatprep.mubr.msk.bf16.mxu0 %vm1361_vm1, %v3670_v56  ;;  %v3698_v56 = vld [vmem:[%s4758_s0 + $0x554] ss:$24 sps:$4 sm:$0xff]  }
 0x16c   :  { %v4496_v58 = vpop.f32.mrb[44].mxu1 }
 0x16d   :  { %v1577_v59 = vpop.f32.mrb[45].mxu1 }
 0x16e   :  { %v4504_v63 = vpop.f32.mrb[46].mxu1 }
 0x16f   :  { %v1580_v3 = vpop.f32.mrb[47].mxu1 }
 0x171   :  { %1943 = vmatmul.mubr.bf16.gmra.mrb[96].mxu1 %v3672_v60 }
 0x172   :  { %2200 = vmatmul.mubr.bf16.gmra.mrb[92].mxu0 %v3673_v62  ;;  %1950 = vmatprep.mubr.bf16.mxu1 %v3674_v1 }
 0x173   :  { %2840 = vmatprep.mubr.msk.bf16.mxu0 %vm1361_vm1, %v3676_v4  ;;  %v1499_v4 = vadd.f32 %v4566_v40, %v4334_v37 }
 0x174   :  { %v4513_v5 = vpop.f32.mrb[48].mxu1 }
 0x175   :  { %v1585_v7 = vpop.f32.mrb[49].mxu1 }
 0x176   :  { %v4521_v11 = vpop.f32.mrb[50].mxu1 }
 0x177   :  { %v1588_v13 = vpop.f32.mrb[51].mxu1 }
 0x179   :  { %1951 = vmatmul.mubr.bf16.gmra.mrb[100].mxu1 %v3678_v8 }
 0x17a   :  { %2208 = vmatmul.mubr.bf16.gmra.mrb[96].mxu0 %v3679_v9  ;;  %1958 = vmatprep.mubr.bf16.mxu1 %v3680_v12  ;;  %v3700_v9 = vld [vmem:[%s4758_s0 + $0x550] ss:$24 sps:$4 sm:$0xff]  }
 0x17b   :  { %2841 = vmatprep.mubr.msk.bf16.mxu0 %vm1361_vm1, %v3682_v15 }
 0x17c   :  { %v4530_v16 = vpop.f32.mrb[52].mxu1 }
 0x17d   :  { %v1593_v17 = vpop.f32.mrb[53].mxu1 }
 0x17e   :  { %v4538_v0 = vpop.f32.mrb[54].mxu1 }
 0x17f   :  { %v1596_v23 = vpop.f32.mrb[55].mxu1 }
 0x181   :  { %1959 = vmatmul.mubr.bf16.gmra.mrb[104].mxu1 %v3684_v19  ;;  %v1504_v19 = vadd.f32 %v4566_v40, %v4343_v41 }
 0x182   :  { %2216 = vmatmul.mubr.bf16.gmra.mrb[100].mxu0 %v3685_v20  ;;  %1966 = vmatprep.mubr.bf16.mxu1 %v3686_v22  ;;  %v1507_v22 = vadd.f32 %v4566_v40, %v4351_v45 }
 0x183   :  { %2842 = vmatprep.mubr.msk.bf16.mxu0 %vm1361_vm1, %v3688_v24 }
 0x184   :  { %v4547_v27 = vpop.f32.mrb[56].mxu1 }
 0x185   :  { %v1601_v28 = vpop.f32.mrb[57].mxu1 }
 0x186   :  { %v4555_v34 = vpop.f32.mrb[58].mxu1 }
 0x187   :  { %v1604_v38 = vpop.f32.mrb[59].mxu1 }
 0x189   :  { %1967 = vmatmul.mubr.bf16.gmra.mrb[108].mxu1 %v3690_v30 }
 0x18a   :  { %2224 = vmatmul.mubr.bf16.gmra.mrb[104].mxu0 %v3691_v32  ;;  %1974 = vmatprep.mubr.bf16.mxu1 %v3692_v35 }
 0x18b   :  { %2843 = vmatprep.mubr.msk.bf16.mxu0 %vm1361_vm1, %v3694_v39  ;;  %v1512_v39 = vadd.f32 %v4566_v40, %v4360_v49 }
 0x18d   :  { %v2017_v44 = vpop.f32.mrb[0].mxu0 }
 0x18e   :  { %v3167_v50 = vadd.f32 %v2017_v44, %v1488_v43  ;;  %v2019_v51 = vpop.f32.mrb[1].mxu0  ;;  %v1515_v44 = vadd.f32 %v4566_v40, %v4368_v53 }
 0x18f   :  { %v2020_v55 = vpop.f32.mrb[2].mxu0 }
 0x190   :  { %v3169_v25 = vadd.f32 %v2020_v55, %v1491_v48  ;;  %v2022_v59 = vpop.f32.mrb[3].mxu0  ;;  %v2248_v60 = vmax.f32 %v3167_v50, 0.0 }
 0x191   :  { %1975 = vmatmul.mubr.bf16.gmra.mrb[112].mxu1 %v3696_v46  ;;  %v1523_v59 = vadd.f32 %v4566_v40, %v4385_v61 }
 0x192   :  { %v2249_v62 = vmax.f32 %v3169_v25, 0.0  ;;  %2232 = vmatmul.mubr.bf16.gmra.mrb[108].mxu0 %v3697_v54 }
 0x193   :  { %2844 = vmatprep.mubr.msk.bf16.mxu0 %vm1361_vm1, %v3698_v56  ;;  %v1520_v56 = vadd.f32 %v4566_v40, %v4377_v57 }
 0x194   :  { %v2964_v1 = vpack.c.bf16 %v2249_v62, %v2248_v60 }
 0x195   :  { %v2025_v3 = vpop.f32.mrb[4].mxu0 }
 0x196   :  { %2965 = vst [vmem:[%s4760_s3] sm:$0xff] %v2964_v1   ;;  %v3171_v7 = vadd.f32 %v2025_v3, %v1496_v29  ;;  %v2027_v8 = vpop.f32.mrb[5].mxu0 }
 0x197   :  { %v2028_v12 = vpop.f32.mrb[6].mxu0 }
 0x198   :  { %v3173_v13 = vadd.f32 %v2028_v12, %v1499_v4  ;;  %v2030_v15 = vpop.f32.mrb[7].mxu0  ;;  %v2250_v17 = vmax.f32 %v3171_v7, 0.0  ;;  %v1528_v7 = vadd.f32 %v4566_v40, %v4394_v2 }
 0x19a   :  { %v2251_v33 = vmax.f32 %v3173_v13, 0.0  ;;  %2240 = vmatmul.mubr.bf16.gmra.mrb[112].mxu0 %v3700_v9  ;;  %v1531_v9 = vadd.f32 %v4566_v40, %v4402_v6 }
 0x19c   :  { %v2969_v37 = vpack.c.bf16 %v2251_v33, %v2250_v17 }
 0x19d   :  { %v2033_v20 = vpop.f32.mrb[8].mxu0 }
 0x19e   :  { %3106 = vst [vmem:[%s4760_s3 + $0x8] sm:$0xff] %v2969_v37   ;;  %v3175_v23 = vadd.f32 %v2033_v20, %v1504_v19  ;;  %v2035_v24 = vpop.f32.mrb[9].mxu0  ;;  %v1536_v37 = vadd.f32 %v4566_v40, %v4411_v10 }
 0x19f   :  { %v2036_v28 = vpop.f32.mrb[10].mxu0 }
 0x1a0   :  { %v3177_v30 = vadd.f32 %v2036_v28, %v1507_v22  ;;  %v2038_v32 = vpop.f32.mrb[11].mxu0  ;;  %v2252_v35 = vmax.f32 %v3175_v23, 0.0  ;;  %v1539_v22 = vadd.f32 %v4566_v40, %v4419_v14 }
 0x1a2   :  { %v2253_v38 = vmax.f32 %v3177_v30, 0.0 }
 0x1a4   :  { %v2974_v41 = vpack.c.bf16 %v2253_v38, %v2252_v35  ;;  %v1544_v38 = vadd.f32 %v4566_v40, %v4428_v18 }
 0x1a5   :  { %v2041_v43 = vpop.f32.mrb[12].mxu0 }
 0x1a6   :  { %3107 = vst [vmem:[%s4760_s3 + $0x10] sm:$0xff] %v2974_v41   ;;  %v3179_v45 = vadd.f32 %v2041_v43, %v1512_v39  ;;  %v2043_v46 = vpop.f32.mrb[13].mxu0  ;;  %v1547_v41 = vadd.f32 %v4566_v40, %v4436_v21 }
 0x1a7   :  { %v2044_v48 = vpop.f32.mrb[14].mxu0 }
 0x1a8   :  { %v3181_v50 = vadd.f32 %v2044_v48, %v1515_v44  ;;  %v2046_v51 = vpop.f32.mrb[15].mxu0  ;;  %v2254_v54 = vmax.f32 %v3179_v45, 0.0 }
 0x1a9   :  { %v1552_v51 = vadd.f32 %v4566_v40, %v4445_v26 }
 0x1aa   :  { %v2255_v55 = vmax.f32 %v3181_v50, 0.0 }
 0x1ac   :  { %v2979_v49 = vpack.c.bf16 %v2255_v55, %v2254_v54  ;;  %v1555_v55 = vadd.f32 %v4566_v40, %v4453_v31 }
 0x1ad   :  { %v2049_v25 = vpop.f32.mrb[16].mxu0 }
 0x1ae   :  { %3108 = vst [vmem:[%s4760_s3 + $0x18] sm:$0xff] %v2979_v49   ;;  %v3183_v53 = vadd.f32 %v2049_v25, %v1520_v56  ;;  %v2051_v60 = vpop.f32.mrb[17].mxu0 }
 0x1af   :  { %v2052_v62 = vpop.f32.mrb[18].mxu0 }
 0x1b0   :  { %v3185_v29 = vadd.f32 %v2052_v62, %v1523_v59  ;;  %v2054_v1 = vpop.f32.mrb[19].mxu0  ;;  %v2256_v3 = vmax.f32 %v3183_v53, 0.0  ;;  %v1560_v62 = vadd.f32 %v4566_v40, %v4462_v36 }
 0x1b1   :  { %v1563_v1 = vadd.f32 %v4566_v40, %v4470_v42 }
 0x1b2   :  { %v2257_v4 = vmax.f32 %v3185_v29, 0.0 }
 0x1b4   :  { %v2984_v57 = vpack.c.bf16 %v2257_v4, %v2256_v3 }
 0x1b5   :  { %v2057_v8 = vpop.f32.mrb[20].mxu0 }
 0x1b6   :  { %3109 = vst [vmem:[%s4760_s3 + $0x20] sm:$0xff] %v2984_v57   ;;  %v3187_v61 = vadd.f32 %v2057_v8, %v1528_v7  ;;  %v2059_v12 = vpop.f32.mrb[21].mxu0 }
 0x1b7   :  { %v2060_v13 = vpop.f32.mrb[22].mxu0 }
 0x1b8   :  { %v3189_v15 = vadd.f32 %v2060_v13, %v1531_v9  ;;  %v2062_v17 = vpop.f32.mrb[23].mxu0  ;;  %v2258_v33 = vmax.f32 %v3187_v61, 0.0  ;;  %v1568_v61 = vadd.f32 %v4566_v40, %v4479_v47  ;;  %v1571_v13 = vadd.f32 %v4566_v40, %v4487_v52 }
 0x1ba   :  { %v2259_v19 = vmax.f32 %v3189_v15, 0.0 }
 0x1bc   :  { %v2989_v2 = vpack.c.bf16 %v2259_v19, %v2258_v33 }
 0x1bd   :  { %v2065_v20 = vpop.f32.mrb[24].mxu0 }
 0x1be   :  { %3110 = vst [vmem:[%s4760_s3 + $0x28] sm:$0xff] %v2989_v2   ;;  %v3191_v6 = vadd.f32 %v2065_v20, %v1536_v37  ;;  %v2067_v23 = vpop.f32.mrb[25].mxu0  ;;  %v1576_v20 = vadd.f32 %v4566_v40, %v4496_v58 }
 0x1bf   :  { %v2068_v24 = vpop.f32.mrb[26].mxu0 }
 0x1c0   :  { %v3193_v28 = vadd.f32 %v2068_v24, %v1539_v22  ;;  %v2070_v30 = vpop.f32.mrb[27].mxu0  ;;  %v2260_v32 = vmax.f32 %v3191_v6, 0.0  ;;  %v1579_v6 = vadd.f32 %v4566_v40, %v4504_v63 }
 0x1c2   :  { %v2261_v35 = vmax.f32 %v3193_v28, 0.0 }
 0x1c4   :  { %v2994_v10 = vpack.c.bf16 %v2261_v35, %v2260_v32 }
 0x1c5   :  { %v2073_v39 = vpop.f32.mrb[28].mxu0 }
 0x1c6   :  { %3111 = vst [vmem:[%s4760_s3 + $0x30] sm:$0xff] %v2994_v10   ;;  %v3195_v14 = vadd.f32 %v2073_v39, %v1544_v38  ;;  %v2075_v43 = vpop.f32.mrb[29].mxu0  ;;  %v1584_v38 = vadd.f32 %v4566_v40, %v4513_v5  ;;  %v1587_v39 = vadd.f32 %v4566_v40, %v4521_v11 }
 0x1c7   :  { %v2076_v44 = vpop.f32.mrb[30].mxu0 }
 0x1c8   :  { %v3197_v45 = vadd.f32 %v2076_v44, %v1547_v41  ;;  %v2078_v46 = vpop.f32.mrb[31].mxu0  ;;  %v2262_v48 = vmax.f32 %v3195_v14, 0.0 }
 0x1ca   :  { %v2263_v50 = vmax.f32 %v3197_v45, 0.0 }
 0x1cc   :  { %v2999_v18 = vpack.c.bf16 %v2263_v50, %v2262_v48  ;;  %v1592_v48 = vadd.f32 %v4566_v40, %v4530_v16 }
 0x1cd   :  { %v2081_v54 = vpop.f32.mrb[32].mxu0 }
 0x1ce   :  { %3112 = vst [vmem:[%s4760_s3 + $0x38] sm:$0xff] %v2999_v18   ;;  %v3199_v21 = vadd.f32 %v2081_v54, %v1552_v51  ;;  %v2083_v56 = vpop.f32.mrb[33].mxu0  ;;  %v1595_v51 = vadd.f32 %v4566_v40, %v4538_v0  ;;  %v1603_v0 = vadd.f32 %v4566_v40, %v4555_v34 }
 0x1cf   :  { %v2084_v49 = vpop.f32.mrb[34].mxu0 }
 0x1d0   :  { %v3201_v25 = vadd.f32 %v2084_v49, %v1555_v55  ;;  %v2086_v59 = vpop.f32.mrb[35].mxu0  ;;  %v2264_v53 = vmax.f32 %v3199_v21, 0.0 }
 0x1d2   :  { %v2265_v60 = vmax.f32 %v3201_v25, 0.0  ;;  %v1600_v25 = vadd.f32 %v4566_v40, %v4547_v27 }
 0x1d4   :  { %v3004_v26 = vpack.c.bf16 %v2265_v60, %v2264_v53 }
 0x1d5   :  { %v2089_v29 = vpop.f32.mrb[36].mxu0 }
 0x1d6   :  { %3113 = vst [vmem:[%s4760_s3 + $0x40] sm:$0xff] %v3004_v26   ;;  %v3203_v31 = vadd.f32 %v2089_v29, %v1560_v62  ;;  %v2091_v3 = vpop.f32.mrb[37].mxu0 }
 0x1d7   :  { %v2092_v4 = vpop.f32.mrb[38].mxu0 }
 0x1d8   :  { %v3205_v7 = vadd.f32 %v2092_v4, %v1563_v1  ;;  %v2094_v57 = vpop.f32.mrb[39].mxu0  ;;  %v2266_v8 = vmax.f32 %v3203_v31, 0.0 }
 0x1da   :  { %v2267_v9 = vmax.f32 %v3205_v7, 0.0 }
 0x1dc   :  { %v3009_v36 = vpack.c.bf16 %v2267_v9, %v2266_v8 }
 0x1dd   :  { %v2097_v12 = vpop.f32.mrb[40].mxu0 }
 0x1de   :  { %3114 = vst [vmem:[%s4760_s3 + $0x48] sm:$0xff] %v3009_v36   ;;  %v3207_v42 = vadd.f32 %v2097_v12, %v1568_v61  ;;  %v2099_v15 = vpop.f32.mrb[41].mxu0 }
 0x1df   :  { %v2100_v17 = vpop.f32.mrb[42].mxu0 }
 0x1e0   :  { %v3209_v33 = vadd.f32 %v2100_v17, %v1571_v13  ;;  %v2102_v19 = vpop.f32.mrb[43].mxu0  ;;  %v2268_v37 = vmax.f32 %v3207_v42, 0.0 }
 0x1e2   :  { %v2269_v2 = vmax.f32 %v3209_v33, 0.0 }
 0x1e4   :  { %v3014_v47 = vpack.c.bf16 %v2269_v2, %v2268_v37 }
 0x1e5   :  { %v2105_v22 = vpop.f32.mrb[44].mxu0 }
 0x1e6   :  { %3115 = vst [vmem:[%s4760_s3 + $0x50] sm:$0xff] %v3014_v47   ;;  %v3211_v52 = vadd.f32 %v2105_v22, %v1576_v20  ;;  %v2107_v23 = vpop.f32.mrb[45].mxu0 }
 0x1e7   :  { %v2108_v24 = vpop.f32.mrb[46].mxu0 }
 0x1e8   :  { %v3213_v28 = vadd.f32 %v2108_v24, %v1579_v6  ;;  %v2110_v30 = vpop.f32.mrb[47].mxu0  ;;  %v2270_v32 = vmax.f32 %v3211_v52, 0.0 }
 0x1ea   :  { %v2271_v35 = vmax.f32 %v3213_v28, 0.0 }
 0x1ec   :  { %v3019_v58 = vpack.c.bf16 %v2271_v35, %v2270_v32 }
 0x1ed   :  { %v2113_v10 = vpop.f32.mrb[48].mxu0 }
 0x1ee   :  { %3116 = vst [vmem:[%s4760_s3 + $0x58] sm:$0xff] %v3019_v58   ;;  %v3215_v63 = vadd.f32 %v2113_v10, %v1584_v38  ;;  %v2115_v41 = vpop.f32.mrb[49].mxu0 }
 0x1ef   :  { %v2116_v14 = vpop.f32.mrb[50].mxu0 }
 0x1f0   :  { %v3217_v43 = vadd.f32 %v2116_v14, %v1587_v39  ;;  %v2118_v44 = vpop.f32.mrb[51].mxu0  ;;  %v2272_v45 = vmax.f32 %v3215_v63, 0.0 }
 0x1f2   :  { %v2273_v46 = vmax.f32 %v3217_v43, 0.0 }
 0x1f4   :  { %v3024_v5 = vpack.c.bf16 %v2273_v46, %v2272_v45 }
 0x1f5   :  { %v2121_v50 = vpop.f32.mrb[52].mxu0 }
 0x1f6   :  { %3117 = vst [vmem:[%s4760_s3 + $0x60] sm:$0xff] %v3024_v5   ;;  %v3219_v11 = vadd.f32 %v2121_v50, %v1592_v48  ;;  %v2123_v18 = vpop.f32.mrb[53].mxu0 }
 0x1f7   :  { %v2124_v54 = vpop.f32.mrb[54].mxu0 }
 0x1f8   :  { %v3221_v55 = vadd.f32 %v2124_v54, %v1595_v51  ;;  %v2126_v21 = vpop.f32.mrb[55].mxu0  ;;  %v2274_v56 = vmax.f32 %v3219_v11, 0.0 }
 0x1fa   :  { %v2275_v49 = vmax.f32 %v3221_v55, 0.0 }
 0x1fc   :  { %v3029_v16 = vpack.c.bf16 %v2275_v49, %v2274_v56  ;;  %v1872_v59 = vpop.f32.mrb[60].mxu1 }
 0x1fd   :  { %v2129_v53 = vpop.f32.mrb[56].mxu0  ;;  %v1874_v60 = vpop.f32.mrb[61].mxu1  ;;  %v3226_v57 = vadd.f32 %v4566_v40, %v1872_v59 }
 0x1fe   :  { %3118 = vst [vmem:[%s4760_s3 + $0x68] sm:$0xff] %v3029_v16   ;;  %v3223_v62 = vadd.f32 %v2129_v53, %v1600_v25  ;;  %v2131_v26 = vpop.f32.mrb[57].mxu0  ;;  %v1875_v29 = vpop.f32.mrb[62].mxu1 }
 0x1ff   :  { %v2132_v1 = vpop.f32.mrb[58].mxu0  ;;  %v1877_v31 = vpop.f32.mrb[63].mxu1  ;;  %v3228_v34 = vadd.f32 %v4566_v40, %v1875_v29 }
 0x200   :  { %v3225_v3 = vadd.f32 %v2132_v1, %v1603_v0  ;;  %v2134_v4 = vpop.f32.mrb[59].mxu0  ;;  %v2276_v7 = vmax.f32 %v3223_v62, 0.0 }
 0x202   :  { %v2277_v27 = vmax.f32 %v3225_v3, 0.0 }
 0x204   :  { %v3034_v8 = vpack.c.bf16 %v2277_v27, %v2276_v7  ;;  %v1880_v9 = vpop.f32.mrb[64].mxu1 }
 0x205   :  { %v2137_v61 = vpop.f32.mrb[60].mxu0  ;;  %v1882_v36 = vpop.f32.mrb[65].mxu1  ;;  %v3230_v20 = vadd.f32 %v4566_v40, %v1880_v9 }
 0x206   :  { %3119 = vst [vmem:[%s4760_s3 + $0x70] sm:$0xff] %v3034_v8   ;;  %v3227_v12 = vadd.f32 %v3226_v57, %v2137_v61  ;;  %v2139_v13 = vpop.f32.mrb[61].mxu0  ;;  %v1883_v42 = vpop.f32.mrb[66].mxu1 }
 0x207   :  { %v2140_v15 = vpop.f32.mrb[62].mxu0  ;;  %v1885_v17 = vpop.f32.mrb[67].mxu1  ;;  %v3232_v23 = vadd.f32 %v4566_v40, %v1883_v42 }
 0x208   :  { %v3229_v33 = vadd.f32 %v3228_v34, %v2140_v15  ;;  %v2142_v19 = vpop.f32.mrb[63].mxu0  ;;  %v2278_v37 = vmax.f32 %v3227_v12, 0.0 }
 0x20a   :  { %v2279_v2 = vmax.f32 %v3229_v33, 0.0 }
 0x20c   :  { %v3039_v47 = vpack.c.bf16 %v2279_v2, %v2278_v37  ;;  %v1888_v22 = vpop.f32.mrb[68].mxu1 }
 0x20d   :  { %v2145_v6 = vpop.f32.mrb[64].mxu0  ;;  %v1890_v52 = vpop.f32.mrb[69].mxu1  ;;  %v3234_v63 = vadd.f32 %v4566_v40, %v1888_v22 }
 0x20e   :  { %3120 = vst [vmem:[%s4760_s3 + $0x78] sm:$0xff] %v3039_v47   ;;  %v3231_v24 = vadd.f32 %v3230_v20, %v2145_v6  ;;  %v2147_v28 = vpop.f32.mrb[65].mxu0  ;;  %v1891_v30 = vpop.f32.mrb[70].mxu1 }
 0x20f   :  { %v2148_v32 = vpop.f32.mrb[66].mxu0  ;;  %v1893_v35 = vpop.f32.mrb[71].mxu1  ;;  %v3236_v45 = vadd.f32 %v4566_v40, %v1891_v30 }
 0x210   :  { %v3233_v38 = vadd.f32 %v3232_v23, %v2148_v32  ;;  %v2150_v58 = vpop.f32.mrb[67].mxu0  ;;  %v2280_v10 = vmax.f32 %v3231_v24, 0.0 }
 0x212   :  { %v2281_v39 = vmax.f32 %v3233_v38, 0.0 }
 0x214   :  { %v3044_v41 = vpack.c.bf16 %v2281_v39, %v2280_v10  ;;  %v1896_v14 = vpop.f32.mrb[72].mxu1 }
 0x215   :  { %v2153_v43 = vpop.f32.mrb[68].mxu0  ;;  %v1898_v44 = vpop.f32.mrb[73].mxu1  ;;  %v3238_v21 = vadd.f32 %v4566_v40, %v1896_v14 }
 0x216   :  { %3121 = vst [vmem:[%s4760_s3 + $0x80] sm:$0xff] %v3044_v41   ;;  %v3235_v46 = vadd.f32 %v3234_v63, %v2153_v43  ;;  %v2155_v48 = vpop.f32.mrb[69].mxu0  ;;  %v1899_v5 = vpop.f32.mrb[74].mxu1 }
 0x217   :  { %v2156_v50 = vpop.f32.mrb[70].mxu0  ;;  %v1901_v51 = vpop.f32.mrb[75].mxu1  ;;  %v3240_v59 = vadd.f32 %v4566_v40, %v1899_v5 }
 0x218   :  { %v3237_v11 = vadd.f32 %v3236_v45, %v2156_v50  ;;  %v2158_v18 = vpop.f32.mrb[71].mxu0  ;;  %v2282_v54 = vmax.f32 %v3235_v46, 0.0 }
 0x21a   :  { %v2283_v55 = vmax.f32 %v3237_v11, 0.0 }
 0x21c   :  { %v3049_v56 = vpack.c.bf16 %v2283_v55, %v2282_v54  ;;  %v1904_v49 = vpop.f32.mrb[76].mxu1 }
 0x21d   :  { %v2161_v25 = vpop.f32.mrb[72].mxu0  ;;  %v1906_v16 = vpop.f32.mrb[77].mxu1  ;;  %v3242_v4 = vadd.f32 %v4566_v40, %v1904_v49 }
 0x21e   :  { %3122 = vst [vmem:[%s4760_s3 + $0x88] sm:$0xff] %v3049_v56   ;;  %v3239_v53 = vadd.f32 %v3238_v21, %v2161_v25  ;;  %v2163_v60 = vpop.f32.mrb[73].mxu0  ;;  %v1907_v0 = vpop.f32.mrb[78].mxu1 }
 0x21f   :  { %v2164_v62 = vpop.f32.mrb[74].mxu0  ;;  %v1909_v26 = vpop.f32.mrb[79].mxu1  ;;  %v3244_v9 = vadd.f32 %v4566_v40, %v1907_v0 }
 0x220   :  { %v3241_v29 = vadd.f32 %v3240_v59, %v2164_v62  ;;  %v2166_v1 = vpop.f32.mrb[75].mxu0  ;;  %v2284_v31 = vmax.f32 %v3239_v53, 0.0 }
 0x222   :  { %v2285_v3 = vmax.f32 %v3241_v29, 0.0 }
 0x224   :  { %v3054_v7 = vpack.c.bf16 %v2285_v3, %v2284_v31  ;;  %v1912_v27 = vpop.f32.mrb[80].mxu1 }
 0x225   :  { %v2169_v57 = vpop.f32.mrb[76].mxu0  ;;  %v1914_v8 = vpop.f32.mrb[81].mxu1  ;;  %v3246_v19 = vadd.f32 %v4566_v40, %v1912_v27 }
 0x226   :  { %3123 = vst [vmem:[%s4760_s3 + $0x90] sm:$0xff] %v3054_v7   ;;  %v3243_v61 = vadd.f32 %v3242_v4, %v2169_v57  ;;  %v2171_v36 = vpop.f32.mrb[77].mxu0  ;;  %v1915_v34 = vpop.f32.mrb[82].mxu1 }
 0x227   :  { %v2172_v12 = vpop.f32.mrb[78].mxu0  ;;  %v1917_v13 = vpop.f32.mrb[83].mxu1  ;;  %v3248_v22 = vadd.f32 %v4566_v40, %v1915_v34 }
 0x228   :  { %v3245_v42 = vadd.f32 %v3244_v9, %v2172_v12  ;;  %v2174_v15 = vpop.f32.mrb[79].mxu0  ;;  %v2286_v17 = vmax.f32 %v3243_v61, 0.0 }
 0x22a   :  { %v2287_v33 = vmax.f32 %v3245_v42, 0.0 }
 0x22c   :  { %v3059_v37 = vpack.c.bf16 %v2287_v33, %v2286_v17  ;;  %v1920_v2 = vpop.f32.mrb[84].mxu1 }
 0x22d   :  { %v2177_v20 = vpop.f32.mrb[80].mxu0  ;;  %v1922_v47 = vpop.f32.mrb[85].mxu1  ;;  %v3250_v58 = vadd.f32 %v4566_v40, %v1920_v2 }
 0x22e   :  { %3124 = vst [vmem:[%s4760_s3 + $0x98] sm:$0xff] %v3059_v37   ;;  %v3247_v6 = vadd.f32 %v3246_v19, %v2177_v20  ;;  %v2179_v52 = vpop.f32.mrb[81].mxu0  ;;  %v1923_v23 = vpop.f32.mrb[86].mxu1 }
 0x22f   :  { %v2180_v24 = vpop.f32.mrb[82].mxu0  ;;  %v1925_v28 = vpop.f32.mrb[87].mxu1  ;;  %v3252_v14 = vadd.f32 %v4566_v40, %v1923_v23 }
 0x230   :  { %v3249_v30 = vadd.f32 %v3248_v22, %v2180_v24  ;;  %v2182_v32 = vpop.f32.mrb[83].mxu0  ;;  %v2288_v35 = vmax.f32 %v3247_v6, 0.0 }
 0x232   :  { %v2289_v38 = vmax.f32 %v3249_v30, 0.0 }
 0x234   :  { %v3064_v10 = vpack.c.bf16 %v2289_v38, %v2288_v35  ;;  %v1928_v39 = vpop.f32.mrb[88].mxu1 }
 0x235   :  { %v2185_v63 = vpop.f32.mrb[84].mxu0  ;;  %v1930_v41 = vpop.f32.mrb[89].mxu1  ;;  %v3254_v18 = vadd.f32 %v4566_v40, %v1928_v39 }
 0x236   :  { %3125 = vst [vmem:[%s4760_s3 + $0xa0] sm:$0xff] %v3064_v10   ;;  %v3251_v43 = vadd.f32 %v3250_v58, %v2185_v63  ;;  %v2187_v44 = vpop.f32.mrb[85].mxu0  ;;  %v1931_v45 = vpop.f32.mrb[90].mxu1 }
 0x237   :  { %v2188_v46 = vpop.f32.mrb[86].mxu0  ;;  %v1933_v48 = vpop.f32.mrb[91].mxu1  ;;  %v3256_v49 = vadd.f32 %v4566_v40, %v1931_v45 }
 0x238   :  { %v3253_v5 = vadd.f32 %v3252_v14, %v2188_v46  ;;  %v2190_v50 = vpop.f32.mrb[87].mxu0  ;;  %v2290_v51 = vmax.f32 %v3251_v43, 0.0 }
 0x23a   :  { %v2291_v11 = vmax.f32 %v3253_v5, 0.0 }
 0x23c   :  { %v3069_v54 = vpack.c.bf16 %v2291_v11, %v2290_v51  ;;  %v1936_v55 = vpop.f32.mrb[92].mxu1 }
 0x23d   :  { %v2193_v21 = vpop.f32.mrb[88].mxu0  ;;  %v1938_v56 = vpop.f32.mrb[93].mxu1  ;;  %v3258_v1 = vadd.f32 %v4566_v40, %v1936_v55 }
 0x23e   :  { %3126 = vst [vmem:[%s4760_s3 + $0xa8] sm:$0xff] %v3069_v54   ;;  %v3255_v25 = vadd.f32 %v3254_v18, %v2193_v21  ;;  %v2195_v16 = vpop.f32.mrb[89].mxu0  ;;  %v1939_v59 = vpop.f32.mrb[94].mxu1 }
 0x23f   :  { %v2196_v53 = vpop.f32.mrb[90].mxu0  ;;  %v1941_v60 = vpop.f32.mrb[95].mxu1  ;;  %v3260_v27 = vadd.f32 %v4566_v40, %v1939_v59 }
 0x240   :  { %v3257_v0 = vadd.f32 %v3256_v49, %v2196_v53  ;;  %v2198_v62 = vpop.f32.mrb[91].mxu0  ;;  %v2292_v26 = vmax.f32 %v3255_v25, 0.0 }
 0x242   :  { %v2293_v29 = vmax.f32 %v3257_v0, 0.0 }
 0x244   :  { %v3074_v31 = vpack.c.bf16 %v2293_v29, %v2292_v26  ;;  %v1944_v3 = vpop.f32.mrb[96].mxu1 }
 0x245   :  { %v2201_v4 = vpop.f32.mrb[92].mxu0  ;;  %v1946_v7 = vpop.f32.mrb[97].mxu1  ;;  %v3262_v15 = vadd.f32 %v4566_v40, %v1944_v3 }
 0x246   :  { %3127 = vst [vmem:[%s4760_s3 + $0xb0] sm:$0xff] %v3074_v31   ;;  %v3259_v57 = vadd.f32 %v3258_v1, %v2201_v4  ;;  %v2203_v8 = vpop.f32.mrb[93].mxu0  ;;  %v1947_v9 = vpop.f32.mrb[98].mxu1 }
 0x247   :  { %v2204_v61 = vpop.f32.mrb[94].mxu0  ;;  %v1949_v36 = vpop.f32.mrb[99].mxu1  ;;  %v3264_v2 = vadd.f32 %v4566_v40, %v1947_v9 }
 0x248   :  { %v3261_v34 = vadd.f32 %v3260_v27, %v2204_v61  ;;  %v2206_v12 = vpop.f32.mrb[95].mxu0  ;;  %v2294_v13 = vmax.f32 %v3259_v57, 0.0 }
 0x24a   :  { %v2295_v42 = vmax.f32 %v3261_v34, 0.0 }
 0x24c   :  { %v3079_v17 = vpack.c.bf16 %v2295_v42, %v2294_v13  ;;  %v1952_v33 = vpop.f32.mrb[100].mxu1 }
 0x24d   :  { %v2209_v19 = vpop.f32.mrb[96].mxu0  ;;  %v1954_v37 = vpop.f32.mrb[101].mxu1  ;;  %v3266_v32 = vadd.f32 %v4566_v40, %v1952_v33 }
 0x24e   :  { %3128 = vst [vmem:[%s4760_s3 + $0xb8] sm:$0xff] %v3079_v17   ;;  %v3263_v20 = vadd.f32 %v3262_v15, %v2209_v19  ;;  %v2211_v47 = vpop.f32.mrb[97].mxu0  ;;  %v1955_v22 = vpop.f32.mrb[102].mxu1 }
 0x24f   :  { %v2212_v6 = vpop.f32.mrb[98].mxu0  ;;  %v1957_v52 = vpop.f32.mrb[103].mxu1  ;;  %v3268_v39 = vadd.f32 %v4566_v40, %v1955_v22 }
 0x250   :  { %v3265_v23 = vadd.f32 %v3264_v2, %v2212_v6  ;;  %v2214_v24 = vpop.f32.mrb[99].mxu0  ;;  %v2296_v28 = vmax.f32 %v3263_v20, 0.0 }
 0x252   :  { %v2297_v30 = vmax.f32 %v3265_v23, 0.0 }
 0x254   :  { %v3084_v35 = vpack.c.bf16 %v2297_v30, %v2296_v28  ;;  %v1960_v38 = vpop.f32.mrb[104].mxu1 }
 0x255   :  { %v2217_v58 = vpop.f32.mrb[100].mxu0  ;;  %v1962_v10 = vpop.f32.mrb[105].mxu1  ;;  %v3270_v50 = vadd.f32 %v4566_v40, %v1960_v38 }
 0x256   :  { %3129 = vst [vmem:[%s4760_s3 + $0xc0] sm:$0xff] %v3084_v35   ;;  %v3267_v63 = vadd.f32 %v3266_v32, %v2217_v58  ;;  %v2219_v41 = vpop.f32.mrb[101].mxu0  ;;  %v1963_v14 = vpop.f32.mrb[106].mxu1 }
 0x257   :  { %v2220_v43 = vpop.f32.mrb[102].mxu0  ;;  %v1965_v44 = vpop.f32.mrb[107].mxu1  ;;  %v3272_v55 = vadd.f32 %v4566_v40, %v1963_v14 }
 0x258   :  { %v3269_v45 = vadd.f32 %v3268_v39, %v2220_v43  ;;  %v2222_v46 = vpop.f32.mrb[103].mxu0  ;;  %v2298_v48 = vmax.f32 %v3267_v63, 0.0 }
 0x25a   :  { %v2299_v5 = vmax.f32 %v3269_v45, 0.0 }
 0x25c   :  { %v3089_v51 = vpack.c.bf16 %v2299_v5, %v2298_v48  ;;  %v1968_v11 = vpop.f32.mrb[108].mxu1 }
 0x25d   :  { %v2225_v18 = vpop.f32.mrb[104].mxu0  ;;  %v1970_v54 = vpop.f32.mrb[109].mxu1  ;;  %v3274_v62 = vadd.f32 %v4566_v40, %v1968_v11 }
 0x25e   :  { %3130 = vst [vmem:[%s4760_s3 + $0xc8] sm:$0xff] %v3089_v51   ;;  %v3271_v21 = vadd.f32 %v3270_v50, %v2225_v18  ;;  %v2227_v56 = vpop.f32.mrb[105].mxu0  ;;  %v1971_v49 = vpop.f32.mrb[110].mxu1 }
 0x25f   :  { %v2228_v25 = vpop.f32.mrb[106].mxu0  ;;  %v1973_v16 = vpop.f32.mrb[111].mxu1  ;;  %v3276_v3 = vadd.f32 %v4566_v40, %v1971_v49 }
 0x260   :  { %v3273_v59 = vadd.f32 %v3272_v55, %v2228_v25  ;;  %v2230_v53 = vpop.f32.mrb[107].mxu0  ;;  %v2300_v60 = vmax.f32 %v3271_v21, 0.0 }
 0x262   :  { %v2301_v0 = vmax.f32 %v3273_v59, 0.0 }
 0x264   :  { %v3094_v26 = vpack.c.bf16 %v2301_v0, %v2300_v60  ;;  %v1976_v29 = vpop.f32.mrb[112].mxu1 }
 0x265   :  { %v2233_v1 = vpop.f32.mrb[108].mxu0  ;;  %v1978_v31 = vpop.f32.mrb[113].mxu1  ;;  %v3278_v12 = vadd.f32 %v4566_v40, %v1976_v29 }
 0x266   :  { %3131 = vst [vmem:[%s4760_s3 + $0xd0] sm:$0xff] %v3094_v26   ;;  %v3275_v4 = vadd.f32 %v3274_v62, %v2233_v1  ;;  %v2235_v7 = vpop.f32.mrb[109].mxu0  ;;  %v1979_v27 = vpop.f32.mrb[114].mxu1 }
 0x267   :  { %v2236_v57 = vpop.f32.mrb[110].mxu0  ;;  %v1981_v8 = vpop.f32.mrb[115].mxu1  ;;  %v3280_v15 = vadd.f32 %v4566_v40, %v1979_v27 }
 0x268   :  { %v3277_v9 = vadd.f32 %v3276_v3, %v2236_v57  ;;  %v2238_v61 = vpop.f32.mrb[111].mxu0  ;;  %v2302_v36 = vmax.f32 %v3275_v4, 0.0 }
 0x26a   :  { %v2303_v34 = vmax.f32 %v3277_v9, 0.0 }
 0x26c   :  { %v3099_v13 = vpack.c.bf16 %v2303_v34, %v2302_v36 }
 0x26d   :  { %v2241_v42 = vpop.f32.mrb[112].mxu0 }
 0x26e   :  { %3132 = vst [vmem:[%s4760_s3 + $0xd8] sm:$0xff] %v3099_v13   ;;  %v3279_v17 = vadd.f32 %v3278_v12, %v2241_v42  ;;  %v2243_v33 = vpop.f32.mrb[113].mxu0 }
 0x26f   :  { %v2244_v19 = vpop.f32.mrb[114].mxu0 }
 0x270   :  { %v3281_v37 = vadd.f32 %v3280_v15, %v2244_v19  ;;  %v2246_v2 = vpop.f32.mrb[115].mxu0  ;;  %v2304_v20 = vmax.f32 %v3279_v17, 0.0 }
 0x272   :  { %v2305_v47 = vmax.f32 %v3281_v37, 0.0 }
 0x274   :  { %v3104_v22 = vpack.c.bf16 %v2305_v47, %v2304_v20 }
 0x276   :  { %3133 = vst [vmem:[%s4760_s3 + $0xe0] sm:$0xff] %v3104_v22  }

// kernel: vae_forward.16
= control target key start
LH: loop header
LB: loop body
LE: loop exit
PB: predicated region body
PF: predicated region fallthrough
CT: control target
= control target key end

     0   :  { %s2072_s12 = smov 0   ;;  %s2074_s13 = smov 0   ;;  %s2341_s0 = inlined_call_operand.vmem [shape: bf16[1792,432], index: 0, kind: input, shape index: {}]   ;;  %s2342_s1 = inlined_call_operand.vmem [shape: bf16[432,128], index: 1, kind: input, shape index: {}]   ;;  %s2343_s2 = inlined_call_operand.vmem [shape: f32[1,128], index: 2, kind: input, shape index: {}]   ;;  %s2344_s3 = inlined_call_operand.vmem [shape: bf16[1792,128], index: 3, kind: output, shape index: {}]  }
   0x1   :  { %s2076_s14 = smov 0  }
   0x2 LB: > { %s25_s15 = sadd.s32 1, %s2045_s13  ;;  %p1491_p0 = scmp.ge.s32.totalorder %s2049_s14, 1  ;;  %s2049_s14 = sphi %s2076_s14, %s13_s14   ;;  %s2045_s13 = sphi %s2074_s13, %s2346_s13   ;;  %s2041_s12 = sphi %s2072_s12, %s2345_s12  }
   0x3   : > { %p27_p1 = scmp.ge.s32.totalorder %s25_s15, 7  ;;  %p170_p2 = scmp.lt.s32.totalorder %s2049_s14, 8 }
   0x5   : > { %s2348_s15 = smov (%p27_p1, %s25_s15), 0  ;;  %p171_p3 = pnand %p1491_p0, %p170_p2 }
   0x6   : > { %v1904_v0 = vld [vmem:[%s2342_s1 + $0x80] sm:$0xff] (!%p171_p3)   ;;  %v2051_v1 = vmov (!%p171_p3), 0   ;;  %v1907_v4 = vld [vmem:[%s2342_s1 + $0x88] sm:$0xff] (!%p171_p3)   ;;  %v1910_v7 = vld [vmem:[%s2342_s1 + $0x90] sm:$0xff] (!%p171_p3)   ;;  %s1492_s9 = sshll.u32 (!%p171_p3), %s2041_s12, 5  ;;  %vm820_vm0 = vcmask (!%p171_p3), 392192  }
   0x7   : > { %174 = sbr.rel (%p171_p3) target bundleno = 392 (0x188), region = 32  ;;  %1030 = vmatprep.subr.bf16.mxu1 (!%p171_p3), %v2051_v1  ;;  %v1905_v2 = vld [vmem:[%s2342_s1 + $0x40] sm:$0xff] (!%p171_p3)   ;;  %v1908_v5 = vld [vmem:[%s2342_s1 + $0x48] sm:$0xff] (!%p171_p3)   ;;  %v1911_v8 = vld [vmem:[%s2342_s1 + $0x50] sm:$0xff] (!%p171_p3)   ;;  %p206_p4 = scmp.lt.s32.totalorder (!%p171_p3), %s1492_s9, 223 }
   0x8   : > { %1031 = vmatpush1.bf16.msra.mxu1 (!%p171_p3), %v1904_v0  ;;  %v1906_v3 = vld [vmem:[%s2342_s1] sm:$0xff] (!%p171_p3)   ;;  %1767 = vmatprep.subr.bf16.mxu0 (!%p171_p3), %v1905_v2  ;;  %v1909_v6 = vld [vmem:[%s2342_s1 + $0x8] sm:$0xff] (!%p171_p3)   ;;  %v1912_v9 = vld [vmem:[%s2342_s1 + $0x10] sm:$0xff] (!%p171_p3)  }
   0x9   : > { %1032 = vmatprep.subr.bf16.mxu1 (!%p171_p3), %v2051_v1  ;;  %1768 = vmatpush3.bf16.msra.mxu0 (!%p171_p3), %v1906_v3  ;;  %v1913_v10 = vld [vmem:[%s2342_s1 + $0x98] sm:$0xff] (!%p171_p3)   ;;  %v1917_v13 = vld [vmem:[%s2342_s1 + $0x60] sm:$0xff] (!%p171_p3)   ;;  %v1920_v16 = vld [vmem:[%s2342_s1 + $0x68] sm:$0xff] (!%p171_p3)  }
   0xa   : > { %1769 = vmatprep.subr.bf16.mxu0 (!%p171_p3), %v1908_v5  ;;  %v1914_v11 = vld [vmem:[%s2342_s1 + $0x58] sm:$0xff] (!%p171_p3)   ;;  %v1916_v14 = vld [vmem:[%s2342_s1 + $0xa0] sm:$0xff] (!%p171_p3)   ;;  %v1919_v17 = vld [vmem:[%s2342_s1 + $0xa8] sm:$0xff] (!%p171_p3)  }
   0xb   : > { %v1915_v12 = vld [vmem:[%s2342_s1 + $0x18] sm:$0xff] (!%p171_p3)   ;;  %v1918_v15 = vld [vmem:[%s2342_s1 + $0x20] sm:$0xff] (!%p171_p3)   ;;  %v1921_v18 = vld [vmem:[%s2342_s1 + $0x28] sm:$0xff] (!%p171_p3)  }
   0xc   : > { %1033 = vmatpush1.bf16.msra.mxu1 (!%p171_p3), %v1907_v4  ;;  %v1923_v19 = vld [vmem:[%s2342_s1 + $0x70] sm:$0xff] (!%p171_p3)   ;;  %v1925_v22 = vld [vmem:[%s2342_s1 + $0xb8] sm:$0xff] (!%p171_p3)   ;;  %v1928_v26 = vld [vmem:[%s2342_s1 + $0xc0] sm:$0xff] (!%p171_p3)  }
   0xd   : > { %1034 = vmatprep.subr.bf16.mxu1 (!%p171_p3), %v2051_v1  ;;  %1770 = vmatpush3.bf16.msra.mxu0 (!%p171_p3), %v1909_v6  ;;  %v1922_v20 = vld [vmem:[%s2342_s1 + $0xb0] sm:$0xff] (!%p171_p3)   ;;  %v1926_v23 = vld [vmem:[%s2342_s1 + $0x78] sm:$0xff] (!%p171_p3)   ;;  %v1932_v30 = vld [vmem:[%s2342_s1 + $0xc8] sm:$0xff] (!%p171_p3)  }
   0xe   : > { %1771 = vmatprep.subr.bf16.mxu0 %v1911_v8  ;;  %s2350_s9 = smov (!%p206_p4, %s1492_s9), 223  ;;  %v1924_v21 = vld [vmem:[%s2342_s1 + $0x30] sm:$0xff]   ;;  %v1927_v25 = vld [vmem:[%s2342_s1 + $0x38] sm:$0xff]  }
   0xf   : > { %s1639_s29 = sshll.u32 %s2350_s9, 4  ;;  %v1933_v31 = vld [vmem:[%s2342_s1 + $0xd0] sm:$0xff]   ;;  %s1496_s30 = sshll.u32 %s2350_s9, 2 }
  0x10   : > { %1035 = vmatpush1.bf16.msra.mxu1 %v1910_v7  ;;  %s2169_s16 = scalar_lea.vmem %s2341_s0, %s1639_s29  ;;  %s2285_s6 = scalar_lea.vmem %s2344_s3, %s1496_s30 }
  0x11   : > { %1036 = vmatprep.subr.bf16.mxu1 %v2051_v1  ;;  %1772 = vmatpush3.bf16.msra.mxu0 %v1912_v9  ;;  %v1931_v24 = vld [vmem:[%s2169_s16 + $0x4] ss:$16 sps:$4 sm:$0xff]   ;;  %v1938_v27 = vld [vmem:[%s2169_s16 + $0xc] ss:$16 sps:$4 sm:$0xff]   ;;  %v1929_v28 = vld [vmem:[%s2169_s16] ss:$16 sps:$4 sm:$0xff]  }
  0x12   : > { %1773 = vmatprep.subr.bf16.mxu0 %v1914_v11  ;;  %901 = vmatprep.mubr.bf16.mxu0 %v1931_v24  ;;  %v1934_v29 = vld [vmem:[%s2169_s16 + $0x24] ss:$16 sps:$4 sm:$0xff]   ;;  %v1939_v32 = vld [vmem:[%s2169_s16 + $0x20] ss:$16 sps:$4 sm:$0xff]   ;;  %v1936_v34 = vld [vmem:[%s2169_s16 + $0x8] ss:$16 sps:$4 sm:$0xff]  }
  0x13   : > { %1589 = vmatprep.mubr.msk.bf16.mxu1 %vm820_vm0, %v1938_v27  ;;  %v1940_v33 = vld [vmem:[%s2169_s16 + $0x44] ss:$16 sps:$4 sm:$0xff]   ;;  %v1942_v35 = vld [vmem:[%s2169_s16 + $0x2c] ss:$16 sps:$4 sm:$0xff]   ;;  %v1944_v36 = vld [vmem:[%s2169_s16 + $0x40] ss:$16 sps:$4 sm:$0xff]  }
  0x14   : > { %1037 = vmatpush1.bf16.msra.mxu1 %v1913_v10  ;;  %v1946_v37 = vld [vmem:[%s2169_s16 + $0x64] ss:$16 sps:$4 sm:$0xff]   ;;  %v1945_v38 = vld [vmem:[%s2169_s16 + $0x28] ss:$16 sps:$4 sm:$0xff]   ;;  %v1948_v39 = vld [vmem:[%s2169_s16 + $0x4c] ss:$16 sps:$4 sm:$0xff]  }
  0x15   : > { %1038 = vmatprep.subr.bf16.mxu1 %v2051_v1  ;;  %1774 = vmatpush3.bf16.msra.mxu0 %v1915_v12  ;;  %v1950_v40 = vld [vmem:[%s2169_s16 + $0x60] ss:$16 sps:$4 sm:$0xff]   ;;  %v1952_v41 = vld [vmem:[%s2169_s16 + $0x84] ss:$16 sps:$4 sm:$0xff]   ;;  %v1951_v42 = vld [vmem:[%s2169_s16 + $0x48] ss:$16 sps:$4 sm:$0xff]  }
  0x16   : > { %1775 = vmatprep.subr.bf16.mxu0 %v1917_v13  ;;  %v1954_v43 = vld [vmem:[%s2169_s16 + $0x6c] ss:$16 sps:$4 sm:$0xff]   ;;  %v1956_v44 = vld [vmem:[%s2169_s16 + $0x80] ss:$16 sps:$4 sm:$0xff]   ;;  %v1958_v45 = vld [vmem:[%s2169_s16 + $0xa4] ss:$16 sps:$4 sm:$0xff]  }
  0x17   : > { %v1957_v46 = vld [vmem:[%s2169_s16 + $0x68] ss:$16 sps:$4 sm:$0xff]   ;;  %v1960_v47 = vld [vmem:[%s2169_s16 + $0x8c] ss:$16 sps:$4 sm:$0xff]   ;;  %v1962_v48 = vld [vmem:[%s2169_s16 + $0xa0] ss:$16 sps:$4 sm:$0xff]  }
  0x18   : > { %1039 = vmatpush1.bf16.msra.mxu1 %v1916_v14  ;;  %v1964_v49 = vld [vmem:[%s2169_s16 + $0xc4] ss:$16 sps:$4 sm:$0xff]   ;;  %v1963_v50 = vld [vmem:[%s2169_s16 + $0x88] ss:$16 sps:$4 sm:$0xff]   ;;  %v1966_v51 = vld [vmem:[%s2169_s16 + $0xac] ss:$16 sps:$4 sm:$0xff]  }
  0x19   : > { %1040 = vmatprep.subr.bf16.mxu1 %v2051_v1  ;;  %1776 = vmatpush3.bf16.msra.mxu0 %v1918_v15  ;;  %v1968_v52 = vld [vmem:[%s2169_s16 + $0xc0] ss:$16 sps:$4 sm:$0xff]   ;;  %v1970_v53 = vld [vmem:[%s2169_s16 + $0xe4] ss:$16 sps:$4 sm:$0xff]   ;;  %v1969_v54 = vld [vmem:[%s2169_s16 + $0xa8] ss:$16 sps:$4 sm:$0xff]  }
  0x1a   : > { %1777 = vmatprep.subr.bf16.mxu0 %v1920_v16  ;;  %v1972_v55 = vld [vmem:[%s2169_s16 + $0xcc] ss:$16 sps:$4 sm:$0xff]   ;;  %v1974_v56 = vld [vmem:[%s2169_s16 + $0xe0] ss:$16 sps:$4 sm:$0xff]   ;;  %v1976_v57 = vld [vmem:[%s2169_s16 + $0x104] ss:$16 sps:$4 sm:$0xff]  }
  0x1b   : > { %v1975_v58 = vld [vmem:[%s2169_s16 + $0xc8] ss:$16 sps:$4 sm:$0xff]   ;;  %v1978_v59 = vld [vmem:[%s2169_s16 + $0xec] ss:$16 sps:$4 sm:$0xff]   ;;  %v1980_v60 = vld [vmem:[%s2169_s16 + $0x100] ss:$16 sps:$4 sm:$0xff]  }
  0x1c   : > { %1041 = vmatpush1.bf16.msra.mxu1 %v1919_v17  ;;  %v1982_v61 = vld [vmem:[%s2169_s16 + $0x124] ss:$16 sps:$4 sm:$0xff]   ;;  %v1981_v62 = vld [vmem:[%s2169_s16 + $0xe8] ss:$16 sps:$4 sm:$0xff]   ;;  %v1984_v63 = vld [vmem:[%s2169_s16 + $0x10c] ss:$16 sps:$4 sm:$0xff]  }
  0x1d   : > { %1042 = vmatprep.subr.bf16.mxu1 %v2051_v1  ;;  %1778 = vmatpush3.bf16.msra.mxu0 %v1921_v18  ;;  %v1986_v0 = vld [vmem:[%s2169_s16 + $0x120] ss:$16 sps:$4 sm:$0xff]   ;;  %v1987_v2 = vld [vmem:[%s2169_s16 + $0x108] ss:$16 sps:$4 sm:$0xff]   ;;  %v1990_v3 = vld [vmem:[%s2169_s16 + $0x12c] ss:$16 sps:$4 sm:$0xff]  }
  0x1e   : > { %1779 = vmatprep.subr.bf16.mxu0 %v1923_v19  ;;  %v1992_v4 = vld [vmem:[%s2169_s16 + $0x140] ss:$16 sps:$4 sm:$0xff]   ;;  %v1994_v5 = vld [vmem:[%s2169_s16 + $0x164] ss:$16 sps:$4 sm:$0xff]   ;;  %v1993_v6 = vld [vmem:[%s2169_s16 + $0x128] ss:$16 sps:$4 sm:$0xff]  }
  0x1f   : > { %v1996_v7 = vld [vmem:[%s2169_s16 + $0x14c] ss:$16 sps:$4 sm:$0xff]   ;;  %v1998_v8 = vld [vmem:[%s2169_s16 + $0x160] ss:$16 sps:$4 sm:$0xff]   ;;  %v2000_v9 = vld [vmem:[%s2169_s16 + $0x184] ss:$16 sps:$4 sm:$0xff]  }
  0x20   : > { %1043 = vmatpush1.bf16.msra.mxu1 %v1922_v20  ;;  %v1999_v10 = vld [vmem:[%s2169_s16 + $0x148] ss:$16 sps:$4 sm:$0xff]   ;;  %v2002_v11 = vld [vmem:[%s2169_s16 + $0x16c] ss:$16 sps:$4 sm:$0xff]   ;;  %v2004_v12 = vld [vmem:[%s2169_s16 + $0x180] ss:$16 sps:$4 sm:$0xff]  }
  0x21   : > { %1044 = vmatprep.subr.bf16.mxu1 %v2051_v1  ;;  %1780 = vmatpush3.bf16.msra.mxu0 %v1924_v21  ;;  %v2006_v13 = vld [vmem:[%s2169_s16 + $0x1a4] ss:$16 sps:$4 sm:$0xff]   ;;  %v2005_v14 = vld [vmem:[%s2169_s16 + $0x168] ss:$16 sps:$4 sm:$0xff]   ;;  %v2008_v15 = vld [vmem:[%s2169_s16 + $0x18c] ss:$16 sps:$4 sm:$0xff]  }
  0x22   : > { %1781 = vmatprep.subr.bf16.mxu0 %v1926_v23  ;;  %v2010_v16 = vld [vmem:[%s2169_s16 + $0x1a0] ss:$16 sps:$4 sm:$0xff]   ;;  %v2012_v17 = vld [vmem:[%s2169_s16 + $0x1c4] ss:$16 sps:$4 sm:$0xff]   ;;  %v2011_v18 = vld [vmem:[%s2169_s16 + $0x188] ss:$16 sps:$4 sm:$0xff]  }
  0x23   : > { %v2014_v19 = vld [vmem:[%s2169_s16 + $0x1ac] ss:$16 sps:$4 sm:$0xff]   ;;  %v2016_v20 = vld [vmem:[%s2169_s16 + $0x1c0] ss:$16 sps:$4 sm:$0xff]   ;;  %v2018_v21 = vld [vmem:[%s2169_s16 + $0x1e4] ss:$16 sps:$4 sm:$0xff]  }
  0x24   : > { %1045 = vmatpush1.bf16.msra.mxu1 %v1925_v22  ;;  %v2017_v22 = vld [vmem:[%s2169_s16 + $0x1a8] ss:$16 sps:$4 sm:$0xff]   ;;  %v2020_v23 = vld [vmem:[%s2169_s16 + $0x1cc] ss:$16 sps:$4 sm:$0xff]   ;;  %v2022_v24 = vld [vmem:[%s2169_s16 + $0x1e0] ss:$16 sps:$4 sm:$0xff]  }
  0x25   : > { %1046 = vmatprep.subr.bf16.mxu1 %v2051_v1  ;;  %1782 = vmatpush3.bf16.msra.mxu0 %v1927_v25  ;;  %v2023_v25 = vld [vmem:[%s2169_s16 + $0x1c8] ss:$16 sps:$4 sm:$0xff]  }
  0x26   : > { %v2026_v27 = vld [vmem:[%s2169_s16 + $0x1e8] ss:$16 sps:$4 sm:$0xff]  }
  0x28   : > { %1047 = vmatpush1.bf16.msra.mxu1 %v1928_v26  ;;  %902 = vmatmul.mubr.bf16.vlgmr.msra.gmra.mrb[0].mxu0 %v1929_v28  ;;  %v2024_v26 = vld [vmem:[%s2169_s16 + $0x1ec] ss:$16 sps:$4 sm:$0xff]  }
  0x29   : > { %1048 = vmatprep.subr.bf16.mxu1 %v2051_v1  ;;  %909 = vmatprep.mubr.bf16.mxu0 %v1934_v29 }
  0x2c   : > { %1049 = vmatpush1.bf16.msra.mxu1 %v1932_v30 }
  0x2d   : > { %1050 = vmatprep.subr.bf16.mxu1 %v2051_v1  ;;  %v1988_v1 = vld [vmem:[%s2169_s16 + $0x144] ss:$16 sps:$4 sm:$0xff]  }
  0x30   : > { %1051 = vmatpush1.bf16.msra.mxu1 %v1933_v31  ;;  %910 = vmatmul.mubr.bf16.gmra.mrb[4].mxu0 %v1939_v32 }
  0x31   : > { %917 = vmatprep.mubr.bf16.mxu0 %v1940_v33 }
  0x33   : > { %1063 = vmatmul.mubr.bf16.vlgmr.msra.gmra.mrb[0].mxu1 %v1936_v34  ;;  %v2276_v34 = vld [vmem:[%s2343_s2] ss:$0 sm:$0xff] }
  0x34   : > { %1590 = vmatprep.mubr.msk.bf16.mxu1 %vm820_vm0, %v1942_v35 }
  0x38   : > { %918 = vmatmul.mubr.bf16.gmra.mrb[8].mxu0 %v1944_v36 }
  0x39   : > { %925 = vmatprep.mubr.bf16.mxu0 %v1946_v37 }
  0x3b   : > { %1071 = vmatmul.mubr.bf16.gmra.mrb[4].mxu1 %v1945_v38 }
  0x3c   : > { %1591 = vmatprep.mubr.msk.bf16.mxu1 %vm820_vm0, %v1948_v39 }
  0x40   : > { %926 = vmatmul.mubr.bf16.gmra.mrb[12].mxu0 %v1950_v40 }
  0x41   : > { %933 = vmatprep.mubr.bf16.mxu0 %v1952_v41 }
  0x43   : > { %1079 = vmatmul.mubr.bf16.gmra.mrb[8].mxu1 %v1951_v42 }
  0x44   : > { %1592 = vmatprep.mubr.msk.bf16.mxu1 %vm820_vm0, %v1954_v43 }
  0x48   : > { %934 = vmatmul.mubr.bf16.gmra.mrb[16].mxu0 %v1956_v44 }
  0x49   : > { %941 = vmatprep.mubr.bf16.mxu0 %v1958_v45 }
  0x4b   : > { %1087 = vmatmul.mubr.bf16.gmra.mrb[12].mxu1 %v1957_v46 }
  0x4c   : > { %1593 = vmatprep.mubr.msk.bf16.mxu1 %vm820_vm0, %v1960_v47 }
  0x50   : > { %942 = vmatmul.mubr.bf16.gmra.mrb[20].mxu0 %v1962_v48 }
  0x51   : > { %949 = vmatprep.mubr.bf16.mxu0 %v1964_v49 }
  0x53   : > { %1095 = vmatmul.mubr.bf16.gmra.mrb[16].mxu1 %v1963_v50 }
  0x54   : > { %1594 = vmatprep.mubr.msk.bf16.mxu1 %vm820_vm0, %v1966_v51 }
  0x58   : > { %950 = vmatmul.mubr.bf16.gmra.mrb[24].mxu0 %v1968_v52 }
  0x59   : > { %957 = vmatprep.mubr.bf16.mxu0 %v1970_v53 }
  0x5b   : > { %1103 = vmatmul.mubr.bf16.gmra.mrb[20].mxu1 %v1969_v54 }
  0x5c   : > { %1595 = vmatprep.mubr.msk.bf16.mxu1 %vm820_vm0, %v1972_v55 }
  0x60   : > { %958 = vmatmul.mubr.bf16.gmra.mrb[28].mxu0 %v1974_v56 }
  0x61   : > { %965 = vmatprep.mubr.bf16.mxu0 %v1976_v57 }
  0x63   : > { %1111 = vmatmul.mubr.bf16.gmra.mrb[24].mxu1 %v1975_v58 }
  0x64   : > { %1596 = vmatprep.mubr.msk.bf16.mxu1 %vm820_vm0, %v1978_v59 }
  0x68   : > { %966 = vmatmul.mubr.bf16.gmra.mrb[32].mxu0 %v1980_v60 }
  0x69   : > { %973 = vmatprep.mubr.bf16.mxu0 %v1982_v61 }
  0x6b   : > { %1119 = vmatmul.mubr.bf16.gmra.mrb[28].mxu1 %v1981_v62 }
  0x6c   : > { %1597 = vmatprep.mubr.msk.bf16.mxu1 %vm820_vm0, %v1984_v63 }
  0x70   : > { %974 = vmatmul.mubr.bf16.gmra.mrb[36].mxu0 %v1986_v0 }
  0x71   : > { %981 = vmatprep.mubr.bf16.mxu0 %v1988_v1 }
  0x73   : > { %1127 = vmatmul.mubr.bf16.gmra.mrb[32].mxu1 %v1987_v2 }
  0x74   : > { %1598 = vmatprep.mubr.msk.bf16.mxu1 %vm820_vm0, %v1990_v3 }
  0x78   : > { %982 = vmatmul.mubr.bf16.gmra.mrb[40].mxu0 %v1992_v4 }
  0x79   : > { %989 = vmatprep.mubr.bf16.mxu0 %v1994_v5 }
  0x7b   : > { %1135 = vmatmul.mubr.bf16.gmra.mrb[36].mxu1 %v1993_v6 }
  0x7c   : > { %1599 = vmatprep.mubr.msk.bf16.mxu1 %vm820_vm0, %v1996_v7 }
  0x80   : > { %990 = vmatmul.mubr.bf16.gmra.mrb[44].mxu0 %v1998_v8 }
  0x81   : > { %997 = vmatprep.mubr.bf16.mxu0 %v2000_v9 }
  0x83   : > { %1143 = vmatmul.mubr.bf16.gmra.mrb[40].mxu1 %v1999_v10 }
  0x84   : > { %1600 = vmatprep.mubr.msk.bf16.mxu1 %vm820_vm0, %v2002_v11 }
  0x88   : > { %998 = vmatmul.mubr.bf16.gmra.mrb[48].mxu0 %v2004_v12 }
  0x89   : > { %1005 = vmatprep.mubr.bf16.mxu0 %v2006_v13 }
  0x8b   : > { %1151 = vmatmul.mubr.bf16.gmra.mrb[44].mxu1 %v2005_v14 }
  0x8c   : > { %1601 = vmatprep.mubr.msk.bf16.mxu1 %vm820_vm0, %v2008_v15 }
  0x90   : > { %1006 = vmatmul.mubr.bf16.gmra.mrb[52].mxu0 %v2010_v16 }
  0x91   : > { %1013 = vmatprep.mubr.bf16.mxu0 %v2012_v17 }
  0x93   : > { %1159 = vmatmul.mubr.bf16.gmra.mrb[48].mxu1 %v2011_v18 }
  0x94   : > { %1602 = vmatprep.mubr.msk.bf16.mxu1 %vm820_vm0, %v2014_v19 }
  0x98   : > { %1014 = vmatmul.mubr.bf16.gmra.mrb[56].mxu0 %v2016_v20 }
  0x99   : > { %1021 = vmatprep.mubr.bf16.mxu0 %v2018_v21 }
  0x9b   : > { %1167 = vmatmul.mubr.bf16.gmra.mrb[52].mxu1 %v2017_v22 }
  0x9c   : > { %1603 = vmatprep.mubr.msk.bf16.mxu1 %vm820_vm0, %v2020_v23 }
  0xa0   : > { %1022 = vmatmul.mubr.bf16.gmra.mrb[60].mxu0 %v2022_v24 }
  0xa3   : > { %1175 = vmatmul.mubr.bf16.gmra.mrb[56].mxu1 %v2023_v25 }
  0xa4   : > { %1604 = vmatprep.mubr.msk.bf16.mxu1 %vm820_vm0, %v2024_v26 }
  0xab   : > { %1183 = vmatmul.mubr.bf16.gmra.mrb[60].mxu1 %v2026_v27 }
  0xfb   : > { %v1783_v28 = vpop.f32.mrb[0].mxu0 }
  0xfc   : > { %v1784_v29 = vpop.f32.mrb[1].mxu0 }
  0xfd   : > { %v1785_v30 = vadd.f32 %v1784_v29, %v1783_v28  ;;  %v1786_v31 = vpop.f32.mrb[2].mxu0 }
  0xfe   : > { %v1787_v32 = vpop.f32.mrb[3].mxu0 }
  0xff   : > { %v1788_v33 = vadd.f32 %v1787_v32, %v1786_v31  ;;  %v904_v35 = vadd.f32 %v1785_v30, %v2276_v34 }
 0x101   : > { %v907_v43 = vadd.f32 %v1788_v33, %v2276_v34 }
 0x103   : > { %v1789_v36 = vpop.f32.mrb[4].mxu0 }
 0x104   : > { %v1790_v37 = vpop.f32.mrb[5].mxu0 }
 0x105   : > { %v1791_v39 = vadd.f32 %v1790_v37, %v1789_v36  ;;  %v1792_v40 = vpop.f32.mrb[6].mxu0 }
 0x106   : > { %v1064_v38 = vpop.f32.mrb[0].mxu1  ;;  %v1793_v44 = vpop.f32.mrb[7].mxu0 }
 0x107   : > { %v1065_v41 = vadd.f32 %v1064_v38, %v904_v35  ;;  %v1066_v42 = vpop.f32.mrb[1].mxu1  ;;  %v1794_v46 = vadd.f32 %v1793_v44, %v1792_v40  ;;  %v912_v51 = vadd.f32 %v1791_v39, %v2276_v34 }
 0x108   : > { %v1067_v45 = vpop.f32.mrb[2].mxu1 }
 0x109   : > { %v1068_v47 = vadd.f32 %v1067_v45, %v907_v43  ;;  %v1069_v48 = vpop.f32.mrb[3].mxu1  ;;  %v1191_v49 = vmax.f32 %v1065_v41, 0.0  ;;  %v915_v60 = vadd.f32 %v1794_v46, %v2276_v34 }
 0x10b   : > { %v1192_v50 = vmax.f32 %v1068_v47, 0.0  ;;  %v1795_v52 = vpop.f32.mrb[8].mxu0 }
 0x10c   : > { %v1796_v54 = vpop.f32.mrb[9].mxu0 }
 0x10d   : > { %v1675_v53 = vpack.c.bf16 %v1192_v50, %v1191_v49  ;;  %v1797_v56 = vadd.f32 %v1796_v54, %v1795_v52  ;;  %v1798_v57 = vpop.f32.mrb[10].mxu0 }
 0x10e   : > { %v1072_v55 = vpop.f32.mrb[4].mxu1  ;;  %v1799_v61 = vpop.f32.mrb[11].mxu0 }
 0x10f   : > { %1676 = vst [vmem:[%s2285_s6] sm:$0xff] %v1675_v53   ;;  %v1073_v58 = vadd.f32 %v1072_v55, %v912_v51  ;;  %v1074_v59 = vpop.f32.mrb[5].mxu1  ;;  %v1800_v63 = vadd.f32 %v1799_v61, %v1798_v57  ;;  %v920_v4 = vadd.f32 %v1797_v56, %v2276_v34 }
 0x110   : > { %v1075_v62 = vpop.f32.mrb[6].mxu1 }
 0x111   : > { %v1076_v0 = vadd.f32 %v1075_v62, %v915_v60  ;;  %v1077_v1 = vpop.f32.mrb[7].mxu1  ;;  %v1193_v2 = vmax.f32 %v1073_v58, 0.0  ;;  %v923_v13 = vadd.f32 %v1800_v63, %v2276_v34 }
 0x113   : > { %v1194_v3 = vmax.f32 %v1076_v0, 0.0  ;;  %v1801_v5 = vpop.f32.mrb[12].mxu0 }
 0x114   : > { %v1802_v7 = vpop.f32.mrb[13].mxu0 }
 0x115   : > { %v1680_v6 = vpack.c.bf16 %v1194_v3, %v1193_v2  ;;  %v1803_v9 = vadd.f32 %v1802_v7, %v1801_v5  ;;  %v1804_v10 = vpop.f32.mrb[14].mxu0 }
 0x116   : > { %v1080_v8 = vpop.f32.mrb[8].mxu1  ;;  %v1805_v14 = vpop.f32.mrb[15].mxu0 }
 0x117   : > { %1752 = vst [vmem:[%s2285_s6 + $0x8] sm:$0xff] %v1680_v6   ;;  %v1081_v11 = vadd.f32 %v1080_v8, %v920_v4  ;;  %v1082_v12 = vpop.f32.mrb[9].mxu1  ;;  %v1806_v16 = vadd.f32 %v1805_v14, %v1804_v10  ;;  %v928_v21 = vadd.f32 %v1803_v9, %v2276_v34 }
 0x118   : > { %v1083_v15 = vpop.f32.mrb[10].mxu1 }
 0x119   : > { %v1084_v17 = vadd.f32 %v1083_v15, %v923_v13  ;;  %v1085_v18 = vpop.f32.mrb[11].mxu1  ;;  %v1195_v19 = vmax.f32 %v1081_v11, 0.0  ;;  %v931_v30 = vadd.f32 %v1806_v16, %v2276_v34 }
 0x11b   : > { %v1196_v20 = vmax.f32 %v1084_v17, 0.0  ;;  %v1807_v22 = vpop.f32.mrb[16].mxu0 }
 0x11c   : > { %v1808_v24 = vpop.f32.mrb[17].mxu0 }
 0x11d   : > { %v1685_v23 = vpack.c.bf16 %v1196_v20, %v1195_v19  ;;  %v1809_v26 = vadd.f32 %v1808_v24, %v1807_v22  ;;  %v1810_v27 = vpop.f32.mrb[18].mxu0 }
 0x11e   : > { %v1088_v25 = vpop.f32.mrb[12].mxu1  ;;  %v1811_v31 = vpop.f32.mrb[19].mxu0 }
 0x11f   : > { %1753 = vst [vmem:[%s2285_s6 + $0x10] sm:$0xff] %v1685_v23   ;;  %v1089_v28 = vadd.f32 %v1088_v25, %v928_v21  ;;  %v1090_v29 = vpop.f32.mrb[13].mxu1  ;;  %v1812_v33 = vadd.f32 %v1811_v31, %v1810_v27  ;;  %v936_v39 = vadd.f32 %v1809_v26, %v2276_v34 }
 0x120   : > { %v1091_v32 = vpop.f32.mrb[14].mxu1 }
 0x121   : > { %v1092_v35 = vadd.f32 %v1091_v32, %v931_v30  ;;  %v1093_v36 = vpop.f32.mrb[15].mxu1  ;;  %v1197_v37 = vmax.f32 %v1089_v28, 0.0  ;;  %v939_v48 = vadd.f32 %v1812_v33, %v2276_v34 }
 0x123   : > { %v1198_v38 = vmax.f32 %v1092_v35, 0.0  ;;  %v1813_v40 = vpop.f32.mrb[20].mxu0 }
 0x124   : > { %v1814_v42 = vpop.f32.mrb[21].mxu0 }
 0x125   : > { %v1690_v41 = vpack.c.bf16 %v1198_v38, %v1197_v37  ;;  %v1815_v44 = vadd.f32 %v1814_v42, %v1813_v40  ;;  %v1816_v45 = vpop.f32.mrb[22].mxu0 }
 0x126   : > { %v1096_v43 = vpop.f32.mrb[16].mxu1  ;;  %v1817_v49 = vpop.f32.mrb[23].mxu0 }
 0x127   : > { %1754 = vst [vmem:[%s2285_s6 + $0x18] sm:$0xff] %v1690_v41   ;;  %v1097_v46 = vadd.f32 %v1096_v43, %v936_v39  ;;  %v1098_v47 = vpop.f32.mrb[17].mxu1  ;;  %v1818_v51 = vadd.f32 %v1817_v49, %v1816_v45  ;;  %v944_v56 = vadd.f32 %v1815_v44, %v2276_v34 }
 0x128   : > { %v1099_v50 = vpop.f32.mrb[18].mxu1 }
 0x129   : > { %v1100_v52 = vadd.f32 %v1099_v50, %v939_v48  ;;  %v1101_v53 = vpop.f32.mrb[19].mxu1  ;;  %v1199_v54 = vmax.f32 %v1097_v46, 0.0  ;;  %v947_v1 = vadd.f32 %v1818_v51, %v2276_v34 }
 0x12b   : > { %v1200_v55 = vmax.f32 %v1100_v52, 0.0  ;;  %v1819_v57 = vpop.f32.mrb[24].mxu0 }
 0x12c   : > { %v1820_v59 = vpop.f32.mrb[25].mxu0 }
 0x12d   : > { %v1695_v58 = vpack.c.bf16 %v1200_v55, %v1199_v54  ;;  %v1821_v61 = vadd.f32 %v1820_v59, %v1819_v57  ;;  %v1822_v62 = vpop.f32.mrb[26].mxu0 }
 0x12e   : > { %v1104_v60 = vpop.f32.mrb[20].mxu1  ;;  %v1823_v2 = vpop.f32.mrb[27].mxu0 }
 0x12f   : > { %1755 = vst [vmem:[%s2285_s6 + $0x20] sm:$0xff] %v1695_v58   ;;  %v1105_v63 = vadd.f32 %v1104_v60, %v944_v56  ;;  %v1106_v0 = vpop.f32.mrb[21].mxu1  ;;  %v1824_v4 = vadd.f32 %v1823_v2, %v1822_v62  ;;  %v952_v9 = vadd.f32 %v1821_v61, %v2276_v34 }
 0x130   : > { %v1107_v3 = vpop.f32.mrb[22].mxu1 }
 0x131   : > { %v1108_v5 = vadd.f32 %v1107_v3, %v947_v1  ;;  %v1109_v6 = vpop.f32.mrb[23].mxu1  ;;  %v1201_v7 = vmax.f32 %v1105_v63, 0.0  ;;  %v955_v18 = vadd.f32 %v1824_v4, %v2276_v34 }
 0x133   : > { %v1202_v8 = vmax.f32 %v1108_v5, 0.0  ;;  %v1825_v10 = vpop.f32.mrb[28].mxu0 }
 0x134   : > { %v1826_v12 = vpop.f32.mrb[29].mxu0 }
 0x135   : > { %v1700_v11 = vpack.c.bf16 %v1202_v8, %v1201_v7  ;;  %v1827_v14 = vadd.f32 %v1826_v12, %v1825_v10  ;;  %v1828_v15 = vpop.f32.mrb[30].mxu0 }
 0x136   : > { %v1112_v13 = vpop.f32.mrb[24].mxu1  ;;  %v1829_v19 = vpop.f32.mrb[31].mxu0 }
 0x137   : > { %1756 = vst [vmem:[%s2285_s6 + $0x28] sm:$0xff] %v1700_v11   ;;  %v1113_v16 = vadd.f32 %v1112_v13, %v952_v9  ;;  %v1114_v17 = vpop.f32.mrb[25].mxu1  ;;  %v1830_v21 = vadd.f32 %v1829_v19, %v1828_v15  ;;  %v960_v26 = vadd.f32 %v1827_v14, %v2276_v34 }
 0x138   : > { %v1115_v20 = vpop.f32.mrb[26].mxu1 }
 0x139   : > { %v1116_v22 = vadd.f32 %v1115_v20, %v955_v18  ;;  %v1117_v23 = vpop.f32.mrb[27].mxu1  ;;  %v1203_v24 = vmax.f32 %v1113_v16, 0.0  ;;  %v963_v36 = vadd.f32 %v1830_v21, %v2276_v34 }
 0x13b   : > { %v1204_v25 = vmax.f32 %v1116_v22, 0.0  ;;  %v1831_v27 = vpop.f32.mrb[32].mxu0 }
 0x13c   : > { %v1832_v29 = vpop.f32.mrb[33].mxu0 }
 0x13d   : > { %v1705_v28 = vpack.c.bf16 %v1204_v25, %v1203_v24  ;;  %v1833_v31 = vadd.f32 %v1832_v29, %v1831_v27  ;;  %v1834_v32 = vpop.f32.mrb[34].mxu0 }
 0x13e   : > { %v1120_v30 = vpop.f32.mrb[28].mxu1  ;;  %v1835_v37 = vpop.f32.mrb[35].mxu0 }
 0x13f   : > { %1757 = vst [vmem:[%s2285_s6 + $0x30] sm:$0xff] %v1705_v28   ;;  %v1121_v33 = vadd.f32 %v1120_v30, %v960_v26  ;;  %v1122_v35 = vpop.f32.mrb[29].mxu1  ;;  %v1836_v39 = vadd.f32 %v1835_v37, %v1834_v32  ;;  %v968_v44 = vadd.f32 %v1833_v31, %v2276_v34 }
 0x140   : > { %v1123_v38 = vpop.f32.mrb[30].mxu1 }
 0x141   : > { %v1124_v40 = vadd.f32 %v1123_v38, %v963_v36  ;;  %v1125_v41 = vpop.f32.mrb[31].mxu1  ;;  %v1205_v42 = vmax.f32 %v1121_v33, 0.0  ;;  %v971_v53 = vadd.f32 %v1836_v39, %v2276_v34 }
 0x143   : > { %v1206_v43 = vmax.f32 %v1124_v40, 0.0  ;;  %v1837_v45 = vpop.f32.mrb[36].mxu0 }
 0x144   : > { %v1838_v47 = vpop.f32.mrb[37].mxu0 }
 0x145   : > { %v1710_v46 = vpack.c.bf16 %v1206_v43, %v1205_v42  ;;  %v1839_v49 = vadd.f32 %v1838_v47, %v1837_v45  ;;  %v1840_v50 = vpop.f32.mrb[38].mxu0 }
 0x146   : > { %v1128_v48 = vpop.f32.mrb[32].mxu1  ;;  %v1841_v54 = vpop.f32.mrb[39].mxu0 }
 0x147   : > { %1758 = vst [vmem:[%s2285_s6 + $0x38] sm:$0xff] %v1710_v46   ;;  %v1129_v51 = vadd.f32 %v1128_v48, %v968_v44  ;;  %v1130_v52 = vpop.f32.mrb[33].mxu1  ;;  %v1842_v56 = vadd.f32 %v1841_v54, %v1840_v50  ;;  %v976_v61 = vadd.f32 %v1839_v49, %v2276_v34 }
 0x148   : > { %v1131_v55 = vpop.f32.mrb[34].mxu1 }
 0x149   : > { %v1132_v57 = vadd.f32 %v1131_v55, %v971_v53  ;;  %v1133_v58 = vpop.f32.mrb[35].mxu1  ;;  %v1207_v59 = vmax.f32 %v1129_v51, 0.0  ;;  %v979_v6 = vadd.f32 %v1842_v56, %v2276_v34 }
 0x14b   : > { %v1208_v60 = vmax.f32 %v1132_v57, 0.0  ;;  %v1843_v62 = vpop.f32.mrb[40].mxu0 }
 0x14c   : > { %v1844_v0 = vpop.f32.mrb[41].mxu0 }
 0x14d   : > { %v1715_v63 = vpack.c.bf16 %v1208_v60, %v1207_v59  ;;  %v1845_v2 = vadd.f32 %v1844_v0, %v1843_v62  ;;  %v1846_v3 = vpop.f32.mrb[42].mxu0 }
 0x14e   : > { %v1136_v1 = vpop.f32.mrb[36].mxu1  ;;  %v1847_v7 = vpop.f32.mrb[43].mxu0 }
 0x14f   : > { %1759 = vst [vmem:[%s2285_s6 + $0x40] sm:$0xff] %v1715_v63   ;;  %v1137_v4 = vadd.f32 %v1136_v1, %v976_v61  ;;  %v1138_v5 = vpop.f32.mrb[37].mxu1  ;;  %v1848_v9 = vadd.f32 %v1847_v7, %v1846_v3  ;;  %v984_v14 = vadd.f32 %v1845_v2, %v2276_v34 }
 0x150   : > { %v1139_v8 = vpop.f32.mrb[38].mxu1 }
 0x151   : > { %v1140_v10 = vadd.f32 %v1139_v8, %v979_v6  ;;  %v1141_v11 = vpop.f32.mrb[39].mxu1  ;;  %v1209_v12 = vmax.f32 %v1137_v4, 0.0  ;;  %v987_v23 = vadd.f32 %v1848_v9, %v2276_v34 }
 0x153   : > { %v1210_v13 = vmax.f32 %v1140_v10, 0.0  ;;  %v1849_v15 = vpop.f32.mrb[44].mxu0 }
 0x154   : > { %v1850_v17 = vpop.f32.mrb[45].mxu0 }
 0x155   : > { %v1720_v16 = vpack.c.bf16 %v1210_v13, %v1209_v12  ;;  %v1851_v19 = vadd.f32 %v1850_v17, %v1849_v15  ;;  %v1852_v20 = vpop.f32.mrb[46].mxu0 }
 0x156   : > { %v1144_v18 = vpop.f32.mrb[40].mxu1  ;;  %v1853_v24 = vpop.f32.mrb[47].mxu0 }
 0x157   : > { %1760 = vst [vmem:[%s2285_s6 + $0x48] sm:$0xff] %v1720_v16   ;;  %v1145_v21 = vadd.f32 %v1144_v18, %v984_v14  ;;  %v1146_v22 = vpop.f32.mrb[41].mxu1  ;;  %v1854_v26 = vadd.f32 %v1853_v24, %v1852_v20  ;;  %v992_v31 = vadd.f32 %v1851_v19, %v2276_v34 }
 0x158   : > { %v1147_v25 = vpop.f32.mrb[42].mxu1 }
 0x159   : > { %v1148_v27 = vadd.f32 %v1147_v25, %v987_v23  ;;  %v1149_v28 = vpop.f32.mrb[43].mxu1  ;;  %v1211_v29 = vmax.f32 %v1145_v21, 0.0  ;;  %v995_v41 = vadd.f32 %v1854_v26, %v2276_v34 }
 0x15b   : > { %v1212_v30 = vmax.f32 %v1148_v27, 0.0  ;;  %v1855_v32 = vpop.f32.mrb[48].mxu0 }
 0x15c   : > { %v1856_v35 = vpop.f32.mrb[49].mxu0 }
 0x15d   : > { %v1725_v33 = vpack.c.bf16 %v1212_v30, %v1211_v29  ;;  %v1857_v37 = vadd.f32 %v1856_v35, %v1855_v32  ;;  %v1858_v38 = vpop.f32.mrb[50].mxu0 }
 0x15e   : > { %v1152_v36 = vpop.f32.mrb[44].mxu1  ;;  %v1859_v42 = vpop.f32.mrb[51].mxu0 }
 0x15f   : > { %1761 = vst [vmem:[%s2285_s6 + $0x50] sm:$0xff] %v1725_v33   ;;  %v1153_v39 = vadd.f32 %v1152_v36, %v992_v31  ;;  %v1154_v40 = vpop.f32.mrb[45].mxu1  ;;  %v1860_v44 = vadd.f32 %v1859_v42, %v1858_v38  ;;  %v1000_v49 = vadd.f32 %v1857_v37, %v2276_v34 }
 0x160   : > { %v1155_v43 = vpop.f32.mrb[46].mxu1 }
 0x161   : > { %v1156_v45 = vadd.f32 %v1155_v43, %v995_v41  ;;  %v1157_v46 = vpop.f32.mrb[47].mxu1  ;;  %v1213_v47 = vmax.f32 %v1153_v39, 0.0  ;;  %v1003_v58 = vadd.f32 %v1860_v44, %v2276_v34 }
 0x163   : > { %v1214_v48 = vmax.f32 %v1156_v45, 0.0  ;;  %v1861_v50 = vpop.f32.mrb[52].mxu0 }
 0x164   : > { %v1862_v52 = vpop.f32.mrb[53].mxu0 }
 0x165   : > { %v1730_v51 = vpack.c.bf16 %v1214_v48, %v1213_v47  ;;  %v1863_v54 = vadd.f32 %v1862_v52, %v1861_v50  ;;  %v1864_v55 = vpop.f32.mrb[54].mxu0 }
 0x166   : > { %v1160_v53 = vpop.f32.mrb[48].mxu1  ;;  %v1865_v59 = vpop.f32.mrb[55].mxu0 }
 0x167   : > { %1762 = vst [vmem:[%s2285_s6 + $0x58] sm:$0xff] %v1730_v51   ;;  %v1161_v56 = vadd.f32 %v1160_v53, %v1000_v49  ;;  %v1162_v57 = vpop.f32.mrb[49].mxu1  ;;  %v1866_v61 = vadd.f32 %v1865_v59, %v1864_v55  ;;  %v1008_v2 = vadd.f32 %v1863_v54, %v2276_v34 }
 0x168   : > { %v1163_v60 = vpop.f32.mrb[50].mxu1 }
 0x169   : > { %v1164_v62 = vadd.f32 %v1163_v60, %v1003_v58  ;;  %v1165_v63 = vpop.f32.mrb[51].mxu1  ;;  %v1215_v0 = vmax.f32 %v1161_v56, 0.0  ;;  %v1011_v11 = vadd.f32 %v1866_v61, %v2276_v34 }
 0x16b   : > { %v1216_v1 = vmax.f32 %v1164_v62, 0.0  ;;  %v1867_v3 = vpop.f32.mrb[56].mxu0 }
 0x16c   : > { %v1868_v5 = vpop.f32.mrb[57].mxu0 }
 0x16d   : > { %v1735_v4 = vpack.c.bf16 %v1216_v1, %v1215_v0  ;;  %v1869_v7 = vadd.f32 %v1868_v5, %v1867_v3  ;;  %v1870_v8 = vpop.f32.mrb[58].mxu0 }
 0x16e   : > { %v1168_v6 = vpop.f32.mrb[52].mxu1  ;;  %v1871_v12 = vpop.f32.mrb[59].mxu0 }
 0x16f   : > { %1763 = vst [vmem:[%s2285_s6 + $0x60] sm:$0xff] %v1735_v4   ;;  %v1169_v9 = vadd.f32 %v1168_v6, %v1008_v2  ;;  %v1170_v10 = vpop.f32.mrb[53].mxu1  ;;  %v1872_v14 = vadd.f32 %v1871_v12, %v1870_v8  ;;  %v1016_v19 = vadd.f32 %v1869_v7, %v2276_v34 }
 0x170   : > { %v1171_v13 = vpop.f32.mrb[54].mxu1 }
 0x171   : > { %v1172_v15 = vadd.f32 %v1171_v13, %v1011_v11  ;;  %v1173_v16 = vpop.f32.mrb[55].mxu1  ;;  %v1217_v17 = vmax.f32 %v1169_v9, 0.0  ;;  %v1019_v28 = vadd.f32 %v1872_v14, %v2276_v34 }
 0x173   : > { %v1218_v18 = vmax.f32 %v1172_v15, 0.0  ;;  %v1873_v20 = vpop.f32.mrb[60].mxu0 }
 0x174   : > { %v1874_v22 = vpop.f32.mrb[61].mxu0 }
 0x175   : > { %v1740_v21 = vpack.c.bf16 %v1218_v18, %v1217_v17  ;;  %v1875_v24 = vadd.f32 %v1874_v22, %v1873_v20  ;;  %v1876_v25 = vpop.f32.mrb[62].mxu0 }
 0x176   : > { %v1176_v23 = vpop.f32.mrb[56].mxu1  ;;  %v1877_v29 = vpop.f32.mrb[63].mxu0 }
 0x177   : > { %1764 = vst [vmem:[%s2285_s6 + $0x68] sm:$0xff] %v1740_v21   ;;  %v1177_v26 = vadd.f32 %v1176_v23, %v1016_v19  ;;  %v1178_v27 = vpop.f32.mrb[57].mxu1  ;;  %v1878_v31 = vadd.f32 %v1877_v29, %v1876_v25  ;;  %v1024_v37 = vadd.f32 %v1875_v24, %v2276_v34 }
 0x178   : > { %v1179_v30 = vpop.f32.mrb[58].mxu1 }
 0x179   : > { %v1180_v32 = vadd.f32 %v1179_v30, %v1019_v28  ;;  %v1181_v33 = vpop.f32.mrb[59].mxu1  ;;  %v1219_v35 = vmax.f32 %v1177_v26, 0.0  ;;  %v1027_v42 = vadd.f32 %v1878_v31, %v2276_v34 }
 0x17b   : > { %v1220_v36 = vmax.f32 %v1180_v32, 0.0 }
 0x17d   : > { %v1745_v38 = vpack.c.bf16 %v1220_v36, %v1219_v35 }
 0x17e   : > { %v1184_v39 = vpop.f32.mrb[60].mxu1 }
 0x17f   : > { %1765 = vst [vmem:[%s2285_s6 + $0x70] sm:$0xff] %v1745_v38   ;;  %v1185_v40 = vadd.f32 %v1184_v39, %v1024_v37  ;;  %v1186_v41 = vpop.f32.mrb[61].mxu1 }
 0x180   : > { %v1187_v43 = vpop.f32.mrb[62].mxu1 }
 0x181   : > { %v1188_v44 = vadd.f32 %v1187_v43, %v1027_v42  ;;  %v1189_v45 = vpop.f32.mrb[63].mxu1  ;;  %v1221_v46 = vmax.f32 %v1185_v40, 0.0 }
 0x183   : > { %v1222_v47 = vmax.f32 %v1188_v44, 0.0 }
 0x185   : > { %v1750_v48 = vpack.c.bf16 %v1222_v47, %v1221_v46 }
 0x187   : > { %1766 = vst [vmem:[%s2285_s6 + $0x78] sm:$0xff] %v1750_v48  }
 0x188 PF: > { %s13_s14 = sadd.s32 1, %s2049_s14   ;;  %s2345_s12 = smov %s2045_s13 }
 0x189   : > { %p10_p5 = scmp.ge.s32.totalorder %s13_s14, 9   ;;  %s2346_s13 = smov %s2348_s15 }
 0x18b   :  { %12 = sbr.rel (!%p10_p5) target bundleno = 2 (0x2), region = 68 }

// kernel: vae_forward.17
= control target key start
LH: loop header
LB: loop body
LE: loop exit
PB: predicated region body
PF: predicated region fallthrough
CT: control target
= control target key end

     0   :  { %s7962_s12 = smov 0   ;;  %s7964_s13 = smov 0   ;;  %s9386_s0 = inlined_call_operand.vmem [shape: bf16[8192,1568], index: 0, kind: input, shape index: {}]   ;;  %s9387_s1 = inlined_call_operand.vmem [shape: bf16[1568,128], index: 1, kind: input, shape index: {}]   ;;  %s9388_s2 = inlined_call_operand.vmem [shape: f32[1,128], index: 2, kind: input, shape index: {}]   ;;  %s9389_s3 = inlined_call_operand.vmem [shape: f32[8192,128], index: 3, kind: output, shape index: {}]  }
   0x1   :  { %s7966_s14 = smov 0  }
   0x2 LB: > { %s25_s15 = sadd.s32 1, %s7935_s13  ;;  %p5840_p0 = scmp.ge.s32.totalorder %s7939_s14, 1  ;;  %s7939_s14 = sphi %s7966_s14, %s13_s14   ;;  %s7935_s13 = sphi %s7964_s13, %s9419_s13   ;;  %s7931_s12 = sphi %s7962_s12, %s9418_s12  }
   0x3   : > { %p27_p1 = scmp.ge.s32.totalorder %s25_s15, 16  ;;  %p170_p2 = scmp.lt.s32.totalorder %s7939_s14, 17 }
   0x5   : > { %s9421_s15 = smov (%p27_p1, %s25_s15), 0  ;;  %p171_p3 = pnand %p5840_p0, %p170_p2 }
   0x7   : > { %174 = sbr.rel (%p171_p3) target bundleno = 1123 (0x463), region = 32 }
   0xe   : > { %v7194_v0 = vld [vmem:[%s9387_s1] sm:$0xff]   ;;  %v7941_v1 = vmov 0   ;;  %v7196_v3 = vld [vmem:[%s9387_s1 + $0x8] sm:$0xff]   ;;  %v7198_v5 = vld [vmem:[%s9387_s1 + $0x10] sm:$0xff]   ;;  %s5841_s9 = sshll.u32 %s7931_s12, 6  ;;  %vm3548_vm0 = vcmask 261120  }
   0xf   : > { %3645 = vmatprep.subr.bf16.mxu1 %v7941_v1  ;;  %4223 = vmatprep.subr.bf16.mxu0 %v7941_v1  ;;  %v7195_v2 = vld [vmem:[%s9387_s1 + $0x100] sm:$0xff]   ;;  %v7197_v4 = vld [vmem:[%s9387_s1 + $0x108] sm:$0xff]   ;;  %v7199_v6 = vld [vmem:[%s9387_s1 + $0x110] sm:$0xff]   ;;  %p206_p4 = scmp.lt.s32.totalorder %s5841_s9, 1023 }
  0x10   : > { %3646 = vmatpush1.bf16.msra.mxu1 %v7194_v0  ;;  %4224 = vmatpush1.bf16.msra.mxu0 %v7195_v2  ;;  %v7200_v7 = vld [vmem:[%s9387_s1 + $0x18] sm:$0xff]   ;;  %v7202_v9 = vld [vmem:[%s9387_s1 + $0x20] sm:$0xff]   ;;  %v7204_v11 = vld [vmem:[%s9387_s1 + $0x28] sm:$0xff]  }
  0x11   : > { %3647 = vmatprep.subr.bf16.mxu1 %v7941_v1  ;;  %4225 = vmatprep.subr.bf16.mxu0 %v7941_v1  ;;  %v7201_v8 = vld [vmem:[%s9387_s1 + $0x118] sm:$0xff]   ;;  %v7203_v10 = vld [vmem:[%s9387_s1 + $0x120] sm:$0xff]   ;;  %v7205_v12 = vld [vmem:[%s9387_s1 + $0x128] sm:$0xff]   ;;  %s9423_s9 = smov (!%p206_p4, %s5841_s9), 1023 }
  0x12   : > { %v7206_v13 = vld [vmem:[%s9387_s1 + $0x30] sm:$0xff]   ;;  %v7208_v15 = vld [vmem:[%s9387_s1 + $0x38] sm:$0xff]   ;;  %s7168_s23 = smul.u32 52, %s9423_s9  ;;  %v7210_v17 = vld [vmem:[%s9387_s1 + $0x40] sm:$0xff]  }
  0x13   : > { %v7207_v14 = vld [vmem:[%s9387_s1 + $0x130] sm:$0xff]   ;;  %v7209_v16 = vld [vmem:[%s9387_s1 + $0x138] sm:$0xff]   ;;  %v7211_v18 = vld [vmem:[%s9387_s1 + $0x140] sm:$0xff]  }
  0x14   : > { %3648 = vmatpush1.bf16.msra.mxu1 %v7196_v3  ;;  %4226 = vmatpush1.bf16.msra.mxu0 %v7197_v4  ;;  %s8056_s30 = scalar_lea.vmem %s9386_s0, %s7168_s23  ;;  %v7212_v20 = vld [vmem:[%s9387_s1 + $0x48] sm:$0xff]   ;;  %v7214_v23 = vld [vmem:[%s9387_s1 + $0x50] sm:$0xff]   ;;  %v7216_v25 = vld [vmem:[%s9387_s1 + $0x58] sm:$0xff]  }
  0x15   : > { %3649 = vmatprep.subr.bf16.mxu1 %v7941_v1  ;;  %4227 = vmatprep.subr.bf16.mxu0 %v7941_v1  ;;  %v7228_v19 = vld [vmem:[%s8056_s30 + $0x4] ss:$52 sps:$4 sm:$0xff]   ;;  %v7231_v21 = vld [vmem:[%s8056_s30 + $0x14] ss:$52 sps:$4 sm:$0xff]   ;;  %v7235_v39 = vld [vmem:[%s8056_s30 + $0x6c] ss:$52 sps:$4 sm:$0xff]  }
  0x16   : > { %v7213_v22 = vld [vmem:[%s9387_s1 + $0x148] sm:$0xff]   ;;  %3677 = vmatprep.mubr.bf16.mxu1 %v7228_v19  ;;  %4255 = vmatprep.mubr.bf16.mxu0 %v7231_v21  ;;  %v7215_v24 = vld [vmem:[%s9387_s1 + $0x150] sm:$0xff]   ;;  %v7217_v26 = vld [vmem:[%s9387_s1 + $0x158] sm:$0xff]  }
  0x17   : > { %v7218_v27 = vld [vmem:[%s9387_s1 + $0x60] sm:$0xff]   ;;  %v7220_v29 = vld [vmem:[%s9387_s1 + $0x68] sm:$0xff]   ;;  %v7222_v31 = vld [vmem:[%s9387_s1 + $0x70] sm:$0xff]  }
  0x18   : > { %3650 = vmatpush1.bf16.msra.mxu1 %v7198_v5  ;;  %4228 = vmatpush1.bf16.msra.mxu0 %v7199_v6  ;;  %v7219_v28 = vld [vmem:[%s9387_s1 + $0x160] sm:$0xff]   ;;  %v7221_v30 = vld [vmem:[%s9387_s1 + $0x168] sm:$0xff]   ;;  %v7223_v32 = vld [vmem:[%s9387_s1 + $0x170] sm:$0xff]  }
  0x19   : > { %3651 = vmatprep.subr.bf16.mxu1 %v7941_v1  ;;  %4229 = vmatprep.subr.bf16.mxu0 %v7941_v1  ;;  %v7224_v33 = vld [vmem:[%s9387_s1 + $0x78] sm:$0xff]   ;;  %v7226_v35 = vld [vmem:[%s8056_s30] ss:$52 sps:$4 sm:$0xff]   ;;  %v7229_v36 = vld [vmem:[%s8056_s30 + $0x10] ss:$52 sps:$4 sm:$0xff]  }
  0x1a   : > { %v7225_v34 = vld [vmem:[%s9387_s1 + $0x178] sm:$0xff]   ;;  %v7232_v37 = vld [vmem:[%s9387_s1 + $0x180] sm:$0xff]   ;;  %v7250_v41 = vld [vmem:[%s9387_s1 + $0x88] sm:$0xff]  }
  0x1b   : > { %v7233_v38 = vld [vmem:[%s9387_s1 + $0x80] sm:$0xff]   ;;  %v7237_v40 = vld [vmem:[%s8056_s30 + $0x7c] ss:$52 sps:$4 sm:$0xff]   ;;  %v7234_v42 = vld [vmem:[%s9387_s1 + $0x188] sm:$0xff]  }
  0x1c   : > { %3652 = vmatpush1.bf16.msra.mxu1 %v7200_v7  ;;  %4230 = vmatpush1.bf16.msra.mxu0 %v7201_v8  ;;  %v7239_v43 = vld [vmem:[%s8056_s30 + $0x68] ss:$52 sps:$4 sm:$0xff]   ;;  %v7240_v44 = vld [vmem:[%s8056_s30 + $0x78] ss:$52 sps:$4 sm:$0xff]   ;;  %v7241_v45 = vld [vmem:[%s9387_s1 + $0x190] sm:$0xff]  }
  0x1d   : > { %3653 = vmatprep.subr.bf16.mxu1 %v7941_v1  ;;  %4231 = vmatprep.subr.bf16.mxu0 %v7941_v1  ;;  %v7243_v46 = vld [vmem:[%s8056_s30 + $0xd4] ss:$52 sps:$4 sm:$0xff]   ;;  %v7245_v47 = vld [vmem:[%s8056_s30 + $0xe4] ss:$52 sps:$4 sm:$0xff]   ;;  %v7252_v54 = vld [vmem:[%s8056_s30 + $0x13c] ss:$52 sps:$4 sm:$0xff]  }
  0x1e   : > { %v7267_v48 = vld [vmem:[%s9387_s1 + $0x90] sm:$0xff]   ;;  %v7242_v49 = vld [vmem:[%s9387_s1 + $0x198] sm:$0xff]   ;;  %v7249_v53 = vld [vmem:[%s9387_s1 + $0x1a0] sm:$0xff]  }
  0x1f   : > { %v7247_v50 = vld [vmem:[%s8056_s30 + $0xd0] ss:$52 sps:$4 sm:$0xff]   ;;  %v7248_v51 = vld [vmem:[%s8056_s30 + $0xe0] ss:$52 sps:$4 sm:$0xff]   ;;  %v7284_v52 = vld [vmem:[%s9387_s1 + $0x98] sm:$0xff]  }
  0x20   : > { %3654 = vmatpush1.bf16.msra.mxu1 %v7202_v9  ;;  %4232 = vmatpush1.bf16.msra.mxu0 %v7203_v10  ;;  %v7254_v55 = vld [vmem:[%s8056_s30 + $0x14c] ss:$52 sps:$4 sm:$0xff]   ;;  %v7257_v59 = vld [vmem:[%s8056_s30 + $0x148] ss:$52 sps:$4 sm:$0xff]   ;;  %v7260_v61 = vld [vmem:[%s8056_s30 + $0x1a4] ss:$52 sps:$4 sm:$0xff]  }
  0x21   : > { %3655 = vmatprep.subr.bf16.mxu1 %v7941_v1  ;;  %4233 = vmatprep.subr.bf16.mxu0 %v7941_v1  ;;  %v7301_v56 = vld [vmem:[%s9387_s1 + $0xa0] sm:$0xff]   ;;  %v7251_v57 = vld [vmem:[%s9387_s1 + $0x1a8] sm:$0xff]   ;;  %v7258_v62 = vld [vmem:[%s9387_s1 + $0x1b0] sm:$0xff]  }
  0x22   : > { %v7256_v58 = vld [vmem:[%s8056_s30 + $0x138] ss:$52 sps:$4 sm:$0xff]   ;;  %v7262_v63 = vld [vmem:[%s8056_s30 + $0x1b4] ss:$52 sps:$4 sm:$0xff]   ;;  %v7265_v4 = vld [vmem:[%s8056_s30 + $0x1b0] ss:$52 sps:$4 sm:$0xff]  }
  0x23   : > { %v7315_v60 = vld [vmem:[%s9387_s1 + $0xa8] sm:$0xff]   ;;  %v7259_v0 = vld [vmem:[%s9387_s1 + $0x1b8] sm:$0xff]   ;;  %v7264_v2 = vld [vmem:[%s8056_s30 + $0x1a0] ss:$52 sps:$4 sm:$0xff]  }
  0x24   : > { %3656 = vmatpush1.bf16.msra.mxu1 %v7204_v11  ;;  %4234 = vmatpush1.bf16.msra.mxu0 %v7205_v12  ;;  %v7329_v3 = vld [vmem:[%s9387_s1 + $0xb0] sm:$0xff]   ;;  %v7266_v5 = vld [vmem:[%s9387_s1 + $0x1c0] sm:$0xff]   ;;  %v7268_v8 = vld [vmem:[%s9387_s1 + $0x1c8] sm:$0xff]  }
  0x25   : > { %3657 = vmatprep.subr.bf16.mxu1 %v7941_v1  ;;  %4235 = vmatprep.subr.bf16.mxu0 %v7941_v1  ;;  %v7269_v6 = vld [vmem:[%s8056_s30 + $0x20c] ss:$52 sps:$4 sm:$0xff]   ;;  %v7271_v7 = vld [vmem:[%s8056_s30 + $0x21c] ss:$52 sps:$4 sm:$0xff]  }
  0x26   : > { %v7343_v9 = vld [vmem:[%s9387_s1 + $0xb8] sm:$0xff]   ;;  %v7275_v12 = vld [vmem:[%s9387_s1 + $0x1d0] sm:$0xff]   ;;  %v7283_v19 = vld [vmem:[%s9387_s1 + $0x1e0] sm:$0xff]  }
  0x27   : > { %v7273_v10 = vld [vmem:[%s8056_s30 + $0x208] ss:$52 sps:$4 sm:$0xff]   ;;  %v7274_v11 = vld [vmem:[%s8056_s30 + $0x218] ss:$52 sps:$4 sm:$0xff]  }
  0x28   : > { %3658 = vmatpush1.bf16.msra.mxu1 %v7206_v13  ;;  %4236 = vmatpush1.bf16.msra.mxu0 %v7207_v14  ;;  %v7277_v13 = vld [vmem:[%s8056_s30 + $0x274] ss:$52 sps:$4 sm:$0xff]   ;;  %v7279_v14 = vld [vmem:[%s8056_s30 + $0x284] ss:$52 sps:$4 sm:$0xff]   ;;  %v7288_v21 = vld [vmem:[%s8056_s30 + $0x2ec] ss:$52 sps:$4 sm:$0xff]  }
  0x29   : > { %3659 = vmatprep.subr.bf16.mxu1 %v7941_v1  ;;  %4237 = vmatprep.subr.bf16.mxu0 %v7941_v1 }
  0x2c   : > { %3660 = vmatpush1.bf16.msra.mxu1 %v7208_v15  ;;  %4238 = vmatpush1.bf16.msra.mxu0 %v7209_v16  ;;  %v7276_v15 = vld [vmem:[%s9387_s1 + $0x1d8] sm:$0xff]   ;;  %v7357_v16 = vld [vmem:[%s9387_s1 + $0xc0] sm:$0xff]  }
  0x2d   : > { %3661 = vmatprep.subr.bf16.mxu1 %v7941_v1  ;;  %4239 = vmatprep.subr.bf16.mxu0 %v7941_v1 }
  0x30   : > { %3662 = vmatpush1.bf16.msra.mxu1 %v7210_v17  ;;  %4240 = vmatpush1.bf16.msra.mxu0 %v7211_v18  ;;  %v7281_v17 = vld [vmem:[%s8056_s30 + $0x270] ss:$52 sps:$4 sm:$0xff]   ;;  %v7282_v18 = vld [vmem:[%s8056_s30 + $0x280] ss:$52 sps:$4 sm:$0xff]  }
  0x31   : > { %3663 = vmatprep.subr.bf16.mxu1 %v7941_v1  ;;  %4241 = vmatprep.subr.bf16.mxu0 %v7941_v1 }
  0x34   : > { %3664 = vmatpush1.bf16.msra.mxu1 %v7212_v20  ;;  %4242 = vmatpush1.bf16.msra.mxu0 %v7213_v22  ;;  %v7286_v20 = vld [vmem:[%s8056_s30 + $0x2dc] ss:$52 sps:$4 sm:$0xff]   ;;  %v7371_v22 = vld [vmem:[%s9387_s1 + $0xc8] sm:$0xff]  }
  0x35   : > { %3665 = vmatprep.subr.bf16.mxu1 %v7941_v1  ;;  %4243 = vmatprep.subr.bf16.mxu0 %v7941_v1 }
  0x38   : > { %3666 = vmatpush1.bf16.msra.mxu1 %v7214_v23  ;;  %4244 = vmatpush1.bf16.msra.mxu0 %v7215_v24  ;;  %v7285_v23 = vld [vmem:[%s9387_s1 + $0x1e8] sm:$0xff]  }
  0x39   : > { %3667 = vmatprep.subr.bf16.mxu1 %v7941_v1  ;;  %4245 = vmatprep.subr.bf16.mxu0 %v7941_v1  ;;  %v7290_v24 = vld [vmem:[%s8056_s30 + $0x2d8] ss:$52 sps:$4 sm:$0xff]  }
  0x3c   : > { %3668 = vmatpush1.bf16.msra.mxu1 %v7216_v25  ;;  %4246 = vmatpush1.bf16.msra.mxu0 %v7217_v26  ;;  %v7291_v25 = vld [vmem:[%s8056_s30 + $0x2e8] ss:$52 sps:$4 sm:$0xff]   ;;  %v7294_v26 = vld [vmem:[%s8056_s30 + $0x344] ss:$52 sps:$4 sm:$0xff]  }
  0x3d   : > { %3669 = vmatprep.subr.bf16.mxu1 %v7941_v1  ;;  %4247 = vmatprep.subr.bf16.mxu0 %v7941_v1 }
  0x40   : > { %3670 = vmatpush1.bf16.msra.mxu1 %v7218_v27  ;;  %4248 = vmatpush1.bf16.msra.mxu0 %v7219_v28  ;;  %v7292_v27 = vld [vmem:[%s9387_s1 + $0x1f0] sm:$0xff]  }
  0x41   : > { %3671 = vmatprep.subr.bf16.mxu1 %v7941_v1  ;;  %4249 = vmatprep.subr.bf16.mxu0 %v7941_v1  ;;  %v7298_v28 = vld [vmem:[%s8056_s30 + $0x1c] ss:$52 sps:$4 sm:$0xff]  }
  0x44   : > { %3672 = vmatpush1.bf16.msra.mxu1 %v7220_v29  ;;  %4250 = vmatpush1.bf16.msra.mxu0 %v7221_v30  ;;  %v7385_v29 = vld [vmem:[%s9387_s1 + $0xd0] sm:$0xff]   ;;  %v7293_v30 = vld [vmem:[%s9387_s1 + $0x1f8] sm:$0xff]  }
  0x45   : > { %3673 = vmatprep.subr.bf16.mxu1 %v7941_v1  ;;  %4251 = vmatprep.subr.bf16.mxu0 %v7941_v1 }
  0x48   : > { %3674 = vmatpush1.bf16.msra.mxu1 %v7222_v31  ;;  %4252 = vmatpush1.bf16.msra.mxu0 %v7223_v32  ;;  %v7296_v31 = vld [vmem:[%s8056_s30 + $0x18] ss:$52 sps:$4 sm:$0xff]   ;;  %v7299_v32 = vld [vmem:[%s8056_s30 + $0x340] ss:$52 sps:$4 sm:$0xff]  }
  0x49   : > { %3675 = vmatprep.subr.bf16.mxu1 %v7941_v1  ;;  %4253 = vmatprep.subr.bf16.mxu0 %v7941_v1 }
  0x4c   : > { %3676 = vmatpush1.bf16.msra.mxu1 %v7224_v33  ;;  %4254 = vmatpush1.bf16.msra.mxu0 %v7225_v34  ;;  %v7300_v33 = vld [vmem:[%s9387_s1 + $0x200] sm:$0xff]  }
  0x4d   : > { %3934 = vmatprep.subr.bf16.mxu1 %v7941_v1  ;;  %4512 = vmatprep.subr.bf16.mxu0 %v7941_v1  ;;  %v7302_v34 = vld [vmem:[%s8056_s30 + $0x3ac] ss:$52 sps:$4 sm:$0xff]  }
  0x4f   : > { %3678 = vmatmul.mubr.bf16.vlgmr.msra.gmra.mrb[0].mxu1 %v7226_v35  ;;  %4256 = vmatmul.mubr.bf16.vlgmr.msra.gmra.mrb[0].mxu0 %v7229_v36  ;;  %v7304_v35 = vld [vmem:[%s8056_s30 + $0x84] ss:$52 sps:$4 sm:$0xff]  }
  0x50   : > { %3935 = vmatpush1.bf16.msra.mxu1 %v7233_v38  ;;  %4513 = vmatpush1.bf16.msra.mxu0 %v7232_v37  ;;  %v7399_v36 = vld [vmem:[%s9387_s1 + $0xd8] sm:$0xff]   ;;  %v7314_v37 = vld [vmem:[%s9387_s1 + $0x208] sm:$0xff]  }
  0x51   : > { %3685 = vmatprep.mubr.bf16.mxu1 %v7235_v39  ;;  %4514 = vmatprep.subr.bf16.mxu0 %v7941_v1  ;;  %v7306_v38 = vld [vmem:[%s8056_s30 + $0x3a8] ss:$52 sps:$4 sm:$0xff]   ;;  %v7307_v39 = vld [vmem:[%s8056_s30 + $0x80] ss:$52 sps:$4 sm:$0xff]  }
  0x52   : > { %4263 = vmatprep.mubr.bf16.mxu0 %v7237_v40  ;;  %3936 = vmatprep.subr.bf16.mxu1 %v7941_v1  ;;  %v7308_v40 = vld [vmem:[%s8056_s30 + $0x414] ss:$52 sps:$4 sm:$0xff]  }
  0x54   : > { %3937 = vmatpush1.bf16.msra.mxu1 %v7250_v41  ;;  %4515 = vmatpush1.bf16.msra.mxu0 %v7234_v42  ;;  %v7310_v41 = vld [vmem:[%s8056_s30 + $0xec] ss:$52 sps:$4 sm:$0xff]   ;;  %v7328_v42 = vld [vmem:[%s9387_s1 + $0x210] sm:$0xff]  }
  0x55   : > { %3938 = vmatprep.subr.bf16.mxu1 %v7941_v1  ;;  %4516 = vmatprep.subr.bf16.mxu0 %v7941_v1 }
  0x57   : > { %3686 = vmatmul.mubr.bf16.gmra.mrb[4].mxu1 %v7239_v43  ;;  %4264 = vmatmul.mubr.bf16.gmra.mrb[4].mxu0 %v7240_v44  ;;  %v7413_v43 = vld [vmem:[%s9387_s1 + $0xe0] sm:$0xff]  }
  0x58   : > { %3693 = vmatprep.mubr.bf16.mxu1 %v7243_v46  ;;  %4517 = vmatpush1.bf16.msra.mxu0 %v7241_v45  ;;  %v7312_v44 = vld [vmem:[%s8056_s30 + $0x410] ss:$52 sps:$4 sm:$0xff]   ;;  %v7342_v45 = vld [vmem:[%s9387_s1 + $0x218] sm:$0xff]  }
  0x59   : > { %4271 = vmatprep.mubr.bf16.mxu0 %v7245_v47  ;;  %4518 = vmatprep.subr.bf16.mxu0 %v7941_v1  ;;  %v7313_v46 = vld [vmem:[%s8056_s30 + $0xe8] ss:$52 sps:$4 sm:$0xff]  }
  0x5a   : > { %3939 = vmatpush1.bf16.msra.mxu1 %v7267_v48  ;;  %v7316_v47 = vld [vmem:[%s8056_s30 + $0x47c] ss:$52 sps:$4 sm:$0xff]   ;;  %v7318_v48 = vld [vmem:[%s8056_s30 + $0x154] ss:$52 sps:$4 sm:$0xff]  }
  0x5b   : > { %3940 = vmatprep.subr.bf16.mxu1 %v7941_v1 }
  0x5c   : > { %4519 = vmatpush1.bf16.msra.mxu0 %v7242_v49  ;;  %v7356_v49 = vld [vmem:[%s9387_s1 + $0x220] sm:$0xff]  }
  0x5d   : > { %4520 = vmatprep.subr.bf16.mxu0 %v7941_v1 }
  0x5e   : > { %3941 = vmatpush1.bf16.msra.mxu1 %v7284_v52  ;;  %v7370_v52 = vld [vmem:[%s9387_s1 + $0x228] sm:$0xff]  }
  0x5f   : > { %3694 = vmatmul.mubr.bf16.gmra.mrb[8].mxu1 %v7247_v50  ;;  %3942 = vmatprep.subr.bf16.mxu1 %v7941_v1  ;;  %v7427_v50 = vld [vmem:[%s9387_s1 + $0xe8] sm:$0xff]  }
  0x60   : > { %4272 = vmatmul.mubr.bf16.gmra.mrb[8].mxu0 %v7248_v51  ;;  %3701 = vmatprep.mubr.bf16.mxu1 %v7252_v54  ;;  %v7320_v51 = vld [vmem:[%s8056_s30 + $0x478] ss:$52 sps:$4 sm:$0xff]  }
  0x61   : > { %4521 = vmatpush1.bf16.msra.mxu0 %v7249_v53  ;;  %4279 = vmatprep.mubr.bf16.mxu0 %v7254_v55  ;;  %v7321_v53 = vld [vmem:[%s8056_s30 + $0x150] ss:$52 sps:$4 sm:$0xff]  }
  0x62   : > { %4522 = vmatprep.subr.bf16.mxu0 %v7941_v1  ;;  %3943 = vmatpush1.bf16.msra.mxu1 %v7301_v56  ;;  %v7322_v54 = vld [vmem:[%s8056_s30 + $0x4e4] ss:$52 sps:$4 sm:$0xff]   ;;  %v7324_v55 = vld [vmem:[%s8056_s30 + $0x1bc] ss:$52 sps:$4 sm:$0xff]  }
  0x63   : > { %3944 = vmatprep.subr.bf16.mxu1 %v7941_v1  ;;  %v7384_v56 = vld [vmem:[%s9387_s1 + $0x230] sm:$0xff]  }
  0x65   : > { %4523 = vmatpush1.bf16.msra.mxu0 %v7251_v57  ;;  %v7326_v57 = vld [vmem:[%s8056_s30 + $0x4e0] ss:$52 sps:$4 sm:$0xff]  }
  0x66   : > { %4524 = vmatprep.subr.bf16.mxu0 %v7941_v1  ;;  %3945 = vmatpush1.bf16.msra.mxu1 %v7315_v60  ;;  %v7330_v60 = vld [vmem:[%s8056_s30 + $0x54c] ss:$52 sps:$4 sm:$0xff]  }
  0x67   : > { %3702 = vmatmul.mubr.bf16.gmra.mrb[12].mxu1 %v7256_v58  ;;  %3946 = vmatprep.subr.bf16.mxu1 %v7941_v1  ;;  %v7398_v58 = vld [vmem:[%s9387_s1 + $0x238] sm:$0xff]  }
  0x68   : > { %4280 = vmatmul.mubr.bf16.gmra.mrb[12].mxu0 %v7257_v59  ;;  %3709 = vmatprep.mubr.bf16.mxu1 %v7260_v61  ;;  %v7327_v59 = vld [vmem:[%s8056_s30 + $0x1b8] ss:$52 sps:$4 sm:$0xff]  }
  0x69   : > { %4525 = vmatpush1.bf16.msra.mxu0 %v7258_v62  ;;  %4287 = vmatprep.mubr.bf16.mxu0 %v7262_v63  ;;  %v7332_v61 = vld [vmem:[%s8056_s30 + $0x224] ss:$52 sps:$4 sm:$0xff]   ;;  %v7441_v63 = vld [vmem:[%s9387_s1 + $0xf0] sm:$0xff]  }
  0x6a   : > { %4526 = vmatprep.subr.bf16.mxu0 %v7941_v1  ;;  %3947 = vmatpush1.bf16.msra.mxu1 %v7329_v3  ;;  %v7412_v62 = vld [vmem:[%s9387_s1 + $0x240] sm:$0xff]  }
  0x6b   : > { %3948 = vmatprep.subr.bf16.mxu1 %v7941_v1  ;;  %v7335_v3 = vld [vmem:[%s8056_s30 + $0x220] ss:$52 sps:$4 sm:$0xff]  }
  0x6d   : > { %4527 = vmatpush1.bf16.msra.mxu0 %v7259_v0  ;;  %v7334_v0 = vld [vmem:[%s8056_s30 + $0x548] ss:$52 sps:$4 sm:$0xff]  }
  0x6e   : > { %4528 = vmatprep.subr.bf16.mxu0 %v7941_v1  ;;  %3949 = vmatpush1.bf16.msra.mxu1 %v7343_v9  ;;  %v7344_v9 = vld [vmem:[%s8056_s30 + $0x61c] ss:$52 sps:$4 sm:$0xff]  }
  0x6f   : > { %3710 = vmatmul.mubr.bf16.gmra.mrb[16].mxu1 %v7264_v2  ;;  %3950 = vmatprep.subr.bf16.mxu1 %v7941_v1  ;;  %v7426_v2 = vld [vmem:[%s9387_s1 + $0x248] sm:$0xff]  }
  0x70   : > { %4288 = vmatmul.mubr.bf16.gmra.mrb[16].mxu0 %v7265_v4  ;;  %3717 = vmatprep.mubr.bf16.mxu1 %v7269_v6  ;;  %v7336_v4 = vld [vmem:[%s8056_s30 + $0x5b4] ss:$52 sps:$4 sm:$0xff]  }
  0x71   : > { %4529 = vmatpush1.bf16.msra.mxu0 %v7266_v5  ;;  %4295 = vmatprep.mubr.bf16.mxu0 %v7271_v7  ;;  %v7338_v5 = vld [vmem:[%s8056_s30 + $0x28c] ss:$52 sps:$4 sm:$0xff]   ;;  %v7440_v6 = vld [vmem:[%s9387_s1 + $0x250] sm:$0xff]  }
  0x72   : > { %4530 = vmatprep.subr.bf16.mxu0 %v7941_v1  ;;  %3951 = vmatpush1.bf16.msra.mxu1 %v7357_v16  ;;  %v7340_v7 = vld [vmem:[%s8056_s30 + $0x5b0] ss:$52 sps:$4 sm:$0xff]  }
  0x73   : > { %3952 = vmatprep.subr.bf16.mxu1 %v7941_v1  ;;  %v7352_v16 = vld [vmem:[%s8056_s30 + $0x35c] ss:$52 sps:$4 sm:$0xff]  }
  0x75   : > { %4531 = vmatpush1.bf16.msra.mxu0 %v7268_v8  ;;  %v7341_v8 = vld [vmem:[%s8056_s30 + $0x288] ss:$52 sps:$4 sm:$0xff]  }
  0x76   : > { %4532 = vmatprep.subr.bf16.mxu0 %v7941_v1  ;;  %3953 = vmatpush1.bf16.msra.mxu1 %v7371_v22  ;;  %v7362_v22 = vld [vmem:[%s8056_s30 + $0x6e8] ss:$52 sps:$4 sm:$0xff]  }
  0x77   : > { %3718 = vmatmul.mubr.bf16.gmra.mrb[20].mxu1 %v7273_v10  ;;  %3954 = vmatprep.subr.bf16.mxu1 %v7941_v1  ;;  %v7346_v10 = vld [vmem:[%s8056_s30 + $0x2f4] ss:$52 sps:$4 sm:$0xff]  }
  0x78   : > { %4296 = vmatmul.mubr.bf16.gmra.mrb[20].mxu0 %v7274_v11  ;;  %3725 = vmatprep.mubr.bf16.mxu1 %v7277_v13  ;;  %v7454_v11 = vld [vmem:[%s9387_s1 + $0x258] sm:$0xff]  }
  0x79   : > { %4533 = vmatpush1.bf16.msra.mxu0 %v7275_v12  ;;  %4303 = vmatprep.mubr.bf16.mxu0 %v7279_v14  ;;  %v7455_v12 = vld [vmem:[%s9387_s1 + $0xf8] sm:$0xff]   ;;  %v7349_v14 = vld [vmem:[%s8056_s30 + $0x2f0] ss:$52 sps:$4 sm:$0xff]  }
  0x7a   : > { %4534 = vmatprep.subr.bf16.mxu0 %v7941_v1  ;;  %3955 = vmatpush1.bf16.msra.mxu1 %v7385_v29  ;;  %v7348_v13 = vld [vmem:[%s8056_s30 + $0x618] ss:$52 sps:$4 sm:$0xff]   ;;  %v7374_v29 = vld [vmem:[%s8056_s30 + $0x494] ss:$52 sps:$4 sm:$0xff]  }
  0x7b   : > { %3956 = vmatprep.subr.bf16.mxu1 %v7941_v1 }
  0x7d   : > { %4535 = vmatpush1.bf16.msra.mxu0 %v7276_v15  ;;  %v7350_v15 = vld [vmem:[%s8056_s30 + $0x684] ss:$52 sps:$4 sm:$0xff]  }
  0x7e   : > { %4536 = vmatprep.subr.bf16.mxu0 %v7941_v1  ;;  %3957 = vmatpush1.bf16.msra.mxu1 %v7399_v36  ;;  %v7383_v36 = vld [vmem:[%s8056_s30 + $0x4f8] ss:$52 sps:$4 sm:$0xff]  }
  0x7f   : > { %3726 = vmatmul.mubr.bf16.gmra.mrb[24].mxu1 %v7281_v17  ;;  %3958 = vmatprep.subr.bf16.mxu1 %v7941_v1  ;;  %v7354_v17 = vld [vmem:[%s8056_s30 + $0x680] ss:$52 sps:$4 sm:$0xff]  }
  0x80   : > { %4304 = vmatmul.mubr.bf16.gmra.mrb[24].mxu0 %v7282_v18  ;;  %3733 = vmatprep.mubr.bf16.mxu1 %v7286_v20  ;;  %v7355_v18 = vld [vmem:[%s8056_s30 + $0x358] ss:$52 sps:$4 sm:$0xff]  }
  0x81   : > { %4537 = vmatpush1.bf16.msra.mxu0 %v7283_v19  ;;  %4311 = vmatprep.mubr.bf16.mxu0 %v7288_v21  ;;  %v7358_v19 = vld [vmem:[%s8056_s30 + $0x6ec] ss:$52 sps:$4 sm:$0xff]   ;;  %v7360_v20 = vld [vmem:[%s8056_s30 + $0x3c4] ss:$52 sps:$4 sm:$0xff]  }
  0x82   : > { %4538 = vmatprep.subr.bf16.mxu0 %v7941_v1  ;;  %3959 = vmatpush1.bf16.msra.mxu1 %v7413_v43  ;;  %v7468_v21 = vld [vmem:[%s9387_s1 + $0x260] sm:$0xff]  }
  0x83   : > { %3960 = vmatprep.subr.bf16.mxu1 %v7941_v1  ;;  %v7394_v43 = vld [vmem:[%s8056_s30 + $0x5cc] ss:$52 sps:$4 sm:$0xff]  }
  0x85   : > { %4539 = vmatpush1.bf16.msra.mxu0 %v7285_v23  ;;  %v7363_v23 = vld [vmem:[%s8056_s30 + $0x3c0] ss:$52 sps:$4 sm:$0xff]  }
  0x86   : > { %4540 = vmatprep.subr.bf16.mxu0 %v7941_v1  ;;  %3961 = vmatpush1.bf16.msra.mxu1 %v7427_v50  ;;  %v7405_v50 = vld [vmem:[%s8056_s30 + $0x630] ss:$52 sps:$4 sm:$0xff]  }
  0x87   : > { %3734 = vmatmul.mubr.bf16.gmra.mrb[28].mxu1 %v7290_v24  ;;  %3962 = vmatprep.subr.bf16.mxu1 %v7941_v1  ;;  %v7364_v24 = vld [vmem:[%s8056_s30 + $0x754] ss:$52 sps:$4 sm:$0xff]  }
  0x88   : > { %4312 = vmatmul.mubr.bf16.gmra.mrb[28].mxu0 %v7291_v25  ;;  %3741 = vmatprep.mubr.bf16.mxu1 %v7294_v26  ;;  %v7366_v25 = vld [vmem:[%s8056_s30 + $0x42c] ss:$52 sps:$4 sm:$0xff]   ;;  %v7368_v26 = vld [vmem:[%s8056_s30 + $0x750] ss:$52 sps:$4 sm:$0xff]  }
  0x89   : > { %4541 = vmatpush1.bf16.msra.mxu0 %v7292_v27  ;;  %4544 = vmatprep.mubr.bf16.mxu0 %v7298_v28  ;;  %v7369_v27 = vld [vmem:[%s8056_s30 + $0x428] ss:$52 sps:$4 sm:$0xff]  }
  0x8a   : > { %4542 = vmatprep.subr.bf16.mxu0 %v7941_v1  ;;  %3963 = vmatpush1.bf16.msra.mxu1 %v7441_v63  ;;  %v7372_v28 = vld [vmem:[%s8056_s30 + $0x7bc] ss:$52 sps:$4 sm:$0xff]  }
  0x8b   : > { %3964 = vmatprep.subr.bf16.mxu1 %v7941_v1  ;;  %v7428_v63 = vld [vmem:[%s8056_s30 + $0xafc] ss:$52 sps:$4 sm:$0xff]  }
  0x8d   : > { %4543 = vmatpush1.bf16.msra.mxu0 %v7293_v30  ;;  %v7481_v30 = vld [vmem:[%s9387_s1 + $0x268] sm:$0xff]  }
  0x8e   : > { %4801 = vmatprep.subr.bf16.mxu0 %v7941_v1  ;;  %3965 = vmatpush1.bf16.msra.mxu1 %v7455_v12  ;;  %v7448_v12 = vld [vmem:[%s8056_s30 + $0xc34] ss:$52 sps:$4 sm:$0xff]  }
  0x8f   : > { %3742 = vmatmul.mubr.bf16.gmra.mrb[32].mxu1 %v7299_v32  ;;  %6496 = vmatprep.subr.bf16.mxu1 %v7941_v1  ;;  %v7377_v32 = vld [vmem:[%s8056_s30 + $0x490] ss:$52 sps:$4 sm:$0xff]  }
  0x90   : > { %4545 = vmatmul.mubr.bf16.vlgmr.msra.gmra.mrb[0].mxu0 %v7296_v31  ;;  %3749 = vmatprep.mubr.bf16.mxu1 %v7302_v34  ;;  %v7376_v31 = vld [vmem:[%s8056_s30 + $0x7b8] ss:$52 sps:$4 sm:$0xff]   ;;  %v7380_v34 = vld [vmem:[%s8056_s30 + $0x4fc] ss:$52 sps:$4 sm:$0xff]  }
  0x91   : > { %4802 = vmatpush1.bf16.msra.mxu0 %v7300_v33  ;;  %4552 = vmatprep.mubr.bf16.mxu0 %v7304_v35  ;;  %v7378_v33 = vld [vmem:[%s8056_s30 + $0x824] ss:$52 sps:$4 sm:$0xff]   ;;  %v7382_v35 = vld [vmem:[%s8056_s30 + $0x820] ss:$52 sps:$4 sm:$0xff]  }
  0x92   : > { %4803 = vmatprep.subr.bf16.mxu0 %v7941_v1 }
  0x95   : > { %4804 = vmatpush1.bf16.msra.mxu0 %v7314_v37  ;;  %v7386_v37 = vld [vmem:[%s8056_s30 + $0x88c] ss:$52 sps:$4 sm:$0xff]  }
  0x96   : > { %4805 = vmatprep.subr.bf16.mxu0 %v7941_v1 }
  0x97   : > { %3750 = vmatmul.mubr.bf16.gmra.mrb[36].mxu1 %v7306_v38  ;;  %v7388_v38 = vld [vmem:[%s8056_s30 + $0x564] ss:$52 sps:$4 sm:$0xff]  }
  0x98   : > { %4553 = vmatmul.mubr.bf16.gmra.mrb[4].mxu0 %v7307_v39  ;;  %3757 = vmatprep.mubr.bf16.mxu1 %v7308_v40  ;;  %v7494_v39 = vld [vmem:[%s9387_s1 + $0x270] sm:$0xff]   ;;  %v7390_v40 = vld [vmem:[%s8056_s30 + $0x888] ss:$52 sps:$4 sm:$0xff]  }
  0x99   : > { %4560 = vmatprep.mubr.bf16.mxu0 %v7310_v41  ;;  %4806 = vmatpush1.bf16.msra.mxu0 %v7328_v42  ;;  %v7391_v41 = vld [vmem:[%s8056_s30 + $0x560] ss:$52 sps:$4 sm:$0xff]  }
  0x9a   : > { %4807 = vmatprep.subr.bf16.mxu0 %v7941_v1  ;;  %v7392_v42 = vld [vmem:[%s8056_s30 + $0x8f4] ss:$52 sps:$4 sm:$0xff]  }
  0x9d   : > { %4808 = vmatpush1.bf16.msra.mxu0 %v7342_v45  ;;  %v7397_v45 = vld [vmem:[%s8056_s30 + $0x5c8] ss:$52 sps:$4 sm:$0xff]  }
  0x9e   : > { %4809 = vmatprep.subr.bf16.mxu0 %v7941_v1 }
  0x9f   : > { %3758 = vmatmul.mubr.bf16.gmra.mrb[40].mxu1 %v7312_v44  ;;  %v7396_v44 = vld [vmem:[%s8056_s30 + $0x8f0] ss:$52 sps:$4 sm:$0xff]  }
  0xa0   : > { %4561 = vmatmul.mubr.bf16.gmra.mrb[8].mxu0 %v7313_v46  ;;  %3765 = vmatprep.mubr.bf16.mxu1 %v7316_v47  ;;  %v7400_v46 = vld [vmem:[%s8056_s30 + $0x95c] ss:$52 sps:$4 sm:$0xff]   ;;  %v7402_v47 = vld [vmem:[%s8056_s30 + $0x634] ss:$52 sps:$4 sm:$0xff]  }
  0xa1   : > { %4568 = vmatprep.mubr.bf16.mxu0 %v7318_v48  ;;  %4810 = vmatpush1.bf16.msra.mxu0 %v7356_v49  ;;  %v7507_v48 = vld [vmem:[%s9387_s1 + $0x278] sm:$0xff]  }
  0xa2   : > { %4811 = vmatprep.subr.bf16.mxu0 %v7941_v1  ;;  %v7404_v49 = vld [vmem:[%s8056_s30 + $0x958] ss:$52 sps:$4 sm:$0xff]  }
  0xa5   : > { %4812 = vmatpush1.bf16.msra.mxu0 %v7370_v52  ;;  %v7408_v52 = vld [vmem:[%s8056_s30 + $0x69c] ss:$52 sps:$4 sm:$0xff]  }
  0xa6   : > { %4813 = vmatprep.subr.bf16.mxu0 %v7941_v1 }
  0xa7   : > { %3766 = vmatmul.mubr.bf16.gmra.mrb[44].mxu1 %v7320_v51  ;;  %v7406_v51 = vld [vmem:[%s8056_s30 + $0x9c4] ss:$52 sps:$4 sm:$0xff]  }
  0xa8   : > { %4569 = vmatmul.mubr.bf16.gmra.mrb[12].mxu0 %v7321_v53  ;;  %3773 = vmatprep.mubr.bf16.mxu1 %v7322_v54  ;;  %v7410_v53 = vld [vmem:[%s8056_s30 + $0x9c0] ss:$52 sps:$4 sm:$0xff]   ;;  %v7411_v54 = vld [vmem:[%s8056_s30 + $0x698] ss:$52 sps:$4 sm:$0xff]  }
  0xa9   : > { %4576 = vmatprep.mubr.bf16.mxu0 %v7324_v55  ;;  %4814 = vmatpush1.bf16.msra.mxu0 %v7384_v56  ;;  %v7414_v55 = vld [vmem:[%s8056_s30 + $0xa2c] ss:$52 sps:$4 sm:$0xff]   ;;  %v7416_v56 = vld [vmem:[%s8056_s30 + $0x704] ss:$52 sps:$4 sm:$0xff]  }
  0xaa   : > { %4815 = vmatprep.subr.bf16.mxu0 %v7941_v1 }
  0xad   : > { %4816 = vmatpush1.bf16.msra.mxu0 %v7398_v58  ;;  %v7419_v58 = vld [vmem:[%s8056_s30 + $0x700] ss:$52 sps:$4 sm:$0xff]  }
  0xae   : > { %4817 = vmatprep.subr.bf16.mxu0 %v7941_v1 }
  0xaf   : > { %3774 = vmatmul.mubr.bf16.gmra.mrb[48].mxu1 %v7326_v57  ;;  %v7418_v57 = vld [vmem:[%s8056_s30 + $0xa28] ss:$52 sps:$4 sm:$0xff]  }
  0xb0   : > { %4577 = vmatmul.mubr.bf16.gmra.mrb[16].mxu0 %v7327_v59  ;;  %3781 = vmatprep.mubr.bf16.mxu1 %v7330_v60  ;;  %v7420_v59 = vld [vmem:[%s8056_s30 + $0xa94] ss:$52 sps:$4 sm:$0xff]   ;;  %v7422_v60 = vld [vmem:[%s8056_s30 + $0x76c] ss:$52 sps:$4 sm:$0xff]  }
  0xb1   : > { %4584 = vmatprep.mubr.bf16.mxu0 %v7332_v61  ;;  %4818 = vmatpush1.bf16.msra.mxu0 %v7412_v62  ;;  %v7424_v61 = vld [vmem:[%s8056_s30 + $0xa90] ss:$52 sps:$4 sm:$0xff]   ;;  %v7425_v62 = vld [vmem:[%s8056_s30 + $0x768] ss:$52 sps:$4 sm:$0xff]  }
  0xb2   : > { %4819 = vmatprep.subr.bf16.mxu0 %v7941_v1 }
  0xb5   : > { %4820 = vmatpush1.bf16.msra.mxu0 %v7426_v2  ;;  %v7432_v2 = vld [vmem:[%s8056_s30 + $0xaf8] ss:$52 sps:$4 sm:$0xff]  }
  0xb6   : > { %4821 = vmatprep.subr.bf16.mxu0 %v7941_v1 }
  0xb7   : > { %3782 = vmatmul.mubr.bf16.gmra.mrb[52].mxu1 %v7334_v0  ;;  %v7430_v0 = vld [vmem:[%s8056_s30 + $0x7d4] ss:$52 sps:$4 sm:$0xff]  }
  0xb8   : > { %4585 = vmatmul.mubr.bf16.gmra.mrb[20].mxu0 %v7335_v3  ;;  %3789 = vmatprep.mubr.bf16.mxu1 %v7336_v4  ;;  %v7433_v3 = vld [vmem:[%s8056_s30 + $0x7d0] ss:$52 sps:$4 sm:$0xff]  }
  0xb9   : > { %4592 = vmatprep.mubr.bf16.mxu0 %v7338_v5  ;;  %4822 = vmatpush1.bf16.msra.mxu0 %v7440_v6  ;;  %v7434_v4 = vld [vmem:[%s8056_s30 + $0xb64] ss:$52 sps:$4 sm:$0xff]   ;;  %v7436_v5 = vld [vmem:[%s8056_s30 + $0x83c] ss:$52 sps:$4 sm:$0xff]   ;;  %v7438_v6 = vld [vmem:[%s8056_s30 + $0xb60] ss:$52 sps:$4 sm:$0xff]  }
  0xba   : > { %4823 = vmatprep.subr.bf16.mxu0 %v7941_v1 }
  0xbd   : > { %4824 = vmatpush1.bf16.msra.mxu0 %v7454_v11  ;;  %v7447_v11 = vld [vmem:[%s8056_s30 + $0x8a0] ss:$52 sps:$4 sm:$0xff]  }
  0xbe   : > { %4825 = vmatprep.subr.bf16.mxu0 %v7941_v1 }
  0xbf   : > { %3790 = vmatmul.mubr.bf16.gmra.mrb[56].mxu1 %v7340_v7  ;;  %v7439_v7 = vld [vmem:[%s8056_s30 + $0x838] ss:$52 sps:$4 sm:$0xff]  }
  0xc0   : > { %4593 = vmatmul.mubr.bf16.gmra.mrb[24].mxu0 %v7341_v8  ;;  %3797 = vmatprep.mubr.bf16.mxu1 %v7344_v9  ;;  %v7442_v8 = vld [vmem:[%s8056_s30 + $0xbcc] ss:$52 sps:$4 sm:$0xff]   ;;  %v7444_v9 = vld [vmem:[%s8056_s30 + $0x8a4] ss:$52 sps:$4 sm:$0xff]  }
  0xc1   : > { %4600 = vmatprep.mubr.bf16.mxu0 %v7346_v10  ;;  %4826 = vmatpush1.bf16.msra.mxu0 %v7468_v21  ;;  %v7446_v10 = vld [vmem:[%s8056_s30 + $0xbc8] ss:$52 sps:$4 sm:$0xff]  }
  0xc2   : > { %4827 = vmatprep.subr.bf16.mxu0 %v7941_v1  ;;  %v7465_v21 = vld [vmem:[%s8056_s30 + $0x9dc] ss:$52 sps:$4 sm:$0xff]  }
  0xc5   : > { %4828 = vmatpush1.bf16.msra.mxu0 %v7481_v30  ;;  %v7901_v30 = vld [vmem:[%s9387_s1 + $0x108] sm:$0xff]  }
  0xc6   : > { %4829 = vmatprep.subr.bf16.mxu0 %v7941_v1 }
  0xc7   : > { %3798 = vmatmul.mubr.bf16.gmra.mrb[60].mxu1 %v7348_v13  ;;  %v7450_v13 = vld [vmem:[%s8056_s30 + $0x90c] ss:$52 sps:$4 sm:$0xff]  }
  0xc8   : > { %4601 = vmatmul.mubr.bf16.gmra.mrb[28].mxu0 %v7349_v14  ;;  %3805 = vmatprep.mubr.bf16.mxu1 %v7350_v15  ;;  %v7452_v14 = vld [vmem:[%s8056_s30 + $0xc30] ss:$52 sps:$4 sm:$0xff]   ;;  %v7453_v15 = vld [vmem:[%s8056_s30 + $0x908] ss:$52 sps:$4 sm:$0xff]  }
  0xc9   : > { %4608 = vmatprep.mubr.bf16.mxu0 %v7352_v16  ;;  %4830 = vmatpush1.bf16.msra.mxu0 %v7494_v39  ;;  %v7456_v16 = vld [vmem:[%s8056_s30 + $0xc9c] ss:$52 sps:$4 sm:$0xff]   ;;  %v7486_v39 = vld [vmem:[%s8056_s30 + $0x140] ss:$52 sps:$4 sm:$0xff]  }
  0xca   : > { %4831 = vmatprep.subr.bf16.mxu0 %v7941_v1 }
  0xcd   : > { %4832 = vmatpush1.bf16.msra.mxu0 %v7507_v48  ;;  %v7497_v48 = vld [vmem:[%s8056_s30 + $0xbe4] ss:$52 sps:$4 sm:$0xff]  }
  0xce   : > { %5090 = vmatprep.subr.bf16.mxu0 %v7941_v1 }
  0xcf   : > { %3806 = vmatmul.mubr.bf16.gmra.mrb[64].mxu1 %v7354_v17  ;;  %v7458_v17 = vld [vmem:[%s8056_s30 + $0x974] ss:$52 sps:$4 sm:$0xff]  }
  0xd0   : > { %4609 = vmatmul.mubr.bf16.gmra.mrb[32].mxu0 %v7355_v18  ;;  %3813 = vmatprep.mubr.bf16.mxu1 %v7358_v19  ;;  %v7460_v18 = vld [vmem:[%s8056_s30 + $0xc98] ss:$52 sps:$4 sm:$0xff]   ;;  %v7461_v19 = vld [vmem:[%s8056_s30 + $0x970] ss:$52 sps:$4 sm:$0xff]  }
  0xd1   : > { %4616 = vmatprep.mubr.bf16.mxu0 %v7360_v20  ;;  %v7464_v20 = vld [vmem:[%s8056_s30 + $0xc] ss:$52 sps:$4 sm:$0xff]  }
  0xd7   : > { %3814 = vmatmul.mubr.bf16.gmra.mrb[68].mxu1 %v7362_v22  ;;  %v7462_v22 = vld [vmem:[%s8056_s30 + $0x8] ss:$52 sps:$4 sm:$0xff]  }
  0xd8   : > { %4617 = vmatmul.mubr.bf16.gmra.mrb[36].mxu0 %v7363_v23  ;;  %3821 = vmatprep.mubr.bf16.mxu1 %v7364_v24  ;;  %v7467_v23 = vld [vmem:[%s8056_s30 + $0x9d8] ss:$52 sps:$4 sm:$0xff]   ;;  %v7469_v24 = vld [vmem:[%s8056_s30 + $0x74] ss:$52 sps:$4 sm:$0xff]  }
  0xd9   : > { %4624 = vmatprep.mubr.bf16.mxu0 %v7366_v25  ;;  %v7471_v25 = vld [vmem:[%s8056_s30 + $0xa44] ss:$52 sps:$4 sm:$0xff]  }
  0xdf   : > { %3822 = vmatmul.mubr.bf16.gmra.mrb[72].mxu1 %v7368_v26  ;;  %v7900_v26 = vld [vmem:[%s9387_s1 + $0x100] sm:$0xff]  }
  0xe0   : > { %4625 = vmatmul.mubr.bf16.gmra.mrb[40].mxu0 %v7369_v27  ;;  %3829 = vmatprep.mubr.bf16.mxu1 %v7372_v28  ;;  %v7473_v27 = vld [vmem:[%s8056_s30 + $0x70] ss:$52 sps:$4 sm:$0xff]   ;;  %v7474_v28 = vld [vmem:[%s8056_s30 + $0xa40] ss:$52 sps:$4 sm:$0xff]  }
  0xe1   : > { %4632 = vmatprep.mubr.bf16.mxu0 %v7374_v29  ;;  %v7475_v29 = vld [vmem:[%s8056_s30 + $0xdc] ss:$52 sps:$4 sm:$0xff]  }
  0xe7   : > { %3830 = vmatmul.mubr.bf16.gmra.mrb[76].mxu1 %v7376_v31  ;;  %v7477_v31 = vld [vmem:[%s8056_s30 + $0xaac] ss:$52 sps:$4 sm:$0xff]  }
  0xe8   : > { %4633 = vmatmul.mubr.bf16.gmra.mrb[44].mxu0 %v7377_v32  ;;  %3837 = vmatprep.mubr.bf16.mxu1 %v7378_v33  ;;  %v7902_v32 = vld [vmem:[%s9387_s1 + $0x110] sm:$0xff]   ;;  %v7479_v33 = vld [vmem:[%s8056_s30 + $0xd8] ss:$52 sps:$4 sm:$0xff]  }
  0xe9   : > { %4640 = vmatprep.mubr.bf16.mxu0 %v7380_v34  ;;  %v7480_v34 = vld [vmem:[%s8056_s30 + $0xaa8] ss:$52 sps:$4 sm:$0xff]  }
  0xef   : > { %3838 = vmatmul.mubr.bf16.gmra.mrb[80].mxu1 %v7382_v35  ;;  %v7482_v35 = vld [vmem:[%s8056_s30 + $0x144] ss:$52 sps:$4 sm:$0xff]  }
  0xf0   : > { %4641 = vmatmul.mubr.bf16.gmra.mrb[48].mxu0 %v7383_v36  ;;  %3845 = vmatprep.mubr.bf16.mxu1 %v7386_v37  ;;  %v7484_v36 = vld [vmem:[%s8056_s30 + $0xb14] ss:$52 sps:$4 sm:$0xff]   ;;  %v7903_v37 = vld [vmem:[%s9387_s1 + $0x118] sm:$0xff]  }
  0xf1   : > { %4648 = vmatprep.mubr.bf16.mxu0 %v7388_v38  ;;  %v7904_v38 = vld [vmem:[%s9387_s1 + $0x120] sm:$0xff]  }
  0xf7   : > { %3846 = vmatmul.mubr.bf16.gmra.mrb[84].mxu1 %v7390_v40  ;;  %v7487_v40 = vld [vmem:[%s8056_s30 + $0xb10] ss:$52 sps:$4 sm:$0xff]  }
  0xf8   : > { %4649 = vmatmul.mubr.bf16.gmra.mrb[52].mxu0 %v7391_v41  ;;  %3853 = vmatprep.mubr.bf16.mxu1 %v7392_v42  ;;  %v7488_v41 = vld [vmem:[%s8056_s30 + $0x1ac] ss:$52 sps:$4 sm:$0xff]   ;;  %v7490_v42 = vld [vmem:[%s8056_s30 + $0xb7c] ss:$52 sps:$4 sm:$0xff]  }
  0xf9   : > { %4656 = vmatprep.mubr.bf16.mxu0 %v7394_v43  ;;  %v7905_v43 = vld [vmem:[%s9387_s1 + $0x128] sm:$0xff]  }
  0xff   : > { %3854 = vmatmul.mubr.bf16.gmra.mrb[88].mxu1 %v7396_v44  ;;  %v7906_v44 = vld [vmem:[%s9387_s1 + $0x130] sm:$0xff]  }
 0x100   : > { %4657 = vmatmul.mubr.bf16.gmra.mrb[56].mxu0 %v7397_v45  ;;  %3861 = vmatprep.mubr.bf16.mxu1 %v7400_v46  ;;  %v7492_v45 = vld [vmem:[%s8056_s30 + $0x1a8] ss:$52 sps:$4 sm:$0xff]   ;;  %v7493_v46 = vld [vmem:[%s8056_s30 + $0xb78] ss:$52 sps:$4 sm:$0xff]  }
 0x101   : > { %4664 = vmatprep.mubr.bf16.mxu0 %v7402_v47  ;;  %v7495_v47 = vld [vmem:[%s8056_s30 + $0x214] ss:$52 sps:$4 sm:$0xff]  }
 0x107   : > { %3862 = vmatmul.mubr.bf16.gmra.mrb[92].mxu1 %v7404_v49  ;;  %v7907_v49 = vld [vmem:[%s9387_s1 + $0x138] sm:$0xff]  }
 0x108   : > { %4665 = vmatmul.mubr.bf16.gmra.mrb[60].mxu0 %v7405_v50  ;;  %3869 = vmatprep.mubr.bf16.mxu1 %v7406_v51  ;;  %v7908_v50 = vld [vmem:[%s9387_s1 + $0x140] sm:$0xff]  }
 0x109   : > { %4672 = vmatprep.mubr.bf16.mxu0 %v7408_v52  ;;  %v7499_v51 = vld [vmem:[%s8056_s30 + $0x210] ss:$52 sps:$4 sm:$0xff]   ;;  %v7500_v52 = vld [vmem:[%s8056_s30 + $0xbe0] ss:$52 sps:$4 sm:$0xff]  }
 0x10f   : > { %3870 = vmatmul.mubr.bf16.gmra.mrb[96].mxu1 %v7410_v53  ;;  %v7501_v53 = vld [vmem:[%s8056_s30 + $0x27c] ss:$52 sps:$4 sm:$0xff]  }
 0x110   : > { %4673 = vmatmul.mubr.bf16.gmra.mrb[64].mxu0 %v7411_v54  ;;  %3877 = vmatprep.mubr.bf16.mxu1 %v7414_v55  ;;  %v7503_v54 = vld [vmem:[%s8056_s30 + $0xc4c] ss:$52 sps:$4 sm:$0xff]  }
 0x111   : > { %4680 = vmatprep.mubr.bf16.mxu0 %v7416_v56  ;;  %v7909_v55 = vld [vmem:[%s9387_s1 + $0x148] sm:$0xff]   ;;  %v7910_v56 = vld [vmem:[%s9387_s1 + $0x150] sm:$0xff]  }
 0x117   : > { %3878 = vmatmul.mubr.bf16.gmra.mrb[100].mxu1 %v7418_v57  ;;  %v7505_v57 = vld [vmem:[%s8056_s30 + $0x278] ss:$52 sps:$4 sm:$0xff]  }
 0x118   : > { %4681 = vmatmul.mubr.bf16.gmra.mrb[68].mxu0 %v7419_v58  ;;  %3885 = vmatprep.mubr.bf16.mxu1 %v7420_v59  ;;  %v7506_v58 = vld [vmem:[%s8056_s30 + $0xc48] ss:$52 sps:$4 sm:$0xff]   ;;  %v7508_v59 = vld [vmem:[%s8056_s30 + $0x2e4] ss:$52 sps:$4 sm:$0xff]  }
 0x119   : > { %4688 = vmatprep.mubr.bf16.mxu0 %v7422_v60  ;;  %v7510_v60 = vld [vmem:[%s8056_s30 + $0xcb4] ss:$52 sps:$4 sm:$0xff]  }
 0x11f   : > { %3886 = vmatmul.mubr.bf16.gmra.mrb[104].mxu1 %v7424_v61  ;;  %v7911_v61 = vld [vmem:[%s9387_s1 + $0x158] sm:$0xff]  }
 0x120   : > { %4689 = vmatmul.mubr.bf16.gmra.mrb[72].mxu0 %v7425_v62  ;;  %3893 = vmatprep.mubr.bf16.mxu1 %v7428_v63  ;;  %v7912_v62 = vld [vmem:[%s9387_s1 + $0x160] sm:$0xff]  }
 0x121   : > { %4696 = vmatprep.mubr.bf16.mxu0 %v7430_v0  ;;  %v7512_v63 = vld [vmem:[%s8056_s30 + $0x2e0] ss:$52 sps:$4 sm:$0xff]   ;;  %v7513_v0 = vld [vmem:[%s8056_s30 + $0xcb0] ss:$52 sps:$4 sm:$0xff]  }
 0x127   : > { %3894 = vmatmul.mubr.bf16.gmra.mrb[108].mxu1 %v7432_v2  ;;  %v7514_v2 = vld [vmem:[%s8056_s30 + $0x34c] ss:$52 sps:$4 sm:$0xff]  }
 0x128   : > { %4697 = vmatmul.mubr.bf16.gmra.mrb[76].mxu0 %v7433_v3  ;;  %3901 = vmatprep.mubr.bf16.mxu1 %v7434_v4  ;;  %v7518_v3 = vld [vmem:[%s8056_s30 + $0x24] ss:$52 sps:$4 sm:$0xff]   ;;  %v7913_v4 = vld [vmem:[%s9387_s1 + $0x168] sm:$0xff]  }
 0x129   : > { %4704 = vmatprep.mubr.bf16.mxu0 %v7436_v5  ;;  %v7914_v5 = vld [vmem:[%s9387_s1 + $0x170] sm:$0xff]  }
 0x12f   : > { %3902 = vmatmul.mubr.bf16.gmra.mrb[112].mxu1 %v7438_v6  ;;  %v7519_v6 = vld [vmem:[%s8056_s30 + $0x348] ss:$52 sps:$4 sm:$0xff]  }
 0x130   : > { %4705 = vmatmul.mubr.bf16.gmra.mrb[80].mxu0 %v7439_v7  ;;  %3909 = vmatprep.mubr.bf16.mxu1 %v7442_v8  ;;  %v7516_v7 = vld [vmem:[%s8056_s30 + $0x20] ss:$52 sps:$4 sm:$0xff]  }
 0x131   : > { %4712 = vmatprep.mubr.bf16.mxu0 %v7444_v9  ;;  %v7521_v8 = vld [vmem:[%s8056_s30 + $0x3b4] ss:$52 sps:$4 sm:$0xff]   ;;  %v7520_v9 = vld [vmem:[%s9387_s1 + $0x280] sm:$0xff]  }
 0x137   : > { %3910 = vmatmul.mubr.bf16.gmra.mrb[116].mxu1 %v7446_v10  ;;  %v7523_v10 = vld [vmem:[%s8056_s30 + $0x8c] ss:$52 sps:$4 sm:$0xff]  }
 0x138   : > { %4713 = vmatmul.mubr.bf16.gmra.mrb[84].mxu0 %v7447_v11  ;;  %3917 = vmatprep.mubr.bf16.mxu1 %v7448_v12  ;;  %v7915_v11 = vld [vmem:[%s9387_s1 + $0x178] sm:$0xff]   ;;  %v7533_v12 = vld [vmem:[%s9387_s1 + $0x288] sm:$0xff]  }
 0x139   : > { %4720 = vmatprep.mubr.bf16.mxu0 %v7450_v13  ;;  %v7525_v13 = vld [vmem:[%s8056_s30 + $0x3b0] ss:$52 sps:$4 sm:$0xff]  }
 0x13f   : > { %3918 = vmatmul.mubr.bf16.gmra.mrb[120].mxu1 %v7452_v14  ;;  %v7526_v14 = vld [vmem:[%s8056_s30 + $0x88] ss:$52 sps:$4 sm:$0xff]  }
 0x140   : > { %4721 = vmatmul.mubr.bf16.gmra.mrb[88].mxu0 %v7453_v15  ;;  %3925 = vmatprep.mubr.bf16.mxu1 %v7456_v16  ;;  %v7527_v15 = vld [vmem:[%s8056_s30 + $0x41c] ss:$52 sps:$4 sm:$0xff]   ;;  %v7529_v16 = vld [vmem:[%s8056_s30 + $0xf4] ss:$52 sps:$4 sm:$0xff]  }
 0x141   : > { %4728 = vmatprep.mubr.bf16.mxu0 %v7458_v17  ;;  %v7546_v17 = vld [vmem:[%s9387_s1 + $0x290] sm:$0xff]  }
 0x147   : > { %3926 = vmatmul.mubr.bf16.gmra.mrb[124].mxu1 %v7460_v18  ;;  %v7559_v18 = vld [vmem:[%s9387_s1 + $0x298] sm:$0xff]  }
 0x148   : > { %4729 = vmatmul.mubr.bf16.gmra.mrb[92].mxu0 %v7461_v19  ;;  %3966 = vmatprep.mubr.bf16.mxu1 %v7464_v20  ;;  %v7531_v19 = vld [vmem:[%s8056_s30 + $0x418] ss:$52 sps:$4 sm:$0xff]   ;;  %v7532_v20 = vld [vmem:[%s8056_s30 + $0xf0] ss:$52 sps:$4 sm:$0xff]  }
 0x149   : > { %4736 = vmatprep.mubr.bf16.mxu0 %v7465_v21  ;;  %v7534_v21 = vld [vmem:[%s8056_s30 + $0x484] ss:$52 sps:$4 sm:$0xff]  }
 0x14f   : > { %3967 = vmatmul.mubr.bf16.vlgmr.msra.gmra.mrb[0].mxu1 %v7462_v22  ;;  %v7536_v22 = vld [vmem:[%s8056_s30 + $0x15c] ss:$52 sps:$4 sm:$0xff]  }
 0x150   : > { %4737 = vmatmul.mubr.bf16.gmra.mrb[96].mxu0 %v7467_v23  ;;  %6512 = vmatpush1.bf16.msra.mxu1 %v7900_v26  ;;  %v7572_v23 = vld [vmem:[%s9387_s1 + $0x2a0] sm:$0xff]   ;;  %v7539_v26 = vld [vmem:[%s8056_s30 + $0x158] ss:$52 sps:$4 sm:$0xff]  }
 0x151   : > { %3974 = vmatprep.mubr.bf16.mxu1 %v7469_v24  ;;  %4744 = vmatprep.mubr.bf16.mxu0 %v7471_v25  ;;  %v7585_v24 = vld [vmem:[%s9387_s1 + $0x2a8] sm:$0xff]   ;;  %v7538_v25 = vld [vmem:[%s8056_s30 + $0x480] ss:$52 sps:$4 sm:$0xff]  }
 0x152   : > { %6497 = vmatprep.subr.bf16.mxu1 %v7941_v1 }
 0x154   : > { %6513 = vmatpush1.bf16.msra.mxu1 %v7901_v30  ;;  %v7611_v30 = vld [vmem:[%s9387_s1 + $0x2b8] sm:$0xff]  }
 0x155   : > { %6498 = vmatprep.subr.bf16.mxu1 %v7941_v1 }
 0x157   : > { %3975 = vmatmul.mubr.bf16.gmra.mrb[4].mxu1 %v7473_v27  ;;  %v7540_v27 = vld [vmem:[%s8056_s30 + $0x4ec] ss:$52 sps:$4 sm:$0xff]  }
 0x158   : > { %4745 = vmatmul.mubr.bf16.gmra.mrb[100].mxu0 %v7474_v28  ;;  %3982 = vmatprep.mubr.bf16.mxu1 %v7475_v29  ;;  %v7542_v28 = vld [vmem:[%s8056_s30 + $0x1c4] ss:$52 sps:$4 sm:$0xff]   ;;  %v7598_v29 = vld [vmem:[%s9387_s1 + $0x2b0] sm:$0xff]  }
 0x159   : > { %4752 = vmatprep.mubr.bf16.mxu0 %v7477_v31  ;;  %6514 = vmatpush1.bf16.msra.mxu1 %v7902_v32  ;;  %v7544_v31 = vld [vmem:[%s8056_s30 + $0x4e8] ss:$52 sps:$4 sm:$0xff]   ;;  %v7545_v32 = vld [vmem:[%s8056_s30 + $0x1c0] ss:$52 sps:$4 sm:$0xff]  }
 0x15a   : > { %6499 = vmatprep.subr.bf16.mxu1 %v7941_v1 }
 0x15d   : > { %6515 = vmatpush1.bf16.msra.mxu1 %v7903_v37  ;;  %v7551_v37 = vld [vmem:[%s8056_s30 + $0x550] ss:$52 sps:$4 sm:$0xff]  }
 0x15e   : > { %6500 = vmatprep.subr.bf16.mxu1 %v7941_v1 }
 0x15f   : > { %3983 = vmatmul.mubr.bf16.gmra.mrb[8].mxu1 %v7479_v33  ;;  %v7547_v33 = vld [vmem:[%s8056_s30 + $0x554] ss:$52 sps:$4 sm:$0xff]  }
 0x160   : > { %4753 = vmatmul.mubr.bf16.gmra.mrb[104].mxu0 %v7480_v34  ;;  %3990 = vmatprep.mubr.bf16.mxu1 %v7482_v35  ;;  %v7549_v34 = vld [vmem:[%s8056_s30 + $0x22c] ss:$52 sps:$4 sm:$0xff]  }
 0x161   : > { %4760 = vmatprep.mubr.bf16.mxu0 %v7484_v36  ;;  %6516 = vmatpush1.bf16.msra.mxu1 %v7904_v38  ;;  %v7624_v35 = vld [vmem:[%s9387_s1 + $0x2c0] sm:$0xff]   ;;  %v7637_v36 = vld [vmem:[%s9387_s1 + $0x2c8] sm:$0xff]  }
 0x162   : > { %6501 = vmatprep.subr.bf16.mxu1 %v7941_v1  ;;  %v7552_v38 = vld [vmem:[%s8056_s30 + $0x228] ss:$52 sps:$4 sm:$0xff]  }
 0x165   : > { %6517 = vmatpush1.bf16.msra.mxu1 %v7905_v43  ;;  %v7558_v43 = vld [vmem:[%s8056_s30 + $0x290] ss:$52 sps:$4 sm:$0xff]  }
 0x166   : > { %6502 = vmatprep.subr.bf16.mxu1 %v7941_v1 }
 0x167   : > { %3991 = vmatmul.mubr.bf16.gmra.mrb[12].mxu1 %v7486_v39  ;;  %v7553_v39 = vld [vmem:[%s8056_s30 + $0x5bc] ss:$52 sps:$4 sm:$0xff]  }
 0x168   : > { %4761 = vmatmul.mubr.bf16.gmra.mrb[108].mxu0 %v7487_v40  ;;  %3998 = vmatprep.mubr.bf16.mxu1 %v7488_v41  ;;  %v7555_v40 = vld [vmem:[%s8056_s30 + $0x294] ss:$52 sps:$4 sm:$0xff]  }
 0x169   : > { %4768 = vmatprep.mubr.bf16.mxu0 %v7490_v42  ;;  %6518 = vmatpush1.bf16.msra.mxu1 %v7906_v44  ;;  %v7650_v41 = vld [vmem:[%s9387_s1 + $0x2d0] sm:$0xff]   ;;  %v7557_v42 = vld [vmem:[%s8056_s30 + $0x5b8] ss:$52 sps:$4 sm:$0xff]  }
 0x16a   : > { %6503 = vmatprep.subr.bf16.mxu1 %v7941_v1  ;;  %v7560_v44 = vld [vmem:[%s8056_s30 + $0x624] ss:$52 sps:$4 sm:$0xff]  }
 0x16d   : > { %6519 = vmatpush1.bf16.msra.mxu1 %v7907_v49  ;;  %v7566_v49 = vld [vmem:[%s8056_s30 + $0x68c] ss:$52 sps:$4 sm:$0xff]  }
 0x16e   : > { %6504 = vmatprep.subr.bf16.mxu1 %v7941_v1 }
 0x16f   : > { %3999 = vmatmul.mubr.bf16.gmra.mrb[16].mxu1 %v7492_v45  ;;  %v7562_v45 = vld [vmem:[%s8056_s30 + $0x2fc] ss:$52 sps:$4 sm:$0xff]  }
 0x170   : > { %4769 = vmatmul.mubr.bf16.gmra.mrb[112].mxu0 %v7493_v46  ;;  %4006 = vmatprep.mubr.bf16.mxu1 %v7495_v47  ;;  %v7663_v46 = vld [vmem:[%s9387_s1 + $0x2d8] sm:$0xff]   ;;  %v7564_v47 = vld [vmem:[%s8056_s30 + $0x620] ss:$52 sps:$4 sm:$0xff]  }
 0x171   : > { %4776 = vmatprep.mubr.bf16.mxu0 %v7497_v48  ;;  %6520 = vmatpush1.bf16.msra.mxu1 %v7908_v50  ;;  %v7565_v48 = vld [vmem:[%s8056_s30 + $0x2f8] ss:$52 sps:$4 sm:$0xff]  }
 0x172   : > { %6505 = vmatprep.subr.bf16.mxu1 %v7941_v1  ;;  %v7568_v50 = vld [vmem:[%s8056_s30 + $0x364] ss:$52 sps:$4 sm:$0xff]  }
 0x175   : > { %6521 = vmatpush1.bf16.msra.mxu1 %v7909_v55  ;;  %v7676_v55 = vld [vmem:[%s9387_s1 + $0x2e0] sm:$0xff]  }
 0x176   : > { %6506 = vmatprep.subr.bf16.mxu1 %v7941_v1 }
 0x177   : > { %4007 = vmatmul.mubr.bf16.gmra.mrb[20].mxu1 %v7499_v51  ;;  %v7570_v51 = vld [vmem:[%s8056_s30 + $0x688] ss:$52 sps:$4 sm:$0xff]  }
 0x178   : > { %4777 = vmatmul.mubr.bf16.gmra.mrb[116].mxu0 %v7500_v52  ;;  %4014 = vmatprep.mubr.bf16.mxu1 %v7501_v53  ;;  %v7571_v52 = vld [vmem:[%s8056_s30 + $0x360] ss:$52 sps:$4 sm:$0xff]  }
 0x179   : > { %4784 = vmatprep.mubr.bf16.mxu0 %v7503_v54  ;;  %6522 = vmatpush1.bf16.msra.mxu1 %v7910_v56  ;;  %v7573_v53 = vld [vmem:[%s8056_s30 + $0x6f4] ss:$52 sps:$4 sm:$0xff]   ;;  %v7575_v54 = vld [vmem:[%s8056_s30 + $0x3cc] ss:$52 sps:$4 sm:$0xff]  }
 0x17a   : > { %6507 = vmatprep.subr.bf16.mxu1 %v7941_v1  ;;  %v8628_v56 = vld [vmem:[%s9387_s1 + $0x300] sm:$0xff]  }
 0x17d   : > { %6523 = vmatpush1.bf16.msra.mxu1 %v7911_v61  ;;  %v7583_v61 = vld [vmem:[%s8056_s30 + $0x758] ss:$52 sps:$4 sm:$0xff]  }
 0x17e   : > { %6508 = vmatprep.subr.bf16.mxu1 %v7941_v1 }
 0x17f   : > { %4015 = vmatmul.mubr.bf16.gmra.mrb[24].mxu1 %v7505_v57  ;;  %v7577_v57 = vld [vmem:[%s8056_s30 + $0x6f0] ss:$52 sps:$4 sm:$0xff]  }
 0x180   : > { %4785 = vmatmul.mubr.bf16.gmra.mrb[120].mxu0 %v7506_v58  ;;  %4022 = vmatprep.mubr.bf16.mxu1 %v7508_v59  ;;  %v7578_v58 = vld [vmem:[%s8056_s30 + $0x3c8] ss:$52 sps:$4 sm:$0xff]  }
 0x181   : > { %4792 = vmatprep.mubr.bf16.mxu0 %v7510_v60  ;;  %6524 = vmatpush1.bf16.msra.mxu1 %v7912_v62  ;;  %v7579_v59 = vld [vmem:[%s8056_s30 + $0x75c] ss:$52 sps:$4 sm:$0xff]   ;;  %v7581_v60 = vld [vmem:[%s8056_s30 + $0x434] ss:$52 sps:$4 sm:$0xff]  }
 0x182   : > { %6509 = vmatprep.subr.bf16.mxu1 %v7941_v1  ;;  %v7584_v62 = vld [vmem:[%s8056_s30 + $0x430] ss:$52 sps:$4 sm:$0xff]  }
 0x185   : > { %6525 = vmatpush1.bf16.msra.mxu1 %v7913_v4  ;;  %v7591_v4 = vld [vmem:[%s8056_s30 + $0x498] ss:$52 sps:$4 sm:$0xff]  }
 0x186   : > { %6510 = vmatprep.subr.bf16.mxu1 %v7941_v1 }
 0x187   : > { %4023 = vmatmul.mubr.bf16.gmra.mrb[28].mxu1 %v7512_v63  ;;  %v7586_v63 = vld [vmem:[%s8056_s30 + $0x7c4] ss:$52 sps:$4 sm:$0xff]  }
 0x188   : > { %4793 = vmatmul.mubr.bf16.gmra.mrb[124].mxu0 %v7513_v0  ;;  %4030 = vmatprep.mubr.bf16.mxu1 %v7514_v2  ;;  %v7588_v0 = vld [vmem:[%s8056_s30 + $0x49c] ss:$52 sps:$4 sm:$0xff]   ;;  %v7690_v2 = vld [vmem:[%s9387_s1 + $0x2e8] sm:$0xff]  }
 0x189   : > { %4833 = vmatprep.mubr.bf16.mxu0 %v7518_v3  ;;  %6526 = vmatpush1.bf16.msra.mxu1 %v7914_v5  ;;  %v7590_v3 = vld [vmem:[%s8056_s30 + $0x7c0] ss:$52 sps:$4 sm:$0xff]  }
 0x18a   : > { %6511 = vmatprep.subr.bf16.mxu1 %v7941_v1  ;;  %v7592_v5 = vld [vmem:[%s8056_s30 + $0x82c] ss:$52 sps:$4 sm:$0xff]  }
 0x18d   : > { %6527 = vmatpush1.bf16.msra.mxu1 %v7915_v11  ;;  %v7703_v11 = vld [vmem:[%s9387_s1 + $0x2f0] sm:$0xff]  }
 0x18e   : > { %6428 = vmatprep.subr.bf16.mxu1 %v8628_v56 }
 0x18f   : > { %4031 = vmatmul.mubr.bf16.gmra.mrb[32].mxu1 %v7519_v6  ;;  %v7594_v6 = vld [vmem:[%s8056_s30 + $0x504] ss:$52 sps:$4 sm:$0xff]  }
 0x190   : > { %4834 = vmatmul.mubr.bf16.vlgmr.msra.gmra.mrb[0].mxu0 %v7516_v7  ;;  %4038 = vmatprep.mubr.bf16.mxu1 %v7521_v8  ;;  %v7596_v7 = vld [vmem:[%s8056_s30 + $0x828] ss:$52 sps:$4 sm:$0xff]   ;;  %v7597_v8 = vld [vmem:[%s8056_s30 + $0x500] ss:$52 sps:$4 sm:$0xff]  }
 0x191   : > { %5091 = vmatpush1.bf16.msra.mxu0 %v7520_v9  ;;  %4841 = vmatprep.mubr.bf16.mxu0 %v7523_v10  ;;  %v7599_v9 = vld [vmem:[%s8056_s30 + $0x894] ss:$52 sps:$4 sm:$0xff]   ;;  %v7601_v10 = vld [vmem:[%s8056_s30 + $0x56c] ss:$52 sps:$4 sm:$0xff]  }
 0x192   : > { %5092 = vmatprep.subr.bf16.mxu0 %v7941_v1 }
 0x195   : > { %5093 = vmatpush1.bf16.msra.mxu0 %v7533_v12  ;;  %v7603_v12 = vld [vmem:[%s8056_s30 + $0x890] ss:$52 sps:$4 sm:$0xff]  }
 0x196   : > { %5094 = vmatprep.subr.bf16.mxu0 %v7941_v1 }
 0x197   : > { %4039 = vmatmul.mubr.bf16.gmra.mrb[36].mxu1 %v7525_v13  ;;  %v7604_v13 = vld [vmem:[%s8056_s30 + $0x568] ss:$52 sps:$4 sm:$0xff]  }
 0x198   : > { %4842 = vmatmul.mubr.bf16.gmra.mrb[4].mxu0 %v7526_v14  ;;  %4046 = vmatprep.mubr.bf16.mxu1 %v7527_v15  ;;  %v7605_v14 = vld [vmem:[%s8056_s30 + $0x8fc] ss:$52 sps:$4 sm:$0xff]   ;;  %v7607_v15 = vld [vmem:[%s8056_s30 + $0x5d4] ss:$52 sps:$4 sm:$0xff]  }
 0x199   : > { %4849 = vmatprep.mubr.bf16.mxu0 %v7529_v16  ;;  %5095 = vmatpush1.bf16.msra.mxu0 %v7546_v17  ;;  %v7609_v16 = vld [vmem:[%s8056_s30 + $0x8f8] ss:$52 sps:$4 sm:$0xff]   ;;  %v7610_v17 = vld [vmem:[%s8056_s30 + $0x5d0] ss:$52 sps:$4 sm:$0xff]  }
 0x19a   : > { %5096 = vmatprep.subr.bf16.mxu0 %v7941_v1 }
 0x19d   : > { %5097 = vmatpush1.bf16.msra.mxu0 %v7559_v18  ;;  %v7612_v18 = vld [vmem:[%s8056_s30 + $0x964] ss:$52 sps:$4 sm:$0xff]  }
 0x19e   : > { %5098 = vmatprep.subr.bf16.mxu0 %v7941_v1 }
 0x19f   : > { %4047 = vmatmul.mubr.bf16.gmra.mrb[40].mxu1 %v7531_v19  ;;  %v7614_v19 = vld [vmem:[%s8056_s30 + $0x63c] ss:$52 sps:$4 sm:$0xff]  }
 0x1a0   : > { %4850 = vmatmul.mubr.bf16.gmra.mrb[8].mxu0 %v7532_v20  ;;  %4054 = vmatprep.mubr.bf16.mxu1 %v7534_v21  ;;  %v7616_v20 = vld [vmem:[%s8056_s30 + $0x960] ss:$52 sps:$4 sm:$0xff]   ;;  %v7617_v21 = vld [vmem:[%s8056_s30 + $0x638] ss:$52 sps:$4 sm:$0xff]  }
 0x1a1   : > { %4857 = vmatprep.mubr.bf16.mxu0 %v7536_v22  ;;  %5099 = vmatpush1.bf16.msra.mxu0 %v7572_v23  ;;  %v7618_v22 = vld [vmem:[%s8056_s30 + $0x9cc] ss:$52 sps:$4 sm:$0xff]   ;;  %v7620_v23 = vld [vmem:[%s8056_s30 + $0x6a4] ss:$52 sps:$4 sm:$0xff]  }
 0x1a2   : > { %5100 = vmatprep.subr.bf16.mxu0 %v7941_v1 }
 0x1a5   : > { %5101 = vmatpush1.bf16.msra.mxu0 %v7585_v24  ;;  %v7622_v24 = vld [vmem:[%s8056_s30 + $0x9c8] ss:$52 sps:$4 sm:$0xff]  }
 0x1a6   : > { %5102 = vmatprep.subr.bf16.mxu0 %v7941_v1 }
 0x1a7   : > { %4055 = vmatmul.mubr.bf16.gmra.mrb[44].mxu1 %v7538_v25  ;;  %v7623_v25 = vld [vmem:[%s8056_s30 + $0x6a0] ss:$52 sps:$4 sm:$0xff]  }
 0x1a8   : > { %4858 = vmatmul.mubr.bf16.gmra.mrb[12].mxu0 %v7539_v26  ;;  %4062 = vmatprep.mubr.bf16.mxu1 %v7540_v27  ;;  %v7625_v26 = vld [vmem:[%s8056_s30 + $0xa34] ss:$52 sps:$4 sm:$0xff]   ;;  %v7627_v27 = vld [vmem:[%s8056_s30 + $0x70c] ss:$52 sps:$4 sm:$0xff]  }
 0x1a9   : > { %4865 = vmatprep.mubr.bf16.mxu0 %v7542_v28  ;;  %5103 = vmatpush1.bf16.msra.mxu0 %v7598_v29  ;;  %v7629_v28 = vld [vmem:[%s8056_s30 + $0xa30] ss:$52 sps:$4 sm:$0xff]   ;;  %v7630_v29 = vld [vmem:[%s8056_s30 + $0x708] ss:$52 sps:$4 sm:$0xff]  }
 0x1aa   : > { %5104 = vmatprep.subr.bf16.mxu0 %v7941_v1 }
 0x1ad   : > { %5105 = vmatpush1.bf16.msra.mxu0 %v7611_v30  ;;  %v7631_v30 = vld [vmem:[%s8056_s30 + $0xa9c] ss:$52 sps:$4 sm:$0xff]  }
 0x1ae   : > { %5106 = vmatprep.subr.bf16.mxu0 %v7941_v1 }
 0x1af   : > { %4063 = vmatmul.mubr.bf16.gmra.mrb[48].mxu1 %v7544_v31  ;;  %v7633_v31 = vld [vmem:[%s8056_s30 + $0x774] ss:$52 sps:$4 sm:$0xff]  }
 0x1b0   : > { %4866 = vmatmul.mubr.bf16.gmra.mrb[16].mxu0 %v7545_v32  ;;  %4070 = vmatprep.mubr.bf16.mxu1 %v7547_v33  ;;  %v7635_v32 = vld [vmem:[%s8056_s30 + $0xa98] ss:$52 sps:$4 sm:$0xff]   ;;  %v7636_v33 = vld [vmem:[%s8056_s30 + $0x770] ss:$52 sps:$4 sm:$0xff]  }
 0x1b1   : > { %4873 = vmatprep.mubr.bf16.mxu0 %v7549_v34  ;;  %5107 = vmatpush1.bf16.msra.mxu0 %v7624_v35  ;;  %v7638_v34 = vld [vmem:[%s8056_s30 + $0xb04] ss:$52 sps:$4 sm:$0xff]   ;;  %v7640_v35 = vld [vmem:[%s8056_s30 + $0x7dc] ss:$52 sps:$4 sm:$0xff]  }
 0x1b2   : > { %5108 = vmatprep.subr.bf16.mxu0 %v7941_v1 }
 0x1b5   : > { %5109 = vmatpush1.bf16.msra.mxu0 %v7637_v36 }
 0x1b6   : > { %5110 = vmatprep.subr.bf16.mxu0 %v7941_v1 }
 0x1b7   : > { %4071 = vmatmul.mubr.bf16.gmra.mrb[52].mxu1 %v7551_v37 }
 0x1b8   : > { %4874 = vmatmul.mubr.bf16.gmra.mrb[20].mxu0 %v7552_v38  ;;  %4078 = vmatprep.mubr.bf16.mxu1 %v7553_v39  ;;  %v7642_v38 = vld [vmem:[%s8056_s30 + $0xb00] ss:$52 sps:$4 sm:$0xff]  }
 0x1b9   : > { %4881 = vmatprep.mubr.bf16.mxu0 %v7555_v40  ;;  %5111 = vmatpush1.bf16.msra.mxu0 %v7650_v41  ;;  %v7643_v40 = vld [vmem:[%s8056_s30 + $0x7d8] ss:$52 sps:$4 sm:$0xff]  }
 0x1ba   : > { %5112 = vmatprep.subr.bf16.mxu0 %v7941_v1  ;;  %v7644_v41 = vld [vmem:[%s8056_s30 + $0xb6c] ss:$52 sps:$4 sm:$0xff]  }
 0x1bd   : > { %5113 = vmatpush1.bf16.msra.mxu0 %v7663_v46  ;;  %v7648_v46 = vld [vmem:[%s8056_s30 + $0xb68] ss:$52 sps:$4 sm:$0xff]  }
 0x1be   : > { %5114 = vmatprep.subr.bf16.mxu0 %v7941_v1 }
 0x1bf   : > { %4079 = vmatmul.mubr.bf16.gmra.mrb[56].mxu1 %v7557_v42 }
 0x1c0   : > { %4882 = vmatmul.mubr.bf16.gmra.mrb[24].mxu0 %v7558_v43  ;;  %4086 = vmatprep.mubr.bf16.mxu1 %v7560_v44  ;;  %v7646_v43 = vld [vmem:[%s8056_s30 + $0x844] ss:$52 sps:$4 sm:$0xff]  }
 0x1c1   : > { %4889 = vmatprep.mubr.bf16.mxu0 %v7562_v45  ;;  %5115 = vmatpush1.bf16.msra.mxu0 %v7676_v55 }
 0x1c2   : > { %5116 = vmatprep.subr.bf16.mxu0 %v7941_v1 }
 0x1c5   : > { %5117 = vmatpush1.bf16.msra.mxu0 %v7690_v2  ;;  %v7662_v2 = vld [vmem:[%s8056_s30 + $0x910] ss:$52 sps:$4 sm:$0xff]  }
 0x1c6   : > { %5118 = vmatprep.subr.bf16.mxu0 %v7941_v1 }
 0x1c7   : > { %4087 = vmatmul.mubr.bf16.gmra.mrb[60].mxu1 %v7564_v47 }
 0x1c8   : > { %4890 = vmatmul.mubr.bf16.gmra.mrb[28].mxu0 %v7565_v48  ;;  %4094 = vmatprep.mubr.bf16.mxu1 %v7566_v49  ;;  %v7649_v48 = vld [vmem:[%s8056_s30 + $0x840] ss:$52 sps:$4 sm:$0xff]  }
 0x1c9   : > { %4897 = vmatprep.mubr.bf16.mxu0 %v7568_v50  ;;  %5119 = vmatpush1.bf16.msra.mxu0 %v7703_v11  ;;  %v7651_v49 = vld [vmem:[%s8056_s30 + $0xbd4] ss:$52 sps:$4 sm:$0xff]  }
 0x1ca   : > { %5120 = vmatprep.subr.bf16.mxu0 %v7941_v1  ;;  %v7716_v1 = vld [vmem:[%s9387_s1 + $0x2f8] sm:$0xff]   ;;  %v7672_v11 = vld [vmem:[%s8056_s30 + $0x354] ss:$52 sps:$4 sm:$0xff]  }
 0x1cd   : > { %5121 = vmatpush1.bf16.msra.mxu0 %v7716_v1  ;;  %v7678_v1 = vld [vmem:[%s8056_s30 + $0x3bc] ss:$52 sps:$4 sm:$0xff]  }
 0x1cf   : > { %4095 = vmatmul.mubr.bf16.gmra.mrb[64].mxu1 %v7570_v51  ;;  %v7653_v51 = vld [vmem:[%s8056_s30 + $0x8ac] ss:$52 sps:$4 sm:$0xff]  }
 0x1d0   : > { %4898 = vmatmul.mubr.bf16.gmra.mrb[32].mxu0 %v7571_v52  ;;  %4102 = vmatprep.mubr.bf16.mxu1 %v7573_v53 }
 0x1d1   : > { %4905 = vmatprep.mubr.bf16.mxu0 %v7575_v54  ;;  %v7655_v54 = vld [vmem:[%s8056_s30 + $0xbd0] ss:$52 sps:$4 sm:$0xff]  }
 0x1d7   : > { %4103 = vmatmul.mubr.bf16.gmra.mrb[68].mxu1 %v7577_v57  ;;  %v7656_v57 = vld [vmem:[%s8056_s30 + $0x8a8] ss:$52 sps:$4 sm:$0xff]  }
 0x1d8   : > { %4906 = vmatmul.mubr.bf16.gmra.mrb[36].mxu0 %v7578_v58  ;;  %4110 = vmatprep.mubr.bf16.mxu1 %v7579_v59  ;;  %v7657_v58 = vld [vmem:[%s8056_s30 + $0xc3c] ss:$52 sps:$4 sm:$0xff]  }
 0x1d9   : > { %4913 = vmatprep.mubr.bf16.mxu0 %v7581_v60  ;;  %v7659_v60 = vld [vmem:[%s8056_s30 + $0x914] ss:$52 sps:$4 sm:$0xff]  }
 0x1df   : > { %4111 = vmatmul.mubr.bf16.gmra.mrb[72].mxu1 %v7583_v61 }
 0x1e0   : > { %4914 = vmatmul.mubr.bf16.gmra.mrb[40].mxu0 %v7584_v62  ;;  %4118 = vmatprep.mubr.bf16.mxu1 %v7586_v63  ;;  %v7661_v63 = vld [vmem:[%s8056_s30 + $0xc38] ss:$52 sps:$4 sm:$0xff]  }
 0x1e1   : > { %4921 = vmatprep.mubr.bf16.mxu0 %v7588_v0 }
 0x1e7   : > { %4119 = vmatmul.mubr.bf16.gmra.mrb[76].mxu1 %v7590_v3  ;;  %v7664_v3 = vld [vmem:[%s8056_s30 + $0xca4] ss:$52 sps:$4 sm:$0xff]  }
 0x1e8   : > { %4922 = vmatmul.mubr.bf16.gmra.mrb[44].mxu0 %v7591_v4  ;;  %4126 = vmatprep.mubr.bf16.mxu1 %v7592_v5  ;;  %v7666_v5 = vld [vmem:[%s8056_s30 + $0x97c] ss:$52 sps:$4 sm:$0xff]  }
 0x1e9   : > { %4929 = vmatprep.mubr.bf16.mxu0 %v7594_v6 }
 0x1ef   : > { %4127 = vmatmul.mubr.bf16.gmra.mrb[80].mxu1 %v7596_v7 }
 0x1f0   : > { %4930 = vmatmul.mubr.bf16.gmra.mrb[48].mxu0 %v7597_v8  ;;  %4134 = vmatprep.mubr.bf16.mxu1 %v7599_v9  ;;  %v7668_v8 = vld [vmem:[%s8056_s30 + $0xca0] ss:$52 sps:$4 sm:$0xff]  }
 0x1f1   : > { %4937 = vmatprep.mubr.bf16.mxu0 %v7601_v10  ;;  %v7669_v10 = vld [vmem:[%s8056_s30 + $0x978] ss:$52 sps:$4 sm:$0xff]  }
 0x1f7   : > { %4135 = vmatmul.mubr.bf16.gmra.mrb[84].mxu1 %v7603_v12 }
 0x1f8   : > { %4938 = vmatmul.mubr.bf16.gmra.mrb[52].mxu0 %v7604_v13  ;;  %4142 = vmatprep.mubr.bf16.mxu1 %v7605_v14  ;;  %v7673_v13 = vld [vmem:[%s8056_s30 + $0x9e4] ss:$52 sps:$4 sm:$0xff]  }
 0x1f9   : > { %4945 = vmatprep.mubr.bf16.mxu0 %v7607_v15 }
 0x1ff   : > { %4143 = vmatmul.mubr.bf16.gmra.mrb[88].mxu1 %v7609_v16  ;;  %v7670_v16 = vld [vmem:[%s8056_s30 + $0x350] ss:$52 sps:$4 sm:$0xff]  }
 0x200   : > { %4946 = vmatmul.mubr.bf16.gmra.mrb[56].mxu0 %v7610_v17  ;;  %4150 = vmatprep.mubr.bf16.mxu1 %v7612_v18  ;;  %v7675_v18 = vld [vmem:[%s8056_s30 + $0x9e0] ss:$52 sps:$4 sm:$0xff]  }
 0x201   : > { %4953 = vmatprep.mubr.bf16.mxu0 %v7614_v19 }
 0x207   : > { %4151 = vmatmul.mubr.bf16.gmra.mrb[92].mxu1 %v7616_v20  ;;  %v7680_v20 = vld [vmem:[%s8056_s30 + $0xa4c] ss:$52 sps:$4 sm:$0xff]  }
 0x208   : > { %4954 = vmatmul.mubr.bf16.gmra.mrb[60].mxu0 %v7617_v21  ;;  %4158 = vmatprep.mubr.bf16.mxu1 %v7618_v22  ;;  %v7753_v21 = vld [vmem:[%s9387_s1 + $0x308] sm:$0xff]  }
 0x209   : > { %4961 = vmatprep.mubr.bf16.mxu0 %v7620_v23 }
 0x20f   : > { %4159 = vmatmul.mubr.bf16.gmra.mrb[96].mxu1 %v7622_v24  ;;  %v7682_v24 = vld [vmem:[%s8056_s30 + $0x3b8] ss:$52 sps:$4 sm:$0xff]  }
 0x210   : > { %4962 = vmatmul.mubr.bf16.gmra.mrb[64].mxu0 %v7623_v25  ;;  %4166 = vmatprep.mubr.bf16.mxu1 %v7625_v26  ;;  %v7683_v26 = vld [vmem:[%s8056_s30 + $0xa48] ss:$52 sps:$4 sm:$0xff]  }
 0x211   : > { %4969 = vmatprep.mubr.bf16.mxu0 %v7627_v27  ;;  %v7684_v27 = vld [vmem:[%s8056_s30 + $0x424] ss:$52 sps:$4 sm:$0xff]  }
 0x217   : > { %4167 = vmatmul.mubr.bf16.gmra.mrb[100].mxu1 %v7629_v28 }
 0x218   : > { %4970 = vmatmul.mubr.bf16.gmra.mrb[68].mxu0 %v7630_v29  ;;  %4174 = vmatprep.mubr.bf16.mxu1 %v7631_v30  ;;  %v7686_v29 = vld [vmem:[%s8056_s30 + $0xab4] ss:$52 sps:$4 sm:$0xff]  }
 0x219   : > { %4977 = vmatprep.mubr.bf16.mxu0 %v7633_v31  ;;  %v7688_v31 = vld [vmem:[%s8056_s30 + $0x420] ss:$52 sps:$4 sm:$0xff]  }
 0x21f   : > { %4175 = vmatmul.mubr.bf16.gmra.mrb[104].mxu1 %v7635_v32 }
 0x220   : > { %4978 = vmatmul.mubr.bf16.gmra.mrb[72].mxu0 %v7636_v33  ;;  %4182 = vmatprep.mubr.bf16.mxu1 %v7638_v34  ;;  %v7689_v33 = vld [vmem:[%s8056_s30 + $0xab0] ss:$52 sps:$4 sm:$0xff]   ;;  %v7691_v34 = vld [vmem:[%s8056_s30 + $0x48c] ss:$52 sps:$4 sm:$0xff]  }
 0x221   : > { %4985 = vmatprep.mubr.bf16.mxu0 %v7640_v35 }
 0x222   : > { %v8683_v36 = vpop.f32.mrb[0].mxu1 }
 0x223   : > { %v3970_v37 = vpop.f32.mrb[1].mxu1 }
 0x224   : > { %v8686_v39 = vpop.f32.mrb[2].mxu1  ;;  %v7693_v37 = vld [vmem:[%s8056_s30 + $0xb1c] ss:$52 sps:$4 sm:$0xff]  }
 0x225   : > { %v3973_v42 = vpop.f32.mrb[3].mxu1 }
 0x226   : > { %v7699_v42 = vld [vmem:[%s8056_s30 + $0xb84] ss:$52 sps:$4 sm:$0xff]  }
 0x227   : > { %4183 = vmatmul.mubr.bf16.gmra.mrb[108].mxu1 %v7642_v38  ;;  %v7695_v38 = vld [vmem:[%s8056_s30 + $0x488] ss:$52 sps:$4 sm:$0xff]  }
 0x228   : > { %4986 = vmatmul.mubr.bf16.gmra.mrb[76].mxu0 %v7643_v40  ;;  %4190 = vmatprep.mubr.bf16.mxu1 %v7644_v41  ;;  %v7696_v40 = vld [vmem:[%s8056_s30 + $0xb18] ss:$52 sps:$4 sm:$0xff]   ;;  %v7697_v41 = vld [vmem:[%s8056_s30 + $0x4f4] ss:$52 sps:$4 sm:$0xff]  }
 0x229   : > { %4993 = vmatprep.mubr.bf16.mxu0 %v7646_v43  ;;  %v7701_v43 = vld [vmem:[%s8056_s30 + $0x4f0] ss:$52 sps:$4 sm:$0xff]  }
 0x22a   : > { %v8691_v44 = vpop.f32.mrb[4].mxu1 }
 0x22b   : > { %v3978_v45 = vpop.f32.mrb[5].mxu1 }
 0x22c   : > { %v8694_v47 = vpop.f32.mrb[6].mxu1  ;;  %v7702_v45 = vld [vmem:[%s8056_s30 + $0xb80] ss:$52 sps:$4 sm:$0xff]  }
 0x22d   : > { %v3981_v50 = vpop.f32.mrb[7].mxu1 }
 0x22e   : > { %v7709_v50 = vld [vmem:[%s8056_s30 + $0xbe8] ss:$52 sps:$4 sm:$0xff]  }
 0x22f   : > { %4191 = vmatmul.mubr.bf16.gmra.mrb[112].mxu1 %v7648_v46  ;;  %v7704_v46 = vld [vmem:[%s8056_s30 + $0x55c] ss:$52 sps:$4 sm:$0xff]  }
 0x230   : > { %4994 = vmatmul.mubr.bf16.gmra.mrb[80].mxu0 %v7649_v48  ;;  %4198 = vmatprep.mubr.bf16.mxu1 %v7651_v49  ;;  %v7706_v48 = vld [vmem:[%s8056_s30 + $0xbec] ss:$52 sps:$4 sm:$0xff]  }
 0x231   : > { %5001 = vmatprep.mubr.bf16.mxu0 %v7653_v51  ;;  %v7708_v49 = vld [vmem:[%s8056_s30 + $0x558] ss:$52 sps:$4 sm:$0xff]  }
 0x232   : > { %v8699_v52 = vpop.f32.mrb[8].mxu1  ;;  %v7710_v51 = vld [vmem:[%s8056_s30 + $0x5c4] ss:$52 sps:$4 sm:$0xff]  }
 0x233   : > { %v3986_v53 = vpop.f32.mrb[9].mxu1 }
 0x234   : > { %v8702_v55 = vpop.f32.mrb[10].mxu1  ;;  %v7712_v53 = vld [vmem:[%s8056_s30 + $0xc54] ss:$52 sps:$4 sm:$0xff]  }
 0x235   : > { %v3989_v59 = vpop.f32.mrb[11].mxu1 }
 0x236   : > { %v7719_v59 = vld [vmem:[%s8056_s30 + $0xcbc] ss:$52 sps:$4 sm:$0xff]  }
 0x237   : > { %4199 = vmatmul.mubr.bf16.gmra.mrb[116].mxu1 %v7655_v54  ;;  %v7714_v54 = vld [vmem:[%s8056_s30 + $0x5c0] ss:$52 sps:$4 sm:$0xff]  }
 0x238   : > { %5002 = vmatmul.mubr.bf16.gmra.mrb[84].mxu0 %v7656_v57  ;;  %4206 = vmatprep.mubr.bf16.mxu1 %v7657_v58  ;;  %v7715_v57 = vld [vmem:[%s8056_s30 + $0xc50] ss:$52 sps:$4 sm:$0xff]   ;;  %v7717_v58 = vld [vmem:[%s8056_s30 + $0x62c] ss:$52 sps:$4 sm:$0xff]  }
 0x239   : > { %5009 = vmatprep.mubr.bf16.mxu0 %v7659_v60  ;;  %v7721_v60 = vld [vmem:[%s8056_s30 + $0x628] ss:$52 sps:$4 sm:$0xff]  }
 0x23a   : > { %v8707_v61 = vpop.f32.mrb[12].mxu1 }
 0x23b   : > { %v3994_v62 = vpop.f32.mrb[13].mxu1 }
 0x23c   : > { %v8710_v0 = vpop.f32.mrb[14].mxu1  ;;  %v7722_v62 = vld [vmem:[%s8056_s30 + $0xcb8] ss:$52 sps:$4 sm:$0xff]  }
 0x23d   : > { %v3997_v4 = vpop.f32.mrb[15].mxu1 }
 0x23e   : > { %v7725_v4 = vld [vmem:[%s8056_s30 + $0x28] ss:$52 sps:$4 sm:$0xff]  }
 0x23f   : > { %4207 = vmatmul.mubr.bf16.gmra.mrb[120].mxu1 %v7661_v63  ;;  %v7723_v63 = vld [vmem:[%s8056_s30 + $0x694] ss:$52 sps:$4 sm:$0xff]  }
 0x240   : > { %5010 = vmatmul.mubr.bf16.gmra.mrb[88].mxu0 %v7662_v2  ;;  %4214 = vmatprep.mubr.bf16.mxu1 %v7664_v3  ;;  %v7727_v2 = vld [vmem:[%s8056_s30 + $0x2c] ss:$52 sps:$4 sm:$0xff]   ;;  %v7728_v3 = vld [vmem:[%s8056_s30 + $0x690] ss:$52 sps:$4 sm:$0xff]  }
 0x241   : > { %5017 = vmatprep.mubr.bf16.mxu0 %v7666_v5  ;;  %v7729_v5 = vld [vmem:[%s8056_s30 + $0x6fc] ss:$52 sps:$4 sm:$0xff]  }
 0x242   : > { %v8715_v6 = vpop.f32.mrb[16].mxu1 }
 0x243   : > { %v4002_v7 = vpop.f32.mrb[17].mxu1 }
 0x244   : > { %v8718_v9 = vpop.f32.mrb[18].mxu1  ;;  %v7731_v7 = vld [vmem:[%s8056_s30 + $0x94] ss:$52 sps:$4 sm:$0xff]  }
 0x245   : > { %v4005_v12 = vpop.f32.mrb[19].mxu1 }
 0x246   : > { %v7737_v12 = vld [vmem:[%s8056_s30 + $0xfc] ss:$52 sps:$4 sm:$0xff]  }
 0x247   : > { %4215 = vmatmul.mubr.bf16.gmra.mrb[124].mxu1 %v7668_v8  ;;  %v7733_v8 = vld [vmem:[%s8056_s30 + $0x6f8] ss:$52 sps:$4 sm:$0xff]  }
 0x248   : > { %5018 = vmatmul.mubr.bf16.gmra.mrb[92].mxu0 %v7669_v10  ;;  %4319 = vmatprep.mubr.bf16.mxu1 %v7672_v11  ;;  %v7734_v10 = vld [vmem:[%s8056_s30 + $0x90] ss:$52 sps:$4 sm:$0xff]  }
 0x249   : > { %5025 = vmatprep.mubr.bf16.mxu0 %v7673_v13  ;;  %v7735_v11 = vld [vmem:[%s8056_s30 + $0x764] ss:$52 sps:$4 sm:$0xff]   ;;  %v7739_v13 = vld [vmem:[%s8056_s30 + $0x760] ss:$52 sps:$4 sm:$0xff]  }
 0x24a   : > { %v8723_v14 = vpop.f32.mrb[20].mxu1 }
 0x24b   : > { %v4010_v15 = vpop.f32.mrb[21].mxu1 }
 0x24c   : > { %v8726_v17 = vpop.f32.mrb[22].mxu1  ;;  %v7740_v15 = vld [vmem:[%s8056_s30 + $0xf8] ss:$52 sps:$4 sm:$0xff]  }
 0x24d   : > { %v4013_v19 = vpop.f32.mrb[23].mxu1 }
 0x24e   : > { %v7745_v19 = vld [vmem:[%s8056_s30 + $0x7c8] ss:$52 sps:$4 sm:$0xff]  }
 0x24f   : > { %4320 = vmatmul.mubr.bf16.vlgmr.msra.gmra.mrb[32].mxu1 %v7670_v16  ;;  %v7741_v16 = vld [vmem:[%s8056_s30 + $0x7cc] ss:$52 sps:$4 sm:$0xff]  }
 0x250   : > { %5026 = vmatmul.mubr.bf16.gmra.mrb[96].mxu0 %v7675_v18  ;;  %6429 = vmatpush3.bf16.msra.mxu1 %v8628_v56  ;;  %v7743_v18 = vld [vmem:[%s8056_s30 + $0x164] ss:$52 sps:$4 sm:$0xff]  }
 0x251   : > { %4327 = vmatprep.mubr.bf16.mxu1 %v7678_v1  ;;  %5033 = vmatprep.mubr.bf16.mxu0 %v7680_v20  ;;  %v7746_v1 = vld [vmem:[%s8056_s30 + $0x160] ss:$52 sps:$4 sm:$0xff]  }
 0x252   : > { %v8735_v22 = vpop.f32.mrb[24].mxu1  ;;  %6430 = vmatprep.subr.bf16.mxu1 %v7753_v21  ;;  %v7747_v20 = vld [vmem:[%s8056_s30 + $0x834] ss:$52 sps:$4 sm:$0xff]  }
 0x253   : > { %v4018_v23 = vpop.f32.mrb[25].mxu1 }
 0x254   : > { %v8738_v25 = vpop.f32.mrb[26].mxu1  ;;  %6431 = vmatpush3.bf16.msra.mxu1 %v7753_v21  ;;  %v7749_v21 = vld [vmem:[%s8056_s30 + $0x1cc] ss:$52 sps:$4 sm:$0xff]   ;;  %v7751_v23 = vld [vmem:[%s8056_s30 + $0x830] ss:$52 sps:$4 sm:$0xff]  }
 0x255   : > { %v4021_v28 = vpop.f32.mrb[27].mxu1 }
 0x256   : > { %v7758_v28 = vld [vmem:[%s8056_s30 + $0x898] ss:$52 sps:$4 sm:$0xff]  }
 0x257   : > { %4328 = vmatmul.mubr.bf16.gmra.mrb[36].mxu1 %v7682_v24  ;;  %v7752_v24 = vld [vmem:[%s8056_s30 + $0x1c8] ss:$52 sps:$4 sm:$0xff]  }
 0x258   : > { %5034 = vmatmul.mubr.bf16.gmra.mrb[100].mxu0 %v7683_v26  ;;  %4335 = vmatprep.mubr.bf16.mxu1 %v7684_v27  ;;  %v7754_v26 = vld [vmem:[%s8056_s30 + $0x89c] ss:$52 sps:$4 sm:$0xff]   ;;  %v7756_v27 = vld [vmem:[%s8056_s30 + $0x234] ss:$52 sps:$4 sm:$0xff]  }
 0x259   : > { %5041 = vmatprep.mubr.bf16.mxu0 %v7686_v29  ;;  %v7759_v29 = vld [vmem:[%s8056_s30 + $0x230] ss:$52 sps:$4 sm:$0xff]  }
 0x25a   : > { %v8743_v56 = vpop.f32.mrb[28].mxu1 }
 0x25b   : > { %v4026_v30 = vpop.f32.mrb[29].mxu1 }
 0x25c   : > { %v8746_v32 = vpop.f32.mrb[30].mxu1  ;;  %v7760_v30 = vld [vmem:[%s8056_s30 + $0x904] ss:$52 sps:$4 sm:$0xff]  }
 0x25d   : > { %v4029_v35 = vpop.f32.mrb[31].mxu1 }
 0x25e   : > { %v7766_v35 = vld [vmem:[%s8056_s30 + $0x96c] ss:$52 sps:$4 sm:$0xff]  }
 0x25f   : > { %4336 = vmatmul.mubr.bf16.gmra.mrb[40].mxu1 %v7688_v31  ;;  %v7762_v31 = vld [vmem:[%s8056_s30 + $0x29c] ss:$52 sps:$4 sm:$0xff]  }
 0x260   : > { %5042 = vmatmul.mubr.bf16.gmra.mrb[104].mxu0 %v7689_v33  ;;  %4343 = vmatprep.mubr.bf16.mxu1 %v7691_v34  ;;  %v7764_v33 = vld [vmem:[%s8056_s30 + $0x900] ss:$52 sps:$4 sm:$0xff]   ;;  %v7765_v34 = vld [vmem:[%s8056_s30 + $0x298] ss:$52 sps:$4 sm:$0xff]  }
 0x261   : > { %5049 = vmatprep.mubr.bf16.mxu0 %v7693_v37  ;;  %v7768_v37 = vld [vmem:[%s8056_s30 + $0x304] ss:$52 sps:$4 sm:$0xff]  }
 0x267   : > { %4344 = vmatmul.mubr.bf16.gmra.mrb[44].mxu1 %v7695_v38  ;;  %v7770_v38 = vld [vmem:[%s8056_s30 + $0x968] ss:$52 sps:$4 sm:$0xff]  }
 0x268   : > { %5050 = vmatmul.mubr.bf16.gmra.mrb[108].mxu0 %v7696_v40  ;;  %4351 = vmatprep.mubr.bf16.mxu1 %v7697_v41  ;;  %v7771_v40 = vld [vmem:[%s8056_s30 + $0x300] ss:$52 sps:$4 sm:$0xff]  }
 0x269   : > { %5057 = vmatprep.mubr.bf16.mxu0 %v7699_v42  ;;  %v7772_v41 = vld [vmem:[%s8056_s30 + $0x9d4] ss:$52 sps:$4 sm:$0xff]   ;;  %v7774_v42 = vld [vmem:[%s8056_s30 + $0x36c] ss:$52 sps:$4 sm:$0xff]  }
 0x26f   : > { %4352 = vmatmul.mubr.bf16.gmra.mrb[48].mxu1 %v7701_v43  ;;  %v7776_v43 = vld [vmem:[%s8056_s30 + $0x9d0] ss:$52 sps:$4 sm:$0xff]  }
 0x270   : > { %5058 = vmatmul.mubr.bf16.gmra.mrb[112].mxu0 %v7702_v45  ;;  %4359 = vmatprep.mubr.bf16.mxu1 %v7704_v46  ;;  %v7777_v45 = vld [vmem:[%s8056_s30 + $0x368] ss:$52 sps:$4 sm:$0xff]  }
 0x271   : > { %5065 = vmatprep.mubr.bf16.mxu0 %v7706_v48  ;;  %v7778_v46 = vld [vmem:[%s8056_s30 + $0xa3c] ss:$52 sps:$4 sm:$0xff]   ;;  %v7780_v48 = vld [vmem:[%s8056_s30 + $0x3d4] ss:$52 sps:$4 sm:$0xff]  }
 0x277   : > { %4360 = vmatmul.mubr.bf16.gmra.mrb[52].mxu1 %v7708_v49  ;;  %v7782_v49 = vld [vmem:[%s8056_s30 + $0xa38] ss:$52 sps:$4 sm:$0xff]  }
 0x278   : > { %5066 = vmatmul.mubr.bf16.gmra.mrb[116].mxu0 %v7709_v50  ;;  %4367 = vmatprep.mubr.bf16.mxu1 %v7710_v51  ;;  %v7783_v50 = vld [vmem:[%s8056_s30 + $0x3d0] ss:$52 sps:$4 sm:$0xff]  }
 0x279   : > { %5073 = vmatprep.mubr.bf16.mxu0 %v7712_v53  ;;  %v7784_v51 = vld [vmem:[%s8056_s30 + $0xaa4] ss:$52 sps:$4 sm:$0xff]   ;;  %v7786_v53 = vld [vmem:[%s8056_s30 + $0x43c] ss:$52 sps:$4 sm:$0xff]  }
 0x27f   : > { %4368 = vmatmul.mubr.bf16.gmra.mrb[56].mxu1 %v7714_v54  ;;  %v7788_v54 = vld [vmem:[%s8056_s30 + $0xaa0] ss:$52 sps:$4 sm:$0xff]  }
 0x280   : > { %5074 = vmatmul.mubr.bf16.gmra.mrb[120].mxu0 %v7715_v57  ;;  %4375 = vmatprep.mubr.bf16.mxu1 %v7717_v58  ;;  %v7789_v57 = vld [vmem:[%s8056_s30 + $0x438] ss:$52 sps:$4 sm:$0xff]  }
 0x281   : > { %5081 = vmatprep.mubr.bf16.mxu0 %v7719_v59  ;;  %v7790_v58 = vld [vmem:[%s8056_s30 + $0xb0c] ss:$52 sps:$4 sm:$0xff]   ;;  %v7792_v59 = vld [vmem:[%s8056_s30 + $0x4a4] ss:$52 sps:$4 sm:$0xff]  }
 0x287   : > { %4376 = vmatmul.mubr.bf16.gmra.mrb[60].mxu1 %v7721_v60  ;;  %v7794_v60 = vld [vmem:[%s8056_s30 + $0xb08] ss:$52 sps:$4 sm:$0xff]  }
 0x288   : > { %5082 = vmatmul.mubr.bf16.gmra.mrb[124].mxu0 %v7722_v62  ;;  %4383 = vmatprep.mubr.bf16.mxu1 %v7723_v63  ;;  %v7795_v62 = vld [vmem:[%s8056_s30 + $0x4a0] ss:$52 sps:$4 sm:$0xff]  }
 0x289   : > { %5122 = vmatprep.mubr.bf16.mxu0 %v7727_v2  ;;  %v7796_v63 = vld [vmem:[%s8056_s30 + $0xb74] ss:$52 sps:$4 sm:$0xff]   ;;  %v7798_v2 = vld [vmem:[%s8056_s30 + $0x50c] ss:$52 sps:$4 sm:$0xff]  }
 0x28f   : > { %4384 = vmatmul.mubr.bf16.gmra.mrb[64].mxu1 %v7728_v3  ;;  %v7800_v3 = vld [vmem:[%s8056_s30 + $0xb70] ss:$52 sps:$4 sm:$0xff]  }
 0x290   : > { %5123 = vmatmul.mubr.bf16.vlgmr.msra.gmra.mrb[0].mxu0 %v7725_v4  ;;  %4391 = vmatprep.mubr.bf16.mxu1 %v7729_v5  ;;  %v7801_v4 = vld [vmem:[%s8056_s30 + $0x508] ss:$52 sps:$4 sm:$0xff]  }
 0x291   : > { %5130 = vmatprep.mubr.bf16.mxu0 %v7731_v7  ;;  %v7802_v5 = vld [vmem:[%s8056_s30 + $0xbdc] ss:$52 sps:$4 sm:$0xff]   ;;  %v7804_v7 = vld [vmem:[%s8056_s30 + $0x574] ss:$52 sps:$4 sm:$0xff]  }
 0x297   : > { %4392 = vmatmul.mubr.bf16.gmra.mrb[68].mxu1 %v7733_v8  ;;  %v7806_v8 = vld [vmem:[%s8056_s30 + $0xbd8] ss:$52 sps:$4 sm:$0xff]  }
 0x298   : > { %5131 = vmatmul.mubr.bf16.gmra.mrb[4].mxu0 %v7734_v10  ;;  %4399 = vmatprep.mubr.bf16.mxu1 %v7735_v11  ;;  %v7807_v10 = vld [vmem:[%s8056_s30 + $0x570] ss:$52 sps:$4 sm:$0xff]  }
 0x299   : > { %5138 = vmatprep.mubr.bf16.mxu0 %v7737_v12  ;;  %v7808_v11 = vld [vmem:[%s8056_s30 + $0xc44] ss:$52 sps:$4 sm:$0xff]   ;;  %v7810_v12 = vld [vmem:[%s8056_s30 + $0x5dc] ss:$52 sps:$4 sm:$0xff]  }
 0x29f   : > { %4400 = vmatmul.mubr.bf16.gmra.mrb[72].mxu1 %v7739_v13  ;;  %v7812_v13 = vld [vmem:[%s8056_s30 + $0xc40] ss:$52 sps:$4 sm:$0xff]  }
 0x2a0   : > { %5139 = vmatmul.mubr.bf16.gmra.mrb[8].mxu0 %v7740_v15  ;;  %4407 = vmatprep.mubr.bf16.mxu1 %v7741_v16  ;;  %v7813_v15 = vld [vmem:[%s8056_s30 + $0x5d8] ss:$52 sps:$4 sm:$0xff]  }
 0x2a1   : > { %5146 = vmatprep.mubr.bf16.mxu0 %v7743_v18  ;;  %v7814_v16 = vld [vmem:[%s8056_s30 + $0xcac] ss:$52 sps:$4 sm:$0xff]   ;;  %v7816_v18 = vld [vmem:[%s8056_s30 + $0x644] ss:$52 sps:$4 sm:$0xff]  }
 0x2a7   : > { %4408 = vmatmul.mubr.bf16.gmra.mrb[76].mxu1 %v7745_v19  ;;  %v7818_v19 = vld [vmem:[%s8056_s30 + $0xca8] ss:$52 sps:$4 sm:$0xff]  }
 0x2a8   : > { %5147 = vmatmul.mubr.bf16.gmra.mrb[12].mxu0 %v7746_v1  ;;  %4415 = vmatprep.mubr.bf16.mxu1 %v7747_v20  ;;  %v7819_v1 = vld [vmem:[%s8056_s30 + $0x640] ss:$52 sps:$4 sm:$0xff]   ;;  %v7822_v20 = vld [vmem:[%s8056_s30 + $0x30] ss:$52 sps:$4 sm:$0xff]  }
 0x2a9   : > { %5154 = vmatprep.mubr.bf16.mxu0 %v7749_v21  ;;  %v7820_v21 = vld [vmem:[%s8056_s30 + $0x6ac] ss:$52 sps:$4 sm:$0xff]  }
 0x2af   : > { %4416 = vmatmul.mubr.bf16.gmra.mrb[80].mxu1 %v7751_v23  ;;  %v7824_v23 = vld [vmem:[%s8056_s30 + $0x98] ss:$52 sps:$4 sm:$0xff]  }
 0x2b0   : > { %5155 = vmatmul.mubr.bf16.gmra.mrb[16].mxu0 %v7752_v24  ;;  %4423 = vmatprep.mubr.bf16.mxu1 %v7754_v26  ;;  %v7823_v24 = vld [vmem:[%s8056_s30 + $0x6a8] ss:$52 sps:$4 sm:$0xff]   ;;  %v7827_v26 = vld [vmem:[%s8056_s30 + $0x100] ss:$52 sps:$4 sm:$0xff]  }
 0x2b1   : > { %5162 = vmatprep.mubr.bf16.mxu0 %v7756_v27  ;;  %v7825_v27 = vld [vmem:[%s8056_s30 + $0x714] ss:$52 sps:$4 sm:$0xff]  }
 0x2b7   : > { %4424 = vmatmul.mubr.bf16.gmra.mrb[84].mxu1 %v7758_v28  ;;  %v7829_v28 = vld [vmem:[%s8056_s30 + $0x168] ss:$52 sps:$4 sm:$0xff]  }
 0x2b8   : > { %5163 = vmatmul.mubr.bf16.gmra.mrb[20].mxu0 %v7759_v29  ;;  %4431 = vmatprep.mubr.bf16.mxu1 %v7760_v30  ;;  %v7828_v29 = vld [vmem:[%s8056_s30 + $0x710] ss:$52 sps:$4 sm:$0xff]  }
 0x2b9   : > { %5170 = vmatprep.mubr.bf16.mxu0 %v7762_v31  ;;  %v7832_v30 = vld [vmem:[%s8056_s30 + $0x1d0] ss:$52 sps:$4 sm:$0xff]  }
 0x2ba   : > { %v7830_v31 = vld [vmem:[%s8056_s30 + $0x77c] ss:$52 sps:$4 sm:$0xff]  }
 0x2bf   : > { %4432 = vmatmul.mubr.bf16.gmra.mrb[88].mxu1 %v7764_v33  ;;  %v7834_v33 = vld [vmem:[%s8056_s30 + $0x238] ss:$52 sps:$4 sm:$0xff]  }
 0x2c0   : > { %5171 = vmatmul.mubr.bf16.gmra.mrb[24].mxu0 %v7765_v34  ;;  %4439 = vmatprep.mubr.bf16.mxu1 %v7766_v35  ;;  %v7833_v34 = vld [vmem:[%s8056_s30 + $0x778] ss:$52 sps:$4 sm:$0xff]   ;;  %v7837_v35 = vld [vmem:[%s8056_s30 + $0x2a0] ss:$52 sps:$4 sm:$0xff]  }
 0x2c1   : > { %5178 = vmatprep.mubr.bf16.mxu0 %v7768_v37  ;;  %v7835_v37 = vld [vmem:[%s8056_s30 + $0x7e4] ss:$52 sps:$4 sm:$0xff]  }
 0x2c7   : > { %4440 = vmatmul.mubr.bf16.gmra.mrb[92].mxu1 %v7770_v38 }
 0x2c8   : > { %5179 = vmatmul.mubr.bf16.gmra.mrb[28].mxu0 %v7771_v40  ;;  %4447 = vmatprep.mubr.bf16.mxu1 %v7772_v41  ;;  %v7839_v41 = vld [vmem:[%s8056_s30 + $0x308] ss:$52 sps:$4 sm:$0xff]  }
 0x2c9   : > { %5186 = vmatprep.mubr.bf16.mxu0 %v7774_v42 }
 0x2cf   : > { %4448 = vmatmul.mubr.bf16.gmra.mrb[96].mxu1 %v7776_v43  ;;  %v7838_v43 = vld [vmem:[%s8056_s30 + $0x7e0] ss:$52 sps:$4 sm:$0xff]  }
 0x2d0   : > { %5187 = vmatmul.mubr.bf16.gmra.mrb[32].mxu0 %v7777_v45  ;;  %4455 = vmatprep.mubr.bf16.mxu1 %v7778_v46  ;;  %v7842_v45 = vld [vmem:[%s8056_s30 + $0x370] ss:$52 sps:$4 sm:$0xff]  }
 0x2d1   : > { %5194 = vmatprep.mubr.bf16.mxu0 %v7780_v48  ;;  %v7840_v48 = vld [vmem:[%s8056_s30 + $0x84c] ss:$52 sps:$4 sm:$0xff]  }
 0x2d7   : > { %4456 = vmatmul.mubr.bf16.gmra.mrb[100].mxu1 %v7782_v49 }
 0x2d8   : > { %5195 = vmatmul.mubr.bf16.gmra.mrb[36].mxu0 %v7783_v50  ;;  %4463 = vmatprep.mubr.bf16.mxu1 %v7784_v51  ;;  %v7844_v51 = vld [vmem:[%s8056_s30 + $0x3d8] ss:$52 sps:$4 sm:$0xff]  }
 0x2d9   : > { %5202 = vmatprep.mubr.bf16.mxu0 %v7786_v53 }
 0x2df   : > { %4464 = vmatmul.mubr.bf16.gmra.mrb[104].mxu1 %v7788_v54  ;;  %v7843_v54 = vld [vmem:[%s8056_s30 + $0x848] ss:$52 sps:$4 sm:$0xff]  }
 0x2e0   : > { %5203 = vmatmul.mubr.bf16.gmra.mrb[40].mxu0 %v7789_v57  ;;  %4471 = vmatprep.mubr.bf16.mxu1 %v7790_v58  ;;  %v7847_v57 = vld [vmem:[%s8056_s30 + $0x440] ss:$52 sps:$4 sm:$0xff]  }
 0x2e1   : > { %5210 = vmatprep.mubr.bf16.mxu0 %v7792_v59  ;;  %v7845_v59 = vld [vmem:[%s8056_s30 + $0x8b4] ss:$52 sps:$4 sm:$0xff]  }
 0x2e7   : > { %4472 = vmatmul.mubr.bf16.gmra.mrb[108].mxu1 %v7794_v60 }
 0x2e8   : > { %5211 = vmatmul.mubr.bf16.gmra.mrb[44].mxu0 %v7795_v62  ;;  %4479 = vmatprep.mubr.bf16.mxu1 %v7796_v63  ;;  %v7849_v63 = vld [vmem:[%s8056_s30 + $0x4a8] ss:$52 sps:$4 sm:$0xff]  }
 0x2e9   : > { %5218 = vmatprep.mubr.bf16.mxu0 %v7798_v2 }
 0x2ef   : > { %4480 = vmatmul.mubr.bf16.gmra.mrb[112].mxu1 %v7800_v3  ;;  %v7848_v3 = vld [vmem:[%s8056_s30 + $0x8b0] ss:$52 sps:$4 sm:$0xff]  }
 0x2f0   : > { %5219 = vmatmul.mubr.bf16.gmra.mrb[48].mxu0 %v7801_v4  ;;  %4487 = vmatprep.mubr.bf16.mxu1 %v7802_v5  ;;  %v7852_v4 = vld [vmem:[%s8056_s30 + $0x510] ss:$52 sps:$4 sm:$0xff]  }
 0x2f1   : > { %5226 = vmatprep.mubr.bf16.mxu0 %v7804_v7  ;;  %v7850_v7 = vld [vmem:[%s8056_s30 + $0x91c] ss:$52 sps:$4 sm:$0xff]  }
 0x2f7   : > { %4488 = vmatmul.mubr.bf16.gmra.mrb[116].mxu1 %v7806_v8 }
 0x2f8   : > { %5227 = vmatmul.mubr.bf16.gmra.mrb[52].mxu0 %v7807_v10  ;;  %4495 = vmatprep.mubr.bf16.mxu1 %v7808_v11  ;;  %v7854_v11 = vld [vmem:[%s8056_s30 + $0x578] ss:$52 sps:$4 sm:$0xff]  }
 0x2f9   : > { %5234 = vmatprep.mubr.bf16.mxu0 %v7810_v12 }
 0x2ff   : > { %4496 = vmatmul.mubr.bf16.gmra.mrb[120].mxu1 %v7812_v13  ;;  %v7853_v13 = vld [vmem:[%s8056_s30 + $0x918] ss:$52 sps:$4 sm:$0xff]  }
 0x300   : > { %5235 = vmatmul.mubr.bf16.gmra.mrb[56].mxu0 %v7813_v15  ;;  %4503 = vmatprep.mubr.bf16.mxu1 %v7814_v16  ;;  %v7857_v15 = vld [vmem:[%s8056_s30 + $0x5e0] ss:$52 sps:$4 sm:$0xff]  }
 0x301   : > { %5242 = vmatprep.mubr.bf16.mxu0 %v7816_v18  ;;  %v7855_v18 = vld [vmem:[%s8056_s30 + $0x984] ss:$52 sps:$4 sm:$0xff]  }
 0x307   : > { %4504 = vmatmul.mubr.bf16.gmra.mrb[124].mxu1 %v7818_v19 }
 0x308   : > { %5243 = vmatmul.mubr.bf16.gmra.mrb[60].mxu0 %v7819_v1  ;;  %6432 = vmatprep.mubr.msk.bf16.mxu1 %vm3548_vm0, %v7822_v20  ;;  %v7859_v20 = vld [vmem:[%s8056_s30 + $0x648] ss:$52 sps:$4 sm:$0xff]  }
 0x309   : > { %5250 = vmatprep.mubr.bf16.mxu0 %v7820_v21 }
 0x30f   : > { %6433 = vmatmul.mubr.msk.bf16.vlgmr.msra.gmra.mrb[128].mxu1 %vm3548_vm0, %v7824_v23  ;;  %v7858_v23 = vld [vmem:[%s8056_s30 + $0x980] ss:$52 sps:$4 sm:$0xff]  }
 0x310   : > { %5251 = vmatmul.mubr.bf16.gmra.mrb[64].mxu0 %v7823_v24  ;;  %6436 = vmatprep.mubr.msk.bf16.mxu1 %vm3548_vm0, %v7827_v26  ;;  %v7862_v24 = vld [vmem:[%s8056_s30 + $0x6b0] ss:$52 sps:$4 sm:$0xff]  }
 0x311   : > { %5258 = vmatprep.mubr.bf16.mxu0 %v7825_v27  ;;  %v7860_v27 = vld [vmem:[%s8056_s30 + $0x9ec] ss:$52 sps:$4 sm:$0xff]  }
 0x317   : > { %6437 = vmatmul.mubr.msk.bf16.gmra.mrb[132].mxu1 %vm3548_vm0, %v7829_v28 }
 0x318   : > { %5259 = vmatmul.mubr.bf16.gmra.mrb[68].mxu0 %v7828_v29  ;;  %6440 = vmatprep.mubr.msk.bf16.mxu1 %vm3548_vm0, %v7832_v30  ;;  %v7864_v30 = vld [vmem:[%s8056_s30 + $0x718] ss:$52 sps:$4 sm:$0xff]  }
 0x319   : > { %5266 = vmatprep.mubr.bf16.mxu0 %v7830_v31 }
 0x31f   : > { %6441 = vmatmul.mubr.msk.bf16.gmra.mrb[136].mxu1 %vm3548_vm0, %v7834_v33  ;;  %v7863_v33 = vld [vmem:[%s8056_s30 + $0x9e8] ss:$52 sps:$4 sm:$0xff]  }
 0x320   : > { %5267 = vmatmul.mubr.bf16.gmra.mrb[72].mxu0 %v7833_v34  ;;  %6444 = vmatprep.mubr.msk.bf16.mxu1 %vm3548_vm0, %v7837_v35  ;;  %v7867_v34 = vld [vmem:[%s8056_s30 + $0x780] ss:$52 sps:$4 sm:$0xff]  }
 0x321   : > { %5274 = vmatprep.mubr.bf16.mxu0 %v7835_v37  ;;  %v7865_v37 = vld [vmem:[%s8056_s30 + $0xa54] ss:$52 sps:$4 sm:$0xff]  }
 0x322   : > { %v8854_v38 = vpop.f32.mrb[32].mxu1 }
 0x323   : > { %v4323_v40 = vpop.f32.mrb[33].mxu1 }
 0x324   : > { %v8857_v42 = vpop.f32.mrb[34].mxu1 }
 0x325   : > { %v4326_v46 = vpop.f32.mrb[35].mxu1 }
 0x326   : > { %v7868_v46 = vld [vmem:[%s8056_s30 + $0xa50] ss:$52 sps:$4 sm:$0xff]  }
 0x327   : > { %6445 = vmatmul.mubr.msk.bf16.gmra.mrb[140].mxu1 %vm3548_vm0, %v7839_v41 }
 0x328   : > { %5275 = vmatmul.mubr.bf16.gmra.mrb[76].mxu0 %v7838_v43  ;;  %6448 = vmatprep.mubr.msk.bf16.mxu1 %vm3548_vm0, %v7842_v45  ;;  %v7869_v43 = vld [vmem:[%s8056_s30 + $0x7e8] ss:$52 sps:$4 sm:$0xff]  }
 0x329   : > { %5282 = vmatprep.mubr.bf16.mxu0 %v7840_v48  ;;  %v7872_v48 = vld [vmem:[%s8056_s30 + $0x850] ss:$52 sps:$4 sm:$0xff]  }
 0x32a   : > { %v8864_v49 = vpop.f32.mrb[36].mxu1 }
 0x32b   : > { %v4331_v50 = vpop.f32.mrb[37].mxu1 }
 0x32c   : > { %v8867_v53 = vpop.f32.mrb[38].mxu1 }
 0x32d   : > { %v4334_v58 = vpop.f32.mrb[39].mxu1 }
 0x32e   : > { %v7874_v58 = vld [vmem:[%s8056_s30 + $0x8b8] ss:$52 sps:$4 sm:$0xff]  }
 0x32f   : > { %6449 = vmatmul.mubr.msk.bf16.gmra.mrb[144].mxu1 %vm3548_vm0, %v7844_v51  ;;  %v7870_v51 = vld [vmem:[%s8056_s30 + $0xabc] ss:$52 sps:$4 sm:$0xff]  }
 0x330   : > { %5283 = vmatmul.mubr.bf16.gmra.mrb[80].mxu0 %v7843_v54  ;;  %6452 = vmatprep.mubr.msk.bf16.mxu1 %vm3548_vm0, %v7847_v57 }
 0x331   : > { %5290 = vmatprep.mubr.bf16.mxu0 %v7845_v59 }
 0x332   : > { %v8874_v60 = vpop.f32.mrb[40].mxu1 }
 0x333   : > { %v4339_v62 = vpop.f32.mrb[41].mxu1 }
 0x334   : > { %v8877_v2 = vpop.f32.mrb[42].mxu1  ;;  %v7873_v62 = vld [vmem:[%s8056_s30 + $0xab8] ss:$52 sps:$4 sm:$0xff]  }
 0x335   : > { %v4342_v5 = vpop.f32.mrb[43].mxu1 }
 0x336   : > { %v8935_v5 = vld [vmem:[%s9388_s2] ss:$0 sm:$0xff] }
 0x337   : > { %6453 = vmatmul.mubr.msk.bf16.gmra.mrb[148].mxu1 %vm3548_vm0, %v7849_v63  ;;  %v7877_v63 = vld [vmem:[%s8056_s30 + $0x920] ss:$52 sps:$4 sm:$0xff]  }
 0x338   : > { %5291 = vmatmul.mubr.bf16.gmra.mrb[84].mxu0 %v7848_v3  ;;  %6456 = vmatprep.mubr.msk.bf16.mxu1 %vm3548_vm0, %v7852_v4  ;;  %v7875_v4 = vld [vmem:[%s8056_s30 + $0xb24] ss:$52 sps:$4 sm:$0xff]  }
 0x339   : > { %5298 = vmatprep.mubr.bf16.mxu0 %v7850_v7  ;;  %v6528_v7 = vadd.f32 %v8935_v5, %v8683_v36 }
 0x33a   : > { %v8884_v8 = vpop.f32.mrb[44].mxu1 }
 0x33b   : > { %v4347_v10 = vpop.f32.mrb[45].mxu1 }
 0x33c   : > { %v8887_v12 = vpop.f32.mrb[46].mxu1 }
 0x33d   : > { %v4350_v16 = vpop.f32.mrb[47].mxu1 }
 0x33e   : > { %v6530_v16 = vadd.f32 %v8935_v5, %v8686_v39  ;;  %v6532_v39 = vadd.f32 %v8935_v5, %v8691_v44 }
 0x33f   : > { %6457 = vmatmul.mubr.msk.bf16.gmra.mrb[152].mxu1 %vm3548_vm0, %v7854_v11 }
 0x340   : > { %5299 = vmatmul.mubr.bf16.gmra.mrb[88].mxu0 %v7853_v13  ;;  %6460 = vmatprep.mubr.msk.bf16.mxu1 %vm3548_vm0, %v7857_v15  ;;  %v7879_v15 = vld [vmem:[%s8056_s30 + $0x988] ss:$52 sps:$4 sm:$0xff]  }
 0x341   : > { %5306 = vmatprep.mubr.bf16.mxu0 %v7855_v18 }
 0x342   : > { %v8894_v19 = vpop.f32.mrb[48].mxu1 }
 0x343   : > { %v4355_v1 = vpop.f32.mrb[49].mxu1 }
 0x344   : > { %v8897_v21 = vpop.f32.mrb[50].mxu1 }
 0x345   : > { %v4358_v26 = vpop.f32.mrb[51].mxu1 }
 0x347   : > { %6461 = vmatmul.mubr.msk.bf16.gmra.mrb[156].mxu1 %vm3548_vm0, %v7859_v20 }
 0x348   : > { %5307 = vmatmul.mubr.bf16.gmra.mrb[92].mxu0 %v7858_v23  ;;  %6464 = vmatprep.mubr.msk.bf16.mxu1 %vm3548_vm0, %v7862_v24  ;;  %v7878_v23 = vld [vmem:[%s8056_s30 + $0xb20] ss:$52 sps:$4 sm:$0xff]   ;;  %v7882_v24 = vld [vmem:[%s8056_s30 + $0x9f0] ss:$52 sps:$4 sm:$0xff]  }
 0x349   : > { %5314 = vmatprep.mubr.bf16.mxu0 %v7860_v27 }
 0x34a   : > { %v8904_v28 = vpop.f32.mrb[52].mxu1 }
 0x34b   : > { %v4363_v29 = vpop.f32.mrb[53].mxu1 }
 0x34c   : > { %v8907_v31 = vpop.f32.mrb[54].mxu1  ;;  %v7880_v29 = vld [vmem:[%s8056_s30 + $0xb8c] ss:$52 sps:$4 sm:$0xff]  }
 0x34d   : > { %v4366_v35 = vpop.f32.mrb[55].mxu1 }
 0x34f   : > { %6465 = vmatmul.mubr.msk.bf16.gmra.mrb[160].mxu1 %vm3548_vm0, %v7864_v30 }
 0x350   : > { %5315 = vmatmul.mubr.bf16.gmra.mrb[96].mxu0 %v7863_v33  ;;  %6468 = vmatprep.mubr.msk.bf16.mxu1 %vm3548_vm0, %v7867_v34 }
 0x351   : > { %5322 = vmatprep.mubr.bf16.mxu0 %v7865_v37  ;;  %v7884_v37 = vld [vmem:[%s8056_s30 + $0xa58] ss:$52 sps:$4 sm:$0xff]  }
 0x352   : > { %v8914_v40 = vpop.f32.mrb[56].mxu1 }
 0x353   : > { %v4371_v41 = vpop.f32.mrb[57].mxu1 }
 0x354   : > { %v8917_v45 = vpop.f32.mrb[58].mxu1  ;;  %v6534_v41 = vadd.f32 %v8935_v5, %v8694_v47  ;;  %v6536_v47 = vadd.f32 %v8935_v5, %v8699_v52 }
 0x355   : > { %v4374_v50 = vpop.f32.mrb[59].mxu1 }
 0x356   : > { %v7883_v50 = vld [vmem:[%s8056_s30 + $0xb88] ss:$52 sps:$4 sm:$0xff]  }
 0x357   : > { %6469 = vmatmul.mubr.msk.bf16.gmra.mrb[164].mxu1 %vm3548_vm0, %v7869_v43 }
 0x358   : > { %5323 = vmatmul.mubr.bf16.gmra.mrb[100].mxu0 %v7868_v46  ;;  %6472 = vmatprep.mubr.msk.bf16.mxu1 %vm3548_vm0, %v7872_v48 }
 0x359   : > { %5330 = vmatprep.mubr.bf16.mxu0 %v7870_v51  ;;  %v7887_v51 = vld [vmem:[%s8056_s30 + $0xac0] ss:$52 sps:$4 sm:$0xff]  }
 0x35a   : > { %v8924_v54 = vpop.f32.mrb[60].mxu1 }
 0x35b   : > { %v4379_v57 = vpop.f32.mrb[61].mxu1 }
 0x35c   : > { %v8927_v59 = vpop.f32.mrb[62].mxu1 }
 0x35d   : > { %v4382_v3 = vpop.f32.mrb[63].mxu1 }
 0x35f   : > { %6473 = vmatmul.mubr.msk.bf16.gmra.mrb[168].mxu1 %vm3548_vm0, %v7874_v58 }
 0x360   : > { %5331 = vmatmul.mubr.bf16.gmra.mrb[104].mxu0 %v7873_v62  ;;  %6476 = vmatprep.mubr.msk.bf16.mxu1 %vm3548_vm0, %v7877_v63  ;;  %v7885_v62 = vld [vmem:[%s8056_s30 + $0xbf4] ss:$52 sps:$4 sm:$0xff]  }
 0x361   : > { %5338 = vmatprep.mubr.bf16.mxu0 %v7875_v4 }
 0x362   : > { %v8941_v10 = vpop.f32.mrb[64].mxu1 }
 0x363   : > { %v5124_v11 = vpop.f32.mrb[0].mxu0  ;;  %v4387_v13 = vpop.f32.mrb[65].mxu1 }
 0x364   : > { %v8946_v18 = vadd.f32 %v6528_v7, %v5124_v11  ;;  %v5126_v1 = vpop.f32.mrb[1].mxu0  ;;  %v8948_v20 = vpop.f32.mrb[66].mxu1  ;;  %v7889_v11 = vld [vmem:[%s8056_s30 + $0xb28] ss:$52 sps:$4 sm:$0xff]   ;;  %v6538_v13 = vadd.f32 %v8935_v5, %v8702_v55  ;;  %v6540_v55 = vadd.f32 %v8935_v5, %v8707_v61 }
 0x365   : > { %v5127_v26 = vpop.f32.mrb[2].mxu0  ;;  %v4390_v27 = vpop.f32.mrb[67].mxu1 }
 0x366   : > { %v8953_v36 = vadd.f32 %v6530_v16, %v5127_v26  ;;  %v5129_v30 = vpop.f32.mrb[3].mxu0 }
 0x367   : > { %6477 = vmatmul.mubr.msk.bf16.gmra.mrb[172].mxu1 %vm3548_vm0, %v7879_v15 }
 0x368   : > { %5339 = vmatmul.mubr.bf16.gmra.mrb[108].mxu0 %v7878_v23  ;;  %6480 = vmatprep.mubr.msk.bf16.mxu1 %vm3548_vm0, %v7882_v24  ;;  %v7888_v23 = vld [vmem:[%s8056_s30 + $0xbf0] ss:$52 sps:$4 sm:$0xff]  }
 0x369   : > { %5346 = vmatprep.mubr.bf16.mxu0 %v7880_v29  ;;  %v7892_v24 = vld [vmem:[%s8056_s30 + $0xb90] ss:$52 sps:$4 sm:$0xff]  }
 0x36a   : > { %v8959_v33 = vpop.f32.mrb[68].mxu1  ;;  %v7890_v29 = vld [vmem:[%s8056_s30 + $0xc5c] ss:$52 sps:$4 sm:$0xff]  }
 0x36b   : > { %v5132_v34 = vpop.f32.mrb[4].mxu0  ;;  %v4395_v35 = vpop.f32.mrb[69].mxu1 }
 0x36c   : > { %v8964_v43 = vadd.f32 %v6532_v39, %v5132_v34  ;;  %v5134_v46 = vpop.f32.mrb[5].mxu0  ;;  %v8966_v48 = vpop.f32.mrb[70].mxu1 }
 0x36d   : > { %v5135_v57 = vpop.f32.mrb[6].mxu0  ;;  %v4398_v58 = vpop.f32.mrb[71].mxu1 }
 0x36e   : > { %v8971_v44 = vadd.f32 %v6534_v41, %v5135_v57  ;;  %v5137_v63 = vpop.f32.mrb[7].mxu0  ;;  %v6542_v41 = vadd.f32 %v8935_v5, %v8710_v0  ;;  %v7893_v57 = vld [vmem:[%s8056_s30 + $0xc58] ss:$52 sps:$4 sm:$0xff]   ;;  %v7897_v58 = vld [vmem:[%s8056_s30 + $0xc60] ss:$52 sps:$4 sm:$0xff]   ;;  %v6544_v0 = vadd.f32 %v8935_v5, %v8715_v6  ;;  %v6548_v6 = vadd.f32 %v8935_v5, %v8723_v14 }
 0x36f   : > { %6481 = vmatmul.mubr.msk.bf16.gmra.mrb[176].mxu1 %vm3548_vm0, %v7884_v37  ;;  %v7894_v37 = vld [vmem:[%s8056_s30 + $0xbf8] ss:$52 sps:$4 sm:$0xff]   ;;  %v6552_v14 = vadd.f32 %v8935_v5, %v8735_v22  ;;  %v6556_v22 = vadd.f32 %v8935_v5, %v8743_v56  ;;  %v6560_v56 = vadd.f32 %v8935_v5, %v8854_v38  ;;  %v6564_v38 = vadd.f32 %v8935_v5, %v8864_v49 }
 0x370   : > { %5347 = vmatmul.mubr.bf16.gmra.mrb[112].mxu0 %v7883_v50  ;;  %6484 = vmatprep.mubr.msk.bf16.mxu1 %vm3548_vm0, %v7887_v51  ;;  %v6568_v49 = vadd.f32 %v8935_v5, %v8874_v60  ;;  %v6572_v60 = vadd.f32 %v8935_v5, %v8884_v8  ;;  %v6576_v8 = vadd.f32 %v8935_v5, %v8894_v19 }
 0x371   : > { %5354 = vmatprep.mubr.bf16.mxu0 %v7885_v62  ;;  %v6580_v19 = vadd.f32 %v8935_v5, %v8904_v28  ;;  %v6584_v28 = vadd.f32 %v8935_v5, %v8914_v40  ;;  %v6588_v40 = vadd.f32 %v8935_v5, %v8924_v54  ;;  %v6592_v54 = vadd.f32 %v8935_v5, %v8941_v10 }
 0x372   : > { %v8977_v3 = vpop.f32.mrb[72].mxu1 }
 0x373   : > { %v5140_v4 = vpop.f32.mrb[8].mxu0  ;;  %v4403_v7 = vpop.f32.mrb[73].mxu1 }
 0x374   : > { %v8982_v15 = vadd.f32 %v6536_v47, %v5140_v4  ;;  %v5142_v16 = vpop.f32.mrb[9].mxu0  ;;  %v8984_v1 = vpop.f32.mrb[74].mxu1  ;;  %v7895_v47 = vld [vmem:[%s8056_s30 + $0xcc4] ss:$52 sps:$4 sm:$0xff]  }
 0x375   : > { %v5143_v26 = vpop.f32.mrb[10].mxu0  ;;  %v4406_v27 = vpop.f32.mrb[75].mxu1  ;;  %v7899_v16 = vld [vmem:[%s8056_s30 + $0xcc8] ss:$52 sps:$4 sm:$0xff]  }
 0x376   : > { %v8989_v52 = vadd.f32 %v6538_v13, %v5143_v26  ;;  %v5145_v30 = vpop.f32.mrb[11].mxu0 }
 0x377   : > { %6485 = vmatmul.mubr.msk.bf16.gmra.mrb[180].mxu1 %vm3548_vm0, %v7889_v11 }
 0x378   : > { %5355 = vmatmul.mubr.bf16.gmra.mrb[116].mxu0 %v7888_v23  ;;  %6488 = vmatprep.mubr.msk.bf16.mxu1 %vm3548_vm0, %v7892_v24  ;;  %v6546_v23 = vadd.f32 %v8935_v5, %v8718_v9 }
 0x379   : > { %5362 = vmatprep.mubr.bf16.mxu0 %v7890_v29  ;;  %v7898_v29 = vld [vmem:[%s8056_s30 + $0xcc0] ss:$52 sps:$4 sm:$0xff]   ;;  %s5844_s30 = sshll.u32 %s9423_s9, 3 }
 0x37a   : > { %v8995_v39 = vpop.f32.mrb[76].mxu1  ;;  %s9164_s4 = scalar_lea.vmem %s9389_s3, %s5844_s30 }
 0x37b   : > { %v5148_v34 = vpop.f32.mrb[12].mxu0  ;;  %v4411_v35 = vpop.f32.mrb[77].mxu1 }
 0x37c   : > { %v9000_v46 = vadd.f32 %v6540_v55, %v5148_v34  ;;  %v5150_v50 = vpop.f32.mrb[13].mxu0  ;;  %v9002_v51 = vpop.f32.mrb[78].mxu1 }
 0x37d   : > { %v5151_v62 = vpop.f32.mrb[14].mxu0  ;;  %v4414_v63 = vpop.f32.mrb[79].mxu1  ;;  %v6550_v50 = vadd.f32 %v8935_v5, %v8726_v17  ;;  %v6554_v17 = vadd.f32 %v8935_v5, %v8738_v25  ;;  %v6558_v25 = vadd.f32 %v8935_v5, %v8746_v32  ;;  %v6562_v32 = vadd.f32 %v8935_v5, %v8857_v42 }
 0x37e   : > { %v9007_v61 = vadd.f32 %v6542_v41, %v5151_v62  ;;  %v5153_v4 = vpop.f32.mrb[15].mxu0  ;;  %v6566_v42 = vadd.f32 %v8935_v5, %v8867_v53  ;;  %v6570_v53 = vadd.f32 %v8935_v5, %v8877_v2  ;;  %v6574_v2 = vadd.f32 %v8935_v5, %v8887_v12 }
 0x37f   : > { %6489 = vmatmul.mubr.msk.bf16.gmra.mrb[184].mxu1 %vm3548_vm0, %v7894_v37  ;;  %v6578_v12 = vadd.f32 %v8935_v5, %v8897_v21  ;;  %v6582_v21 = vadd.f32 %v8935_v5, %v8907_v31  ;;  %v6586_v31 = vadd.f32 %v8935_v5, %v8917_v45  ;;  %v6590_v45 = vadd.f32 %v8935_v5, %v8927_v59 }
 0x380   : > { %5363 = vmatmul.mubr.bf16.gmra.mrb[120].mxu0 %v7893_v57  ;;  %6492 = vmatprep.mubr.msk.bf16.mxu1 %vm3548_vm0, %v7897_v58 }
 0x381   : > { %5370 = vmatprep.mubr.bf16.mxu0 %v7895_v47 }
 0x382   : > { %v9013_v7 = vpop.f32.mrb[80].mxu1 }
 0x383   : > { %v5156_v11 = vpop.f32.mrb[16].mxu0  ;;  %v4419_v13 = vpop.f32.mrb[81].mxu1 }
 0x384   : > { %v9018_v24 = vadd.f32 %v6544_v0, %v5156_v11  ;;  %v5158_v26 = vpop.f32.mrb[17].mxu0  ;;  %v9020_v27 = vpop.f32.mrb[82].mxu1 }
 0x385   : > { %v5159_v30 = vpop.f32.mrb[18].mxu0  ;;  %v4422_v55 = vpop.f32.mrb[83].mxu1 }
 0x386   : > { %v9023_v34 = vadd.f32 %v6546_v23, %v5159_v30  ;;  %v5161_v35 = vpop.f32.mrb[19].mxu0 }
 0x387   : > { %6493 = vmatmul.mubr.msk.bf16.gmra.mrb[188].mxu1 %vm3548_vm0, %v7899_v16 }
 0x388   : > { %5371 = vmatmul.mubr.bf16.gmra.mrb[124].mxu0 %v7898_v29 }
 0x38a   : > { %v9028_v37 = vpop.f32.mrb[84].mxu1 }
 0x38b   : > { %v5164_v9 = vpop.f32.mrb[20].mxu0  ;;  %v4427_v41 = vpop.f32.mrb[85].mxu1 }
 0x38c   : > { %v9032_v57 = vadd.f32 %v6548_v6, %v5164_v9  ;;  %v5166_v58 = vpop.f32.mrb[21].mxu0  ;;  %v9034_v62 = vpop.f32.mrb[86].mxu1 }
 0x38d   : > { %v5167_v63 = vpop.f32.mrb[22].mxu0  ;;  %v4430_v47 = vpop.f32.mrb[87].mxu1 }
 0x38e   : > { %v9036_v4 = vadd.f32 %v6550_v50, %v5167_v63  ;;  %v5169_v0 = vpop.f32.mrb[23].mxu0 }
 0x392   : > { %v9040_v11 = vpop.f32.mrb[88].mxu1 }
 0x393   : > { %v5172_v13 = vpop.f32.mrb[24].mxu0  ;;  %v4435_v16 = vpop.f32.mrb[89].mxu1 }
 0x394   : > { %v9044_v23 = vadd.f32 %v6552_v14, %v5172_v13  ;;  %v5174_v26 = vpop.f32.mrb[25].mxu0  ;;  %v9046_v29 = vpop.f32.mrb[90].mxu1 }
 0x395   : > { %v5175_v30 = vpop.f32.mrb[26].mxu0  ;;  %v4438_v55 = vpop.f32.mrb[91].mxu1 }
 0x396   : > { %v9048_v35 = vadd.f32 %v6554_v17, %v5175_v30  ;;  %v5177_v6 = vpop.f32.mrb[27].mxu0 }
 0x39a   : > { %v9052_v9 = vpop.f32.mrb[92].mxu1 }
 0x39b   : > { %v5180_v41 = vpop.f32.mrb[28].mxu0  ;;  %v4443_v50 = vpop.f32.mrb[93].mxu1 }
 0x39c   : > { %v9056_v58 = vadd.f32 %v6556_v22, %v5180_v41  ;;  %v5182_v63 = vpop.f32.mrb[29].mxu0  ;;  %v9058_v47 = vpop.f32.mrb[94].mxu1 }
 0x39d   : > { %v5183_v0 = vpop.f32.mrb[30].mxu0  ;;  %v4446_v14 = vpop.f32.mrb[95].mxu1 }
 0x39e   : > { %v9060_v13 = vadd.f32 %v6558_v25, %v5183_v0  ;;  %v5185_v16 = vpop.f32.mrb[31].mxu0 }
 0x3a2   : > { %v9064_v17 = vpop.f32.mrb[96].mxu1 }
 0x3a3   : > { %v5188_v26 = vpop.f32.mrb[32].mxu0  ;;  %v4451_v30 = vpop.f32.mrb[97].mxu1 }
 0x3a4   : > { %v9068_v55 = vadd.f32 %v6560_v56, %v5188_v26  ;;  %v5190_v6 = vpop.f32.mrb[33].mxu0  ;;  %v9070_v22 = vpop.f32.mrb[98].mxu1 }
 0x3a5   : > { %v5191_v41 = vpop.f32.mrb[34].mxu0  ;;  %v4454_v50 = vpop.f32.mrb[99].mxu1 }
 0x3a6   : > { %v9072_v25 = vadd.f32 %v6562_v32, %v5191_v41  ;;  %v5193_v63 = vpop.f32.mrb[35].mxu0 }
 0x3aa   : > { %v9076_v0 = vpop.f32.mrb[100].mxu1 }
 0x3ab   : > { %9390 = vst [vmem:[#allocation2_spill] sm:$0xff] %v9076_v0  ;;  %v5196_v14 = vpop.f32.mrb[36].mxu0  ;;  %v4459_v16 = vpop.f32.mrb[101].mxu1 }
 0x3ac   : > { %v9080_v56 = vadd.f32 %v6564_v38, %v5196_v14  ;;  %v5198_v26 = vpop.f32.mrb[37].mxu0  ;;  %v9082_v30 = vpop.f32.mrb[102].mxu1 }
 0x3ad   : > { %9391 = vst [vmem:[#allocation3_spill] sm:$0xff] %v9082_v30  ;;  %v5199_v6 = vpop.f32.mrb[38].mxu0  ;;  %v4462_v50 = vpop.f32.mrb[103].mxu1 }
 0x3ae   : > { %v9084_v32 = vadd.f32 %v6566_v42, %v5199_v6  ;;  %v5201_v41 = vpop.f32.mrb[39].mxu0 }
 0x3b2   : > { %v9088_v63 = vpop.f32.mrb[104].mxu1 }
 0x3b3   : > { %9392 = vst [vmem:[#allocation4_spill] sm:$0xff] %v9088_v63  ;;  %v5204_v0 = vpop.f32.mrb[40].mxu0  ;;  %v4467_v16 = vpop.f32.mrb[105].mxu1 }
 0x3b4   : > { %v9092_v38 = vadd.f32 %v6568_v49, %v5204_v0  ;;  %v5206_v14 = vpop.f32.mrb[41].mxu0  ;;  %v9094_v26 = vpop.f32.mrb[106].mxu1 }
 0x3b5   : > { %9393 = vst [vmem:[#allocation5_spill] sm:$0xff] %v9094_v26  ;;  %v5207_v30 = vpop.f32.mrb[42].mxu0  ;;  %v4470_v50 = vpop.f32.mrb[107].mxu1 }
 0x3b6   : > { %v9096_v42 = vadd.f32 %v6570_v53, %v5207_v30  ;;  %v5209_v6 = vpop.f32.mrb[43].mxu0 }
 0x3ba   : > { %v9100_v41 = vpop.f32.mrb[108].mxu1 }
 0x3bb   : > { %9394 = vst [vmem:[#allocation6_spill] sm:$0xff] %v9100_v41  ;;  %v5212_v63 = vpop.f32.mrb[44].mxu0  ;;  %v4475_v16 = vpop.f32.mrb[109].mxu1 }
 0x3bc   : > { %v9104_v0 = vadd.f32 %v6572_v60, %v5212_v63  ;;  %v5214_v49 = vpop.f32.mrb[45].mxu0  ;;  %v9106_v14 = vpop.f32.mrb[110].mxu1 }
 0x3bd   : > { %9395 = vst [vmem:[#allocation7_spill] sm:$0xff] %v9106_v14  ;;  %v5215_v26 = vpop.f32.mrb[46].mxu0  ;;  %v4478_v50 = vpop.f32.mrb[111].mxu1 }
 0x3be   : > { %v9108_v30 = vadd.f32 %v6574_v2, %v5215_v26  ;;  %v5217_v53 = vpop.f32.mrb[47].mxu0 }
 0x3c2   : > { %v9112_v6 = vpop.f32.mrb[112].mxu1 }
 0x3c3   : > { %9396 = vst [vmem:[#allocation8_spill] sm:$0xff] %v9112_v6  ;;  %v5220_v41 = vpop.f32.mrb[48].mxu0  ;;  %v4483_v16 = vpop.f32.mrb[113].mxu1 }
 0x3c4   : > { %v9116_v63 = vadd.f32 %v6576_v8, %v5220_v41  ;;  %v5222_v60 = vpop.f32.mrb[49].mxu0  ;;  %v9118_v49 = vpop.f32.mrb[114].mxu1 }
 0x3c5   : > { %9397 = vst [vmem:[#allocation9_spill] sm:$0xff] %v9118_v49  ;;  %v5223_v14 = vpop.f32.mrb[50].mxu0  ;;  %v4486_v50 = vpop.f32.mrb[115].mxu1 }
 0x3c6   : > { %v9120_v26 = vadd.f32 %v6578_v12, %v5223_v14  ;;  %v5225_v2 = vpop.f32.mrb[51].mxu0 }
 0x3ca   : > { %v9124_v53 = vpop.f32.mrb[116].mxu1 }
 0x3cb   : > { %9398 = vst [vmem:[#allocation10_spill] sm:$0xff] %v9124_v53  ;;  %v5228_v6 = vpop.f32.mrb[52].mxu0  ;;  %v4491_v16 = vpop.f32.mrb[117].mxu1 }
 0x3cc   : > { %v9128_v41 = vadd.f32 %v6580_v19, %v5228_v6  ;;  %v5230_v8 = vpop.f32.mrb[53].mxu0  ;;  %v9130_v60 = vpop.f32.mrb[118].mxu1 }
 0x3cd   : > { %9399 = vst [vmem:[#allocation11_spill] sm:$0xff] %v9130_v60  ;;  %v5231_v49 = vpop.f32.mrb[54].mxu0  ;;  %v4494_v50 = vpop.f32.mrb[119].mxu1 }
 0x3ce   : > { %v9132_v14 = vadd.f32 %v6582_v21, %v5231_v49  ;;  %v5233_v12 = vpop.f32.mrb[55].mxu0 }
 0x3d2   : > { %v9136_v2 = vpop.f32.mrb[120].mxu1 }
 0x3d3   : > { %9400 = vst [vmem:[#allocation12_spill] sm:$0xff] %v9136_v2  ;;  %v5236_v53 = vpop.f32.mrb[56].mxu0  ;;  %v4499_v16 = vpop.f32.mrb[121].mxu1 }
 0x3d4   : > { %v9140_v6 = vadd.f32 %v6584_v28, %v5236_v53  ;;  %v5238_v19 = vpop.f32.mrb[57].mxu0  ;;  %v9142_v8 = vpop.f32.mrb[122].mxu1 }
 0x3d5   : > { %9401 = vst [vmem:[#allocation13_spill] sm:$0xff] %v9142_v8  ;;  %v5239_v60 = vpop.f32.mrb[58].mxu0  ;;  %v4502_v49 = vpop.f32.mrb[123].mxu1 }
 0x3d6   : > { %v9144_v21 = vadd.f32 %v6586_v31, %v5239_v60  ;;  %v5241_v50 = vpop.f32.mrb[59].mxu0 }
 0x3da   : > { %v9148_v12 = vpop.f32.mrb[124].mxu1 }
 0x3db   : > { %9402 = vst [vmem:[#allocation14_spill] sm:$0xff] %v9148_v12  ;;  %v5244_v16 = vpop.f32.mrb[60].mxu0  ;;  %v4507_v2 = vpop.f32.mrb[125].mxu1 }
 0x3dc   : > { %v9152_v53 = vadd.f32 %v6588_v40, %v5244_v16  ;;  %v5246_v28 = vpop.f32.mrb[61].mxu0  ;;  %v9154_v19 = vpop.f32.mrb[126].mxu1  ;;  %v6594_v40 = vadd.f32 %v8935_v5, %v8948_v20  ;;  %v6596_v20 = vadd.f32 %v8935_v5, %v8959_v33 }
 0x3dd   : > { %9403 = vst [vmem:[#allocation15_spill] sm:$0xff] %v9154_v19  ;;  %v5247_v8 = vpop.f32.mrb[62].mxu0  ;;  %v4510_v49 = vpop.f32.mrb[127].mxu1 }
 0x3de   : > { %v9156_v60 = vadd.f32 %v6590_v45, %v5247_v8  ;;  %v5249_v31 = vpop.f32.mrb[63].mxu0 }
 0x3e2   : > { %v6434_v59 = vpop.f32.mrb[128].mxu1 }
 0x3e3   : > { %v5252_v2 = vpop.f32.mrb[64].mxu0  ;;  %v5422_v50 = vadd.f32 %v8964_v43, %v6434_v59  ;;  %v5413_v8 = vpop.f32.mrb[129].mxu1 }
 0x3e4   : > { %v9169_v16 = vadd.f32 %v6592_v54, %v5252_v2  ;;  %v5254_v10 = vpop.f32.mrb[65].mxu0  ;;  %v5414_v45 = vadd.f32 %v8946_v18, %v5413_v8  ;;  %v6435_v28 = vpop.f32.mrb[130].mxu1 }
 0x3e5   : > { %5670 = vst [vmem:[%s9164_s4 + $0x10] sm:$0xff] %v5422_v50  ;;  %v5255_v49 = vpop.f32.mrb[66].mxu0  ;;  %v5425_v31 = vadd.f32 %v8971_v44, %v6435_v28  ;;  %v5416_v19 = vpop.f32.mrb[131].mxu1  ;;  %v6598_v50 = vadd.f32 %v8935_v5, %v8966_v48  ;;  %v6600_v48 = vadd.f32 %v8935_v5, %v8977_v3 }
 0x3e6   : > { %5668 = vst [vmem:[%s9164_s4] sm:$0xff] %v5414_v45  ;;  %v9175_v12 = vadd.f32 %v6594_v40, %v5255_v49  ;;  %v5257_v43 = vpop.f32.mrb[67].mxu0  ;;  %v5417_v59 = vadd.f32 %v8953_v36, %v5416_v19 }
 0x3e7   : > { %5671 = vst [vmem:[%s9164_s4 + $0x18] sm:$0xff] %v5425_v31 }
 0x3e8   : > { %5669 = vst [vmem:[%s9164_s4 + $0x8] sm:$0xff] %v5417_v59  ;;  %v6602_v59 = vadd.f32 %v8935_v5, %v8984_v1  ;;  %v6604_v1 = vadd.f32 %v8935_v5, %v8995_v39 }
 0x3ea   : > { %v6438_v18 = vpop.f32.mrb[132].mxu1 }
 0x3eb   : > { %v5260_v54 = vpop.f32.mrb[68].mxu0  ;;  %v5438_v2 = vadd.f32 %v9000_v46, %v6438_v18  ;;  %v5429_v44 = vpop.f32.mrb[133].mxu1 }
 0x3ec   : > { %v9185_v8 = vadd.f32 %v6596_v20, %v5260_v54  ;;  %v5262_v40 = vpop.f32.mrb[69].mxu0  ;;  %v5430_v36 = vadd.f32 %v8982_v15, %v5429_v44  ;;  %v6439_v19 = vpop.f32.mrb[134].mxu1 }
 0x3ed   : > { %5674 = vst [vmem:[%s9164_s4 + $0x30] sm:$0xff] %v5438_v2  ;;  %v5263_v10 = vpop.f32.mrb[70].mxu0  ;;  %v5441_v33 = vadd.f32 %v9007_v61, %v6439_v19  ;;  %v5432_v45 = vpop.f32.mrb[135].mxu1 }
 0x3ee   : > { %5672 = vst [vmem:[%s9164_s4 + $0x20] sm:$0xff] %v5430_v36  ;;  %v9191_v28 = vadd.f32 %v6598_v50, %v5263_v10  ;;  %v5265_v46 = vpop.f32.mrb[71].mxu0  ;;  %v5433_v49 = vadd.f32 %v8989_v52, %v5432_v45  ;;  %v6606_v10 = vadd.f32 %v8935_v5, %v9002_v51  ;;  %v6608_v51 = vadd.f32 %v8935_v5, %v9013_v7 }
 0x3ef   : > { %5675 = vst [vmem:[%s9164_s4 + $0x38] sm:$0xff] %v5441_v33 }
 0x3f0   : > { %5673 = vst [vmem:[%s9164_s4 + $0x28] sm:$0xff] %v5433_v49 }
 0x3f2   : > { %v6442_v15 = vpop.f32.mrb[136].mxu1 }
 0x3f3   : > { %v5268_v31 = vpop.f32.mrb[72].mxu0  ;;  %v5454_v43 = vadd.f32 %v9032_v57, %v6442_v15  ;;  %v5445_v61 = vpop.f32.mrb[137].mxu1 }
 0x3f4   : > { %v9201_v20 = vadd.f32 %v6600_v48, %v5268_v31  ;;  %v5270_v18 = vpop.f32.mrb[73].mxu0  ;;  %v5446_v52 = vadd.f32 %v9018_v24, %v5445_v61  ;;  %v6443_v54 = vpop.f32.mrb[138].mxu1 }
 0x3f5   : > { %5678 = vst [vmem:[%s9164_s4 + $0x50] sm:$0xff] %v5454_v43  ;;  %v5271_v2 = vpop.f32.mrb[74].mxu0  ;;  %v5457_v3 = vadd.f32 %v9036_v4, %v6443_v54  ;;  %v5448_v44 = vpop.f32.mrb[139].mxu1 }
 0x3f6   : > { %5676 = vst [vmem:[%s9164_s4 + $0x40] sm:$0xff] %v5446_v52  ;;  %v9207_v50 = vadd.f32 %v6602_v59, %v5271_v2  ;;  %v5273_v57 = vpop.f32.mrb[75].mxu0  ;;  %v5449_v40 = vadd.f32 %v9023_v34, %v5448_v44  ;;  %v6610_v59 = vadd.f32 %v8935_v5, %v9020_v27  ;;  %v6612_v27 = vadd.f32 %v8935_v5, %v9028_v37 }
 0x3f7   : > { %5679 = vst [vmem:[%s9164_s4 + $0x58] sm:$0xff] %v5457_v3 }
 0x3f8   : > { %5677 = vst [vmem:[%s9164_s4 + $0x48] sm:$0xff] %v5449_v40 }
 0x3fa   : > { %v6446_v24 = vpop.f32.mrb[140].mxu1 }
 0x3fb   : > { %v5276_v36 = vpop.f32.mrb[76].mxu0  ;;  %v5470_v19 = vadd.f32 %v9056_v58, %v6446_v24  ;;  %v5461_v4 = vpop.f32.mrb[141].mxu1  ;;  %v6614_v24 = vadd.f32 %v8935_v5, %v9034_v62  ;;  %v6616_v62 = vadd.f32 %v8935_v5, %v9040_v11 }
 0x3fc   : > { %v9217_v33 = vadd.f32 %v6604_v1, %v5276_v36  ;;  %v5278_v45 = vpop.f32.mrb[77].mxu0  ;;  %v5462_v34 = vadd.f32 %v9044_v23, %v5461_v4  ;;  %v6447_v46 = vpop.f32.mrb[142].mxu1 }
 0x3fd   : > { %5682 = vst [vmem:[%s9164_s4 + $0x70] sm:$0xff] %v5470_v19  ;;  %v5279_v49 = vpop.f32.mrb[78].mxu0  ;;  %v5473_v39 = vadd.f32 %v9060_v13, %v6447_v46  ;;  %v5464_v48 = vpop.f32.mrb[143].mxu1 }
 0x3fe   : > { %5680 = vst [vmem:[%s9164_s4 + $0x60] sm:$0xff] %v5462_v34  ;;  %v9223_v15 = vadd.f32 %v6606_v10, %v5279_v49  ;;  %v5281_v58 = vpop.f32.mrb[79].mxu0  ;;  %v5465_v31 = vadd.f32 %v9048_v35, %v5464_v48  ;;  %v6618_v48 = vadd.f32 %v8935_v5, %v9046_v29  ;;  %v6620_v29 = vadd.f32 %v8935_v5, %v9052_v9 }
 0x3ff   : > { %5683 = vst [vmem:[%s9164_s4 + $0x78] sm:$0xff] %v5473_v39 }
 0x400   : > { %5681 = vst [vmem:[%s9164_s4 + $0x68] sm:$0xff] %v5465_v31 }
 0x402   : > { %v6450_v23 = vpop.f32.mrb[144].mxu1 }
 0x403   : > { %v5284_v43 = vpop.f32.mrb[80].mxu0  ;;  %v5486_v61 = vadd.f32 %v9080_v56, %v6450_v23  ;;  %v5477_v13 = vpop.f32.mrb[145].mxu1 }
 0x404   : > { %v9233_v18 = vadd.f32 %v6608_v51, %v5284_v43  ;;  %v5286_v52 = vpop.f32.mrb[81].mxu0  ;;  %v5478_v35 = vadd.f32 %v9068_v55, %v5477_v13  ;;  %v6451_v54 = vpop.f32.mrb[146].mxu1 }
 0x405   : > { %5686 = vst [vmem:[%s9164_s4 + $0x90] sm:$0xff] %v5486_v61  ;;  %v5287_v2 = vpop.f32.mrb[82].mxu0  ;;  %v5489_v7 = vadd.f32 %v9084_v32, %v6451_v54  ;;  %v5480_v3 = vpop.f32.mrb[147].mxu1 }
 0x406   : > { %5684 = vst [vmem:[%s9164_s4 + $0x80] sm:$0xff] %v5478_v35  ;;  %v9239_v44 = vadd.f32 %v6610_v59, %v5287_v2  ;;  %v5289_v56 = vpop.f32.mrb[83].mxu0  ;;  %v5481_v57 = vadd.f32 %v9072_v25, %v5480_v3  ;;  %v6622_v35 = vadd.f32 %v8935_v5, %v9058_v47  ;;  %v6624_v47 = vadd.f32 %v8935_v5, %v9064_v17 }
 0x407   : > { %5687 = vst [vmem:[%s9164_s4 + $0x98] sm:$0xff] %v5489_v7 }
 0x408   : > { %5685 = vst [vmem:[%s9164_s4 + $0x88] sm:$0xff] %v5481_v57 }
 0x40a   : > { %v6454_v55 = vpop.f32.mrb[148].mxu1 }
 0x40b   : > { %v5292_v40 = vpop.f32.mrb[84].mxu0  ;;  %v5502_v1 = vadd.f32 %v9104_v0, %v6454_v55  ;;  %v5493_v32 = vpop.f32.mrb[149].mxu1 }
 0x40c   : > { %v9249_v36 = vadd.f32 %v6612_v27, %v5292_v40  ;;  %v5294_v19 = vpop.f32.mrb[85].mxu0  ;;  %v5494_v25 = vadd.f32 %v9092_v38, %v5493_v32  ;;  %v6455_v4 = vpop.f32.mrb[150].mxu1 }
 0x40d   : > { %5690 = vst [vmem:[%s9164_s4 + $0xb0] sm:$0xff] %v5502_v1  ;;  %v5295_v10 = vpop.f32.mrb[86].mxu0  ;;  %v5505_v37 = vadd.f32 %v9108_v30, %v6455_v4  ;;  %v5496_v45 = vpop.f32.mrb[151].mxu1  ;;  %v6626_v1 = vadd.f32 %v8935_v5, %v9070_v22  ;;  %v9404_v22 = vld [vmem:[#allocation2_spill] sm:$0xff] }
 0x40e   : > { %5688 = vst [vmem:[%s9164_s4 + $0xa0] sm:$0xff] %v5494_v25  ;;  %v9255_v34 = vadd.f32 %v6614_v24, %v5295_v10  ;;  %v5297_v0 = vpop.f32.mrb[87].mxu0  ;;  %v5497_v46 = vadd.f32 %v9096_v42, %v5496_v45  ;;  %v6628_v45 = vadd.f32 %v8935_v5, %v9404_v22 }
 0x40f   : > { %5691 = vst [vmem:[%s9164_s4 + $0xb8] sm:$0xff] %v5505_v37 }
 0x410   : > { %5689 = vst [vmem:[%s9164_s4 + $0xa8] sm:$0xff] %v5497_v46 }
 0x412   : > { %v6458_v38 = vpop.f32.mrb[152].mxu1 }
 0x413   : > { %v5300_v49 = vpop.f32.mrb[88].mxu0  ;;  %v5518_v39 = vadd.f32 %v9128_v41, %v6458_v38  ;;  %v5509_v30 = vpop.f32.mrb[153].mxu1 }
 0x414   : > { %v9265_v58 = vadd.f32 %v6616_v62, %v5300_v49  ;;  %v5302_v31 = vpop.f32.mrb[89].mxu0  ;;  %v5510_v42 = vadd.f32 %v9116_v63, %v5509_v30  ;;  %v6459_v51 = vpop.f32.mrb[154].mxu1  ;;  %v9405_v62 = vld [vmem:[#allocation3_spill] sm:$0xff] }
 0x415   : > { %5694 = vst [vmem:[%s9164_s4 + $0xd0] sm:$0xff] %v5518_v39  ;;  %v5303_v23 = vpop.f32.mrb[90].mxu0  ;;  %v5521_v11 = vadd.f32 %v9132_v14, %v6459_v51  ;;  %v5512_v43 = vpop.f32.mrb[155].mxu1  ;;  %v6630_v38 = vadd.f32 %v8935_v5, %v9405_v62 }
 0x416   : > { %5692 = vst [vmem:[%s9164_s4 + $0xc0] sm:$0xff] %v5510_v42  ;;  %v9271_v61 = vadd.f32 %v6618_v48, %v5303_v23  ;;  %v5305_v41 = vpop.f32.mrb[91].mxu0  ;;  %v5513_v13 = vadd.f32 %v9120_v26, %v5512_v43 }
 0x417   : > { %5695 = vst [vmem:[%s9164_s4 + $0xd8] sm:$0xff] %v5521_v11  ;;  %v9406_v11 = vld [vmem:[#allocation4_spill] sm:$0xff] }
 0x418   : > { %5693 = vst [vmem:[%s9164_s4 + $0xc8] sm:$0xff] %v5513_v13  ;;  %v6632_v43 = vadd.f32 %v8935_v5, %v9406_v11 }
 0x41a   : > { %v6462_v63 = vpop.f32.mrb[156].mxu1 }
 0x41b   : > { %v5308_v59 = vpop.f32.mrb[92].mxu0  ;;  %v5534_v52 = vadd.f32 %v9152_v53, %v6462_v63  ;;  %v5525_v14 = vpop.f32.mrb[157].mxu1 }
 0x41c   : > { %v9281_v54 = vadd.f32 %v6620_v29, %v5308_v59  ;;  %v5310_v2 = vpop.f32.mrb[93].mxu0  ;;  %v5526_v26 = vadd.f32 %v9140_v6, %v5525_v14  ;;  %v6463_v7 = vpop.f32.mrb[158].mxu1  ;;  %v9407_v29 = vld [vmem:[#allocation5_spill] sm:$0xff] }
 0x41d   : > { %5698 = vst [vmem:[%s9164_s4 + $0xf0] sm:$0xff] %v5534_v52  ;;  %v5311_v3 = vpop.f32.mrb[94].mxu0  ;;  %v5537_v9 = vadd.f32 %v9156_v60, %v6463_v7  ;;  %v5528_v56 = vpop.f32.mrb[159].mxu1  ;;  %v6634_v63 = vadd.f32 %v8935_v5, %v9407_v29 }
 0x41e   : > { %5696 = vst [vmem:[%s9164_s4 + $0xe0] sm:$0xff] %v5526_v26  ;;  %v9287_v57 = vadd.f32 %v6622_v35, %v5311_v3  ;;  %v5313_v53 = vpop.f32.mrb[95].mxu0  ;;  %v5529_v27 = vadd.f32 %v9144_v21, %v5528_v56 }
 0x41f   : > { %5699 = vst [vmem:[%s9164_s4 + $0xf8] sm:$0xff] %v5537_v9  ;;  %v9408_v9 = vld [vmem:[#allocation6_spill] sm:$0xff] }
 0x420   : > { %5697 = vst [vmem:[%s9164_s4 + $0xe8] sm:$0xff] %v5529_v27  ;;  %v6636_v56 = vadd.f32 %v8935_v5, %v9408_v9 }
 0x422   : > { %v6466_v6 = vpop.f32.mrb[160].mxu1 }
 0x423   : > { %v5316_v55 = vpop.f32.mrb[96].mxu0  ;;  %v5550_v40 = vadd.f32 %v9185_v8, %v6466_v6  ;;  %v5541_v60 = vpop.f32.mrb[161].mxu1 }
 0x424   : > { %v9297_v32 = vadd.f32 %v6624_v47, %v5316_v55  ;;  %v5318_v24 = vpop.f32.mrb[97].mxu0  ;;  %v5542_v21 = vadd.f32 %v9169_v16, %v5541_v60  ;;  %v6467_v19 = vpop.f32.mrb[162].mxu1  ;;  %v9409_v47 = vld [vmem:[#allocation7_spill] sm:$0xff] }
 0x425   : > { %5702 = vst [vmem:[%s9164_s4 + $0x110] sm:$0xff] %v5550_v40  ;;  %v5319_v25 = vpop.f32.mrb[98].mxu0  ;;  %v5553_v17 = vadd.f32 %v9191_v28, %v6467_v19  ;;  %v5544_v4 = vpop.f32.mrb[163].mxu1  ;;  %v6638_v6 = vadd.f32 %v8935_v5, %v9409_v47 }
 0x426   : > { %5700 = vst [vmem:[%s9164_s4 + $0x100] sm:$0xff] %v5542_v21  ;;  %v9303_v10 = vadd.f32 %v6626_v1, %v5319_v25  ;;  %v5321_v8 = vpop.f32.mrb[99].mxu0  ;;  %v5545_v37 = vadd.f32 %v9175_v12, %v5544_v4 }
 0x427   : > { %5703 = vst [vmem:[%s9164_s4 + $0x118] sm:$0xff] %v5553_v17  ;;  %v9410_v17 = vld [vmem:[#allocation8_spill] sm:$0xff] }
 0x428   : > { %5701 = vst [vmem:[%s9164_s4 + $0x108] sm:$0xff] %v5545_v37  ;;  %v6640_v4 = vadd.f32 %v8935_v5, %v9410_v17 }
 0x42a   : > { %v6470_v16 = vpop.f32.mrb[164].mxu1 }
 0x42b   : > { %v5324_v0 = vpop.f32.mrb[100].mxu0  ;;  %v5566_v46 = vadd.f32 %v9217_v33, %v6470_v16  ;;  %v5557_v28 = vpop.f32.mrb[165].mxu1 }
 0x42c   : > { %v6629_v49 = vadd.f32 %v6628_v45, %v5324_v0  ;;  %v5326_v39 = vpop.f32.mrb[101].mxu0  ;;  %v5558_v12 = vadd.f32 %v9201_v20, %v5557_v28  ;;  %v6471_v30 = vpop.f32.mrb[166].mxu1 }
 0x42d   : > { %5706 = vst [vmem:[%s9164_s4 + $0x130] sm:$0xff] %v5566_v46  ;;  %v5327_v48 = vpop.f32.mrb[102].mxu0  ;;  %v5569_v31 = vadd.f32 %v9223_v15, %v6471_v30  ;;  %v5560_v42 = vpop.f32.mrb[167].mxu1  ;;  %v9412_v30 = vld [vmem:[#allocation10_spill] sm:$0xff] }
 0x42e   : > { %5704 = vst [vmem:[%s9164_s4 + $0x120] sm:$0xff] %v5558_v12  ;;  %v6631_v51 = vadd.f32 %v6630_v38, %v5327_v48  ;;  %v5329_v23 = vpop.f32.mrb[103].mxu0  ;;  %v5561_v33 = vadd.f32 %v9207_v50, %v5560_v42  ;;  %v6644_v48 = vadd.f32 %v8935_v5, %v9412_v30 }
 0x42f   : > { %5707 = vst [vmem:[%s9164_s4 + $0x138] sm:$0xff] %v5569_v31 }
 0x430   : > { %5705 = vst [vmem:[%s9164_s4 + $0x128] sm:$0xff] %v5561_v33 }
 0x432   : > { %v6474_v41 = vpop.f32.mrb[168].mxu1 }
 0x433   : > { %v5332_v20 = vpop.f32.mrb[104].mxu0  ;;  %v5582_v13 = vadd.f32 %v9249_v36, %v6474_v41  ;;  %v5573_v15 = vpop.f32.mrb[169].mxu1 }
 0x434   : > { %v6633_v59 = vadd.f32 %v6632_v43, %v5332_v20  ;;  %v5334_v52 = vpop.f32.mrb[105].mxu0  ;;  %v5574_v50 = vadd.f32 %v9233_v18, %v5573_v15  ;;  %v6475_v14 = vpop.f32.mrb[170].mxu1 }
 0x435   : > { %5710 = vst [vmem:[%s9164_s4 + $0x150] sm:$0xff] %v5582_v13  ;;  %v5335_v35 = vpop.f32.mrb[106].mxu0  ;;  %v5585_v2 = vadd.f32 %v9255_v34, %v6475_v14  ;;  %v5576_v26 = vpop.f32.mrb[171].mxu1 }
 0x436   : > { %5708 = vst [vmem:[%s9164_s4 + $0x140] sm:$0xff] %v5574_v50  ;;  %v6635_v7 = vadd.f32 %v6634_v63, %v5335_v35  ;;  %v5337_v3 = vpop.f32.mrb[107].mxu0  ;;  %v5577_v36 = vadd.f32 %v9239_v44, %v5576_v26  ;;  %v9414_v50 = vld [vmem:[#allocation12_spill] sm:$0xff] }
 0x437   : > { %5711 = vst [vmem:[%s9164_s4 + $0x158] sm:$0xff] %v5585_v2  ;;  %v9415_v3 = vld [vmem:[#allocation13_spill] sm:$0xff] }
 0x438   : > { %5709 = vst [vmem:[%s9164_s4 + $0x148] sm:$0xff] %v5577_v36 }
 0x43a   : > { %v6478_v53 = vpop.f32.mrb[172].mxu1 }
 0x43b   : > { %v5340_v18 = vpop.f32.mrb[108].mxu0  ;;  %v5598_v27 = vadd.f32 %v9281_v54, %v6478_v53  ;;  %v5589_v34 = vpop.f32.mrb[173].mxu1 }
 0x43c   : > { %v6637_v55 = vadd.f32 %v6636_v56, %v5340_v18  ;;  %v5342_v40 = vpop.f32.mrb[109].mxu0  ;;  %v5590_v44 = vadd.f32 %v9265_v58, %v5589_v34  ;;  %v6479_v60 = vpop.f32.mrb[174].mxu1 }
 0x43d   : > { %5714 = vst [vmem:[%s9164_s4 + $0x170] sm:$0xff] %v5598_v27  ;;  %v5343_v1 = vpop.f32.mrb[110].mxu0  ;;  %v5601_v24 = vadd.f32 %v9287_v57, %v6479_v60  ;;  %v5592_v21 = vpop.f32.mrb[175].mxu1  ;;  %v9411_v57 = vld [vmem:[#allocation9_spill] sm:$0xff]  ;;  %v9416_v40 = vld [vmem:[#allocation14_spill] sm:$0xff] }
 0x43e   : > { %5712 = vst [vmem:[%s9164_s4 + $0x160] sm:$0xff] %v5590_v44  ;;  %v6639_v19 = vadd.f32 %v6638_v6, %v5343_v1  ;;  %v5345_v25 = vpop.f32.mrb[111].mxu0  ;;  %v5593_v54 = vadd.f32 %v9271_v61, %v5592_v21  ;;  %v6642_v45 = vadd.f32 %v8935_v5, %v9411_v57  ;;  %v9417_v21 = vld [vmem:[#allocation15_spill] sm:$0xff] }
 0x43f   : > { %5715 = vst [vmem:[%s9164_s4 + $0x178] sm:$0xff] %v5601_v24 }
 0x440   : > { %5713 = vst [vmem:[%s9164_s4 + $0x168] sm:$0xff] %v5593_v54 }
 0x442   : > { %v6482_v8 = vpop.f32.mrb[176].mxu1 }
 0x443   : > { %v5348_v58 = vpop.f32.mrb[112].mxu0  ;;  %v5614_v37 = vadd.f32 %v6629_v49, %v6482_v8  ;;  %v5605_v22 = vpop.f32.mrb[177].mxu1 }
 0x444   : > { %v6641_v16 = vadd.f32 %v6640_v4, %v5348_v58  ;;  %v5350_v0 = vpop.f32.mrb[113].mxu0  ;;  %v5606_v46 = vadd.f32 %v9297_v32, %v5605_v22  ;;  %v6483_v61 = vpop.f32.mrb[178].mxu1 }
 0x445   : > { %5718 = vst [vmem:[%s9164_s4 + $0x190] sm:$0xff] %v5614_v37  ;;  %v5351_v28 = vpop.f32.mrb[114].mxu0  ;;  %v5617_v62 = vadd.f32 %v6631_v51, %v6483_v61  ;;  %v5608_v38 = vpop.f32.mrb[179].mxu1  ;;  %v9413_v51 = vld [vmem:[#allocation11_spill] sm:$0xff] }
 0x446   : > { %5716 = vst [vmem:[%s9164_s4 + $0x180] sm:$0xff] %v5606_v46  ;;  %v6643_v39 = vadd.f32 %v6642_v45, %v5351_v28  ;;  %v5353_v12 = vpop.f32.mrb[115].mxu0  ;;  %v5609_v49 = vadd.f32 %v9303_v10, %v5608_v38  ;;  %v6646_v33 = vadd.f32 %v8935_v5, %v9413_v51  ;;  %v7916_v5 = vld [vmem:[%s9388_s2] ss:$0 sm:$0xff] }
 0x447   : > { %5719 = vst [vmem:[%s9164_s4 + $0x198] sm:$0xff] %v5617_v62  ;;  %v6648_v14 = vadd.f32 %v7916_v5, %v9414_v50  ;;  %v6650_v36 = vadd.f32 %v7916_v5, %v9415_v3  ;;  %v6652_v44 = vadd.f32 %v7916_v5, %v9416_v40 }
 0x448   : > { %5717 = vst [vmem:[%s9164_s4 + $0x188] sm:$0xff] %v5609_v49 }
 0x44a   : > { %v6486_v31 = vpop.f32.mrb[180].mxu1 }
 0x44b   : > { %v5356_v42 = vpop.f32.mrb[116].mxu0  ;;  %v5630_v32 = vadd.f32 %v6637_v55, %v6486_v31  ;;  %v5621_v23 = vpop.f32.mrb[181].mxu1 }
 0x44c   : > { %v6645_v11 = vadd.f32 %v6644_v48, %v5356_v42  ;;  %v5358_v43 = vpop.f32.mrb[117].mxu0  ;;  %v5622_v41 = vadd.f32 %v6633_v59, %v5621_v23  ;;  %v6487_v20 = vpop.f32.mrb[182].mxu1 }
 0x44d   : > { %5722 = vst [vmem:[%s9164_s4 + $0x1b0] sm:$0xff] %v5630_v32  ;;  %v5359_v10 = vpop.f32.mrb[118].mxu0  ;;  %v5633_v13 = vadd.f32 %v6639_v19, %v6487_v20  ;;  %v5624_v15 = vpop.f32.mrb[183].mxu1  ;;  %v6654_v19 = vadd.f32 %v7916_v5, %v9417_v21 }
 0x44e   : > { %5720 = vst [vmem:[%s9164_s4 + $0x1a0] sm:$0xff] %v5622_v41  ;;  %v6647_v29 = vadd.f32 %v6646_v33, %v5359_v10  ;;  %v5361_v63 = vpop.f32.mrb[119].mxu0  ;;  %v5625_v52 = vadd.f32 %v6635_v7, %v5624_v15 }
 0x44f   : > { %5723 = vst [vmem:[%s9164_s4 + $0x1b8] sm:$0xff] %v5633_v13 }
 0x450   : > { %5721 = vst [vmem:[%s9164_s4 + $0x1a8] sm:$0xff] %v5625_v52 }
 0x452   : > { %v6490_v59 = vpop.f32.mrb[184].mxu1 }
 0x453   : > { %v5364_v35 = vpop.f32.mrb[120].mxu0  ;;  %v5646_v2 = vadd.f32 %v6645_v11, %v6490_v59  ;;  %v5637_v26 = vpop.f32.mrb[185].mxu1 }
 0x454   : > { %v6649_v9 = vadd.f32 %v6648_v14, %v5364_v35  ;;  %v5366_v56 = vpop.f32.mrb[121].mxu0  ;;  %v5638_v7 = vadd.f32 %v6641_v16, %v5637_v26  ;;  %v6491_v53 = vpop.f32.mrb[186].mxu1 }
 0x455   : > { %5726 = vst [vmem:[%s9164_s4 + $0x1d0] sm:$0xff] %v5646_v2  ;;  %v5367_v18 = vpop.f32.mrb[122].mxu0  ;;  %v5649_v27 = vadd.f32 %v6647_v29, %v6491_v53  ;;  %v5640_v34 = vpop.f32.mrb[187].mxu1 }
 0x456   : > { %5724 = vst [vmem:[%s9164_s4 + $0x1c0] sm:$0xff] %v5638_v7  ;;  %v6651_v47 = vadd.f32 %v6650_v36, %v5367_v18  ;;  %v5369_v6 = vpop.f32.mrb[123].mxu0  ;;  %v5641_v55 = vadd.f32 %v6643_v39, %v5640_v34 }
 0x457   : > { %5727 = vst [vmem:[%s9164_s4 + $0x1d8] sm:$0xff] %v5649_v27 }
 0x458   : > { %5725 = vst [vmem:[%s9164_s4 + $0x1c8] sm:$0xff] %v5641_v55 }
 0x45a   : > { %v6494_v60 = vpop.f32.mrb[188].mxu1 }
 0x45b   : > { %v5372_v1 = vpop.f32.mrb[124].mxu0  ;;  %v5653_v24 = vpop.f32.mrb[189].mxu1 }
 0x45c   : > { %v6653_v25 = vadd.f32 %v6652_v44, %v5372_v1  ;;  %v5374_v54 = vpop.f32.mrb[125].mxu0  ;;  %v5654_v17 = vadd.f32 %v6649_v9, %v5653_v24  ;;  %v6495_v4 = vpop.f32.mrb[190].mxu1 }
 0x45d   : > { %v5375_v8 = vpop.f32.mrb[126].mxu0  ;;  %v5656_v58 = vpop.f32.mrb[191].mxu1 }
 0x45e   : > { %v5662_v37 = vadd.f32 %v6653_v25, %v6494_v60  ;;  %5728 = vst [vmem:[%s9164_s4 + $0x1e0] sm:$0xff] %v5654_v17  ;;  %v6655_v22 = vadd.f32 %v6654_v19, %v5375_v8  ;;  %v5377_v57 = vpop.f32.mrb[127].mxu0  ;;  %v5657_v45 = vadd.f32 %v6651_v47, %v5656_v58 }
 0x460   : > { %5730 = vst [vmem:[%s9164_s4 + $0x1f0] sm:$0xff] %v5662_v37  ;;  %v5665_v16 = vadd.f32 %v6655_v22, %v6495_v4  ;;  %5729 = vst [vmem:[%s9164_s4 + $0x1e8] sm:$0xff] %v5657_v45 }
 0x462   : > { %5731 = vst [vmem:[%s9164_s4 + $0x1f8] sm:$0xff] %v5665_v16 }
 0x463 PF: > { %s13_s14 = sadd.s32 1, %s7939_s14   ;;  %s9418_s12 = smov %s7935_s13 }
 0x464   : > { %p10_p5 = scmp.ge.s32.totalorder %s13_s14, 18   ;;  %s9419_s13 = smov %s9421_s15 }
 0x466   :  { %12 = sbr.rel (!%p10_p5) target bundleno = 2 (0x2), region = 68 }

</bundles_post_ra>
